<compile_context>
chip_gen: v5e
topology: v5e:2x2
jax: 0.10.0
libtpu: 0.0.40
codegen_flags: <defaults>
</compile_context>

<pallas_src>
import functools

import jax
import jax.numpy as jnp
from jax import lax
from jax.experimental import pallas as pl
from jax.experimental.pallas import tpu as pltpu


def _round_up(x, m):
    return (x + m - 1) // m * m


def _pick_tile_h(H, wp, cp, strip_itemsize, budget_bytes):
    """Largest row tile whose (conservative) working set fits the VMEM budget."""
    cands = sorted(set([min(H, 8)] + list(range(8, H + 1, 8)) + [H]))
    best = cands[0]
    for th in cands:
        rows = th + 4
        strip = 2 * rows * wp * cp * strip_itemsize              # halo-strip double buffer
        outbuf = 2 * th * wp * cp * 4                            # output block double buffer
        temps = (3 * rows + 5 * (th + 2) + 2 * th) * wp * cp * 4  # shifted copies + accumulators
        weights = 2 * (2 * 9 * cp * cp * strip_itemsize + 2 * cp * 4)
        if strip + outbuf + temps + weights <= budget_bytes:
            best = th
    return best


def _residual_block_kernel(x_hbm, w1_ref, b1_ref, w2_ref, b2_ref,
                           out_ref, xstrip, sem, *, H, W):
    """One (image, row-tile) grid step.

    x_hbm  : (N, hp+4, Wp, cp) zero-padded NHWC input, left in HBM (pl.ANY).
    w*_ref : (9, cp, cp) tap-major (ky, kx) weights, VMEM resident.
    b*_ref : (1, cp) f32 biases.
    out_ref: (1, th, Wp, cp) output block (auto-pipelined).
    xstrip : VMEM (2, th+4, Wp, cp) manual double buffer;  sem: DMA sems (2,).
    """
    _, th, wp, cp = out_ref.shape
    rows = xstrip.shape[1]                    # th + 4
    n = pl.program_id(0)
    h = pl.program_id(1)
    nh = pl.num_programs(1)
    slot = h % 2

    def strip_copy(h_idx, s):
        return pltpu.make_async_copy(
            x_hbm.at[n, pl.ds(h_idx * th, rows)], xstrip.at[s], sem.at[s])

    @pl.when(h == 0)                          # prime the per-image DMA chain
    def _():
        strip_copy(0, 0).start()

    @pl.when(h + 1 < nh)                      # prefetch next strip BEFORE the wait
    def _():
        strip_copy(h + 1, (h + 1) % 2).start()

    strip_copy(h, slot).wait()

    s_len = rows * wp
    m1 = (th + 2) * wp                        # conv1 window rows: (th+2, Wp)
    m2 = th * wp                              # conv2 / output window rows: (th, Wp)

    # Flatten the strip once (free: wp % 8 == 0).  kx-shifted copies give every
    # tap as an *aligned* row window; wrapped rows only reach masked/discarded
    # output positions.  (pltpu.roll(x2, s_len - kx, 0) puts this on the XLU.)
    x2 = xstrip[slot].reshape(s_len, cp)
    xs = [x2, jnp.roll(x2, -1, axis=0), jnp.roll(x2, -2, axis=0)]

    def conv3x3(srcs, m, w_ref):
        acc = None
        for ky in range(3):
            base = ky * wp                    # multiple of 8 -> aligned slice
            for kx in range(3):
                tap = srcs[kx][base:base + m, :]
                d = jnp.dot(tap, w_ref[3 * ky + kx],
                            preferred_element_type=jnp.float32)
                acc = d if acc is None else acc + d
        return acc

    # conv1 + bias + ReLU over the (th+2, Wp) window (1-pixel halo for conv2).
    y1 = jnp.maximum(conv3x3(xs, m1, w1_ref) + b1_ref[...], 0.0)

    # conv2's SAME padding: relu(conv1) must be zero outside the HxW image.
    y1 = y1.reshape(th + 2, wp, cp)
    row = lax.broadcasted_iota(jnp.int32, (th + 2, wp, 1), 0) + (h * th - 1)
    col = lax.broadcasted_iota(jnp.int32, (th + 2, wp, 1), 1) - 1
    inside = (row >= 0) & (row < H) & (col >= 0) & (col < W)
    y1 = jnp.where(inside, y1, 0.0).astype(x2.dtype).reshape(m1, cp)

    ys = [y1, jnp.roll(y1, -1, axis=0), jnp.roll(y1, -2, axis=0)]
    y2 = conv3x3(ys, m2, w2_ref) + b2_ref[...]

    # Residual add (interior rows/cols of the original-x strip) + final ReLU.
    resid = xs[2][2 * wp:2 * wp + m2, :].astype(jnp.float32)
    out = jnp.maximum(y2 + resid, 0.0)
    out_ref[...] = out.reshape(1, th, wp, cp).astype(out_ref.dtype)


def residual_block_nhwc(x_nhwc, w1, b1, w2, b2, *,
                        compute_dtype=jnp.float32, tile_h=None,
                        vmem_budget_bytes=40 * 1024 * 1024):
    """Fused ResidualBlock.  x_nhwc: (N,H,W,C);  w*: torch OIHW (C,C,3,3);  b*: (C,)."""
    N, H, W, C = x_nhwc.shape
    cp = _round_up(C, 128)                    # lane-dense channels
    wp = _round_up(W + 4, 8)                  # sublane-aligned padded width
    itemsize = jnp.dtype(compute_dtype).itemsize
    th = tile_h if tile_h is not None else _pick_tile_h(H, wp, cp, itemsize,
                                                        vmem_budget_bytes)
    th = max(1, min(th, H))
    n_h = -(-H // th)
    hp = n_h * th

    # 2-px zero halo for the two stacked 3x3 convs; rows aligned to the tile,
    # width to Wp, channels to cp.
    xpad = jnp.pad(x_nhwc.astype(compute_dtype),
                   ((0, 0), (2, hp - H + 2), (2, wp - W - 2), (0, cp - C)))

    def prep_w(wk):                           # torch OIHW -> (9, cp_in, cp_out), tap-major
        wk = jnp.transpose(wk, (2, 3, 1, 0))
        wk = jnp.pad(wk, ((0, 0), (0, 0), (0, cp - C), (0, cp - C)))
        return wk.reshape(9, cp, cp).astype(compute_dtype)

    def prep_b(bk):
        return jnp.pad(bk, (0, cp - C)).reshape(1, cp).astype(jnp.float32)

    m1, m2 = (th + 2) * wp, th * wp
    flops = 2 * 9 * (m1 + m2) * cp * cp * N * n_h
    bytes_accessed = (xpad.size * itemsize + N * hp * wp * cp * 4
                      + 2 * (9 * cp * cp * itemsize + cp * 4))

    kernel = functools.partial(_residual_block_kernel, H=H, W=W)

    out = pl.pallas_call(
        kernel,
        out_shape=jax.ShapeDtypeStruct((N, hp, wp, cp), x_nhwc.dtype),
        grid=(N, n_h),
        in_specs=[
            pl.BlockSpec(memory_space=pl.ANY),                    # x stays in HBM
            pl.BlockSpec((9, cp, cp), lambda n, h: (0, 0, 0)),    # w1 (VMEM resident)
            pl.BlockSpec((1, cp), lambda n, h: (0, 0)),           # b1
            pl.BlockSpec((9, cp, cp), lambda n, h: (0, 0, 0)),    # w2
            pl.BlockSpec((1, cp), lambda n, h: (0, 0)),           # b2
        ],
        out_specs=pl.BlockSpec((1, th, wp, cp), lambda n, h: (n, h, 0, 0)),
        scratch_shapes=[
            pltpu.VMEM((2, th + 4, wp, cp), compute_dtype),       # halo-strip double buffer
            pltpu.SemaphoreType.DMA((2,)),
        ],
        compiler_params=pltpu.CompilerParams(
            # batch on separate TensorCores; the row-tile axis stays sequential
            # because the manual halo-DMA chain is primed at h == 0.
            dimension_semantics=("parallel", "arbitrary"),
            # <= 48 MiB is safe on v7x (64 MiB physical); raise to ~96 MiB on
            # v6e together with vmem_budget_bytes for bigger tiles.
            vmem_limit_bytes=48 * 1024 * 1024,
        ),
        cost_estimate=pl.CostEstimate(flops=flops, transcendentals=0,
                                      bytes_accessed=bytes_accessed),
    )(xpad, prep_w(w1), prep_b(b1), prep_w(w2), prep_b(b2))

    return out[:, :H, :W, :C]                                     # drop alignment padding


def residual_block(x_nchw, w1, b1, w2, b2, **kwargs):
    """PyTorch-layout entry point: x (N, C, H, W), weights OIHW.  Prefer the
    NHWC entry point in an NHWC pipeline to avoid these transposes."""
    x = jnp.transpose(x_nchw, (0, 2, 3, 1))
    out = residual_block_nhwc(x, w1, b1, w2, b2, **kwargs)
    return jnp.transpose(out, (0, 3, 1, 2)).astype(x_nchw.dtype)


def _reference(x, w1, b1, w2, b2):
    dn = ('NCHW', 'OIHW', 'NCHW')
    y = lax.conv_general_dilated(x, w1, (1, 1), 'SAME', dimension_numbers=dn)
    y = jnp.maximum(y + b1[None, :, None, None], 0.0)
    y = lax.conv_general_dilated(y, w2, (1, 1), 'SAME', dimension_numbers=dn)
    return jnp.maximum(x + y + b2[None, :, None, None], 0.0)


if __name__ == "__main__":
    key = jax.random.PRNGKey(0)
    N, C, H, W = 2, 4, 16, 16
    kx_, k1, k2, kb1, kb2 = jax.random.split(key, 5)

    bound = 1.0 / (C * 9.0) ** 0.5            # matches PyTorch Conv2d init range
    w1 = jax.random.uniform(k1, (C, C, 3, 3), jnp.float32, -bound, bound)
    w2 = jax.random.uniform(k2, (C, C, 3, 3), jnp.float32, -bound, bound)
    b1 = jax.random.uniform(kb1, (C,), jnp.float32, -bound, bound)
    b2 = jax.random.uniform(kb2, (C,), jnp.float32, -bound, bound)
    x = jax.random.normal(kx_, (N, C, H, W), jnp.float32)

    # f32 path (single row tile covering the whole image).  Tolerance accounts
    # for the TPU MXU's default f32 precision (bf16-based passes) on both sides.
    out = jax.block_until_ready(residual_block(x, w1, b1, w2, b2))
    ref = jax.block_until_ready(_reference(x, w1, b1, w2, b2))
    assert out.shape == (N, C, H, W)
    assert jnp.allclose(out, ref, atol=2e-2, rtol=2e-2), (
        f"f32 mismatch: max|err|={float(jnp.max(jnp.abs(out - ref))):.3e}")

    # Multi-row-tile path: exercises the halo masking across tile boundaries,
    # the double-buffered DMA chain, and non-pow2 width padding (W=20 -> Wp=24).
    x_t = jax.random.normal(jax.random.PRNGKey(1), (2, C, 32, 20), jnp.float32)
    out_t = jax.block_until_ready(residual_block(x_t, w1, b1, w2, b2, tile_h=8))
    ref_t = _reference(x_t, w1, b1, w2, b2)
    assert jnp.allclose(out_t, ref_t, atol=2e-2, rtol=2e-2), (
        f"tiled f32 mismatch: max|err|={float(jnp.max(jnp.abs(out_t - ref_t))):.3e}")

    # bf16 MXU-operand path (perf config for v6e/v7x): coarse check against an
    # input-quantized reference.
    out_bf = jax.block_until_ready(
        residual_block(x, w1, b1, w2, b2, compute_dtype=jnp.bfloat16))
    q = lambda a: a.astype(jnp.bfloat16).astype(jnp.float32)
    ref_bf = _reference(q(x), q(w1), b1, q(w2), b2)
    assert jnp.allclose(out_bf, ref_bf, atol=1e-1, rtol=1e-1), (
        f"bf16 mismatch: max|err|={float(jnp.max(jnp.abs(out_bf - ref_bf))):.3e}")

    print("KERNEL_OK")
</pallas_src>

<mosaic_0001>
module attributes {stable_mosaic.version = 11 : i64} {
  func.func @_residual_block_kernel(%arg0: i32, %arg1: i32, %arg2: memref<2x20x24x128xf32, #tpu.memory_space<any>>, %arg3: memref<9x128x128xf32, #tpu.memory_space<vmem>>, %arg4: memref<1x128xf32, #tpu.memory_space<vmem>>, %arg5: memref<9x128x128xf32, #tpu.memory_space<vmem>>, %arg6: memref<1x128xf32, #tpu.memory_space<vmem>>, %arg7: memref<1x16x24x128xf32, #tpu.memory_space<vmem>>, %arg8: memref<2x20x24x128xf32, #tpu.memory_space<vmem>>, %arg9: memref<2x!tpu.dma_semaphore, #tpu.memory_space<semaphore_mem>>) attributes {dimension_semantics = [#tpu.dimension_semantics<parallel>, #tpu.dimension_semantics<arbitrary>], iteration_bounds = array<i64: 2, 1>, scalar_prefetch = 0 : i64, scratch_operands = 2 : i64, tpu.core_type = #tpu.core_type<tc>, window_params = [{}, {pipeline_mode = #tpu.pipeline_mode<synchronous>, transform_indices = @transform_1, window_bounds = array<i64: 9, 128, 128>}, {pipeline_mode = #tpu.pipeline_mode<synchronous>, transform_indices = @transform_2, window_bounds = array<i64: 1, 128>}, {pipeline_mode = #tpu.pipeline_mode<synchronous>, transform_indices = @transform_3, window_bounds = array<i64: 9, 128, 128>}, {pipeline_mode = #tpu.pipeline_mode<synchronous>, transform_indices = @transform_4, window_bounds = array<i64: 1, 128>}, {transform_indices = @transform_5, window_bounds = array<i64: 1, 16, 24, 128>}]} {
    %c2_i32 = arith.constant 2 : i32
    %c0_i32 = arith.constant 0 : i32
    %0 = arith.cmpi eq, %c2_i32, %c0_i32 : i32
    %c1_i32 = arith.constant 1 : i32
    %1 = arith.select %0, %c1_i32, %c2_i32 : i32
    %2 = arith.remsi %arg1, %1 : i32
    %c0_i32_0 = arith.constant 0 : i32
    %3 = arith.cmpi ne, %2, %c0_i32_0 : i32
    %c0_i32_1 = arith.constant 0 : i32
    %4 = arith.cmpi slt, %2, %c0_i32_1 : i32
    %c0_i32_2 = arith.constant 0 : i32
    %5 = arith.cmpi slt, %1, %c0_i32_2 : i32
    %6 = arith.xori %4, %5 : i1
    %7 = arith.andi %6, %3 : i1
    %8 = arith.addi %2, %1 : i32
    %9 = arith.select %7, %8, %2 : i32
    %c0_i32_3 = arith.constant 0 : i32
    %10 = arith.cmpi eq, %arg1, %c0_i32_3 : i32
    %11 = arith.extui %10 : i1 to i32
    %c0_i32_4 = arith.constant 0 : i32
    %12 = arith.cmpi ne, %11, %c0_i32_4 : i32
    scf.if %12 {
      %c0_i32_96 = arith.constant 0 : i32
      %c0_i32_97 = arith.constant 0 : i32
      %c0_i32_98 = arith.constant 0 : i32
      %c0_i32_99 = arith.constant 0 : i32
      %c0_i32_100 = arith.constant 0 : i32
      %167 = tpu.memref_slice %arg2[%arg0, %c0_i32_98, %c0_i32_99, %c0_i32_100] : memref<2x20x24x128xf32, #tpu.memory_space<any>> -> memref<1x20x24x128xf32, #tpu.memory_space<any>>
      %168 = tpu.memref_squeeze %167 : memref<1x20x24x128xf32, #tpu.memory_space<any>> -> memref<20x24x128xf32, #tpu.memory_space<any>>
      %c0_i32_101 = arith.constant 0 : i32
      %c0_i32_102 = arith.constant 0 : i32
      %c0_i32_103 = arith.constant 0 : i32
      %169 = tpu.memref_slice %arg8[%c0_i32_96, %c0_i32_101, %c0_i32_102, %c0_i32_103] : memref<2x20x24x128xf32, #tpu.memory_space<vmem>> -> memref<1x20x24x128xf32, #tpu.memory_space<vmem>>
      %170 = tpu.memref_squeeze %169 : memref<1x20x24x128xf32, #tpu.memory_space<vmem>> -> memref<20x24x128xf32, #tpu.memory_space<vmem>>
      %171 = tpu.memref_slice %arg9[%c0_i32_97] : memref<2x!tpu.dma_semaphore, #tpu.memory_space<semaphore_mem>> -> memref<1x!tpu.dma_semaphore, #tpu.memory_space<semaphore_mem>>
      %172 = tpu.memref_squeeze %171 : memref<1x!tpu.dma_semaphore, #tpu.memory_space<semaphore_mem>> -> memref<!tpu.dma_semaphore, #tpu.memory_space<semaphore_mem>>
      tpu.enqueue_dma source(%168 : memref<20x24x128xf32, #tpu.memory_space<any>>) target(%170 : memref<20x24x128xf32, #tpu.memory_space<vmem>>) target_semaphore(%172 : memref<!tpu.dma_semaphore, #tpu.memory_space<semaphore_mem>>)
    } else {
    }
    %c1_i32_5 = arith.constant 1 : i32
    %13 = arith.addi %arg1, %c1_i32_5 : i32
    %c1_i32_6 = arith.constant 1 : i32
    %14 = arith.cmpi slt, %13, %c1_i32_6 : i32
    %15 = arith.extui %14 : i1 to i32
    %c0_i32_7 = arith.constant 0 : i32
    %16 = arith.cmpi ne, %15, %c0_i32_7 : i32
    scf.if %16 {
      %c1_i32_96 = arith.constant 1 : i32
      %167 = arith.addi %arg1, %c1_i32_96 : i32
      %c1_i32_97 = arith.constant 1 : i32
      %168 = arith.addi %arg1, %c1_i32_97 : i32
      %c2_i32_98 = arith.constant 2 : i32
      %c0_i32_99 = arith.constant 0 : i32
      %169 = arith.cmpi eq, %c2_i32_98, %c0_i32_99 : i32
      %c1_i32_100 = arith.constant 1 : i32
      %170 = arith.select %169, %c1_i32_100, %c2_i32_98 : i32
      %171 = arith.remsi %168, %170 : i32
      %c0_i32_101 = arith.constant 0 : i32
      %172 = arith.cmpi ne, %171, %c0_i32_101 : i32
      %c0_i32_102 = arith.constant 0 : i32
      %173 = arith.cmpi slt, %171, %c0_i32_102 : i32
      %c0_i32_103 = arith.constant 0 : i32
      %174 = arith.cmpi slt, %170, %c0_i32_103 : i32
      %175 = arith.xori %173, %174 : i1
      %176 = arith.andi %175, %172 : i1
      %177 = arith.addi %171, %170 : i32
      %178 = arith.select %176, %177, %171 : i32
      %c16_i32_104 = arith.constant 16 : i32
      %179 = arith.muli %167, %c16_i32_104 : i32
      %c0_i32_105 = arith.constant 0 : i32
      %c0_i32_106 = arith.constant 0 : i32
      %180 = tpu.memref_slice %arg2[%arg0, %179, %c0_i32_105, %c0_i32_106] : memref<2x20x24x128xf32, #tpu.memory_space<any>> -> memref<1x20x24x128xf32, #tpu.memory_space<any>>
      %181 = tpu.memref_squeeze %180 : memref<1x20x24x128xf32, #tpu.memory_space<any>> -> memref<20x24x128xf32, #tpu.memory_space<any>>
      %c0_i32_107 = arith.constant 0 : i32
      %c0_i32_108 = arith.constant 0 : i32
      %c0_i32_109 = arith.constant 0 : i32
      %182 = tpu.memref_slice %arg8[%178, %c0_i32_107, %c0_i32_108, %c0_i32_109] : memref<2x20x24x128xf32, #tpu.memory_space<vmem>> -> memref<1x20x24x128xf32, #tpu.memory_space<vmem>>
      %183 = tpu.memref_squeeze %182 : memref<1x20x24x128xf32, #tpu.memory_space<vmem>> -> memref<20x24x128xf32, #tpu.memory_space<vmem>>
      %184 = tpu.memref_slice %arg9[%178] : memref<2x!tpu.dma_semaphore, #tpu.memory_space<semaphore_mem>> -> memref<1x!tpu.dma_semaphore, #tpu.memory_space<semaphore_mem>>
      %185 = tpu.memref_squeeze %184 : memref<1x!tpu.dma_semaphore, #tpu.memory_space<semaphore_mem>> -> memref<!tpu.dma_semaphore, #tpu.memory_space<semaphore_mem>>
      tpu.enqueue_dma source(%181 : memref<20x24x128xf32, #tpu.memory_space<any>>) target(%183 : memref<20x24x128xf32, #tpu.memory_space<vmem>>) target_semaphore(%185 : memref<!tpu.dma_semaphore, #tpu.memory_space<semaphore_mem>>)
    } else {
    }
    %c16_i32 = arith.constant 16 : i32
    %17 = arith.muli %arg1, %c16_i32 : i32
    %c0_i32_8 = arith.constant 0 : i32
    %c0_i32_9 = arith.constant 0 : i32
    %18 = tpu.memref_slice %arg2[%arg0, %17, %c0_i32_8, %c0_i32_9] : memref<2x20x24x128xf32, #tpu.memory_space<any>> -> memref<1x20x24x128xf32, #tpu.memory_space<any>>
    %19 = tpu.memref_squeeze %18 : memref<1x20x24x128xf32, #tpu.memory_space<any>> -> memref<20x24x128xf32, #tpu.memory_space<any>>
    %c0_i32_10 = arith.constant 0 : i32
    %c0_i32_11 = arith.constant 0 : i32
    %c0_i32_12 = arith.constant 0 : i32
    %20 = tpu.memref_slice %arg8[%9, %c0_i32_10, %c0_i32_11, %c0_i32_12] : memref<2x20x24x128xf32, #tpu.memory_space<vmem>> -> memref<1x20x24x128xf32, #tpu.memory_space<vmem>>
    %21 = tpu.memref_squeeze %20 : memref<1x20x24x128xf32, #tpu.memory_space<vmem>> -> memref<20x24x128xf32, #tpu.memory_space<vmem>>
    %22 = tpu.memref_slice %arg9[%9] : memref<2x!tpu.dma_semaphore, #tpu.memory_space<semaphore_mem>> -> memref<1x!tpu.dma_semaphore, #tpu.memory_space<semaphore_mem>>
    %23 = tpu.memref_squeeze %22 : memref<1x!tpu.dma_semaphore, #tpu.memory_space<semaphore_mem>> -> memref<!tpu.dma_semaphore, #tpu.memory_space<semaphore_mem>>
    tpu.wait_dma2 semaphore(%23 : memref<!tpu.dma_semaphore, #tpu.memory_space<semaphore_mem>>) src(%19 : memref<20x24x128xf32, #tpu.memory_space<any>>) dst(%21 : memref<20x24x128xf32, #tpu.memory_space<vmem>>)
    %24 = arith.index_cast %9 : i32 to index
    %c0 = arith.constant 0 : index
    %c0_13 = arith.constant 0 : index
    %c0_14 = arith.constant 0 : index
    %25 = vector.load %arg8[%24, %c0, %c0_13, %c0_14] : memref<2x20x24x128xf32, #tpu.memory_space<vmem>>, vector<1x20x24x128xf32>
    %26 = vector.shape_cast %25 : vector<1x20x24x128xf32> to vector<20x24x128xf32>
    %27 = vector.shape_cast %26 : vector<20x24x128xf32> to vector<480x128xf32>
    %28 = vector.extract_strided_slice %27 {offsets = [1, 0], sizes = [479, 128], strides = [1, 1]} : vector<480x128xf32> to vector<479x128xf32>
    %29 = vector.extract_strided_slice %27 {offsets = [0, 0], sizes = [1, 128], strides = [1, 1]} : vector<480x128xf32> to vector<1x128xf32>
    %30 = tpu.concatenate %28, %29 in 0 : vector<479x128xf32>, vector<1x128xf32> -> vector<480x128xf32>
    %31 = vector.extract_strided_slice %27 {offsets = [2, 0], sizes = [478, 128], strides = [1, 1]} : vector<480x128xf32> to vector<478x128xf32>
    %32 = vector.extract_strided_slice %27 {offsets = [0, 0], sizes = [2, 128], strides = [1, 1]} : vector<480x128xf32> to vector<2x128xf32>
    %33 = tpu.concatenate %31, %32 in 0 : vector<478x128xf32>, vector<2x128xf32> -> vector<480x128xf32>
    %34 = vector.extract_strided_slice %27 {offsets = [0, 0], sizes = [432, 128], strides = [1, 1]} : vector<480x128xf32> to vector<432x128xf32>
    %c0_15 = arith.constant 0 : index
    %c0_16 = arith.constant 0 : index
    %c0_17 = arith.constant 0 : index
    %35 = vector.load %arg3[%c0_15, %c0_16, %c0_17] : memref<9x128x128xf32, #tpu.memory_space<vmem>>, vector<1x128x128xf32>
    %36 = vector.shape_cast %35 : vector<1x128x128xf32> to vector<128x128xf32>
    %cst = arith.constant dense<0.000000e+00> : vector<432x128xf32>
    %37 = tpu.matmul %34, %36, %cst {dimension_numbers = #tpu.dot_dimension_numbers<[1], [0], [0], [1], [0, 0, 1, 1], [], []>} : vector<432x128xf32>, vector<128x128xf32>, vector<432x128xf32> -> vector<432x128xf32>
    %38 = vector.extract_strided_slice %30 {offsets = [0, 0], sizes = [432, 128], strides = [1, 1]} : vector<480x128xf32> to vector<432x128xf32>
    %c1 = arith.constant 1 : index
    %c0_18 = arith.constant 0 : index
    %c0_19 = arith.constant 0 : index
    %39 = vector.load %arg3[%c1, %c0_18, %c0_19] : memref<9x128x128xf32, #tpu.memory_space<vmem>>, vector<1x128x128xf32>
    %40 = vector.shape_cast %39 : vector<1x128x128xf32> to vector<128x128xf32>
    %cst_20 = arith.constant dense<0.000000e+00> : vector<432x128xf32>
    %41 = tpu.matmul %38, %40, %cst_20 {dimension_numbers = #tpu.dot_dimension_numbers<[1], [0], [0], [1], [0, 0, 1, 1], [], []>} : vector<432x128xf32>, vector<128x128xf32>, vector<432x128xf32> -> vector<432x128xf32>
    %42 = arith.addf %37, %41 : vector<432x128xf32>
    %43 = vector.extract_strided_slice %33 {offsets = [0, 0], sizes = [432, 128], strides = [1, 1]} : vector<480x128xf32> to vector<432x128xf32>
    %c2 = arith.constant 2 : index
    %c0_21 = arith.constant 0 : index
    %c0_22 = arith.constant 0 : index
    %44 = vector.load %arg3[%c2, %c0_21, %c0_22] : memref<9x128x128xf32, #tpu.memory_space<vmem>>, vector<1x128x128xf32>
    %45 = vector.shape_cast %44 : vector<1x128x128xf32> to vector<128x128xf32>
    %cst_23 = arith.constant dense<0.000000e+00> : vector<432x128xf32>
    %46 = tpu.matmul %43, %45, %cst_23 {dimension_numbers = #tpu.dot_dimension_numbers<[1], [0], [0], [1], [0, 0, 1, 1], [], []>} : vector<432x128xf32>, vector<128x128xf32>, vector<432x128xf32> -> vector<432x128xf32>
    %47 = arith.addf %42, %46 : vector<432x128xf32>
    %48 = vector.extract_strided_slice %27 {offsets = [24, 0], sizes = [432, 128], strides = [1, 1]} : vector<480x128xf32> to vector<432x128xf32>
    %c3 = arith.constant 3 : index
    %c0_24 = arith.constant 0 : index
    %c0_25 = arith.constant 0 : index
    %49 = vector.load %arg3[%c3, %c0_24, %c0_25] : memref<9x128x128xf32, #tpu.memory_space<vmem>>, vector<1x128x128xf32>
    %50 = vector.shape_cast %49 : vector<1x128x128xf32> to vector<128x128xf32>
    %cst_26 = arith.constant dense<0.000000e+00> : vector<432x128xf32>
    %51 = tpu.matmul %48, %50, %cst_26 {dimension_numbers = #tpu.dot_dimension_numbers<[1], [0], [0], [1], [0, 0, 1, 1], [], []>} : vector<432x128xf32>, vector<128x128xf32>, vector<432x128xf32> -> vector<432x128xf32>
    %52 = arith.addf %47, %51 : vector<432x128xf32>
    %53 = vector.extract_strided_slice %30 {offsets = [24, 0], sizes = [432, 128], strides = [1, 1]} : vector<480x128xf32> to vector<432x128xf32>
    %c4 = arith.constant 4 : index
    %c0_27 = arith.constant 0 : index
    %c0_28 = arith.constant 0 : index
    %54 = vector.load %arg3[%c4, %c0_27, %c0_28] : memref<9x128x128xf32, #tpu.memory_space<vmem>>, vector<1x128x128xf32>
    %55 = vector.shape_cast %54 : vector<1x128x128xf32> to vector<128x128xf32>
    %cst_29 = arith.constant dense<0.000000e+00> : vector<432x128xf32>
    %56 = tpu.matmul %53, %55, %cst_29 {dimension_numbers = #tpu.dot_dimension_numbers<[1], [0], [0], [1], [0, 0, 1, 1], [], []>} : vector<432x128xf32>, vector<128x128xf32>, vector<432x128xf32> -> vector<432x128xf32>
    %57 = arith.addf %52, %56 : vector<432x128xf32>
    %58 = vector.extract_strided_slice %33 {offsets = [24, 0], sizes = [432, 128], strides = [1, 1]} : vector<480x128xf32> to vector<432x128xf32>
    %c5 = arith.constant 5 : index
    %c0_30 = arith.constant 0 : index
    %c0_31 = arith.constant 0 : index
    %59 = vector.load %arg3[%c5, %c0_30, %c0_31] : memref<9x128x128xf32, #tpu.memory_space<vmem>>, vector<1x128x128xf32>
    %60 = vector.shape_cast %59 : vector<1x128x128xf32> to vector<128x128xf32>
    %cst_32 = arith.constant dense<0.000000e+00> : vector<432x128xf32>
    %61 = tpu.matmul %58, %60, %cst_32 {dimension_numbers = #tpu.dot_dimension_numbers<[1], [0], [0], [1], [0, 0, 1, 1], [], []>} : vector<432x128xf32>, vector<128x128xf32>, vector<432x128xf32> -> vector<432x128xf32>
    %62 = arith.addf %57, %61 : vector<432x128xf32>
    %63 = vector.extract_strided_slice %27 {offsets = [48, 0], sizes = [432, 128], strides = [1, 1]} : vector<480x128xf32> to vector<432x128xf32>
    %c6 = arith.constant 6 : index
    %c0_33 = arith.constant 0 : index
    %c0_34 = arith.constant 0 : index
    %64 = vector.load %arg3[%c6, %c0_33, %c0_34] : memref<9x128x128xf32, #tpu.memory_space<vmem>>, vector<1x128x128xf32>
    %65 = vector.shape_cast %64 : vector<1x128x128xf32> to vector<128x128xf32>
    %cst_35 = arith.constant dense<0.000000e+00> : vector<432x128xf32>
    %66 = tpu.matmul %63, %65, %cst_35 {dimension_numbers = #tpu.dot_dimension_numbers<[1], [0], [0], [1], [0, 0, 1, 1], [], []>} : vector<432x128xf32>, vector<128x128xf32>, vector<432x128xf32> -> vector<432x128xf32>
    %67 = arith.addf %62, %66 : vector<432x128xf32>
    %68 = vector.extract_strided_slice %30 {offsets = [48, 0], sizes = [432, 128], strides = [1, 1]} : vector<480x128xf32> to vector<432x128xf32>
    %c7 = arith.constant 7 : index
    %c0_36 = arith.constant 0 : index
    %c0_37 = arith.constant 0 : index
    %69 = vector.load %arg3[%c7, %c0_36, %c0_37] : memref<9x128x128xf32, #tpu.memory_space<vmem>>, vector<1x128x128xf32>
    %70 = vector.shape_cast %69 : vector<1x128x128xf32> to vector<128x128xf32>
    %cst_38 = arith.constant dense<0.000000e+00> : vector<432x128xf32>
    %71 = tpu.matmul %68, %70, %cst_38 {dimension_numbers = #tpu.dot_dimension_numbers<[1], [0], [0], [1], [0, 0, 1, 1], [], []>} : vector<432x128xf32>, vector<128x128xf32>, vector<432x128xf32> -> vector<432x128xf32>
    %72 = arith.addf %67, %71 : vector<432x128xf32>
    %73 = vector.extract_strided_slice %33 {offsets = [48, 0], sizes = [432, 128], strides = [1, 1]} : vector<480x128xf32> to vector<432x128xf32>
    %c8 = arith.constant 8 : index
    %c0_39 = arith.constant 0 : index
    %c0_40 = arith.constant 0 : index
    %74 = vector.load %arg3[%c8, %c0_39, %c0_40] : memref<9x128x128xf32, #tpu.memory_space<vmem>>, vector<1x128x128xf32>
    %75 = vector.shape_cast %74 : vector<1x128x128xf32> to vector<128x128xf32>
    %cst_41 = arith.constant dense<0.000000e+00> : vector<432x128xf32>
    %76 = tpu.matmul %73, %75, %cst_41 {dimension_numbers = #tpu.dot_dimension_numbers<[1], [0], [0], [1], [0, 0, 1, 1], [], []>} : vector<432x128xf32>, vector<128x128xf32>, vector<432x128xf32> -> vector<432x128xf32>
    %77 = arith.addf %72, %76 : vector<432x128xf32>
    %c0_42 = arith.constant 0 : index
    %c0_43 = arith.constant 0 : index
    %78 = vector.load %arg4[%c0_42, %c0_43] : memref<1x128xf32, #tpu.memory_space<vmem>>, vector<1x128xf32>
    %79 = vector.broadcast %78 : vector<1x128xf32> to vector<432x128xf32>
    %80 = arith.addf %77, %79 : vector<432x128xf32>
    %cst_44 = arith.constant 0.000000e+00 : f32
    %81 = vector.broadcast %cst_44 : f32 to vector<432x128xf32>
    %82 = arith.maximumf %80, %81 : vector<432x128xf32>
    %83 = vector.shape_cast %82 : vector<432x128xf32> to vector<18x24x128xf32>
    %84 = tpu.iota {dimensions = array<i32: 0>} : vector<18x24x1xi32>
    %c16_i32_45 = arith.constant 16 : i32
    %85 = arith.muli %arg1, %c16_i32_45 : i32
    %c1_i32_46 = arith.constant 1 : i32
    %86 = arith.subi %85, %c1_i32_46 : i32
    %87 = vector.broadcast %86 : i32 to vector<18x24x1xi32>
    %88 = arith.addi %84, %87 : vector<18x24x1xi32>
    %89 = tpu.iota {dimensions = array<i32: 1>} : vector<18x24x1xi32>
    %c1_i32_47 = arith.constant 1 : i32
    %90 = vector.broadcast %c1_i32_47 : i32 to vector<18x24x1xi32>
    %91 = arith.subi %89, %90 : vector<18x24x1xi32>
    %c0_i32_48 = arith.constant 0 : i32
    %92 = vector.broadcast %c0_i32_48 : i32 to vector<18x24x1xi32>
    %93 = arith.cmpi sge, %88, %92 : vector<18x24x1xi32>
    %c16_i32_49 = arith.constant 16 : i32
    %94 = vector.broadcast %c16_i32_49 : i32 to vector<18x24x1xi32>
    %95 = arith.cmpi slt, %88, %94 : vector<18x24x1xi32>
    %96 = arith.andi %93, %95 : vector<18x24x1xi1>
    %c0_i32_50 = arith.constant 0 : i32
    %97 = vector.broadcast %c0_i32_50 : i32 to vector<18x24x1xi32>
    %98 = arith.cmpi sge, %91, %97 : vector<18x24x1xi32>
    %99 = arith.andi %96, %98 : vector<18x24x1xi1>
    %c16_i32_51 = arith.constant 16 : i32
    %100 = vector.broadcast %c16_i32_51 : i32 to vector<18x24x1xi32>
    %101 = arith.cmpi slt, %91, %100 : vector<18x24x1xi32>
    %102 = arith.andi %99, %101 : vector<18x24x1xi1>
    %cst_52 = arith.constant 0.000000e+00 : f32
    %103 = vector.shape_cast %102 : vector<18x24x1xi1> to vector<18x24x1xi1>
    %104 = vector.broadcast %103 : vector<18x24x1xi1> to vector<18x24x128xi1>
    %105 = vector.broadcast %cst_52 : f32 to vector<18x24x128xf32>
    %106 = arith.select %104, %83, %105 : vector<18x24x128xi1>, vector<18x24x128xf32>
    %107 = vector.shape_cast %106 : vector<18x24x128xf32> to vector<432x128xf32>
    %108 = vector.extract_strided_slice %107 {offsets = [1, 0], sizes = [431, 128], strides = [1, 1]} : vector<432x128xf32> to vector<431x128xf32>
    %109 = vector.extract_strided_slice %107 {offsets = [0, 0], sizes = [1, 128], strides = [1, 1]} : vector<432x128xf32> to vector<1x128xf32>
    %110 = tpu.concatenate %108, %109 in 0 : vector<431x128xf32>, vector<1x128xf32> -> vector<432x128xf32>
    %111 = vector.extract_strided_slice %107 {offsets = [2, 0], sizes = [430, 128], strides = [1, 1]} : vector<432x128xf32> to vector<430x128xf32>
    %112 = vector.extract_strided_slice %107 {offsets = [0, 0], sizes = [2, 128], strides = [1, 1]} : vector<432x128xf32> to vector<2x128xf32>
    %113 = tpu.concatenate %111, %112 in 0 : vector<430x128xf32>, vector<2x128xf32> -> vector<432x128xf32>
    %114 = vector.extract_strided_slice %107 {offsets = [0, 0], sizes = [384, 128], strides = [1, 1]} : vector<432x128xf32> to vector<384x128xf32>
    %c0_53 = arith.constant 0 : index
    %c0_54 = arith.constant 0 : index
    %c0_55 = arith.constant 0 : index
    %115 = vector.load %arg5[%c0_53, %c0_54, %c0_55] : memref<9x128x128xf32, #tpu.memory_space<vmem>>, vector<1x128x128xf32>
    %116 = vector.shape_cast %115 : vector<1x128x128xf32> to vector<128x128xf32>
    %cst_56 = arith.constant dense<0.000000e+00> : vector<384x128xf32>
    %117 = tpu.matmul %114, %116, %cst_56 {dimension_numbers = #tpu.dot_dimension_numbers<[1], [0], [0], [1], [0, 0, 1, 1], [], []>} : vector<384x128xf32>, vector<128x128xf32>, vector<384x128xf32> -> vector<384x128xf32>
    %118 = vector.extract_strided_slice %110 {offsets = [0, 0], sizes = [384, 128], strides = [1, 1]} : vector<432x128xf32> to vector<384x128xf32>
    %c1_57 = arith.constant 1 : index
    %c0_58 = arith.constant 0 : index
    %c0_59 = arith.constant 0 : index
    %119 = vector.load %arg5[%c1_57, %c0_58, %c0_59] : memref<9x128x128xf32, #tpu.memory_space<vmem>>, vector<1x128x128xf32>
    %120 = vector.shape_cast %119 : vector<1x128x128xf32> to vector<128x128xf32>
    %cst_60 = arith.constant dense<0.000000e+00> : vector<384x128xf32>
    %121 = tpu.matmul %118, %120, %cst_60 {dimension_numbers = #tpu.dot_dimension_numbers<[1], [0], [0], [1], [0, 0, 1, 1], [], []>} : vector<384x128xf32>, vector<128x128xf32>, vector<384x128xf32> -> vector<384x128xf32>
    %122 = arith.addf %117, %121 : vector<384x128xf32>
    %123 = vector.extract_strided_slice %113 {offsets = [0, 0], sizes = [384, 128], strides = [1, 1]} : vector<432x128xf32> to vector<384x128xf32>
    %c2_61 = arith.constant 2 : index
    %c0_62 = arith.constant 0 : index
    %c0_63 = arith.constant 0 : index
    %124 = vector.load %arg5[%c2_61, %c0_62, %c0_63] : memref<9x128x128xf32, #tpu.memory_space<vmem>>, vector<1x128x128xf32>
    %125 = vector.shape_cast %124 : vector<1x128x128xf32> to vector<128x128xf32>
    %cst_64 = arith.constant dense<0.000000e+00> : vector<384x128xf32>
    %126 = tpu.matmul %123, %125, %cst_64 {dimension_numbers = #tpu.dot_dimension_numbers<[1], [0], [0], [1], [0, 0, 1, 1], [], []>} : vector<384x128xf32>, vector<128x128xf32>, vector<384x128xf32> -> vector<384x128xf32>
    %127 = arith.addf %122, %126 : vector<384x128xf32>
    %128 = vector.extract_strided_slice %107 {offsets = [24, 0], sizes = [384, 128], strides = [1, 1]} : vector<432x128xf32> to vector<384x128xf32>
    %c3_65 = arith.constant 3 : index
    %c0_66 = arith.constant 0 : index
    %c0_67 = arith.constant 0 : index
    %129 = vector.load %arg5[%c3_65, %c0_66, %c0_67] : memref<9x128x128xf32, #tpu.memory_space<vmem>>, vector<1x128x128xf32>
    %130 = vector.shape_cast %129 : vector<1x128x128xf32> to vector<128x128xf32>
    %cst_68 = arith.constant dense<0.000000e+00> : vector<384x128xf32>
    %131 = tpu.matmul %128, %130, %cst_68 {dimension_numbers = #tpu.dot_dimension_numbers<[1], [0], [0], [1], [0, 0, 1, 1], [], []>} : vector<384x128xf32>, vector<128x128xf32>, vector<384x128xf32> -> vector<384x128xf32>
    %132 = arith.addf %127, %131 : vector<384x128xf32>
    %133 = vector.extract_strided_slice %110 {offsets = [24, 0], sizes = [384, 128], strides = [1, 1]} : vector<432x128xf32> to vector<384x128xf32>
    %c4_69 = arith.constant 4 : index
    %c0_70 = arith.constant 0 : index
    %c0_71 = arith.constant 0 : index
    %134 = vector.load %arg5[%c4_69, %c0_70, %c0_71] : memref<9x128x128xf32, #tpu.memory_space<vmem>>, vector<1x128x128xf32>
    %135 = vector.shape_cast %134 : vector<1x128x128xf32> to vector<128x128xf32>
    %cst_72 = arith.constant dense<0.000000e+00> : vector<384x128xf32>
    %136 = tpu.matmul %133, %135, %cst_72 {dimension_numbers = #tpu.dot_dimension_numbers<[1], [0], [0], [1], [0, 0, 1, 1], [], []>} : vector<384x128xf32>, vector<128x128xf32>, vector<384x128xf32> -> vector<384x128xf32>
    %137 = arith.addf %132, %136 : vector<384x128xf32>
    %138 = vector.extract_strided_slice %113 {offsets = [24, 0], sizes = [384, 128], strides = [1, 1]} : vector<432x128xf32> to vector<384x128xf32>
    %c5_73 = arith.constant 5 : index
    %c0_74 = arith.constant 0 : index
    %c0_75 = arith.constant 0 : index
    %139 = vector.load %arg5[%c5_73, %c0_74, %c0_75] : memref<9x128x128xf32, #tpu.memory_space<vmem>>, vector<1x128x128xf32>
    %140 = vector.shape_cast %139 : vector<1x128x128xf32> to vector<128x128xf32>
    %cst_76 = arith.constant dense<0.000000e+00> : vector<384x128xf32>
    %141 = tpu.matmul %138, %140, %cst_76 {dimension_numbers = #tpu.dot_dimension_numbers<[1], [0], [0], [1], [0, 0, 1, 1], [], []>} : vector<384x128xf32>, vector<128x128xf32>, vector<384x128xf32> -> vector<384x128xf32>
    %142 = arith.addf %137, %141 : vector<384x128xf32>
    %143 = vector.extract_strided_slice %107 {offsets = [48, 0], sizes = [384, 128], strides = [1, 1]} : vector<432x128xf32> to vector<384x128xf32>
    %c6_77 = arith.constant 6 : index
    %c0_78 = arith.constant 0 : index
    %c0_79 = arith.constant 0 : index
    %144 = vector.load %arg5[%c6_77, %c0_78, %c0_79] : memref<9x128x128xf32, #tpu.memory_space<vmem>>, vector<1x128x128xf32>
    %145 = vector.shape_cast %144 : vector<1x128x128xf32> to vector<128x128xf32>
    %cst_80 = arith.constant dense<0.000000e+00> : vector<384x128xf32>
    %146 = tpu.matmul %143, %145, %cst_80 {dimension_numbers = #tpu.dot_dimension_numbers<[1], [0], [0], [1], [0, 0, 1, 1], [], []>} : vector<384x128xf32>, vector<128x128xf32>, vector<384x128xf32> -> vector<384x128xf32>
    %147 = arith.addf %142, %146 : vector<384x128xf32>
    %148 = vector.extract_strided_slice %110 {offsets = [48, 0], sizes = [384, 128], strides = [1, 1]} : vector<432x128xf32> to vector<384x128xf32>
    %c7_81 = arith.constant 7 : index
    %c0_82 = arith.constant 0 : index
    %c0_83 = arith.constant 0 : index
    %149 = vector.load %arg5[%c7_81, %c0_82, %c0_83] : memref<9x128x128xf32, #tpu.memory_space<vmem>>, vector<1x128x128xf32>
    %150 = vector.shape_cast %149 : vector<1x128x128xf32> to vector<128x128xf32>
    %cst_84 = arith.constant dense<0.000000e+00> : vector<384x128xf32>
    %151 = tpu.matmul %148, %150, %cst_84 {dimension_numbers = #tpu.dot_dimension_numbers<[1], [0], [0], [1], [0, 0, 1, 1], [], []>} : vector<384x128xf32>, vector<128x128xf32>, vector<384x128xf32> -> vector<384x128xf32>
    %152 = arith.addf %147, %151 : vector<384x128xf32>
    %153 = vector.extract_strided_slice %113 {offsets = [48, 0], sizes = [384, 128], strides = [1, 1]} : vector<432x128xf32> to vector<384x128xf32>
    %c8_85 = arith.constant 8 : index
    %c0_86 = arith.constant 0 : index
    %c0_87 = arith.constant 0 : index
    %154 = vector.load %arg5[%c8_85, %c0_86, %c0_87] : memref<9x128x128xf32, #tpu.memory_space<vmem>>, vector<1x128x128xf32>
    %155 = vector.shape_cast %154 : vector<1x128x128xf32> to vector<128x128xf32>
    %cst_88 = arith.constant dense<0.000000e+00> : vector<384x128xf32>
    %156 = tpu.matmul %153, %155, %cst_88 {dimension_numbers = #tpu.dot_dimension_numbers<[1], [0], [0], [1], [0, 0, 1, 1], [], []>} : vector<384x128xf32>, vector<128x128xf32>, vector<384x128xf32> -> vector<384x128xf32>
    %157 = arith.addf %152, %156 : vector<384x128xf32>
    %c0_89 = arith.constant 0 : index
    %c0_90 = arith.constant 0 : index
    %158 = vector.load %arg6[%c0_89, %c0_90] : memref<1x128xf32, #tpu.memory_space<vmem>>, vector<1x128xf32>
    %159 = vector.broadcast %158 : vector<1x128xf32> to vector<384x128xf32>
    %160 = arith.addf %157, %159 : vector<384x128xf32>
    %161 = vector.extract_strided_slice %33 {offsets = [48, 0], sizes = [384, 128], strides = [1, 1]} : vector<480x128xf32> to vector<384x128xf32>
    %162 = arith.addf %160, %161 : vector<384x128xf32>
    %cst_91 = arith.constant 0.000000e+00 : f32
    %163 = vector.broadcast %cst_91 : f32 to vector<384x128xf32>
    %164 = arith.maximumf %162, %163 : vector<384x128xf32>
    %165 = vector.shape_cast %164 : vector<384x128xf32> to vector<1x16x24x128xf32>
    %c0_92 = arith.constant 0 : index
    %c0_93 = arith.constant 0 : index
    %c0_94 = arith.constant 0 : index
    %c0_95 = arith.constant 0 : index
    %166 = vector.load %arg7[%c0_92, %c0_93, %c0_94, %c0_95] : memref<1x16x24x128xf32, #tpu.memory_space<vmem>>, vector<1x16x24x128xf32>
    tpu.vector_store %arg7[%c0_92, %c0_93, %c0_94, %c0_95], %165 {strides = array<i32>} : memref<1x16x24x128xf32, #tpu.memory_space<vmem>>, vector<1x16x24x128xf32>,
    return
  }
  func.func @transform_1(%arg0: i32, %arg1: i32) -> (i32, i32, i32) {
    %c0_i32 = arith.constant 0 : i32
    %c0_i32_0 = arith.constant 0 : i32
    %c0_i32_1 = arith.constant 0 : i32
    %c0_i32_2 = arith.constant 0 : i32
    return %c0_i32, %c0_i32_0, %c0_i32_1 : i32, i32, i32
  }
  func.func @transform_2(%arg0: i32, %arg1: i32) -> (i32, i32) {
    %c0_i32 = arith.constant 0 : i32
    %c0_i32_0 = arith.constant 0 : i32
    %c0_i32_1 = arith.constant 0 : i32
    return %c0_i32, %c0_i32_0 : i32, i32
  }
  func.func @transform_3(%arg0: i32, %arg1: i32) -> (i32, i32, i32) {
    %c0_i32 = arith.constant 0 : i32
    %c0_i32_0 = arith.constant 0 : i32
    %c0_i32_1 = arith.constant 0 : i32
    %c0_i32_2 = arith.constant 0 : i32
    return %c0_i32, %c0_i32_0, %c0_i32_1 : i32, i32, i32
  }
  func.func @transform_4(%arg0: i32, %arg1: i32) -> (i32, i32) {
    %c0_i32 = arith.constant 0 : i32
    %c0_i32_0 = arith.constant 0 : i32
    %c0_i32_1 = arith.constant 0 : i32
    return %c0_i32, %c0_i32_0 : i32, i32
  }
  func.func @transform_5(%arg0: i32, %arg1: i32) -> (i32, i32, i32, i32) {
    %c0_i32 = arith.constant 0 : i32
    %c0_i32_0 = arith.constant 0 : i32
    %c0_i32_1 = arith.constant 0 : i32
    return %arg0, %arg1, %c0_i32, %c0_i32_0 : i32, i32, i32, i32
  }
}

</mosaic_0001>

<bundles_post_ra>
// kernel: tpu_custom_call.1
= control target key start
LH: loop header
LB: loop body
LE: loop exit
PB: predicated region body
PF: predicated region fallthrough
CT: control target
= control target key end

     0   :  { %s10557_s0 = inlined_call_operand.hbm [shape: f32[2,20,24,128], index: 0, kind: input, shape index: {}]   ;;  %s10558_s1 = inlined_call_operand.hbm [shape: f32[9,128,128], index: 1, kind: input, shape index: {}]   ;;  %s10559_s2 = inlined_call_operand.vmem [shape: f32[1,128], index: 2, kind: input, shape index: {}]   ;;  %s10560_s3 = inlined_call_operand.hbm [shape: f32[9,128,128], index: 3, kind: input, shape index: {}]   ;;  %s10561_s4 = inlined_call_operand.vmem [shape: f32[1,128], index: 4, kind: input, shape index: {}]   ;;  %s10562_s5 = inlined_call_operand.hbm [shape: f32[2,16,24,128], index: 5, kind: output, shape index: {}]  }
   0x1   :  { %10971 = sst [smem:[#allocation299_spill]] %s10558_s1 }
   0x2   :  { %10 = vsyncpa [#allocation5], 0 }
   0x3   :  { %11 = vsyncpa [#allocation8], 0 }
   0x4   :  { %12 = vsyncpa [#allocation6], 0 }
   0x5   :  { %14 = vsyncpa [#allocation6 + $0x1], 0  ;;  %s6576_s18 = smov 0   ;;  %s6578_s19 = smov 0  }
   0x6   :  { %s6580_s20 = smov 0   ;;  %s6582_s21 = smov 0  }
   0x7   :  { %s6584_s22 = smov 0   ;;  %s6586_s23 = smov 0  }
   0x8 LB: > { %s6037_s24 = sadd.s32 4294967295, %s6536_s23   ;;  %s6038_s25 = sadd.s32 4294967294, %s6536_s23   ;;  %s6536_s23 = sphi %s6586_s23, %s20_s23   ;;  %s6532_s22 = sphi %s6584_s22, %s12175_s22   ;;  %s6528_s21 = sphi %s6582_s21, %s12174_s21   ;;  %s6524_s20 = sphi %s6580_s20, %s12173_s20   ;;  %s6520_s19 = sphi %s6578_s19, %s12172_s19   ;;  %s6516_s18 = sphi %s6576_s18, %s12171_s18  }
   0x9   : > { %s32_s26 = sadd.s32 1, %s6532_s22  ;;  %s125_s27 = sadd.s32 1, %s6524_s20 }
   0xa   : > { %p34_p0 = scmp.ge.s32.totalorder %s32_s26, 2  ;;  %p135_p1 = scmp.ne.s32.totalorder %s6524_s20, %s6520_s19 }
   0xb   : > { %p136_p2 = scmp.eq.s32.totalorder %s6037_s24, 1  ;;  %p141_p3 = scmp.ne.s32.totalorder %s6520_s19, %s6516_s18 }
   0xc   : > { %s12177_s26 = smov (%p34_p0, %s32_s26), 0  ;;  %p142_p5 = scmp.eq.s32.totalorder %s6038_s25, 1 }
   0xd   : > { %p6616_p4 = por %p136_p2, %p135_p1  ;;  %s120_s29 = ssub.s32 %s6532_s22, %s12177_s26 }
   0xe   : > { %p6039_p6 = scmp.ge.s32.totalorder %s6536_s23, 1  ;;  %p123_p7 = scmp.eq.s32.totalorder %s120_s29, 0 }
   0xf   : > { %p6623_p8 = por %p142_p5, %p141_p3  ;;  %p149_p9 = scmp.lt.s32.totalorder %s6536_s23, 3 }
  0x10   : > { %s6629_s6 = scalar_select %p123_p7, %s6524_s20, %s125_s27  }
  0x11   : > { %p6631_p10 = pnand %p6039_p6, %p149_p9  ;;  %p6635_p11 = scmp.eq.s32.totalorder %s6037_s24, 0 }
  0x12   : > { %s10976_s1 = sld [smem:[#allocation299_spill]]  ;;  %s6538_s12 = smov [#allocation4]  }
  0x13   : > { %p6205_p12 = pneg %p6631_p10  ;;  %s162_s13 = sshll.u32 %s6538_s12, 4  ;;  %s163_s13 = int_to_ptr.vmem [resolvable:$true] %s162_s13 }
  0x14   : > { %s177_s16 = sshll.u32 %s10560_s3, 4  ;;  %s6539_s17 = smov 128   ;;  %s178_s16 = int_to_ptr.hbm [resolvable:$true] %s177_s16 }
  0x15   : > { %p6206_p13 = pnand %p6635_p11, %p6205_p12  ;;  %s6540_s24 = smov 8  }
  0x16   : > { %s6541_s25 = smov [#allocation7]   ;;  %198 = sbr.rel (%p6631_p10) target bundleno = 2547 (0x9f3), region = 36 }
  0x17   : > { %s179_s27 = sshll.u32 %s6541_s25, 4  ;;  %s180_s27 = int_to_ptr.vmem [resolvable:$true] %s179_s27 }
  0x18   : > { %s160_s11 = sshll.u32 %s10976_s1, 4  ;;  %s161_s11 = int_to_ptr.hbm [resolvable:$true] %s160_s11 }
  0x19   : > { %6208 = dma.hbm_to_vmem [thread:$0]  (!%p6206_p13), %s161_s11, 18432, %s163_s13, [#allocation5], %s6539_s17, %s6539_s17, %s6540_s24  }
  0x1a   : > { %6211 = dma.hbm_to_vmem [thread:$0]  (!%p6206_p13), %s178_s16, 18432, %s180_s27, [#allocation8], %s6539_s17, %s6539_s17, %s6540_s24  }
  0x1b   : > { %6501 = dma.done.wait (%p6635_p11), [#allocation5], 18432  }
  0x1c   : > { %6503 = vsyncadd (%p6635_p11), [#allocation5], 4294948864 }
  0x1d   : > { %6505 = dma.done.wait (%p6635_p11), [#allocation8], 18432  }
  0x1e   : > { %6507 = vsyncadd (%p6635_p11), [#allocation8], 4294948864  ;;  %s222_s29 = sand.u32 1, %s6520_s19   ;;  %s242_s9 = smul.u32 480, %s6528_s21 }
  0x1f   : > { %s6193_s7 = smul.u32 384, %s222_s29  ;;  %s6542_s13 = smov [#allocation2]  }
  0x20   : > { %s243_s12 = scalar_lea.hbm %s10557_s0, %s242_s9  ;;  %s253_s14 = sshll.u32 %s6542_s13, 4  ;;  %s254_s14 = int_to_ptr.vmem [resolvable:$true] %s253_s14 }
  0x21   : > { %s251_s15 = sshll.u32 %s243_s12, 4  ;;  %s6428_s25 = scalar_lea.hbm %s10557_s0, 960  ;;  %s252_s15 = int_to_ptr.hbm [resolvable:$true] %s251_s15 }
  0x22   : > { %s6424_s16 = sshra.s32 %s252_s15, 4  ;;  %s6425_s16 = int_to_ptr.hbm [resolvable:$true] %s6424_s16 }
  0x23   : > { %s6426_s8 = scalar_lea.hbm %s6425_s16, 480  ;;  %p6429_p1 = scmp.lt.s32.totalorder %s6425_s16, %s10557_s0 }
  0x24   : > { %p6427_p0 = scmp.ne.s32.totalorder %s6425_s16, %s6426_s8  ;;  %p6430_p2 = scmp.lt.s32.totalorder %s6428_s25, %s6426_s8 }
  0x26   : > { %p6431_p3 = por %p6430_p2, %p6429_p1 }
  0x28   : > { %p6432_p5 = pnand %p6431_p3, %p6427_p0 }
  0x2a   : > { %6435 = shalt.err (!%p6432_p5)  }
  0x2b   : > { %256 = dma.hbm_to_vmem [thread:$0]  %s252_s15, 7680, %s254_s14, [#allocation3] }
  0x2c   : > { %s6672_s9 = scalar_lea.vmem [#allocation9], %s6193_s7 }
  0x2d   : > { %6508 = dma.done.wait [#allocation3], 7680 }
  0x2e   : > { %6509 = vsyncadd [#allocation3], 4294959616  ;;  %v819_v0 = vld [vmem:[#allocation4 + $0xf8] sm:$0xff]  ;;  %v818_v2 = vld [vmem:[#allocation4 + $0xf0] sm:$0xff]  ;;  %vm423_vm0 = vcmask 1046528   ;;  %vm605_vm1 = vcmask 1045504  }
  0x2f   : > { %v802_v1 = vld [vmem:[#allocation4 + $0x78] sm:$0xff]  ;;  %820 = vmatpush.msra.mxu0 %v819_v0  ;;  %v801_v3 = vld [vmem:[#allocation4 + $0x70] sm:$0xff]  ;;  %v817_v4 = vld [vmem:[#allocation4 + $0xe8] sm:$0xff]  ;;  %s6194_s17 = smul.u32 384, %s6528_s21  ;;  %s5925_s1 = sshll.u32 %s6672_s9, 4  ;;  %s5926_s1 = int_to_ptr.vmem [resolvable:$true] %s5925_s1 }
  0x30   : > { %999 = vmatpush.msra.mxu1 %v802_v1  ;;  %6145 = vmatpush.msra.mxu3 %v802_v1  ;;  %v800_v5 = vld [vmem:[#allocation4 + $0x68] sm:$0xff]  ;;  %v816_v6 = vld [vmem:[#allocation4 + $0xe0] sm:$0xff]  ;;  %v815_v8 = vld [vmem:[#allocation4 + $0xd8] sm:$0xff]  ;;  %s5910_s21 = scalar_lea.sflag [#allocation6], %s222_s29  ;;  %s6468_s14 = scalar_lea.hbm %s10562_s5, 768 }
  0x31   : > { %821 = vmatpush.msra.mxu0 %v818_v2  ;;  %v799_v7 = vld [vmem:[#allocation4 + $0x60] sm:$0xff]  ;;  %v798_v9 = vld [vmem:[#allocation4 + $0x58] sm:$0xff]  ;;  %v814_v10 = vld [vmem:[#allocation4 + $0xd0] sm:$0xff]  ;;  %s5924_s27 = scalar_lea.hbm %s10562_s5, %s6194_s17 }
  0x32   : > { %1000 = vmatpush.msra.mxu1 %v801_v3  ;;  %6146 = vmatpush.msra.mxu3 %v801_v3  ;;  %v797_v11 = vld [vmem:[#allocation4 + $0x50] sm:$0xff]  ;;  %v813_v12 = vld [vmem:[#allocation4 + $0xc8] sm:$0xff]  ;;  %v6674_v14 = vld [vmem:[#allocation4 + $0x178] sm:$0xff]  ;;  %s5927_s7 = sshll.u32 %s5924_s27, 4  ;;  %s5928_s7 = int_to_ptr.hbm [resolvable:$true] %s5927_s7 }
  0x33   : > { %822 = vmatpush.msra.mxu0 %v817_v4  ;;  %v796_v13 = vld [vmem:[#allocation4 + $0x48] sm:$0xff]  ;;  %v812_v15 = vld [vmem:[#allocation4 + $0xc0] sm:$0xff]  ;;  %6161 = vmatpush.msra.mxu2 %v6674_v14  ;;  %v811_v17 = vld [vmem:[#allocation4 + $0xb8] sm:$0xff]  ;;  %s6462_s10 = sshra.s32 %s5928_s7, 4  ;;  %s6463_s10 = int_to_ptr.hbm [resolvable:$true] %s6462_s10 }
  0x34   : > { %1001 = vmatpush.msra.mxu1 %v800_v5  ;;  %6147 = vmatpush.msra.mxu3 %v800_v5  ;;  %v795_v16 = vld [vmem:[#allocation4 + $0x40] sm:$0xff]  ;;  %v794_v18 = vld [vmem:[#allocation4 + $0x38] sm:$0xff]  ;;  %v810_v19 = vld [vmem:[#allocation4 + $0xb0] sm:$0xff]  ;;  %s6464_s11 = scalar_lea.hbm %s6463_s10, 384  ;;  %p6469_p10 = scmp.lt.s32.totalorder %s6463_s10, %s10562_s5 }
  0x35   : > { %823 = vmatpush.msra.mxu0 %v816_v6  ;;  %v793_v20 = vld [vmem:[#allocation4 + $0x30] sm:$0xff]  ;;  %v809_v21 = vld [vmem:[#allocation4 + $0xa8] sm:$0xff]  ;;  %v808_v23 = vld [vmem:[#allocation4 + $0xa0] sm:$0xff]  ;;  %p6465_p6 = scmp.ne.s32.totalorder %s6463_s10, %s6464_s11  ;;  %p6470_p11 = scmp.lt.s32.totalorder %s6468_s14, %s6464_s11 }
  0x36   : > { %1002 = vmatpush.msra.mxu1 %v799_v7  ;;  %6148 = vmatpush.msra.mxu3 %v799_v7  ;;  %v792_v22 = vld [vmem:[#allocation4 + $0x28] sm:$0xff]  ;;  %v791_v24 = vld [vmem:[#allocation4 + $0x20] sm:$0xff]  ;;  %v807_v25 = vld [vmem:[#allocation4 + $0x98] sm:$0xff] }
  0x37   : > { %824 = vmatpush.msra.mxu0 %v815_v8  ;;  %v790_v26 = vld [vmem:[#allocation4 + $0x18] sm:$0xff]  ;;  %v6677_v27 = vld [vmem:[#allocation2] sm:$0xff]  ;;  %v304_v28 = vld [vmem:[#allocation2 + $0x8] sm:$0xff]  ;;  %p6466_p7 = pnand %p6465_p6, %p6616_p4  ;;  %p6471_p12 = por %p6470_p11, %p6469_p10 }
  0x38   : > { %1003 = vmatpush.msra.mxu1 %v798_v9  ;;  %6149 = vmatpush.msra.mxu3 %v798_v9  ;;  %10977 = vst [vmem:[#allocation20_spill] sm:$0xff] %v6677_v27  ;;  %v806_v29 = vld [vmem:[#allocation4 + $0x90] sm:$0xff]  ;;  %v10563_v31 = vrot.slane %v6677_v27, 1  ;;  %v425_v32 = vrot.slane %v304_v28, 1  ;;  %v805_v34 = vld [vmem:[#allocation4 + $0x88] sm:$0xff]  ;;  %v804_v36 = vld [vmem:[#allocation4 + $0x80] sm:$0xff] }
  0x39   : > { %825 = vmatpush.msra.mxu0 %v814_v10  ;;  %v789_v30 = vld [vmem:[#allocation4 + $0x10] sm:$0xff]  ;;  %v788_v35 = vld [vmem:[#allocation4 + $0x8] sm:$0xff]  ;;  %v787_v37 = vld [vmem:[#allocation4] sm:$0xff]  ;;  %p6467_p9 = pneg %p6466_p7 }
  0x3a   : > { %1004 = vmatpush.msra.mxu1 %v797_v11  ;;  %6150 = vmatpush.msra.mxu3 %v797_v11  ;;  %v1193_v33 = vld [vmem:[#allocation4 + $0x170] sm:$0xff]  ;;  %v426_v38 = vsel %vm423_vm0, %v10563_v31, %v425_v32  ;;  %v6683_v39 = vld [vmem:[#allocation2 + $0x100] sm:$0xff]  ;;  %v6689_v43 = vld [vmem:[#allocation2 + $0x108] sm:$0xff] }
  0x3b   : > { %826 = vmatpush.msra.mxu0 %v813_v12  ;;  %6162 = vmatpush.msra.mxu2 %v1193_v33  ;;  %v305_v40 = vld [vmem:[#allocation2 + $0x10] sm:$0xff]  ;;  %v6691_v44 = vld [vmem:[#allocation2 + $0x18] sm:$0xff]  ;;  %v6698_v48 = vld [vmem:[#allocation2 + $0x20] sm:$0xff]  ;;  %p6472_p13 = pnand %p6471_p12, %p6467_p9 }
  0x3c   : > { %1005 = vmatpush.msra.mxu1 %v796_v13  ;;  %6151 = vmatpush.msra.mxu3 %v796_v13  ;;  %v427_v41 = vrot.slane %v305_v40, 1  ;;  %v429_v45 = vrot.slane %v6691_v44, 1  ;;  %v6696_v47 = vld [vmem:[#allocation2 + $0x110] sm:$0xff]  ;;  %v431_v49 = vrot.slane %v6698_v48, 1  ;;  %v1192_v50 = vld [vmem:[#allocation4 + $0x168] sm:$0xff]  ;;  %v6705_v52 = vld [vmem:[#allocation2 + $0x118] sm:$0xff] }
  0x3d   : > { %827 = vmatpush.msra.mxu0 %v812_v15  ;;  %6163 = vmatpush.msra.mxu2 %v1192_v50  ;;  %v6707_v53 = vld [vmem:[#allocation2 + $0x28] sm:$0xff]  ;;  %v6716_v56 = vld [vmem:[#allocation2 + $0x120] sm:$0xff]  ;;  %v6718_v57 = vld [vmem:[#allocation2 + $0x30] sm:$0xff] }
  0x3e   : > { %1006 = vmatpush.msra.mxu1 %v795_v16  ;;  %6152 = vmatpush.msra.mxu3 %v795_v16  ;;  %v428_v42 = vsel %vm423_vm0, %v425_v32, %v427_v41  ;;  %v430_v46 = vsel %vm423_vm0, %v427_v41, %v429_v45  ;;  %v6703_v51 = vsel %vm423_vm0, %v429_v45, %v431_v49  ;;  %v433_v54 = vrot.slane %v6707_v53, 1  ;;  %v6727_v60 = vld [vmem:[#allocation2 + $0x128] sm:$0xff]  ;;  %v6729_v61 = vld [vmem:[#allocation2 + $0x38] sm:$0xff]  ;;  %v6738_v0 = vld [vmem:[#allocation2 + $0x130] sm:$0xff] }
  0x3f   : > { %828 = vmatpush.msra.mxu0 %v811_v17  ;;  %v435_v58 = vrot.slane %v6718_v57, 1  ;;  %v437_v62 = vrot.slane %v6729_v61, 1  ;;  %v6740_v1 = vld [vmem:[#allocation2 + $0x40] sm:$0xff]  ;;  %v6749_v5 = vld [vmem:[#allocation2 + $0x138] sm:$0xff]  ;;  %v6751_v6 = vld [vmem:[#allocation2 + $0x48] sm:$0xff] }
  0x40   : > { %1007 = vmatpush.msra.mxu1 %v794_v18  ;;  %6153 = vmatpush.msra.mxu3 %v794_v18  ;;  %v6714_v55 = vsel %vm423_vm0, %v431_v49, %v433_v54  ;;  %v439_v2 = vrot.slane %v6740_v1, 1  ;;  %v1191_v3 = vld [vmem:[#allocation4 + $0x160] sm:$0xff]  ;;  %v441_v7 = vrot.slane %v6751_v6, 1  ;;  %v6762_v10 = vld [vmem:[#allocation2 + $0x50] sm:$0xff]  ;;  %v6771_v13 = vld [vmem:[#allocation2 + $0x148] sm:$0xff] }
  0x41   : > { %829 = vmatpush.msra.mxu0 %v810_v19  ;;  %v6725_v59 = vsel %vm423_vm0, %v433_v54, %v435_v58  ;;  %v6736_v63 = vsel %vm423_vm0, %v435_v58, %v437_v62  ;;  %6164 = vmatpush.msra.mxu2 %v1191_v3  ;;  %v6760_v9 = vld [vmem:[#allocation2 + $0x140] sm:$0xff]  ;;  %v443_v11 = vrot.slane %v6762_v10, 1  ;;  %v1190_v16 = vld [vmem:[#allocation4 + $0x158] sm:$0xff]  ;;  %v6782_v18 = vld [vmem:[#allocation2 + $0x150] sm:$0xff] }
  0x42   : > { %1008 = vmatpush.msra.mxu1 %v793_v20  ;;  %6154 = vmatpush.msra.mxu3 %v793_v20  ;;  %v6747_v4 = vsel %vm423_vm0, %v437_v62, %v439_v2  ;;  %v6758_v8 = vsel %vm423_vm0, %v439_v2, %v441_v7  ;;  %v6784_v19 = vld [vmem:[#allocation2 + $0x60] sm:$0xff]  ;;  %v6815_v32 = vld [vmem:[#allocation2 + $0x168] sm:$0xff]  ;;  %v1444_v41 = vld [vmem:[#allocation4 + $0x1f8] sm:$0xff] }
  0x43   : > { %830 = vmatpush.msra.mxu0 %v809_v21  ;;  %v6769_v12 = vsel %vm423_vm0, %v441_v7, %v443_v11  ;;  %6165 = vmatpush.msra.mxu2 %v1190_v16  ;;  %v447_v20 = vrot.slane %v6784_v19, 1  ;;  %v6837_v49 = vld [vmem:[#allocation2 + $0x178] sm:$0xff]  ;;  %v1441_v54 = vld [vmem:[#allocation4 + $0x1e0] sm:$0xff]  ;;  %v1188_v62 = vld [vmem:[#allocation4 + $0x148] sm:$0xff] }
  0x44   : > { %1009 = vmatpush.msra.mxu1 %v792_v22  ;;  %6155 = vmatpush.msra.mxu3 %v792_v22  ;;  %v6793_v22 = vld [vmem:[#allocation2 + $0x158] sm:$0xff]  ;;  %v1439_v7 = vld [vmem:[#allocation4 + $0x1d0] sm:$0xff] }
  0x45   : > { %831 = vmatpush.msra.mxu0 %v808_v23  ;;  %v6795_v23 = vld [vmem:[#allocation2 + $0x68] sm:$0xff]  ;;  %v1440_v2 = vld [vmem:[#allocation4 + $0x1d8] sm:$0xff] }
  0x46   : > { %1010 = vmatpush.msra.mxu1 %v791_v24  ;;  %6156 = vmatpush.msra.mxu3 %v791_v24  ;;  %v449_v24 = vrot.slane %v6795_v23, 1  ;;  %v6863_v31 = vld [vmem:[#allocation2 + $0x98] sm:$0xff] }
  0x47   : > { %832 = vmatpush.msra.mxu0 %v807_v25 }
  0x48   : > { %1011 = vmatpush.msra.mxu1 %v790_v26  ;;  %6157 = vmatpush.msra.mxu3 %v790_v26  ;;  %v6802_v25 = vsel %vm423_vm0, %v447_v20, %v449_v24  ;;  %v6804_v26 = vld [vmem:[#allocation2 + $0x160] sm:$0xff] }
  0x49   : > { %833 = vmatpush.msra.mxu0 %v806_v29  ;;  %10980 = vst [vmem:[#allocation23_spill] sm:$0xff] %v6802_v25 }
  0x4a   : > { %1012 = vmatpush.msra.mxu1 %v789_v30  ;;  %6158 = vmatpush.msra.mxu3 %v789_v30 }
  0x4b   : > { %834 = vmatpush.msra.mxu0 %v805_v34  ;;  %v1189_v34 = vld [vmem:[#allocation4 + $0x150] sm:$0xff] }
  0x4c   : > { %1013 = vmatpush.msra.mxu1 %v788_v35  ;;  %6159 = vmatpush.msra.mxu3 %v788_v35 }
  0x4d   : > { %835 = vmatpush.msra.mxu0 %v804_v36  ;;  %6166 = vmatpush.msra.mxu2 %v1189_v34 }
  0x4e   : > { %1014 = vmatpush.msra.mxu1 %v787_v37  ;;  %6160 = vmatpush.msra.mxu3 %v787_v37  ;;  %v6826_v37 = vld [vmem:[#allocation2 + $0x170] sm:$0xff] }
  0x4f   : > { %836 = vmatmul.f32.vlgmr.msra.gmra.mxu0 %v426_v38  ;;  %1015 = vmatmul.f32.vlgmr.msra.gmra.mxu1 %v6677_v27  ;;  %v6828_v38 = vld [vmem:[#allocation2 + $0x80] sm:$0xff] }
  0x50   : > { %1111 = vmatmul.f32.vlgmr.msra.gmra.mxu3 %v6683_v39  ;;  %1195 = vmatpush.msrb.mxu0 %v6674_v14  ;;  %v6773_v14 = vld [vmem:[#allocation2 + $0x58] sm:$0xff] }
  0x51   : > { %v445_v15 = vrot.slane %v6773_v14, 1  ;;  %1445 = vmatpush.msrb.mxu3 %v1444_v41  ;;  %6167 = vmatpush.msra.mxu2 %v1188_v62  ;;  %v1437_v41 = vld [vmem:[#allocation4 + $0x1c0] sm:$0xff] }
  0x52   : > { %1196 = vmatpush.msrb.mxu0 %v1193_v33  ;;  %v6817_v33 = vld [vmem:[#allocation2 + $0x78] sm:$0xff] }
  0x53   : > { %v6780_v17 = vsel %vm423_vm0, %v443_v11, %v445_v15  ;;  %v6791_v21 = vsel %vm423_vm0, %v445_v15, %v447_v20  ;;  %v453_v35 = vrot.slane %v6817_v33, 1  ;;  %v1438_v20 = vld [vmem:[#allocation4 + $0x1c8] sm:$0xff] }
  0x54   : > { %1197 = vmatpush.msrb.mxu0 %v1192_v50  ;;  %10978 = vst [vmem:[#allocation21_spill] sm:$0xff] %v6780_v17  ;;  %v6839_v50 = vld [vmem:[#allocation2 + $0x88] sm:$0xff] }
  0x55   : > { %10979 = vst [vmem:[#allocation22_spill] sm:$0xff] %v6791_v21  ;;  %v457_v58 = vrot.slane %v6839_v50, 1 }
  0x56   : > { %1198 = vmatpush.msrb.mxu0 %v1191_v3  ;;  %v1187_v3 = vld [vmem:[#allocation4 + $0x140] sm:$0xff] }
  0x57   : > { %839 = vmatmul.f32.gmra.mxu0 %v428_v42  ;;  %1018 = vmatmul.f32.gmra.mxu1 %v304_v28  ;;  %v6806_v28 = vld [vmem:[#allocation2 + $0x70] sm:$0xff] }
  0x58   : > { %1114 = vmatmul.f32.gmra.mxu3 %v6689_v43  ;;  %1199 = vmatpush.msrb.mxu0 %v1190_v16  ;;  %v451_v29 = vrot.slane %v6806_v28, 1  ;;  %v1443_v42 = vld [vmem:[#allocation4 + $0x1f0] sm:$0xff]  ;;  %v1186_v16 = vld [vmem:[#allocation4 + $0x138] sm:$0xff] }
  0x59   : > { %1446 = vmatpush.msrb.mxu3 %v1443_v42  ;;  %6168 = vmatpush.msra.mxu2 %v1187_v3  ;;  %v1184_v42 = vld [vmem:[#allocation4 + $0x128] sm:$0xff] }
  0x5a   : > { %v6813_v30 = vsel %vm423_vm0, %v449_v24, %v451_v29  ;;  %1200 = vmatpush.msrb.mxu0 %v1189_v34  ;;  %v6824_v36 = vsel %vm423_vm0, %v451_v29, %v453_v35  ;;  %v6848_v29 = vld [vmem:[#allocation2 + $0x180] sm:$0xff]  ;;  %v6850_v34 = vld [vmem:[#allocation2 + $0x90] sm:$0xff] }
  0x5b   : > { %10981 = vst [vmem:[#allocation24_spill] sm:$0xff] %v6813_v30  ;;  %6169 = vmatpush.msra.mxu2 %v1186_v16 }
  0x5c   : > { %10982 = vst [vmem:[#allocation25_spill] sm:$0xff] %v6824_v36  ;;  %1201 = vmatpush.msrb.mxu0 %v1188_v62  ;;  %v1435_v62 = vld [vmem:[#allocation4 + $0x1b0] sm:$0xff] }
  0x5e   : > { %1202 = vmatpush.msrb.mxu0 %v1187_v3 }
  0x5f   : > { %842 = vmatmul.f32.gmra.mxu0 %v430_v46  ;;  %1021 = vmatmul.f32.gmra.mxu1 %v305_v40  ;;  %v455_v40 = vrot.slane %v6828_v38, 1  ;;  %v1442_v46 = vld [vmem:[#allocation4 + $0x1e8] sm:$0xff] }
  0x60   : > { %1117 = vmatmul.f32.gmra.mxu3 %v6696_v47  ;;  %1203 = vmatpush.msrb.mxu0 %v1186_v16  ;;  %v1434_v16 = vld [vmem:[#allocation4 + $0x1a8] sm:$0xff] }
  0x61   : > { %v6835_v45 = vsel %vm423_vm0, %v453_v35, %v455_v40  ;;  %1447 = vmatpush.msrb.mxu3 %v1442_v46  ;;  %v6846_v15 = vsel %vm423_vm0, %v455_v40, %v457_v58  ;;  %v1185_v35 = vld [vmem:[#allocation4 + $0x130] sm:$0xff]  ;;  %v459_v40 = vrot.slane %v6850_v34, 1  ;;  %v1436_v46 = vld [vmem:[#allocation4 + $0x1b8] sm:$0xff] }
  0x62   : > { %10983 = vst [vmem:[#allocation26_spill] sm:$0xff] %v6835_v45  ;;  %6170 = vmatpush.msra.mxu2 %v1185_v35  ;;  %1204 = vmatpush.msrb.mxu0 %v1185_v35  ;;  %v1433_v35 = vld [vmem:[#allocation4 + $0x1a0] sm:$0xff] }
  0x63   : > { %1448 = vmatpush.msrb.mxu3 %v1441_v54  ;;  %10984 = vst [vmem:[#allocation27_spill] sm:$0xff] %v6846_v15  ;;  %v1183_v54 = vld [vmem:[#allocation4 + $0x120] sm:$0xff] }
  0x64   : > { %6171 = vmatpush.msra.mxu2 %v1184_v42  ;;  %1205 = vmatpush.msrb.mxu0 %v1184_v42  ;;  %v1180_v42 = vld [vmem:[#allocation4 + $0x108] sm:$0xff] }
  0x65   : > { %1449 = vmatpush.msrb.mxu3 %v1440_v2 }
  0x66   : > { %6172 = vmatpush.msra.mxu2 %v1183_v54  ;;  %1206 = vmatpush.msrb.mxu0 %v1183_v54 }
  0x67   : > { %845 = vmatmul.f32.gmra.mxu0 %v6703_v51  ;;  %1024 = vmatmul.f32.gmra.mxu1 %v6691_v44 }
  0x68   : > { %1120 = vmatmul.f32.gmra.mxu3 %v6705_v52 }
  0x69   : > { %1450 = vmatpush.msrb.mxu3 %v1439_v7  ;;  %v6859_v7 = vsel %vm423_vm0, %v457_v58, %v459_v40  ;;  %v461_v58 = vrot.slane %v6863_v31, 1 }
  0x6a   : > { %10986 = vst [vmem:[#allocation29_spill] sm:$0xff] %v6859_v7 }
  0x6b   : > { %1451 = vmatpush.msrb.mxu3 %v1438_v20 }
  0x6d   : > { %1452 = vmatpush.msrb.mxu3 %v1437_v41  ;;  %v1181_v41 = vld [vmem:[#allocation4 + $0x110] sm:$0xff] }
  0x6f   : > { %848 = vmatmul.f32.gmra.mxu0 %v6714_v55  ;;  %1027 = vmatmul.f32.gmra.mxu1 %v6698_v48 }
  0x70   : > { %1123 = vmatmul.f32.gmra.mxu3 %v6716_v56 }
  0x71   : > { %1453 = vmatpush.msrb.mxu3 %v1436_v46  ;;  %v6866_v46 = vld [vmem:[#allocation2 + $0xb0] sm:$0xff] }
  0x73   : > { %1454 = vmatpush.msrb.mxu3 %v1435_v62  ;;  %v10577_v62 = vrot.slane %v6866_v46, 2 }
  0x75   : > { %1455 = vmatpush.msrb.mxu3 %v1434_v16  ;;  %v1431_v16 = vld [vmem:[#allocation4 + $0x190] sm:$0xff] }
  0x77   : > { %851 = vmatmul.f32.gmra.mxu0 %v6725_v59  ;;  %1030 = vmatmul.f32.gmra.mxu1 %v6707_v53 }
  0x78   : > { %1126 = vmatmul.f32.gmra.mxu3 %v6727_v60 }
  0x79   : > { %1456 = vmatpush.msrb.mxu3 %v1433_v35  ;;  %v6883_v35 = vsel %vm423_vm0, %v459_v40, %v461_v58 }
  0x7a   : > { %10989 = vst [vmem:[#allocation32_spill] sm:$0xff] %v6883_v35 }
  0x7f   : > { %854 = vmatmul.f32.gmra.mxu0 %v6736_v63  ;;  %1033 = vmatmul.f32.gmra.mxu1 %v6718_v57 }
  0x80   : > { %1129 = vmatmul.f32.gmra.mxu3 %v6738_v0 }
  0x87   : > { %857 = vmatmul.f32.gmra.mxu0 %v6747_v4  ;;  %1036 = vmatmul.f32.gmra.mxu1 %v6729_v61 }
  0x88   : > { %1132 = vmatmul.f32.gmra.mxu3 %v6749_v5 }
  0x8f   : > { %860 = vmatmul.f32.gmra.mxu0 %v6758_v8  ;;  %1039 = vmatmul.f32.gmra.mxu1 %v6740_v1 }
  0x90   : > { %1135 = vmatmul.f32.gmra.mxu3 %v6760_v9 }
  0x97   : > { %863 = vmatmul.f32.gmra.mxu0 %v6769_v12  ;;  %1042 = vmatmul.f32.gmra.mxu1 %v6751_v6 }
  0x98   : > { %1138 = vmatmul.f32.gmra.mxu3 %v6771_v13 }
  0x9f   : > { %866 = vmatmul.f32.gmra.mxu0 %v6780_v17  ;;  %1045 = vmatmul.f32.gmra.mxu1 %v6762_v10  ;;  %v6974_v17 = vld [vmem:[#allocation2 + $0xe0] sm:$0xff] }
  0xa0   : > { %1141 = vmatmul.f32.gmra.mxu3 %v6782_v18 }
  0xa7   : > { %869 = vmatmul.f32.gmra.mxu0 %v6791_v21  ;;  %1048 = vmatmul.f32.gmra.mxu1 %v6773_v14 }
  0xa8   : > { %1144 = vmatmul.f32.gmra.mxu3 %v6793_v22 }
  0xaf   : > { %872 = vmatmul.f32.gmra.mxu0 %v6802_v25  ;;  %1051 = vmatmul.f32.gmra.mxu1 %v6784_v19  ;;  %v6887_v25 = vld [vmem:[#allocation2 + $0xa0] sm:$0xff] }
  0xb0   : > { %1147 = vmatmul.f32.gmra.mxu3 %v6804_v26 }
  0xb7   : > { %875 = vmatmul.f32.gmra.mxu0 %v6813_v30  ;;  %1054 = vmatmul.f32.gmra.mxu1 %v6795_v23  ;;  %v6885_v30 = vld [vmem:[#allocation2 + $0x190] sm:$0xff] }
  0xb8   : > { %1150 = vmatmul.f32.gmra.mxu3 %v6815_v32 }
  0xbf   : > { %878 = vmatmul.f32.gmra.mxu0 %v6824_v36  ;;  %1057 = vmatmul.f32.gmra.mxu1 %v6806_v28 }
  0xc0   : > { %1153 = vmatmul.f32.gmra.mxu3 %v6826_v37 }
  0xc7   : > { %881 = vmatmul.f32.gmra.mxu0 %v6835_v45  ;;  %1060 = vmatmul.f32.gmra.mxu1 %v6817_v33  ;;  %v1430_v45 = vld [vmem:[#allocation4 + $0x188] sm:$0xff] }
  0xc8   : > { %1156 = vmatmul.f32.gmra.mxu3 %v6837_v49 }
  0xcc   : > { %v837_v11 = vpop.f32.mrf.mxu0  ;;  %v1016_v24 = vpop.f32.mrf.mxu1 }
  0xcd   : > { %v1182_v11 = vld [vmem:[#allocation4 + $0x118] sm:$0xff]  ;;  %v6861_v24 = vld [vmem:[#allocation2 + $0x188] sm:$0xff] }
  0xce   : > { %6173 = vmatpush.msra.mxu2 %v1182_v11  ;;  %1207 = vmatpush.msrb.mxu0 %v1182_v11  ;;  %v1429_v11 = vld [vmem:[#allocation4 + $0x180] sm:$0xff] }
  0xcf   : > { %884 = vmatmul.f32.gmra.mxu0 %v6846_v15  ;;  %1063 = vmatmul.f32.gmra.mxu1 %v6828_v38 }
  0xd0   : > { %1159 = vmatmul.f32.gmra.mxu3 %v6848_v29  ;;  %6174 = vmatpush.msra.mxu2 %v1181_v41 }
  0xd1   : > { %1208 = vmatpush.msrb.mxu0 %v1181_v41 }
  0xd2   : > { %6175 = vmatpush.msra.mxu2 %v1180_v42 }
  0xd3   : > { %v6856_v2 = vpop.f32.mrf.mxu3  ;;  %1209 = vmatpush.msrb.mxu0 %v1180_v42 }
  0xd4   : > { %10985 = vst [vmem:[#allocation28_spill] sm:$0xff] %v6856_v2  ;;  %v840_v3 = vpop.f32.mrf.mxu0  ;;  %v1019_v20 = vpop.f32.mrf.mxu1  ;;  %v1179_v2 = vld [vmem:[#allocation4 + $0x100] sm:$0xff] }
  0xd5   : > { %v1432_v3 = vld [vmem:[#allocation4 + $0x198] sm:$0xff]  ;;  %6176 = vmatpush.msra.mxu2 %v1179_v2  ;;  %1210 = vmatpush.msrb.mxu0 %v1179_v2 }
  0xd6   : > { %v6871_v20 = vld [vmem:[#allocation2 + $0xb8] sm:$0xff]  ;;  %1457 = vmatpush.msrb.mxu3 %v1432_v3 }
  0xd7   : > { %887 = vmatmul.f32.gmra.mxu0 %v6859_v7  ;;  %1066 = vmatmul.f32.gmra.mxu1 %v6839_v50  ;;  %v651_v54 = vrot.slane %v6871_v20, 2 }
  0xd8   : > { %1162 = vmatmul.f32.gmra.mxu3 %v6861_v24 }
  0xd9   : > { %v6880_v7 = vsel %vm605_vm1, %v10577_v62, %v651_v54  ;;  %1458 = vmatpush.msrb.mxu3 %v1431_v16  ;;  %v6907_v16 = vld [vmem:[#allocation2 + $0x198] sm:$0xff]  ;;  %v6909_v62 = vld [vmem:[#allocation2 + $0xa8] sm:$0xff] }
  0xda   : > { %10988 = vst [vmem:[#allocation31_spill] sm:$0xff] %v6880_v7  ;;  %1277 = vmatmul.f32.vlgmr.msra.gmra.mxu2 %v6880_v7  ;;  %v465_v2 = vrot.slane %v6909_v62, 1  ;;  %v6936_v7 = vld [vmem:[#allocation2 + $0xd0] sm:$0xff] }
  0xdb   : > { %v6875_v27 = vpop.f32.mrf.mxu3  ;;  %1459 = vmatpush.msrb.mxu3 %v1430_v45 }
  0xdc   : > { %10987 = vst [vmem:[#allocation30_spill] sm:$0xff] %v6875_v27  ;;  %v843_v15 = vpop.f32.mrf.mxu0  ;;  %v1022_v36 = vpop.f32.mrf.mxu1 }
  0xdd   : > { %v463_v15 = vrot.slane %v6887_v25, 1  ;;  %v6894_v36 = vld [vmem:[#allocation2 + $0xc0] sm:$0xff]  ;;  %1460 = vmatpush.msrb.mxu3 %v1429_v11 }
  0xde   : > { %v653_v40 = vrot.slane %v6894_v36, 2 }
  0xdf   : > { %890 = vmatmul.f32.gmra.mxu0 %v6883_v35  ;;  %1069 = vmatmul.f32.gmra.mxu1 %v6850_v34  ;;  %v6905_v45 = vsel %vm423_vm0, %v461_v58, %v463_v15  ;;  %v6956_v35 = vld [vmem:[#allocation2 + $0xd8] sm:$0xff] }
  0xe0   : > { %1165 = vmatmul.f32.gmra.mxu3 %v6885_v30  ;;  %v6900_v3 = vsel %vm605_vm1, %v651_v54, %v653_v40  ;;  %10993 = vst [vmem:[#allocation36_spill] sm:$0xff] %v6905_v45  ;;  %v6916_v54 = vld [vmem:[#allocation2 + $0xc8] sm:$0xff] }
  0xe1   : > { %10991 = vst [vmem:[#allocation34_spill] sm:$0xff] %v6900_v3  ;;  %v655_v11 = vrot.slane %v6916_v54, 2 }
  0xe2   : > { %1280 = vmatmul.f32.gmra.mxu2 %v6900_v3  ;;  %v6929_v3 = vld [vmem:[#allocation2 + $0x1a0] sm:$0xff] }
  0xe3   : > { %v6897_v41 = vpop.f32.mrf.mxu3 }
  0xe4   : > { %10990 = vst [vmem:[#allocation33_spill] sm:$0xff] %v6897_v41  ;;  %v6902_v42 = vpop.f32.mrf.mxu0  ;;  %v6922_v41 = vsel %vm605_vm1, %v653_v40, %v655_v11  ;;  %v657_v40 = vrot.slane %v6936_v7, 2 }
  0xe5   : > { %10992 = vst [vmem:[#allocation35_spill] sm:$0xff] %v6902_v42  ;;  %v6927_v42 = vsel %vm423_vm0, %v463_v15, %v465_v2 }
  0xe6   : > { %10995 = vst [vmem:[#allocation38_spill] sm:$0xff] %v6922_v41  ;;  %v6942_v15 = vsel %vm605_vm1, %v655_v11, %v657_v40  ;;  %v659_v11 = vrot.slane %v6956_v35, 2 }
  0xe7   : > { %893 = vmatmul.f32.gmra.mxu0 %v6905_v45  ;;  %1072 = vmatmul.f32.gmra.mxu1 %v6863_v31  ;;  %10997 = vst [vmem:[#allocation40_spill] sm:$0xff] %v6927_v42 }
  0xe8   : > { %1168 = vmatmul.f32.gmra.mxu3 %v6907_v16  ;;  %10999 = vst [vmem:[#allocation42_spill] sm:$0xff] %v6942_v15 }
  0xea   : > { %1283 = vmatmul.f32.gmra.mxu2 %v6922_v41 }
  0xeb   : > { %v6919_v58 = vpop.f32.mrf.mxu3 }
  0xec   : > { %10994 = vst [vmem:[#allocation37_spill] sm:$0xff] %v6919_v58  ;;  %v6924_v27 = vpop.f32.mrf.mxu0  ;;  %v467_v58 = vrot.slane %v6866_v46, 1 }
  0xed   : > { %10996 = vst [vmem:[#allocation39_spill] sm:$0xff] %v6924_v27 }
  0xee   : > { %v6947_v41 = vsel %vm423_vm0, %v465_v2, %v467_v58  ;;  %v6962_v2 = vsel %vm605_vm1, %v657_v40, %v659_v11  ;;  %v661_v40 = vrot.slane %v6974_v17, 2 }
  0xef   : > { %896 = vmatmul.f32.gmra.mxu0 %v6927_v42  ;;  %1075 = vmatmul.f32.gmra.mxu1 %v6887_v25  ;;  %11001 = vst [vmem:[#allocation44_spill] sm:$0xff] %v6947_v41  ;;  %v6949_v42 = vld [vmem:[#allocation2 + $0x1a8] sm:$0xff] }
  0xf0   : > { %1171 = vmatmul.f32.gmra.mxu3 %v6929_v3  ;;  %11003 = vst [vmem:[#allocation46_spill] sm:$0xff] %v6962_v2 }
  0xf2   : > { %1286 = vmatmul.f32.gmra.mxu2 %v6942_v15 }
  0xf3   : > { %v6939_v27 = vpop.f32.mrf.mxu3 }
  0xf4   : > { %10998 = vst [vmem:[#allocation41_spill] sm:$0xff] %v6939_v27  ;;  %v6944_v45 = vpop.f32.mrf.mxu0  ;;  %v469_v27 = vrot.slane %v6871_v20, 1 }
  0xf5   : > { %11000 = vst [vmem:[#allocation43_spill] sm:$0xff] %v6944_v45 }
  0xf6   : > { %v6967_v15 = vsel %vm423_vm0, %v467_v58, %v469_v27 }
  0xf7   : > { %899 = vmatmul.f32.gmra.mxu0 %v6947_v41  ;;  %1078 = vmatmul.f32.gmra.mxu1 %v6909_v62  ;;  %11005 = vst [vmem:[#allocation48_spill] sm:$0xff] %v6967_v15  ;;  %v471_v41 = vrot.slane %v6894_v36, 1 }
  0xf8   : > { %1174 = vmatmul.f32.gmra.mxu3 %v6949_v42 }
  0xfa   : > { %1289 = vmatmul.f32.gmra.mxu2 %v6962_v2  ;;  %v6985_v2 = vsel %vm423_vm0, %v469_v27, %v471_v41 }
  0xfb   : > { %v6959_v45 = vpop.f32.mrf.mxu3  ;;  %11009 = vst [vmem:[#allocation52_spill] sm:$0xff] %v6985_v2 }
  0xfc   : > { %11002 = vst [vmem:[#allocation45_spill] sm:$0xff] %v6959_v45  ;;  %v6964_v21 = vpop.f32.mrf.mxu0 }
  0xfd   : > { %11004 = vst [vmem:[#allocation47_spill] sm:$0xff] %v6964_v21  ;;  %v6980_v21 = vsel %vm605_vm1, %v659_v11, %v661_v40 }
  0xfe   : > { %11007 = vst [vmem:[#allocation50_spill] sm:$0xff] %v6980_v21 }
  0xff   : > { %902 = vmatmul.f32.gmra.mxu0 %v6967_v15  ;;  %1081 = vmatmul.f32.gmra.mxu1 %v6866_v46  ;;  %v6992_v15 = vld [vmem:[#allocation2 + $0xe8] sm:$0xff] }
 0x100   : > { %1461 = vmatmul.f32.vlgmr.msrb.gmra.mxu3 %v6691_v44  ;;  %v473_v44 = vrot.slane %v6916_v54, 1  ;;  %v663_v11 = vrot.slane %v6992_v15, 2 }
 0x102   : > { %1292 = vmatmul.f32.gmra.mxu2 %v6980_v21  ;;  %v7003_v21 = vsel %vm423_vm0, %v471_v41, %v473_v44 }
 0x103   : > { %v6977_v45 = vpop.f32.mrf.mxu3  ;;  %11013 = vst [vmem:[#allocation56_spill] sm:$0xff] %v7003_v21 }
 0x104   : > { %11006 = vst [vmem:[#allocation49_spill] sm:$0xff] %v6977_v45  ;;  %v6982_v58 = vpop.f32.mrf.mxu0 }
 0x105   : > { %11008 = vst [vmem:[#allocation51_spill] sm:$0xff] %v6982_v58  ;;  %v6998_v58 = vsel %vm605_vm1, %v661_v40, %v663_v11 }
 0x106   : > { %11011 = vst [vmem:[#allocation54_spill] sm:$0xff] %v6998_v58 }
 0x107   : > { %905 = vmatmul.f32.gmra.mxu0 %v6985_v2  ;;  %1084 = vmatmul.f32.gmra.mxu1 %v6871_v20  ;;  %v7010_v2 = vld [vmem:[#allocation2 + $0xf0] sm:$0xff] }
 0x108   : > { %1464 = vmatmul.f32.gmra.mxu3 %v6698_v48  ;;  %v475_v48 = vrot.slane %v6936_v7, 1  ;;  %v665_v40 = vrot.slane %v7010_v2, 2 }
 0x10a   : > { %1295 = vmatmul.f32.gmra.mxu2 %v6998_v58  ;;  %v7021_v58 = vsel %vm423_vm0, %v473_v44, %v475_v48 }
 0x10b   : > { %v6995_v45 = vpop.f32.mrf.mxu3  ;;  %11017 = vst [vmem:[#allocation60_spill] sm:$0xff] %v7021_v58 }
 0x10c   : > { %11010 = vst [vmem:[#allocation53_spill] sm:$0xff] %v6995_v45  ;;  %v7000_v27 = vpop.f32.mrf.mxu0 }
 0x10d   : > { %11012 = vst [vmem:[#allocation55_spill] sm:$0xff] %v7000_v27  ;;  %v7016_v27 = vsel %vm605_vm1, %v663_v11, %v665_v40 }
 0x10e   : > { %11015 = vst [vmem:[#allocation58_spill] sm:$0xff] %v7016_v27 }
 0x10f   : > { %908 = vmatmul.f32.gmra.mxu0 %v7003_v21  ;;  %1087 = vmatmul.f32.gmra.mxu1 %v6894_v36  ;;  %v7028_v21 = vld [vmem:[#allocation2 + $0xf8] sm:$0xff] }
 0x110   : > { %1467 = vmatmul.f32.gmra.mxu3 %v6707_v53  ;;  %v477_v53 = vrot.slane %v6956_v35, 1  ;;  %v667_v11 = vrot.slane %v7028_v21, 2 }
 0x112   : > { %1298 = vmatmul.f32.gmra.mxu2 %v7016_v27  ;;  %v7039_v27 = vsel %vm423_vm0, %v475_v48, %v477_v53 }
 0x113   : > { %v7013_v45 = vpop.f32.mrf.mxu3  ;;  %11021 = vst [vmem:[#allocation64_spill] sm:$0xff] %v7039_v27 }
 0x114   : > { %11014 = vst [vmem:[#allocation57_spill] sm:$0xff] %v7013_v45  ;;  %v7018_v41 = vpop.f32.mrf.mxu0 }
 0x115   : > { %11016 = vst [vmem:[#allocation59_spill] sm:$0xff] %v7018_v41  ;;  %v7034_v41 = vsel %vm605_vm1, %v665_v40, %v667_v11  ;;  %v669_v40 = vrot.slane %v6683_v39, 2 }
 0x116   : > { %11019 = vst [vmem:[#allocation62_spill] sm:$0xff] %v7034_v41 }
 0x117   : > { %911 = vmatmul.f32.gmra.mxu0 %v7021_v58  ;;  %1090 = vmatmul.f32.gmra.mxu1 %v6916_v54 }
 0x118   : > { %1470 = vmatmul.f32.gmra.mxu3 %v6718_v57  ;;  %v7043_v57 = vpop.f32.mrf.mxu1 }
 0x11a   : > { %1301 = vmatmul.f32.gmra.mxu2 %v7034_v41 }
 0x11b   : > { %v7031_v45 = vpop.f32.mrf.mxu3 }
 0x11c   : > { %11018 = vst [vmem:[#allocation61_spill] sm:$0xff] %v7031_v45  ;;  %v7036_v44 = vpop.f32.mrf.mxu0  ;;  %v479_v45 = vrot.slane %v6974_v17, 1 }
 0x11d   : > { %11020 = vst [vmem:[#allocation63_spill] sm:$0xff] %v7036_v44  ;;  %v7052_v44 = vsel %vm605_vm1, %v667_v11, %v669_v40 }
 0x11e   : > { %11023 = vst [vmem:[#allocation66_spill] sm:$0xff] %v7052_v44  ;;  %v7057_v41 = vsel %vm423_vm0, %v477_v53, %v479_v45 }
 0x11f   : > { %914 = vmatmul.f32.gmra.mxu0 %v7039_v27  ;;  %1093 = vmatmul.f32.gmra.mxu1 %v6936_v7  ;;  %11025 = vst [vmem:[#allocation68_spill] sm:$0xff] %v7057_v41 }
 0x120   : > { %1473 = vmatmul.f32.gmra.mxu3 %v6729_v61  ;;  %v481_v61 = vrot.slane %v6992_v15, 1  ;;  %v7065_v27 = vpop.f32.mrf.mxu1 }
 0x122   : > { %1304 = vmatmul.f32.gmra.mxu2 %v7052_v44  ;;  %v7075_v44 = vsel %vm423_vm0, %v479_v45, %v481_v61 }
 0x123   : > { %v7049_v58 = vpop.f32.mrf.mxu3  ;;  %11029 = vst [vmem:[#allocation72_spill] sm:$0xff] %v7075_v44 }
 0x124   : > { %11022 = vst [vmem:[#allocation65_spill] sm:$0xff] %v7049_v58  ;;  %v7054_v48 = vpop.f32.mrf.mxu0  ;;  %v671_v58 = vrot.slane %v6689_v43, 2 }
 0x125   : > { %11024 = vst [vmem:[#allocation67_spill] sm:$0xff] %v7054_v48 }
 0x126   : > { %v7070_v48 = vsel %vm605_vm1, %v669_v40, %v671_v58 }
 0x127   : > { %917 = vmatmul.f32.gmra.mxu0 %v7057_v41  ;;  %1096 = vmatmul.f32.gmra.mxu1 %v6956_v35  ;;  %11027 = vst [vmem:[#allocation70_spill] sm:$0xff] %v7070_v48 }
 0x128   : > { %1476 = vmatmul.f32.gmra.mxu3 %v6740_v1  ;;  %v483_v1 = vrot.slane %v7010_v2, 1 }
 0x12a   : > { %1307 = vmatmul.f32.gmra.mxu2 %v7070_v48  ;;  %v7093_v48 = vsel %vm423_vm0, %v481_v61, %v483_v1 }
 0x12b   : > { %v7067_v11 = vpop.f32.mrf.mxu3  ;;  %11033 = vst [vmem:[#allocation76_spill] sm:$0xff] %v7093_v48 }
 0x12c   : > { %11026 = vst [vmem:[#allocation69_spill] sm:$0xff] %v7067_v11  ;;  %v7072_v53 = vpop.f32.mrf.mxu0  ;;  %v673_v11 = vrot.slane %v6696_v47, 2 }
 0x12d   : > { %11028 = vst [vmem:[#allocation71_spill] sm:$0xff] %v7072_v53  ;;  %v7088_v53 = vpop.f32.mrf.mxu1 }
 0x12e   : > { %v7086_v40 = vsel %vm605_vm1, %v671_v58, %v673_v11  ;;  %v675_v58 = vrot.slane %v6705_v52, 2 }
 0x12f   : > { %920 = vmatmul.f32.gmra.mxu0 %v7075_v44  ;;  %1099 = vmatmul.f32.gmra.mxu1 %v6974_v17  ;;  %11031 = vst [vmem:[#allocation74_spill] sm:$0xff] %v7086_v40 }
 0x130   : > { %1479 = vmatmul.f32.gmra.mxu3 %v6751_v6  ;;  %v485_v6 = vrot.slane %v7028_v21, 1  ;;  %v7104_v44 = vsel %vm605_vm1, %v673_v11, %v675_v58  ;;  %v677_v11 = vrot.slane %v6716_v56, 2 }
 0x131   : > { %11035 = vst [vmem:[#allocation78_spill] sm:$0xff] %v7104_v44 }
 0x132   : > { %1310 = vmatmul.f32.gmra.mxu2 %v7086_v40  ;;  %v7109_v61 = vsel %vm423_vm0, %v483_v1, %v485_v6 }
 0x133   : > { %v7083_v41 = vpop.f32.mrf.mxu3  ;;  %11037 = vst [vmem:[#allocation80_spill] sm:$0xff] %v7109_v61 }
 0x134   : > { %11030 = vst [vmem:[#allocation73_spill] sm:$0xff] %v7083_v41  ;;  %v7090_v45 = vpop.f32.mrf.mxu0 }
 0x135   : > { %11032 = vst [vmem:[#allocation75_spill] sm:$0xff] %v7090_v45  ;;  %v7111_v40 = vpop.f32.mrf.mxu1 }
 0x137   : > { %923 = vmatmul.f32.gmra.mxu0 %v7093_v48  ;;  %1102 = vmatmul.f32.gmra.mxu1 %v6992_v15 }
 0x138   : > { %1482 = vmatmul.f32.gmra.mxu3 %v6762_v10  ;;  %v487_v10 = vrot.slane %v6683_v39, 1  ;;  %v489_v39 = vrot.slane %v6689_v43, 1  ;;  %v491_v43 = vrot.slane %v6696_v47, 1  ;;  %v493_v47 = vrot.slane %v6705_v52, 1 }
 0x139   : > { %v495_v52 = vrot.slane %v6716_v56, 1  ;;  %v497_v56 = vrot.slane %v6727_v60, 1 }
 0x13a   : > { %1313 = vmatmul.f32.gmra.mxu2 %v7104_v44  ;;  %v7127_v48 = vsel %vm423_vm0, %v485_v6, %v487_v10 }
 0x13b   : > { %v7101_v41 = vpop.f32.mrf.mxu3  ;;  %11041 = vst [vmem:[#allocation84_spill] sm:$0xff] %v7127_v48 }
 0x13c   : > { %11034 = vst [vmem:[#allocation77_spill] sm:$0xff] %v7101_v41  ;;  %v7106_v45 = vpop.f32.mrf.mxu0 }
 0x13d   : > { %11036 = vst [vmem:[#allocation79_spill] sm:$0xff] %v7106_v45  ;;  %v7122_v45 = vsel %vm605_vm1, %v675_v58, %v677_v11  ;;  %v7131_v44 = vpop.f32.mrf.mxu1 }
 0x13e   : > { %11039 = vst [vmem:[#allocation82_spill] sm:$0xff] %v7122_v45 }
 0x13f   : > { %926 = vmatmul.f32.gmra.mxu0 %v7109_v61  ;;  %1105 = vmatmul.f32.gmra.mxu1 %v7010_v2 }
 0x140   : > { %1485 = vmatmul.f32.gmra.mxu3 %v6773_v14  ;;  %v679_v14 = vrot.slane %v6727_v60, 2  ;;  %v689_v60 = vrot.slane %v6782_v18, 2 }
 0x142   : > { %1316 = vmatmul.f32.gmra.mxu2 %v7122_v45 }
 0x143   : > { %v7119_v41 = vpop.f32.mrf.mxu3 }
 0x144   : > { %11038 = vst [vmem:[#allocation81_spill] sm:$0xff] %v7119_v41  ;;  %v7124_v1 = vpop.f32.mrf.mxu0  ;;  %v7140_v41 = vsel %vm605_vm1, %v677_v11, %v679_v14 }
 0x145   : > { %11040 = vst [vmem:[#allocation83_spill] sm:$0xff] %v7124_v1  ;;  %v7145_v1 = vsel %vm423_vm0, %v487_v10, %v489_v39  ;;  %v7160_v10 = vsel %vm423_vm0, %v489_v39, %v491_v43  ;;  %v7175_v39 = vsel %vm423_vm0, %v491_v43, %v493_v47  ;;  %v7190_v43 = vsel %vm423_vm0, %v493_v47, %v495_v52 }
 0x146   : > { %11043 = vst [vmem:[#allocation86_spill] sm:$0xff] %v7140_v41 }
 0x147   : > { %929 = vmatmul.f32.gmra.mxu0 %v7127_v48  ;;  %1108 = vmatmul.f32.gmra.mxu1 %v7028_v21  ;;  %11045 = vst [vmem:[#allocation88_spill] sm:$0xff] %v7145_v1  ;;  %v2187_v48 = vld [vmem:[#allocation4 + $0x340] sm:$0xff] }
 0x148   : > { %1488 = vmatmul.f32.gmra.mxu3 %v6784_v19  ;;  %v681_v19 = vrot.slane %v6738_v0, 2  ;;  %11049 = vst [vmem:[#allocation92_spill] sm:$0xff] %v7160_v10 }
 0x149   : > { %11053 = vst [vmem:[#allocation96_spill] sm:$0xff] %v7175_v39 }
 0x14a   : > { %1319 = vmatmul.f32.gmra.mxu2 %v7140_v41  ;;  %v7155_v11 = vsel %vm605_vm1, %v679_v14, %v681_v19  ;;  %11057 = vst [vmem:[#allocation100_spill] sm:$0xff] %v7190_v43 }
 0x14b   : > { %v7137_v58 = vpop.f32.mrf.mxu3  ;;  %11047 = vst [vmem:[#allocation90_spill] sm:$0xff] %v7155_v11 }
 0x14c   : > { %11042 = vst [vmem:[#allocation85_spill] sm:$0xff] %v7137_v58  ;;  %v7142_v6 = vpop.f32.mrf.mxu0 }
 0x14d   : > { %11044 = vst [vmem:[#allocation87_spill] sm:$0xff] %v7142_v6 }
 0x14f   : > { %932 = vmatmul.f32.gmra.mxu0 %v7145_v1  ;;  %v2442_v1 = vld [vmem:[#allocation4 + $0x3e8] sm:$0xff] }
 0x150   : > { %1491 = vmatmul.f32.gmra.mxu3 %v6795_v23  ;;  %v683_v23 = vrot.slane %v6749_v5, 2 }
 0x152   : > { %1322 = vmatmul.f32.gmra.mxu2 %v7155_v11  ;;  %v7170_v14 = vsel %vm605_vm1, %v681_v19, %v683_v23 }
 0x153   : > { %v7152_v45 = vpop.f32.mrf.mxu3  ;;  %11051 = vst [vmem:[#allocation94_spill] sm:$0xff] %v7170_v14 }
 0x154   : > { %11046 = vst [vmem:[#allocation89_spill] sm:$0xff] %v7152_v45  ;;  %v7157_v58 = vpop.f32.mrf.mxu0 }
 0x155   : > { %11048 = vst [vmem:[#allocation91_spill] sm:$0xff] %v7157_v58 }
 0x157   : > { %935 = vmatmul.f32.gmra.mxu0 %v7160_v10 }
 0x158   : > { %1494 = vmatmul.f32.gmra.mxu3 %v6806_v28  ;;  %v685_v28 = vrot.slane %v6760_v9, 2 }
 0x15a   : > { %1325 = vmatmul.f32.gmra.mxu2 %v7170_v14  ;;  %v7185_v19 = vsel %vm605_vm1, %v683_v23, %v685_v28  ;;  %v1693_v14 = vld [vmem:[#allocation4 + $0x270] sm:$0xff] }
 0x15b   : > { %v7167_v6 = vpop.f32.mrf.mxu3  ;;  %11055 = vst [vmem:[#allocation98_spill] sm:$0xff] %v7185_v19 }
 0x15c   : > { %11050 = vst [vmem:[#allocation93_spill] sm:$0xff] %v7167_v6  ;;  %v7172_v45 = vpop.f32.mrf.mxu0 }
 0x15d   : > { %11052 = vst [vmem:[#allocation95_spill] sm:$0xff] %v7172_v45 }
 0x15f   : > { %938 = vmatmul.f32.gmra.mxu0 %v7175_v39  ;;  %v7526_v39 = vld [vmem:[#allocation2 + $0x40] sm:$0xff] }
 0x160   : > { %1497 = vmatmul.f32.gmra.mxu3 %v6817_v33  ;;  %v687_v33 = vrot.slane %v6771_v13, 2 }
 0x162   : > { %1328 = vmatmul.f32.gmra.mxu2 %v7185_v19 }
 0x163   : > { %v7182_v58 = vpop.f32.mrf.mxu3 }
 0x164   : > { %11054 = vst [vmem:[#allocation97_spill] sm:$0xff] %v7182_v58  ;;  %v7187_v6 = vpop.f32.mrf.mxu0  ;;  %v7198_v58 = vsel %vm605_vm1, %v685_v28, %v687_v33 }
 0x165   : > { %11056 = vst [vmem:[#allocation99_spill] sm:$0xff] %v7187_v6  ;;  %v7203_v6 = vsel %vm423_vm0, %v495_v52, %v497_v56 }
 0x166   : > { %11058 = vst [vmem:[#allocation101_spill] sm:$0xff] %v7198_v58 }
 0x167   : > { %941 = vmatmul.f32.gmra.mxu0 %v7190_v43  ;;  %11060 = vst [vmem:[#allocation103_spill] sm:$0xff] %v7203_v6 }
 0x168   : > { %1500 = vmatmul.f32.gmra.mxu3 %v6828_v38  ;;  %v499_v38 = vrot.slane %v6738_v0, 1  ;;  %v691_v0 = vrot.slane %v6793_v22, 2 }
 0x16a   : > { %1331 = vmatmul.f32.gmra.mxu2 %v7198_v58 }
 0x16b   : > { %v1169_v45 = vpop.f32.mrf.mxu3 }
 0x16c   : > { %v7200_v23 = vpop.f32.mrf.mxu0  ;;  %v7211_v45 = vsel %vm605_vm1, %v687_v33, %v689_v60 }
 0x16d   : > { %11059 = vst [vmem:[#allocation102_spill] sm:$0xff] %v7200_v23  ;;  %v7216_v23 = vsel %vm423_vm0, %v497_v56, %v499_v38 }
 0x16e   : > { %11061 = vst [vmem:[#allocation104_spill] sm:$0xff] %v7211_v45 }
 0x16f   : > { %944 = vmatmul.f32.gmra.mxu0 %v7203_v6  ;;  %11063 = vst [vmem:[#allocation106_spill] sm:$0xff] %v7216_v23 }
 0x170   : > { %1503 = vmatmul.f32.gmra.mxu3 %v6839_v50  ;;  %v501_v50 = vrot.slane %v6749_v5, 1  ;;  %v693_v5 = vrot.slane %v6804_v26, 2 }
 0x172   : > { %1334 = vmatmul.f32.gmra.mxu2 %v7211_v45 }
 0x173   : > { %v1172_v47 = vpop.f32.mrf.mxu3 }
 0x174   : > { %v7213_v28 = vpop.f32.mrf.mxu0  ;;  %v7224_v47 = vsel %vm605_vm1, %v689_v60, %v691_v0 }
 0x175   : > { %11062 = vst [vmem:[#allocation105_spill] sm:$0xff] %v7213_v28  ;;  %v7229_v28 = vsel %vm423_vm0, %v499_v38, %v501_v50 }
 0x176   : > { %11064 = vst [vmem:[#allocation107_spill] sm:$0xff] %v7224_v47 }
 0x177   : > { %947 = vmatmul.f32.gmra.mxu0 %v7216_v23  ;;  %11065 = vst [vmem:[#allocation108_spill] sm:$0xff] %v7229_v28 }
 0x178   : > { %1506 = vmatmul.f32.gmra.mxu3 %v6850_v34  ;;  %v503_v34 = vrot.slane %v6760_v9, 1  ;;  %v695_v9 = vrot.slane %v6815_v32, 2 }
 0x17a   : > { %1337 = vmatmul.f32.gmra.mxu2 %v7224_v47  ;;  %v7242_v45 = vsel %vm423_vm0, %v501_v50, %v503_v34 }
 0x17b   : > { %v1175_v52 = vpop.f32.mrf.mxu3  ;;  %11067 = vst [vmem:[#allocation110_spill] sm:$0xff] %v7242_v45 }
 0x17c   : > { %v7226_v33 = vpop.f32.mrf.mxu0  ;;  %v7237_v52 = vsel %vm605_vm1, %v691_v0, %v693_v5 }
 0x17d   : > { %11066 = vst [vmem:[#allocation109_spill] sm:$0xff] %v7237_v52 }
 0x17f   : > { %950 = vmatmul.f32.gmra.mxu0 %v7229_v28 }
 0x180   : > { %1509 = vmatmul.f32.gmra.mxu3 %v6863_v31  ;;  %v505_v31 = vrot.slane %v6771_v13, 1  ;;  %v697_v13 = vrot.slane %v6826_v37, 2 }
 0x182   : > { %1340 = vmatmul.f32.gmra.mxu2 %v7237_v52  ;;  %v7255_v47 = vsel %vm423_vm0, %v503_v34, %v505_v31  ;;  %v7270_v34 = vpop.f32.mrf.mxu2 }
 0x183   : > { %v1462_v56 = vpop.f32.mrf.mxu3  ;;  %11069 = vst [vmem:[#allocation112_spill] sm:$0xff] %v7255_v47 }
 0x184   : > { %v7239_v60 = vpop.f32.mrf.mxu0  ;;  %v7250_v56 = vsel %vm605_vm1, %v693_v5, %v695_v9 }
 0x185   : > { %11068 = vst [vmem:[#allocation111_spill] sm:$0xff] %v7250_v56 }
 0x187   : > { %953 = vmatmul.f32.gmra.mxu0 %v7242_v45 }
 0x188   : > { %1512 = vmatmul.f32.gmra.mxu3 %v6887_v25  ;;  %v507_v25 = vrot.slane %v6782_v18, 1  ;;  %v509_v18 = vrot.slane %v6793_v22, 1  ;;  %v511_v22 = vrot.slane %v6804_v26, 1  ;;  %v513_v26 = vrot.slane %v6815_v32, 1 }
 0x189   : > { %v515_v32 = vrot.slane %v6826_v37, 1  ;;  %v517_v37 = vrot.slane %v6837_v49, 1 }
 0x18a   : > { %1343 = vmatmul.f32.gmra.mxu2 %v7250_v56  ;;  %v7268_v52 = vsel %vm423_vm0, %v505_v31, %v507_v25  ;;  %v7273_v56 = vpop.f32.mrf.mxu1 }
 0x18b   : > { %v1465_v38 = vpop.f32.mrf.mxu3  ;;  %11071 = vst [vmem:[#allocation114_spill] sm:$0xff] %v7268_v52 }
 0x18c   : > { %v7252_v0 = vpop.f32.mrf.mxu0  ;;  %v7263_v38 = vsel %vm605_vm1, %v695_v9, %v697_v13  ;;  %11072 = vst [vmem:[#allocation115_spill] sm:$0xff] %v7273_v56 }
 0x18d   : > { %11070 = vst [vmem:[#allocation113_spill] sm:$0xff] %v7263_v38 }
 0x18f   : > { %956 = vmatmul.f32.gmra.mxu0 %v7255_v47  ;;  %v7287_v47 = vsel %vm423_vm0, %v507_v25, %v509_v18 }
 0x190   : > { %1515 = vmatmul.f32.gmra.mxu3 %v6909_v62  ;;  %v699_v62 = vrot.slane %v6837_v49, 2  ;;  %11074 = vst [vmem:[#allocation117_spill] sm:$0xff] %v7287_v47  ;;  %v519_v49 = vrot.slane %v6848_v29, 1 }
 0x192   : > { %1346 = vmatmul.f32.gmra.mxu2 %v7263_v38  ;;  %v7291_v38 = vpop.f32.mrf.mxu2 }
 0x193   : > { %v1468_v50 = vpop.f32.mrf.mxu3 }
 0x194   : > { %v7265_v5 = vpop.f32.mrf.mxu0  ;;  %v7282_v50 = vsel %vm605_vm1, %v697_v13, %v699_v62  ;;  %v701_v13 = vrot.slane %v6848_v29, 2 }
 0x195   : > { %11073 = vst [vmem:[#allocation116_spill] sm:$0xff] %v7282_v50 }
 0x196   : > { %v7301_v45 = vsel %vm605_vm1, %v699_v62, %v701_v13 }
 0x197   : > { %959 = vmatmul.f32.gmra.mxu0 %v7268_v52  ;;  %v7295_v52 = vpop.f32.mrf.mxu1  ;;  %11076 = vst [vmem:[#allocation119_spill] sm:$0xff] %v7301_v45 }
 0x198   : > { %1518 = vmatmul.f32.gmra.mxu3 %v6866_v46  ;;  %11075 = vst [vmem:[#allocation118_spill] sm:$0xff] %v7295_v52 }
 0x19a   : > { %1349 = vmatmul.f32.gmra.mxu2 %v7282_v50  ;;  %v7306_v50 = vsel %vm423_vm0, %v509_v18, %v511_v22 }
 0x19b   : > { %v7279_v9 = vpop.f32.mrf.mxu3  ;;  %11078 = vst [vmem:[#allocation121_spill] sm:$0xff] %v7306_v50 }
 0x19c   : > { %v7284_v31 = vpop.f32.mrf.mxu0 }
 0x19f   : > { %962 = vmatmul.f32.gmra.mxu0 %v7287_v47  ;;  %v7313_v47 = vpop.f32.mrf.mxu2  ;;  %v7315_v19 = vpop.f32.mrf.mxu1 }
 0x1a0   : > { %1521 = vmatmul.f32.gmra.mxu3 %v6871_v20  ;;  %v703_v20 = vrot.slane %v6861_v24, 2  ;;  %11079 = vst [vmem:[#allocation122_spill] sm:$0xff] %v7315_v19  ;;  %v2438_v19 = vld [vmem:[#allocation4 + $0x3c8] sm:$0xff] }
 0x1a2   : > { %1352 = vmatmul.f32.gmra.mxu2 %v7301_v45  ;;  %v7325_v45 = vsel %vm423_vm0, %v511_v22, %v513_v26  ;;  %v7342_v22 = vsel %vm423_vm0, %v513_v26, %v515_v32 }
 0x1a3   : > { %v7298_v58 = vpop.f32.mrf.mxu3  ;;  %11082 = vst [vmem:[#allocation125_spill] sm:$0xff] %v7325_v45 }
 0x1a4   : > { %v7303_v25 = vpop.f32.mrf.mxu0  ;;  %11085 = vst [vmem:[#allocation128_spill] sm:$0xff] %v7342_v22 }
 0x1a5   : > { %11077 = vst [vmem:[#allocation120_spill] sm:$0xff] %v7303_v25  ;;  %v7320_v25 = vsel %vm605_vm1, %v701_v13, %v703_v20 }
 0x1a6   : > { %11080 = vst [vmem:[#allocation123_spill] sm:$0xff] %v7320_v25 }
 0x1a7   : > { %965 = vmatmul.f32.gmra.mxu0 %v7306_v50  ;;  %v7337_v28 = vpop.f32.mrf.mxu2 }
 0x1a8   : > { %1524 = vmatmul.f32.gmra.mxu3 %v6894_v36  ;;  %v705_v36 = vrot.slane %v6885_v30, 2 }
 0x1aa   : > { %1355 = vmatmul.f32.gmra.mxu2 %v7320_v25  ;;  %v7335_v13 = vsel %vm605_vm1, %v703_v20, %v705_v36  ;;  %v7344_v25 = vpop.f32.mrf.mxu1 }
 0x1ab   : > { %v7317_v62 = vpop.f32.mrf.mxu3  ;;  %11083 = vst [vmem:[#allocation126_spill] sm:$0xff] %v7335_v13 }
 0x1ac   : > { %v7322_v18 = vpop.f32.mrf.mxu0  ;;  %11086 = vst [vmem:[#allocation129_spill] sm:$0xff] %v7344_v25 }
 0x1ad   : > { %11081 = vst [vmem:[#allocation124_spill] sm:$0xff] %v7322_v18 }
 0x1af   : > { %968 = vmatmul.f32.gmra.mxu0 %v7325_v45  ;;  %v7361_v45 = vsel %vm423_vm0, %v515_v32, %v517_v37  ;;  %v521_v32 = vrot.slane %v6861_v24, 1 }
 0x1b0   : > { %1527 = vmatmul.f32.gmra.mxu3 %v6916_v54  ;;  %v10672_v54 = vrot.slane %v6907_v16, 2  ;;  %11090 = vst [vmem:[#allocation133_spill] sm:$0xff] %v7361_v45 }
 0x1b1   : > { %v7388_v29 = vsel %vm423_vm0, %v519_v49, %v521_v32 }
 0x1b2   : > { %1358 = vmatmul.f32.gmra.mxu2 %v7335_v13  ;;  %v7363_v13 = vpop.f32.mrf.mxu2  ;;  %11098 = vst [vmem:[#allocation141_spill] sm:$0xff] %v7388_v29 }
 0x1b3   : > { %v7332_v50 = vpop.f32.mrf.mxu3 }
 0x1b4   : > { %v7339_v18 = vpop.f32.mrf.mxu0 }
 0x1b5   : > { %11084 = vst [vmem:[#allocation127_spill] sm:$0xff] %v7339_v18  ;;  %v7356_v18 = vsel %vm605_vm1, %v705_v36, %v10672_v54  ;;  %v7376_v54 = vsel %vm423_vm0, %v517_v37, %v519_v49  ;;  %v523_v37 = vrot.slane %v6885_v30, 1  ;;  %v525_v49 = vrot.slane %v6907_v16, 1 }
 0x1b6   : > { %11088 = vst [vmem:[#allocation131_spill] sm:$0xff] %v7356_v18 }
 0x1b7   : > { %971 = vmatmul.f32.gmra.mxu0 %v7342_v22  ;;  %11094 = vst [vmem:[#allocation137_spill] sm:$0xff] %v7376_v54  ;;  %v7410_v30 = vsel %vm423_vm0, %v523_v37, %v525_v49 }
 0x1b8   : > { %1530 = vmatmul.f32.gmra.mxu3 %v6936_v7  ;;  %v7366_v7 = vpop.f32.mrf.mxu1  ;;  %11105 = vst [vmem:[#allocation148_spill] sm:$0xff] %v7410_v30 }
 0x1b9   : > { %11091 = vst [vmem:[#allocation134_spill] sm:$0xff] %v7366_v7 }
 0x1ba   : > { %1361 = vmatmul.f32.gmra.mxu2 %v7356_v18 }
 0x1bb   : > { %v7351_v20 = vpop.f32.mrf.mxu3 }
 0x1bc   : > { %11087 = vst [vmem:[#allocation130_spill] sm:$0xff] %v7351_v20  ;;  %v7358_v26 = vpop.f32.mrf.mxu0  ;;  %v1931_v20 = vld [vmem:[#allocation4 + $0x290] sm:$0xff] }
 0x1bd   : > { %11089 = vst [vmem:[#allocation132_spill] sm:$0xff] %v7358_v26 }
 0x1bf   : > { %974 = vmatmul.f32.gmra.mxu0 %v7361_v45 }
 0x1c0   : > { %1533 = vmatmul.f32.gmra.mxu3 %v6956_v35  ;;  %v7381_v26 = vpop.f32.mrf.mxu1 }
 0x1c1   : > { %11095 = vst [vmem:[#allocation138_spill] sm:$0xff] %v7381_v26 }
 0x1c3   : > { %v7371_v22 = vpop.f32.mrf.mxu3 }
 0x1c4   : > { %11092 = vst [vmem:[#allocation135_spill] sm:$0xff] %v7371_v22  ;;  %v7373_v36 = vpop.f32.mrf.mxu0  ;;  %v1935_v22 = vld [vmem:[#allocation4 + $0x2b0] sm:$0xff] }
 0x1c5   : > { %11093 = vst [vmem:[#allocation136_spill] sm:$0xff] %v7373_v36 }
 0x1c7   : > { %977 = vmatmul.f32.gmra.mxu0 %v7376_v54  ;;  %v7400_v54 = vsel %vm423_vm0, %v521_v32, %v523_v37  ;;  %v527_v32 = vrot.slane %v6929_v3, 1  ;;  %v6279_v37 = vld [vmem:[#allocation2 + $0x100] sm:$0xff] }
 0x1c8   : > { %1536 = vmatmul.f32.gmra.mxu3 %v6974_v17  ;;  %v7393_v36 = vpop.f32.mrf.mxu1  ;;  %11102 = vst [vmem:[#allocation145_spill] sm:$0xff] %v7400_v54 }
 0x1c9   : > { %11099 = vst [vmem:[#allocation142_spill] sm:$0xff] %v7393_v36  ;;  %v7422_v45 = vsel %vm423_vm0, %v525_v49, %v527_v32  ;;  %v6280_v49 = vld [vmem:[#allocation2 + $0x108] sm:$0xff]  ;;  %v1687_v36 = vld [vmem:[#allocation4 + $0x240] sm:$0xff] }
 0x1ca   : > { %11109 = vst [vmem:[#allocation152_spill] sm:$0xff] %v7422_v45 }
 0x1cb   : > { %v7383_v18 = vpop.f32.mrf.mxu3 }
 0x1cc   : > { %11096 = vst [vmem:[#allocation139_spill] sm:$0xff] %v7383_v18  ;;  %v7385_v35 = vpop.f32.mrf.mxu0  ;;  %v2184_v18 = vld [vmem:[#allocation4 + $0x328] sm:$0xff] }
 0x1cd   : > { %11097 = vst [vmem:[#allocation140_spill] sm:$0xff] %v7385_v35 }
 0x1cf   : > { %980 = vmatmul.f32.gmra.mxu0 %v7388_v29 }
 0x1d0   : > { %1539 = vmatmul.f32.gmra.mxu3 %v6992_v15  ;;  %v7412_v29 = vpop.f32.mrf.mxu1 }
 0x1d1   : > { %11106 = vst [vmem:[#allocation149_spill] sm:$0xff] %v7412_v29 }
 0x1d3   : > { %v7395_v17 = vpop.f32.mrf.mxu3 }
 0x1d4   : > { %11100 = vst [vmem:[#allocation143_spill] sm:$0xff] %v7395_v17  ;;  %v7397_v24 = vpop.f32.mrf.mxu0  ;;  %v2441_v17 = vld [vmem:[#allocation4 + $0x3e0] sm:$0xff] }
 0x1d5   : > { %11101 = vst [vmem:[#allocation144_spill] sm:$0xff] %v7397_v24  ;;  %v1694_v24 = vld [vmem:[#allocation4 + $0x278] sm:$0xff] }
 0x1d6   : > { %1695 = vmatpush.msra.mxu0 %v1694_v24 }
 0x1d7   : > { %983 = vmatmul.f32.gmra.mxu0 %v7400_v54 }
 0x1d8   : > { %1542 = vmatmul.f32.gmra.mxu3 %v7010_v2  ;;  %1696 = vmatpush.msra.mxu0 %v1693_v14  ;;  %v1692_v14 = vld [vmem:[#allocation4 + $0x268] sm:$0xff] }
 0x1da   : > { %1697 = vmatpush.msra.mxu0 %v1692_v14  ;;  %v6284_v14 = vld [vmem:[#allocation2 + $0x118] sm:$0xff] }
 0x1db   : > { %v7405_v35 = vpop.f32.mrf.mxu3 }
 0x1dc   : > { %11103 = vst [vmem:[#allocation146_spill] sm:$0xff] %v7405_v35  ;;  %v7407_v15 = vpop.f32.mrf.mxu0  ;;  %v1939_v35 = vld [vmem:[#allocation4 + $0x2d0] sm:$0xff] }
 0x1dd   : > { %11104 = vst [vmem:[#allocation147_spill] sm:$0xff] %v7407_v15  ;;  %v7424_v15 = vpop.f32.mrf.mxu1 }
 0x1de   : > { %11110 = vst [vmem:[#allocation153_spill] sm:$0xff] %v7424_v15 }
 0x1df   : > { %986 = vmatmul.f32.gmra.mxu0 %v7410_v30  ;;  %v529_v30 = vrot.slane %v6949_v42, 1 }
 0x1e0   : > { %1545 = vmatmul.f32.gmra.mxu3 %v7028_v21 }
 0x1e1   : > { %v7433_v24 = vsel %vm423_vm0, %v527_v32, %v529_v30 }
 0x1e2   : > { %11113 = vst [vmem:[#allocation156_spill] sm:$0xff] %v7433_v24 }
 0x1e3   : > { %v7417_v2 = vpop.f32.mrf.mxu3 }
 0x1e4   : > { %11107 = vst [vmem:[#allocation150_spill] sm:$0xff] %v7417_v2  ;;  %v7419_v54 = vpop.f32.mrf.mxu0 }
 0x1e5   : > { %11108 = vst [vmem:[#allocation151_spill] sm:$0xff] %v7419_v54  ;;  %v7435_v54 = vld [vmem:[#allocation2 + $0x1b0] sm:$0xff] }
 0x1e7   : > { %989 = vmatmul.f32.gmra.mxu0 %v7422_v45  ;;  %v10699_v45 = vrot.slane %v7435_v54, 1 }
 0x1e8   : > { %1548 = vmatmul.f32.gmra.mxu3 %v6279_v37  ;;  %v7439_v37 = vpop.f32.mrf.mxu1 }
 0x1e9   : > { %11114 = vst [vmem:[#allocation157_spill] sm:$0xff] %v7439_v37  ;;  %v7448_v32 = vsel %vm423_vm0, %v529_v30, %v10699_v45  ;;  %v6283_v37 = vld [vmem:[#allocation2 + $0x8] sm:$0xff] }
 0x1ea   : > { %11117 = vst [vmem:[#allocation160_spill] sm:$0xff] %v7448_v32  ;;  %v607_v15 = vrot.slane %v6283_v37, 2 }
 0x1eb   : > { %v7428_v21 = vpop.f32.mrf.mxu3 }
 0x1ec   : > { %11111 = vst [vmem:[#allocation154_spill] sm:$0xff] %v7428_v21  ;;  %v7430_v23 = vpop.f32.mrf.mxu0 }
 0x1ed   : > { %11112 = vst [vmem:[#allocation155_spill] sm:$0xff] %v7430_v23  ;;  %v6281_v23 = vld [vmem:[#allocation2 + $0x110] sm:$0xff] }
 0x1ef   : > { %992 = vmatmul.f32.gmra.mxu0 %v7433_v24 }
 0x1f0   : > { %1551 = vmatmul.f32.gmra.mxu3 %v6280_v49  ;;  %v7451_v49 = vld [vmem:[#allocation2] sm:$0xff]  ;;  %v7454_v6 = vpop.f32.mrf.mxu1 }
 0x1f1   : > { %11118 = vst [vmem:[#allocation161_spill] sm:$0xff] %v7451_v49  ;;  %v10703_v24 = vrot.slane %v7451_v49, 2  ;;  %v6287_v49 = vld [vmem:[#allocation2 + $0x18] sm:$0xff] }
 0x1f2   : > { %11119 = vst [vmem:[#allocation162_spill] sm:$0xff] %v7454_v6 }
 0x1f3   : > { %v7441_v42 = vpop.f32.mrf.mxu3  ;;  %v608_v30 = vsel %vm605_vm1, %v10703_v24, %v607_v15  ;;  %v611_v24 = vrot.slane %v6287_v49, 2 }
 0x1f4   : > { %11115 = vst [vmem:[#allocation158_spill] sm:$0xff] %v7441_v42  ;;  %v7443_v11 = vpop.f32.mrf.mxu0 }
 0x1f5   : > { %11116 = vst [vmem:[#allocation159_spill] sm:$0xff] %v7443_v11 }
 0x1f7   : > { %995 = vmatmul.f32.gmra.mxu0 %v7448_v32  ;;  %v1691_v32 = vld [vmem:[#allocation4 + $0x260] sm:$0xff] }
 0x1f8   : > { %1554 = vmatmul.f32.gmra.mxu3 %v6281_v23  ;;  %v6285_v23 = vld [vmem:[#allocation2 + $0x10] sm:$0xff]  ;;  %1698 = vmatpush.msra.mxu0 %v1691_v32 }
 0x1f9   : > { %v609_v45 = vrot.slane %v6285_v23, 2  ;;  %v1690_v23 = vld [vmem:[#allocation4 + $0x258] sm:$0xff] }
 0x1fa   : > { %1699 = vmatpush.msra.mxu0 %v1690_v23  ;;  %v6290_v23 = vld [vmem:[#allocation2 + $0x130] sm:$0xff] }
 0x1fb   : > { %v7456_v11 = vpop.f32.mrf.mxu3  ;;  %v610_v6 = vsel %vm605_vm1, %v607_v15, %v609_v45  ;;  %v612_v32 = vsel %vm605_vm1, %v609_v45, %v611_v24  ;;  %v6288_v15 = vld [vmem:[#allocation2 + $0x128] sm:$0xff]  ;;  %v1689_v45 = vld [vmem:[#allocation4 + $0x250] sm:$0xff] }
 0x1fc   : > { %11120 = vst [vmem:[#allocation163_spill] sm:$0xff] %v7456_v11  ;;  %v7458_v41 = vpop.f32.mrf.mxu0  ;;  %v7468_v11 = vpop.f32.mrf.mxu1  ;;  %1700 = vmatpush.msra.mxu0 %v1689_v45  ;;  %v1944_v45 = vld [vmem:[#allocation4 + $0x2f8] sm:$0xff] }
 0x1fd   : > { %11121 = vst [vmem:[#allocation164_spill] sm:$0xff] %v7458_v41  ;;  %v6286_v41 = vld [vmem:[#allocation2 + $0x120] sm:$0xff]  ;;  %1945 = vmatpush.msrb.mxu1 %v1944_v45 }
 0x1fe   : > { %11124 = vst [vmem:[#allocation167_spill] sm:$0xff] %v7468_v11 }
 0x1ff   : > { %1211 = vmatmul.f32.vlgmr.msrb.gmra.mxu0 %v608_v30  ;;  %v7470_v30 = vpop.f32.mrf.mxu2 }
 0x200   : > { %1557 = vmatmul.f32.gmra.mxu3 %v6284_v14  ;;  %11125 = vst [vmem:[#allocation168_spill] sm:$0xff] %v7470_v30 }
 0x203   : > { %v7463_v29 = vpop.f32.mrf.mxu3 }
 0x204   : > { %11122 = vst [vmem:[#allocation165_spill] sm:$0xff] %v7463_v29  ;;  %v7465_v37 = vpop.f32.mrf.mxu0 }
 0x205   : > { %11123 = vst [vmem:[#allocation166_spill] sm:$0xff] %v7465_v37  ;;  %v7477_v37 = vpop.f32.mrf.mxu1 }
 0x206   : > { %11128 = vst [vmem:[#allocation171_spill] sm:$0xff] %v7477_v37 }
 0x207   : > { %1214 = vmatmul.f32.gmra.mxu0 %v610_v6  ;;  %v6289_v6 = vld [vmem:[#allocation2 + $0x20] sm:$0xff] }
 0x208   : > { %1560 = vmatmul.f32.gmra.mxu3 %v6286_v41  ;;  %v613_v11 = vrot.slane %v6289_v6, 2 }
 0x20a   : > { %v7484_v30 = vsel %vm605_vm1, %v611_v24, %v613_v11  ;;  %v2194_v24 = vld [vmem:[#allocation4 + $0x378] sm:$0xff] }
 0x20b   : > { %v7472_v14 = vpop.f32.mrf.mxu3  ;;  %2195 = vmatpush.msrb.mxu2 %v2194_v24 }
 0x20c   : > { %11126 = vst [vmem:[#allocation169_spill] sm:$0xff] %v7472_v14  ;;  %v7474_v42 = vpop.f32.mrf.mxu0  ;;  %v7486_v14 = vpop.f32.mrf.mxu2 }
 0x20d   : > { %11127 = vst [vmem:[#allocation170_spill] sm:$0xff] %v7474_v42  ;;  %v6291_v42 = vld [vmem:[#allocation2 + $0x28] sm:$0xff] }
 0x20e   : > { %11131 = vst [vmem:[#allocation174_spill] sm:$0xff] %v7486_v14 }
 0x20f   : > { %1217 = vmatmul.f32.gmra.mxu0 %v612_v32  ;;  %v615_v32 = vrot.slane %v6291_v42, 2 }
 0x210   : > { %1563 = vmatmul.f32.gmra.mxu3 %v6288_v15  ;;  %v7489_v15 = vpop.f32.mrf.mxu1 }
 0x211   : > { %11132 = vst [vmem:[#allocation175_spill] sm:$0xff] %v7489_v15  ;;  %v1688_v15 = vld [vmem:[#allocation4 + $0x248] sm:$0xff] }
 0x212   : > { %1701 = vmatpush.msra.mxu0 %v1688_v15 }
 0x213   : > { %v7479_v41 = vpop.f32.mrf.mxu3 }
 0x214   : > { %11129 = vst [vmem:[#allocation172_spill] sm:$0xff] %v7479_v41  ;;  %v7481_v49 = vpop.f32.mrf.mxu0  ;;  %v7498_v14 = vpop.f32.mrf.mxu2  ;;  %v6292_v41 = vld [vmem:[#allocation2 + $0x138] sm:$0xff]  ;;  %1702 = vmatpush.msra.mxu0 %v1687_v36 }
 0x215   : > { %11130 = vst [vmem:[#allocation173_spill] sm:$0xff] %v7481_v49  ;;  %v7496_v49 = vsel %vm605_vm1, %v613_v11, %v615_v32 }
 0x216   : > { %11135 = vst [vmem:[#allocation178_spill] sm:$0xff] %v7498_v14  ;;  %v6294_v14 = vld [vmem:[#allocation2 + $0x140] sm:$0xff] }
 0x217   : > { %1220 = vmatmul.f32.gmra.mxu0 %v7484_v30 }
 0x218   : > { %1566 = vmatmul.f32.gmra.mxu3 %v6290_v23  ;;  %v7501_v23 = vld [vmem:[#allocation2 + $0x30] sm:$0xff] }
 0x219   : > { %v617_v42 = vrot.slane %v7501_v23, 2 }
 0x21b   : > { %v7491_v6 = vpop.f32.mrf.mxu3  ;;  %v7509_v24 = vsel %vm605_vm1, %v615_v32, %v617_v42 }
 0x21c   : > { %11133 = vst [vmem:[#allocation176_spill] sm:$0xff] %v7491_v6  ;;  %v7493_v37 = vpop.f32.mrf.mxu0  ;;  %v7515_v43 = vpop.f32.mrf.mxu2 }
 0x21d   : > { %11134 = vst [vmem:[#allocation177_spill] sm:$0xff] %v7493_v37  ;;  %v1082_v37 = vpop.f32.mrf.mxu1 }
 0x21e   : > { %11138 = vst [vmem:[#allocation181_spill] sm:$0xff] %v7515_v43  ;;  %v1083_v21 = vadd.f32 %v1082_v37, %v7226_v33  ;;  %v621_v43 = vrot.slane %v7526_v39, 2 }
 0x21f   : > { %1223 = vmatmul.f32.gmra.mxu0 %v7496_v49 }
 0x220   : > { %1569 = vmatmul.f32.gmra.mxu3 %v6292_v41  ;;  %v7512_v41 = vld [vmem:[#allocation2 + $0x38] sm:$0xff] }
 0x221   : > { %v619_v29 = vrot.slane %v7512_v41, 2 }
 0x223   : > { %v7504_v6 = vpop.f32.mrf.mxu3  ;;  %v7537_v33 = vsel %vm605_vm1, %v619_v29, %v621_v43 }
 0x224   : > { %11136 = vst [vmem:[#allocation179_spill] sm:$0xff] %v7504_v6  ;;  %v7506_v11 = vpop.f32.mrf.mxu0  ;;  %v7522_v6 = vsel %vm605_vm1, %v617_v42, %v619_v29  ;;  %v1396_v42 = vadd.f32 %v7270_v34, %v1083_v21  ;;  %v1686_v21 = vld [vmem:[#allocation4 + $0x238] sm:$0xff] }
 0x225   : > { %11137 = vst [vmem:[#allocation180_spill] sm:$0xff] %v7506_v11  ;;  %v2193_v11 = vld [vmem:[#allocation4 + $0x370] sm:$0xff]  ;;  %v1085_v32 = vpop.f32.mrf.mxu1  ;;  %1703 = vmatpush.msra.mxu0 %v1686_v21 }
 0x226   : > { %11141 = vst [vmem:[#allocation184_spill] sm:$0xff] %v7522_v6  ;;  %2196 = vmatpush.msrb.mxu2 %v2193_v11  ;;  %v1086_v36 = vadd.f32 %v1085_v32, %v7239_v60  ;;  %v2192_v32 = vld [vmem:[#allocation4 + $0x368] sm:$0xff]  ;;  %v7556_v21 = vld [vmem:[#allocation2 + $0x50] sm:$0xff] }
 0x227   : > { %1226 = vmatmul.f32.gmra.mxu0 %v7509_v24  ;;  %11145 = vst [vmem:[#allocation188_spill] sm:$0xff] %v7537_v33 }
 0x228   : > { %1572 = vmatmul.f32.gmra.mxu3 %v6294_v14  ;;  %v6296_v14 = vld [vmem:[#allocation2 + $0x148] sm:$0xff]  ;;  %2197 = vmatpush.msrb.mxu2 %v2192_v32 }
 0x22b   : > { %v7517_v45 = vpop.f32.mrf.mxu3 }
 0x22c   : > { %11139 = vst [vmem:[#allocation182_spill] sm:$0xff] %v7517_v45  ;;  %v7519_v15 = vpop.f32.mrf.mxu0  ;;  %v1943_v45 = vld [vmem:[#allocation4 + $0x2f0] sm:$0xff] }
 0x22d   : > { %11140 = vst [vmem:[#allocation183_spill] sm:$0xff] %v7519_v15  ;;  %1946 = vmatpush.msrb.mxu1 %v1943_v45  ;;  %v7530_v15 = vpop.f32.mrf.mxu2  ;;  %v1088_v37 = vpop.f32.mrf.mxu1  ;;  %v7541_v45 = vld [vmem:[#allocation2 + $0x48] sm:$0xff] }
 0x22e   : > { %11142 = vst [vmem:[#allocation185_spill] sm:$0xff] %v7530_v15  ;;  %v623_v34 = vrot.slane %v7541_v45, 2 }
 0x22f   : > { %1229 = vmatmul.f32.gmra.mxu0 %v7522_v6 }
 0x230   : > { %1575 = vmatmul.f32.gmra.mxu3 %v6296_v14  ;;  %v6298_v14 = vld [vmem:[#allocation2 + $0x150] sm:$0xff]  ;;  %v7550_v60 = vsel %vm605_vm1, %v621_v43, %v623_v34 }
 0x231   : > { %11148 = vst [vmem:[#allocation191_spill] sm:$0xff] %v7550_v60 }
 0x233   : > { %v1528_v26 = vpop.f32.mrf.mxu3 }
 0x234   : > { %v7532_v11 = vadd.f32 %v1528_v26, %v1396_v42  ;;  %v7534_v2 = vpop.f32.mrf.mxu0  ;;  %v1397_v26 = vadd.f32 %v7291_v38, %v1086_v36  ;;  %v625_v38 = vrot.slane %v7556_v21, 2  ;;  %v1942_v36 = vld [vmem:[#allocation4 + $0x2e8] sm:$0xff] }
 0x235   : > { %11144 = vst [vmem:[#allocation187_spill] sm:$0xff] %v7534_v2  ;;  %v7552_v15 = vpop.f32.mrf.mxu2  ;;  %1947 = vmatpush.msrb.mxu1 %v1942_v36  ;;  %v7571_v36 = vld [vmem:[#allocation2 + $0x58] sm:$0xff] }
 0x236   : > { %11143 = vst [vmem:[#allocation186_spill] sm:$0xff] %v7532_v11  ;;  %v6300_v11 = vld [vmem:[#allocation2 + $0x158] sm:$0xff] }
 0x237   : > { %1232 = vmatmul.f32.gmra.mxu0 %v7537_v33  ;;  %11149 = vst [vmem:[#allocation192_spill] sm:$0xff] %v7552_v15 }
 0x238   : > { %1578 = vmatmul.f32.gmra.mxu3 %v6298_v14  ;;  %v1089_v14 = vadd.f32 %v1088_v37, %v7252_v0  ;;  %v7565_v0 = vsel %vm605_vm1, %v623_v34, %v625_v38  ;;  %v1685_v37 = vld [vmem:[#allocation4 + $0x230] sm:$0xff] }
 0x239   : > { %11152 = vst [vmem:[#allocation195_spill] sm:$0xff] %v7565_v0  ;;  %1704 = vmatpush.msra.mxu0 %v1685_v37  ;;  %v1684_v37 = vld [vmem:[#allocation4 + $0x228] sm:$0xff] }
 0x23a   : > { %v1398_v43 = vadd.f32 %v7313_v47, %v1089_v14  ;;  %v627_v47 = vrot.slane %v7571_v36, 2 }
 0x23b   : > { %v1531_v42 = vpop.f32.mrf.mxu3  ;;  %1705 = vmatpush.msra.mxu0 %v1684_v37 }
 0x23c   : > { %v7545_v2 = vadd.f32 %v1531_v42, %v1397_v26  ;;  %v7547_v29 = vpop.f32.mrf.mxu0  ;;  %v1091_v26 = vpop.f32.mrf.mxu1 }
 0x23d   : > { %11147 = vst [vmem:[#allocation190_spill] sm:$0xff] %v7547_v29  ;;  %v7568_v32 = vpop.f32.mrf.mxu2 }
 0x23e   : > { %11146 = vst [vmem:[#allocation189_spill] sm:$0xff] %v7545_v2  ;;  %v6302_v2 = vld [vmem:[#allocation2 + $0x160] sm:$0xff] }
 0x23f   : > { %1235 = vmatmul.f32.gmra.mxu0 %v7550_v60  ;;  %11153 = vst [vmem:[#allocation196_spill] sm:$0xff] %v7568_v32  ;;  %v6304_v32 = vld [vmem:[#allocation2 + $0x168] sm:$0xff] }
 0x240   : > { %1581 = vmatmul.f32.gmra.mxu3 %v6300_v11  ;;  %v1092_v11 = vadd.f32 %v1091_v26, %v7265_v5  ;;  %v7580_v5 = vsel %vm605_vm1, %v625_v38, %v627_v47  ;;  %v2191_v26 = vld [vmem:[#allocation4 + $0x360] sm:$0xff] }
 0x241   : > { %11156 = vst [vmem:[#allocation199_spill] sm:$0xff] %v7580_v5  ;;  %2198 = vmatpush.msrb.mxu2 %v2191_v26 }
 0x242   : > { %v1399_v14 = vadd.f32 %v7337_v28, %v1092_v11  ;;  %v7584_v28 = vld [vmem:[#allocation2 + $0x60] sm:$0xff] }
 0x243   : > { %v1534_v42 = vpop.f32.mrf.mxu3  ;;  %v629_v11 = vrot.slane %v7584_v28, 2 }
 0x244   : > { %v7560_v29 = vadd.f32 %v1534_v42, %v1398_v43  ;;  %v7562_v15 = vpop.f32.mrf.mxu0  ;;  %v1094_v43 = vpop.f32.mrf.mxu1 }
 0x245   : > { %11151 = vst [vmem:[#allocation194_spill] sm:$0xff] %v7562_v15 }
 0x246   : > { %11150 = vst [vmem:[#allocation193_spill] sm:$0xff] %v7560_v29 }
 0x247   : > { %1238 = vmatmul.f32.gmra.mxu0 %v7565_v0 }
 0x248   : > { %1584 = vmatmul.f32.gmra.mxu3 %v6302_v2  ;;  %v1095_v2 = vadd.f32 %v1094_v43, %v7284_v31  ;;  %v7595_v31 = vsel %vm605_vm1, %v627_v47, %v629_v11  ;;  %v7598_v43 = vld [vmem:[#allocation2 + $0x68] sm:$0xff]  ;;  %v2190_v47 = vld [vmem:[#allocation4 + $0x358] sm:$0xff] }
 0x249   : > { %11160 = vst [vmem:[#allocation203_spill] sm:$0xff] %v7595_v31  ;;  %v631_v37 = vrot.slane %v7598_v43, 2  ;;  %2199 = vmatpush.msrb.mxu2 %v2190_v47  ;;  %v6310_v47 = vld [vmem:[#allocation2 + $0x180] sm:$0xff] }
 0x24a   : > { %v1400_v38 = vadd.f32 %v7363_v13, %v1095_v2 }
 0x24b   : > { %v1537_v42 = vpop.f32.mrf.mxu3  ;;  %v7608_v2 = vsel %vm605_vm1, %v629_v11, %v631_v37  ;;  %v1682_v11 = vld [vmem:[#allocation4 + $0x218] sm:$0xff] }
 0x24c   : > { %v7575_v34 = vadd.f32 %v1537_v42, %v1399_v14  ;;  %v7577_v15 = vpop.f32.mrf.mxu0  ;;  %v1941_v14 = vld [vmem:[#allocation4 + $0x2e0] sm:$0xff]  ;;  %v7587_v42 = vpop.f32.mrf.mxu2  ;;  %11164 = vst [vmem:[#allocation207_spill] sm:$0xff] %v7608_v2 }
 0x24d   : > { %11155 = vst [vmem:[#allocation198_spill] sm:$0xff] %v7577_v15  ;;  %1948 = vmatpush.msrb.mxu1 %v1941_v14 }
 0x24e   : > { %11154 = vst [vmem:[#allocation197_spill] sm:$0xff] %v7575_v34 }
 0x24f   : > { %1241 = vmatmul.f32.gmra.mxu0 %v7580_v5  ;;  %11157 = vst [vmem:[#allocation200_spill] sm:$0xff] %v7587_v42  ;;  %v1683_v42 = vld [vmem:[#allocation4 + $0x220] sm:$0xff] }
 0x250   : > { %1587 = vmatmul.f32.gmra.mxu3 %v6304_v32  ;;  %v6306_v32 = vld [vmem:[#allocation2 + $0x170] sm:$0xff]  ;;  %1706 = vmatpush.msra.mxu0 %v1683_v42  ;;  %v1940_v42 = vld [vmem:[#allocation4 + $0x2d8] sm:$0xff] }
 0x251   : > { %1949 = vmatpush.msrb.mxu1 %v1940_v42 }
 0x252   : > { %1707 = vmatpush.msra.mxu0 %v1682_v11  ;;  %v6312_v11 = vld [vmem:[#allocation2 + $0x188] sm:$0xff] }
 0x253   : > { %v1540_v15 = vpop.f32.mrf.mxu3  ;;  %1950 = vmatpush.msrb.mxu1 %v1939_v35 }
 0x254   : > { %v7590_v34 = vadd.f32 %v1540_v15, %v1400_v38  ;;  %v7592_v26 = vpop.f32.mrf.mxu0  ;;  %v7601_v14 = vpop.f32.mrf.mxu2  ;;  %v6308_v38 = vld [vmem:[#allocation2 + $0x178] sm:$0xff] }
 0x255   : > { %11159 = vst [vmem:[#allocation202_spill] sm:$0xff] %v7592_v26 }
 0x256   : > { %11158 = vst [vmem:[#allocation201_spill] sm:$0xff] %v7590_v34 }
 0x257   : > { %1244 = vmatmul.f32.gmra.mxu0 %v7595_v31  ;;  %11161 = vst [vmem:[#allocation204_spill] sm:$0xff] %v7601_v14 }
 0x258   : > { %1590 = vmatmul.f32.gmra.mxu3 %v6306_v32  ;;  %v7611_v32 = vld [vmem:[#allocation2 + $0x70] sm:$0xff] }
 0x259   : > { %v633_v26 = vrot.slane %v7611_v32, 2 }
 0x25b   : > { %v7603_v13 = vpop.f32.mrf.mxu3 }
 0x25c   : > { %11162 = vst [vmem:[#allocation205_spill] sm:$0xff] %v7603_v13  ;;  %v7605_v15 = vpop.f32.mrf.mxu0  ;;  %v7619_v34 = vpop.f32.mrf.mxu2 }
 0x25d   : > { %11163 = vst [vmem:[#allocation206_spill] sm:$0xff] %v7605_v15  ;;  %v7617_v15 = vsel %vm605_vm1, %v631_v37, %v633_v26  ;;  %v2189_v37 = vld [vmem:[#allocation4 + $0x350] sm:$0xff] }
 0x25e   : > { %11166 = vst [vmem:[#allocation209_spill] sm:$0xff] %v7617_v15  ;;  %2200 = vmatpush.msrb.mxu2 %v2189_v37 }
 0x25f   : > { %1247 = vmatmul.f32.gmra.mxu0 %v7608_v2  ;;  %11167 = vst [vmem:[#allocation210_spill] sm:$0xff] %v7619_v34 }
 0x260   : > { %1593 = vmatmul.f32.gmra.mxu3 %v6308_v38  ;;  %v7622_v38 = vld [vmem:[#allocation2 + $0x78] sm:$0xff] }
 0x261   : > { %v635_v29 = vrot.slane %v7622_v38, 2 }
 0x263   : > { %v7614_v14 = vpop.f32.mrf.mxu3 }
 0x264   : > { %11165 = vst [vmem:[#allocation208_spill] sm:$0xff] %v7614_v14  ;;  %v990_v13 = vpop.f32.mrf.mxu0  ;;  %v1681_v14 = vld [vmem:[#allocation4 + $0x210] sm:$0xff]  ;;  %v7630_v34 = vpop.f32.mrf.mxu2 }
 0x265   : > { %v7628_v13 = vsel %vm605_vm1, %v633_v26, %v635_v29  ;;  %1708 = vmatpush.msra.mxu0 %v1681_v14  ;;  %11170 = vst [vmem:[#allocation213_spill] sm:$0xff] %v7630_v34  ;;  %v2443_v26 = vld [vmem:[#allocation4 + $0x3f0] sm:$0xff]  ;;  %v709_v14 = vrot.slane %v6929_v3, 2  ;;  %v7649_v3 = vld [vmem:[#allocation2 + $0x88] sm:$0xff] }
 0x266   : > { %11169 = vst [vmem:[#allocation212_spill] sm:$0xff] %v7628_v13  ;;  %v639_v35 = vrot.slane %v7649_v3, 2 }
 0x267   : > { %1250 = vmatmul.f32.gmra.mxu0 %v7617_v15 }
 0x268   : > { %1596 = vmatmul.f32.gmra.mxu3 %v6310_v47  ;;  %v7633_v47 = vld [vmem:[#allocation2 + $0x80] sm:$0xff] }
 0x269   : > { %v637_v7 = vrot.slane %v7633_v47, 2 }
 0x26b   : > { %v7625_v10 = vpop.f32.mrf.mxu3  ;;  %v7640_v34 = vsel %vm605_vm1, %v635_v29, %v637_v7  ;;  %v2440_v29 = vld [vmem:[#allocation4 + $0x3d8] sm:$0xff] }
 0x26c   : > { %11168 = vst [vmem:[#allocation211_spill] sm:$0xff] %v7625_v10  ;;  %v993_v42 = vpop.f32.mrf.mxu0  ;;  %v2444_v10 = vld [vmem:[#allocation4 + $0x3f8] sm:$0xff] }
 0x26d   : > { %2445 = vmatpush.msra.mxu3 %v2444_v10  ;;  %11172 = vst [vmem:[#allocation215_spill] sm:$0xff] %v7640_v34  ;;  %v6314_v10 = vld [vmem:[#allocation2 + $0x190] sm:$0xff] }
 0x26f   : > { %1253 = vmatmul.f32.gmra.mxu0 %v7628_v13  ;;  %2446 = vmatpush.msra.mxu3 %v2443_v26  ;;  %v1680_v26 = vld [vmem:[#allocation4 + $0x208] sm:$0xff] }
 0x270   : > { %1599 = vmatmul.f32.gmra.mxu3 %v6312_v11  ;;  %v11173_v11 = vrot.slane %v6907_v16, 2  ;;  %1709 = vmatpush.msra.mxu0 %v1680_v26  ;;  %v2188_v16 = vld [vmem:[#allocation4 + $0x348] sm:$0xff] }
 0x271   : > { %2447 = vmatpush.msra.mxu3 %v2442_v1  ;;  %v7652_v1 = vpop.f32.mrf.mxu2  ;;  %2201 = vmatpush.msrb.mxu2 %v2188_v16  ;;  %v1938_v26 = vld [vmem:[#allocation4 + $0x2c8] sm:$0xff]  ;;  %v2437_v16 = vld [vmem:[#allocation4 + $0x3c0] sm:$0xff] }
 0x272   : > { %v7645_v25 = vsel %vm605_vm1, %v11173_v11, %v709_v14  ;;  %11175 = vst [vmem:[#allocation217_spill] sm:$0xff] %v7652_v1  ;;  %v2186_v1 = vld [vmem:[#allocation4 + $0x338] sm:$0xff]  ;;  %1951 = vmatpush.msrb.mxu1 %v1938_v26 }
 0x273   : > { %v7636_v42 = vpop.f32.mrf.mxu3  ;;  %11174 = vst [vmem:[#allocation216_spill] sm:$0xff] %v7645_v25  ;;  %1364 = vmatmul.f32.gmra.mxu2 %v7645_v25  ;;  %2448 = vmatpush.msra.mxu3 %v2441_v17  ;;  %v7660_v25 = vsel %vm605_vm1, %v637_v7, %v639_v35  ;;  %v7667_v7 = vld [vmem:[#allocation2 + $0x90] sm:$0xff] }
 0x274   : > { %11171 = vst [vmem:[#allocation214_spill] sm:$0xff] %v7636_v42  ;;  %v996_v37 = vpop.f32.mrf.mxu0  ;;  %v7656_v42 = vld [vmem:[#allocation2 + $0x1a8] sm:$0xff]  ;;  %2202 = vmatpush.msrb.mxu2 %v2187_v48  ;;  %v1937_v48 = vld [vmem:[#allocation4 + $0x2c0] sm:$0xff] }
 0x275   : > { %2449 = vmatpush.msra.mxu3 %v2440_v29  ;;  %v2439_v37 = vld [vmem:[#allocation4 + $0x3d0] sm:$0xff]  ;;  %v711_v17 = vrot.slane %v7656_v42, 2  ;;  %11177 = vst [vmem:[#allocation219_spill] sm:$0xff] %v7660_v25  ;;  %1952 = vmatpush.msrb.mxu1 %v1937_v48  ;;  %v2434_v48 = vld [vmem:[#allocation4 + $0x3a8] sm:$0xff] }
 0x276   : > { %2203 = vmatpush.msrb.mxu2 %v2186_v1  ;;  %v10720_v1 = vrot.slane %v7435_v54, 2 }
 0x277   : > { %1256 = vmatmul.f32.gmra.mxu0 %v7640_v34  ;;  %2450 = vmatpush.msra.mxu3 %v2439_v37  ;;  %v7663_v29 = vsel %vm605_vm1, %v709_v14, %v711_v17  ;;  %v6317_v37 = vld [vmem:[#allocation2 + $0x198] sm:$0xff] }
 0x278   : > { %1602 = vmatmul.f32.gmra.mxu3 %v6314_v10  ;;  %11178 = vst [vmem:[#allocation220_spill] sm:$0xff] %v7663_v29  ;;  %v1936_v14 = vld [vmem:[#allocation4 + $0x2b8] sm:$0xff] }
 0x279   : > { %2451 = vmatpush.msra.mxu3 %v2438_v19  ;;  %v2185_v19 = vld [vmem:[#allocation4 + $0x330] sm:$0xff]  ;;  %v7670_v26 = vpop.f32.mrf.mxu2  ;;  %1953 = vmatpush.msrb.mxu1 %v1936_v14  ;;  %v2182_v14 = vld [vmem:[#allocation4 + $0x318] sm:$0xff] }
 0x27a   : > { %2204 = vmatpush.msrb.mxu2 %v2185_v19  ;;  %11179 = vst [vmem:[#allocation221_spill] sm:$0xff] %v7670_v26  ;;  %v1679_v19 = vld [vmem:[#allocation4 + $0x200] sm:$0xff]  ;;  %v7681_v26 = vsel %vm605_vm1, %v711_v17, %v10720_v1  ;;  %v2432_v17 = vld [vmem:[#allocation4 + $0x398] sm:$0xff] }
 0x27b   : > { %v7654_v11 = vpop.f32.mrf.mxu3  ;;  %1367 = vmatmul.f32.gmra.mxu2 %v7663_v29  ;;  %2452 = vmatpush.msra.mxu3 %v2437_v16  ;;  %v2435_v29 = vld [vmem:[#allocation4 + $0x3b0] sm:$0xff]  ;;  %v2183_v16 = vld [vmem:[#allocation4 + $0x320] sm:$0xff]  ;;  %11182 = vst [vmem:[#allocation224_spill] sm:$0xff] %v7681_v26 }
 0x27c   : > { %11176 = vst [vmem:[#allocation218_spill] sm:$0xff] %v7654_v11  ;;  %v1212_v10 = vpop.f32.mrf.mxu0  ;;  %v2436_v11 = vld [vmem:[#allocation4 + $0x3b8] sm:$0xff]  ;;  %2205 = vmatpush.msrb.mxu2 %v2184_v18  ;;  %1954 = vmatpush.msrb.mxu1 %v1935_v22  ;;  %v6319_v18 = vld [vmem:[#allocation2 + $0x1a0] sm:$0xff] }
 0x27d   : > { %v641_v10 = vrot.slane %v7667_v7, 2  ;;  %2453 = vmatpush.msra.mxu3 %v2436_v11  ;;  %1710 = vmatpush.msra.mxu0 %v1679_v19  ;;  %v1934_v11 = vld [vmem:[#allocation4 + $0x2a8] sm:$0xff]  ;;  %v1933_v22 = vld [vmem:[#allocation4 + $0x2a0] sm:$0xff] }
 0x27e   : > { %2206 = vmatpush.msrb.mxu2 %v2183_v16  ;;  %1955 = vmatpush.msrb.mxu1 %v1934_v11  ;;  %v1932_v16 = vld [vmem:[#allocation4 + $0x298] sm:$0xff]  ;;  %v2180_v19 = vld [vmem:[#allocation4 + $0x308] sm:$0xff]  ;;  %v2179_v11 = vld [vmem:[#allocation4 + $0x300] sm:$0xff] }
 0x27f   : > { %1259 = vmatmul.f32.gmra.mxu0 %v7660_v25  ;;  %v7676_v52 = vsel %vm605_vm1, %v639_v35, %v641_v10  ;;  %2454 = vmatpush.msra.mxu3 %v2435_v29  ;;  %v2433_v35 = vld [vmem:[#allocation4 + $0x3a0] sm:$0xff] }
 0x280   : > { %1605 = vmatmul.f32.gmra.mxu3 %v6317_v37  ;;  %11181 = vst [vmem:[#allocation223_spill] sm:$0xff] %v7676_v52  ;;  %2207 = vmatpush.msrb.mxu2 %v2182_v14  ;;  %v2430_v14 = vld [vmem:[#allocation4 + $0x388] sm:$0xff] }
 0x281   : > { %2455 = vmatpush.msra.mxu3 %v2434_v48  ;;  %1956 = vmatpush.msrb.mxu1 %v1933_v22  ;;  %v2431_v48 = vld [vmem:[#allocation4 + $0x390] sm:$0xff]  ;;  %v2429_v22 = vld [vmem:[#allocation4 + $0x380] sm:$0xff] }
 0x283   : > { %v7672_v61 = vpop.f32.mrf.mxu3  ;;  %1370 = vmatmul.f32.gmra.mxu2 %v7681_v26  ;;  %2456 = vmatpush.msra.mxu3 %v2433_v35  ;;  %v7693_v26 = vpop.f32.mrf.mxu2  ;;  %v1930_v35 = vld [vmem:[#allocation4 + $0x288] sm:$0xff] }
 0x284   : > { %11180 = vst [vmem:[#allocation222_spill] sm:$0xff] %v7672_v61  ;;  %v1215_v37 = vpop.f32.mrf.mxu0  ;;  %v2181_v61 = vld [vmem:[#allocation4 + $0x310] sm:$0xff]  ;;  %1957 = vmatpush.msrb.mxu1 %v1932_v16  ;;  %v1929_v16 = vld [vmem:[#allocation4 + $0x280] sm:$0xff] }
 0x285   : > { %v7684_v37 = vld [vmem:[#allocation2 + $0x98] sm:$0xff]  ;;  %2208 = vmatpush.msrb.mxu2 %v2181_v61  ;;  %2457 = vmatpush.msra.mxu3 %v2432_v17  ;;  %11185 = vst [vmem:[#allocation227_spill] sm:$0xff] %v7693_v26  ;;  %v7697_v61 = vld [vmem:[#allocation2 + $0xa0] sm:$0xff] }
 0x286   : > { %v643_v29 = vrot.slane %v7684_v37, 2  ;;  %1958 = vmatpush.msrb.mxu1 %v1931_v20  ;;  %v2694_v17 = vld [vmem:[#allocation4 + $0x478] sm:$0xff] }
 0x287   : > { %1262 = vmatmul.f32.gmra.mxu0 %v7676_v52  ;;  %2209 = vmatpush.msrb.mxu2 %v2180_v19 }
 0x288   : > { %1608 = vmatmul.f32.gmra.mxu3 %v6319_v18  ;;  %v7691_v56 = vsel %vm605_vm1, %v641_v10, %v643_v29  ;;  %v645_v10 = vrot.slane %v7697_v61, 2  ;;  %1959 = vmatpush.msrb.mxu1 %v1930_v35 }
 0x289   : > { %11184 = vst [vmem:[#allocation226_spill] sm:$0xff] %v7691_v56  ;;  %2458 = vmatpush.msra.mxu3 %v2431_v48  ;;  %2210 = vmatpush.msrb.mxu2 %v2179_v11 }
 0x28a   : > { %2695 = vmatpush.msrb.mxu0 %v2694_v17  ;;  %1960 = vmatpush.msrb.mxu1 %v1929_v16  ;;  %v11193_v17 = vrot.slane %v6866_v46, 2 }
 0x28b   : > { %v7688_v1 = vpop.f32.mrf.mxu3  ;;  %2459 = vmatpush.msra.mxu3 %v2430_v14  ;;  %2211 = vmatmul.f32.vlgmr.msrb.gmra.mxu2 %v7501_v23  ;;  %v7709_v48 = vpop.f32.mrf.mxu2  ;;  %v7713_v23 = vld [vmem:[#allocation2 + $0xa8] sm:$0xff] }
 0x28c   : > { %11183 = vst [vmem:[#allocation225_spill] sm:$0xff] %v7688_v1  ;;  %v1218_v18 = vpop.f32.mrf.mxu0  ;;  %1961 = vmatmul.f32.vlgmr.msrb.gmra.mxu1 %v7484_v30  ;;  %v358_v30 = vld [vmem:[#allocation2 + $0x1b8] sm:$0xff] }
 0x28d   : > { %2460 = vmatpush.msra.mxu3 %v2429_v22  ;;  %11188 = vst [vmem:[#allocation230_spill] sm:$0xff] %v7709_v48  ;;  %v647_v18 = vrot.slane %v7713_v23, 2 }
 0x28f   : > { %1265 = vmatmul.f32.gmra.mxu0 %v7691_v56  ;;  %v7736_v16 = vsel %vm605_vm1, %v647_v18, %v11193_v17 }
 0x290   : > { %1611 = vmatmul.f32.gmra.mxu3 %v7656_v42  ;;  %v7706_v42 = vsel %vm605_vm1, %v643_v29, %v645_v10  ;;  %v7722_v29 = vsel %vm605_vm1, %v645_v10, %v647_v18  ;;  %11194 = vst [vmem:[#allocation235_spill] sm:$0xff] %v7736_v16  ;;  %v359_v10 = vld [vmem:[#allocation2 + $0x1c0] sm:$0xff] }
 0x291   : > { %11187 = vst [vmem:[#allocation229_spill] sm:$0xff] %v7706_v42 }
 0x292   : > { %11190 = vst [vmem:[#allocation232_spill] sm:$0xff] %v7722_v29 }
 0x293   : > { %v7701_v19 = vpop.f32.mrf.mxu3  ;;  %2214 = vmatmul.f32.gmra.mxu2 %v7512_v41  ;;  %v7726_v35 = vpop.f32.mrf.mxu2 }
 0x294   : > { %11186 = vst [vmem:[#allocation228_spill] sm:$0xff] %v7701_v19  ;;  %v7703_v20 = vpop.f32.mrf.mxu0  ;;  %1964 = vmatmul.f32.gmra.mxu1 %v7496_v49 }
 0x295   : > { %11191 = vst [vmem:[#allocation233_spill] sm:$0xff] %v7726_v35  ;;  %v2693_v35 = vld [vmem:[#allocation4 + $0x470] sm:$0xff] }
 0x296   : > { %2696 = vmatpush.msrb.mxu0 %v2693_v35 }
 0x297   : > { %1268 = vmatmul.f32.gmra.mxu0 %v7706_v42 }
 0x298   : > { %1614 = vmatmul.f32.gmra.mxu3 %v7435_v54 }
 0x29b   : > { %v7717_v11 = vpop.f32.mrf.mxu3  ;;  %2217 = vmatmul.f32.gmra.mxu2 %v7526_v39  ;;  %v7741_v49 = vpop.f32.mrf.mxu2 }
 0x29c   : > { %11189 = vst [vmem:[#allocation231_spill] sm:$0xff] %v7717_v11  ;;  %v7719_v14 = vpop.f32.mrf.mxu0  ;;  %1967 = vmatmul.f32.gmra.mxu1 %v7509_v24 }
 0x29d   : > { %11195 = vst [vmem:[#allocation236_spill] sm:$0xff] %v7741_v49 }
 0x29f   : > { %1271 = vmatmul.f32.gmra.mxu0 %v7722_v29 }
 0x2a0   : > { %1617 = vmatmul.f32.gmra.mxu3 %v358_v30 }
 0x2a3   : > { %v7729_v22 = vpop.f32.mrf.mxu3  ;;  %2220 = vmatmul.f32.gmra.mxu2 %v7541_v45  ;;  %v7755_v45 = vpop.f32.mrf.mxu2 }
 0x2a4   : > { %11192 = vst [vmem:[#allocation234_spill] sm:$0xff] %v7729_v22  ;;  %v7731_v41 = vpop.f32.mrf.mxu0  ;;  %1970 = vmatmul.f32.gmra.mxu1 %v7522_v6  ;;  %v3791_v22 = vld [vmem:[#allocation7 + $0x78] sm:$0xff] }
 0x2a5   : > { %11198 = vst [vmem:[#allocation239_spill] sm:$0xff] %v7755_v45  ;;  %3970 = vmatpush.msra.mxu2 %v3791_v22  ;;  %v11232_v22 = vld [vmem:[#allocation44_spill] sm:$0xff] }
 0x2a7   : > { %1274 = vmatmul.f32.gmra.mxu0 %v7736_v16 }
 0x2a8   : > { %1620 = vmatmul.f32.gmra.mxu3 %v359_v10 }
 0x2ab   : > { %v7743_v39 = vpop.f32.mrf.mxu3  ;;  %2223 = vmatmul.f32.gmra.mxu2 %v7556_v21  ;;  %v7766_v21 = vpop.f32.mrf.mxu2 }
 0x2ac   : > { %11196 = vst [vmem:[#allocation237_spill] sm:$0xff] %v7743_v39  ;;  %v7745_v30 = vpop.f32.mrf.mxu0  ;;  %1973 = vmatmul.f32.gmra.mxu1 %v7537_v33 }
 0x2ad   : > { %11200 = vst [vmem:[#allocation241_spill] sm:$0xff] %v7766_v21 }
 0x2af   : > { %1711 = vmatmul.f32.vlgmr.msra.gmra.mxu0 %v6703_v51 }
 0x2b0   : > { %2461 = vmatmul.f32.vlgmr.msra.gmra.mxu3 %v6736_v63 }
 0x2b3   : > { %v7751_v46 = vpop.f32.mrf.mxu3  ;;  %2226 = vmatmul.f32.gmra.mxu2 %v7571_v36  ;;  %v2692_v36 = vld [vmem:[#allocation4 + $0x468] sm:$0xff]  ;;  %v7778_v17 = vpop.f32.mrf.mxu2 }
 0x2b4   : > { %11197 = vst [vmem:[#allocation238_spill] sm:$0xff] %v7751_v46  ;;  %v7753_v24 = vpop.f32.mrf.mxu0  ;;  %1976 = vmatmul.f32.gmra.mxu1 %v7550_v60  ;;  %2697 = vmatpush.msrb.mxu0 %v2692_v36  ;;  %v2689_v46 = vld [vmem:[#allocation4 + $0x450] sm:$0xff] }
 0x2b5   : > { %11202 = vst [vmem:[#allocation243_spill] sm:$0xff] %v7778_v17 }
 0x2b7   : > { %1714 = vmatmul.f32.gmra.mxu0 %v6714_v55 }
 0x2b8   : > { %2464 = vmatmul.f32.gmra.mxu3 %v6747_v4 }
 0x2bb   : > { %v7761_v18 = vpop.f32.mrf.mxu3  ;;  %2229 = vmatmul.f32.gmra.mxu2 %v7584_v28  ;;  %v11204_v28 = vld [vmem:[#allocation21_spill] sm:$0xff]  ;;  %v7789_v36 = vpop.f32.mrf.mxu2 }
 0x2bc   : > { %11199 = vst [vmem:[#allocation240_spill] sm:$0xff] %v7761_v18  ;;  %v7763_v51 = vpop.f32.mrf.mxu0  ;;  %1979 = vmatmul.f32.gmra.mxu1 %v7565_v0 }
 0x2bd   : > { %11205 = vst [vmem:[#allocation21_spill] sm:$0xff] %v7789_v36  ;;  %v2691_v36 = vld [vmem:[#allocation4 + $0x460] sm:$0xff] }
 0x2be   : > { %2698 = vmatpush.msrb.mxu0 %v2691_v36 }
 0x2bf   : > { %1717 = vmatmul.f32.gmra.mxu0 %v6725_v59 }
 0x2c0   : > { %2467 = vmatmul.f32.gmra.mxu3 %v6758_v8 }
 0x2c3   : > { %v7771_v35 = vpop.f32.mrf.mxu3  ;;  %2232 = vmatmul.f32.gmra.mxu2 %v7598_v43  ;;  %v11207_v43 = vld [vmem:[#allocation22_spill] sm:$0xff]  ;;  %v7803_v45 = vpop.f32.mrf.mxu2 }
 0x2c4   : > { %11201 = vst [vmem:[#allocation242_spill] sm:$0xff] %v7771_v35  ;;  %v7773_v55 = vpop.f32.mrf.mxu0  ;;  %1982 = vmatmul.f32.gmra.mxu1 %v7580_v5 }
 0x2c5   : > { %11209 = vst [vmem:[#allocation246_spill] sm:$0xff] %v7803_v45  ;;  %v11213_v45 = vld [vmem:[#allocation24_spill] sm:$0xff] }
 0x2c7   : > { %1720 = vmatmul.f32.gmra.mxu0 %v6736_v63 }
 0x2c8   : > { %2470 = vmatmul.f32.gmra.mxu3 %v6769_v12 }
 0x2cb   : > { %v7781_v59 = vpop.f32.mrf.mxu3  ;;  %2235 = vmatmul.f32.gmra.mxu2 %v7611_v32  ;;  %v11210_v32 = vld [vmem:[#allocation23_spill] sm:$0xff] }
 0x2cc   : > { %11203 = vst [vmem:[#allocation244_spill] sm:$0xff] %v7781_v59  ;;  %v7783_v10 = vpop.f32.mrf.mxu0  ;;  %1985 = vmatmul.f32.gmra.mxu1 %v7595_v31 }
 0x2cf   : > { %1723 = vmatmul.f32.gmra.mxu0 %v6747_v4 }
 0x2d0   : > { %2473 = vmatmul.f32.gmra.mxu3 %v11204_v28 }
 0x2d3   : > { %v7791_v63 = vpop.f32.mrf.mxu3  ;;  %2238 = vmatmul.f32.gmra.mxu2 %v7622_v38 }
 0x2d4   : > { %11206 = vst [vmem:[#allocation245_spill] sm:$0xff] %v7791_v63  ;;  %v7793_v21 = vpop.f32.mrf.mxu0  ;;  %1988 = vmatmul.f32.gmra.mxu1 %v7608_v2 }
 0x2d7   : > { %1726 = vmatmul.f32.gmra.mxu0 %v6758_v8  ;;  %v7809_v8 = vpop.f32.mrf.mxu1 }
 0x2d8   : > { %2476 = vmatmul.f32.gmra.mxu3 %v11207_v43 }
 0x2db   : > { %v7799_v17 = vpop.f32.mrf.mxu3  ;;  %2241 = vmatmul.f32.gmra.mxu2 %v7633_v47 }
 0x2dc   : > { %11208 = vst [vmem:[#allocation22_spill] sm:$0xff] %v7799_v17  ;;  %v7801_v4 = vpop.f32.mrf.mxu0  ;;  %1991 = vmatmul.f32.gmra.mxu1 %v7617_v15  ;;  %v7816_v17 = vpop.f32.mrf.mxu2 }
 0x2dd   : > { %11212 = vst [vmem:[#allocation247_spill] sm:$0xff] %v7816_v17 }
 0x2df   : > { %1729 = vmatmul.f32.gmra.mxu0 %v6769_v12  ;;  %v7823_v47 = vpop.f32.mrf.mxu1 }
 0x2e0   : > { %2479 = vmatmul.f32.gmra.mxu3 %v11210_v32  ;;  %11215 = vst [vmem:[#allocation248_spill] sm:$0xff] %v7823_v47 }
 0x2e3   : > { %v7811_v49 = vpop.f32.mrf.mxu3  ;;  %2244 = vmatmul.f32.gmra.mxu2 %v7649_v3 }
 0x2e4   : > { %11211 = vst [vmem:[#allocation23_spill] sm:$0xff] %v7811_v49  ;;  %v7813_v38 = vpop.f32.mrf.mxu0  ;;  %1994 = vmatmul.f32.gmra.mxu1 %v7628_v13  ;;  %v11216_v49 = vld [vmem:[#allocation25_spill] sm:$0xff]  ;;  %v7830_v63 = vpop.f32.mrf.mxu2 }
 0x2e5   : > { %11217 = vst [vmem:[#allocation25_spill] sm:$0xff] %v7830_v63  ;;  %v2690_v63 = vld [vmem:[#allocation4 + $0x458] sm:$0xff] }
 0x2e6   : > { %2699 = vmatpush.msrb.mxu0 %v2690_v63  ;;  %v11225_v63 = vld [vmem:[#allocation29_spill] sm:$0xff] }
 0x2e7   : > { %1732 = vmatmul.f32.gmra.mxu0 %v11204_v28  ;;  %v7838_v3 = vpop.f32.mrf.mxu1 }
 0x2e8   : > { %2482 = vmatmul.f32.gmra.mxu3 %v11213_v45  ;;  %11219 = vst [vmem:[#allocation250_spill] sm:$0xff] %v7838_v3  ;;  %2700 = vmatpush.msrb.mxu0 %v2689_v46  ;;  %v3808_v46 = vld [vmem:[#allocation7 + $0xf8] sm:$0xff]  ;;  %v11235_v3 = vld [vmem:[#allocation34_spill] sm:$0xff] }
 0x2e9   : > { %3809 = vmatpush.msra.mxu1 %v3808_v46  ;;  %v2688_v46 = vld [vmem:[#allocation4 + $0x448] sm:$0xff] }
 0x2ea   : > { %2701 = vmatpush.msrb.mxu0 %v2688_v46 }
 0x2eb   : > { %v7821_v12 = vpop.f32.mrf.mxu3  ;;  %2247 = vmatmul.f32.gmra.mxu2 %v7667_v7 }
 0x2ec   : > { %11214 = vst [vmem:[#allocation24_spill] sm:$0xff] %v7821_v12  ;;  %v7825_v36 = vpop.f32.mrf.mxu0  ;;  %1997 = vmatmul.f32.gmra.mxu1 %v7640_v34  ;;  %v11220_v12 = vld [vmem:[#allocation26_spill] sm:$0xff] }
 0x2ef   : > { %1735 = vmatmul.f32.gmra.mxu0 %v11207_v43  ;;  %v7849_v7 = vpop.f32.mrf.mxu1 }
 0x2f0   : > { %2485 = vmatmul.f32.gmra.mxu3 %v11216_v49  ;;  %11222 = vst [vmem:[#allocation251_spill] sm:$0xff] %v7849_v7 }
 0x2f3   : > { %v7833_v28 = vpop.f32.mrf.mxu3  ;;  %2250 = vmatmul.f32.gmra.mxu2 %v7684_v37 }
 0x2f4   : > { %11218 = vst [vmem:[#allocation249_spill] sm:$0xff] %v7833_v28  ;;  %v7835_v17 = vpop.f32.mrf.mxu0  ;;  %2000 = vmatmul.f32.gmra.mxu1 %v7660_v25  ;;  %v11223_v28 = vld [vmem:[#allocation27_spill] sm:$0xff] }
 0x2f6   : > { %v1365_v43 = vpop.f32.mrf.mxu2 }
 0x2f7   : > { %1738 = vmatmul.f32.gmra.mxu0 %v11210_v32 }
 0x2f8   : > { %2488 = vmatmul.f32.gmra.mxu3 %v11220_v12 }
 0x2fb   : > { %v7843_v59 = vpop.f32.mrf.mxu3  ;;  %2253 = vmatmul.f32.gmra.mxu2 %v7697_v61  ;;  %v11228_v61 = vld [vmem:[#allocation32_spill] sm:$0xff] }
 0x2fc   : > { %11221 = vst [vmem:[#allocation26_spill] sm:$0xff] %v7843_v59  ;;  %v7845_v48 = vpop.f32.mrf.mxu0  ;;  %2003 = vmatmul.f32.gmra.mxu1 %v7676_v52 }
 0x2fe   : > { %v1368_v32 = vpop.f32.mrf.mxu2 }
 0x2ff   : > { %1741 = vmatmul.f32.gmra.mxu0 %v11213_v45  ;;  %v7861_v45 = vpop.f32.mrf.mxu1  ;;  %v6323_v32 = vld [vmem:[#allocation2 + $0xb0] sm:$0xff] }
 0x300   : > { %2491 = vmatmul.f32.gmra.mxu3 %v11223_v28  ;;  %11226 = vst [vmem:[#allocation29_spill] sm:$0xff] %v7861_v45  ;;  %v11233_v45 = vld [vmem:[#allocation31_spill] sm:$0xff] }
 0x303   : > { %v7853_v35 = vpop.f32.mrf.mxu3  ;;  %2256 = vmatmul.f32.gmra.mxu2 %v7713_v23 }
 0x304   : > { %11224 = vst [vmem:[#allocation27_spill] sm:$0xff] %v7853_v35  ;;  %v7855_v37 = vpop.f32.mrf.mxu0  ;;  %2006 = vmatmul.f32.gmra.mxu1 %v7691_v56  ;;  %v11240_v56 = vld [vmem:[#allocation39_spill] sm:$0xff] }
 0x306   : > { %v1371_v59 = vpop.f32.mrf.mxu2 }
 0x307   : > { %1744 = vmatmul.f32.gmra.mxu0 %v11216_v49  ;;  %v11230_v59 = vld [vmem:[#allocation36_spill] sm:$0xff] }
 0x308   : > { %2494 = vmatmul.f32.gmra.mxu3 %v11225_v63 }
 0x309   : > { %v1962_v49 = vpop.f32.mrf.mxu1 }
 0x30b   : > { %v7863_v43 = vpop.f32.mrf.mxu3  ;;  %2259 = vmatmul.f32.gmra.mxu2 %v6323_v32 }
 0x30c   : > { %11227 = vst [vmem:[#allocation252_spill] sm:$0xff] %v7863_v43  ;;  %v7865_v26 = vpop.f32.mrf.mxu0  ;;  %2009 = vmatmul.f32.gmra.mxu1 %v7706_v42  ;;  %v6324_v43 = vld [vmem:[#allocation2 + $0xb8] sm:$0xff] }
 0x30e   : > { %v2212_v23 = vpop.f32.mrf.mxu2 }
 0x30f   : > { %1747 = vmatmul.f32.gmra.mxu0 %v11220_v12  ;;  %v11231_v23 = vld [vmem:[#allocation40_spill] sm:$0xff] }
 0x310   : > { %2497 = vmatmul.f32.gmra.mxu3 %v11228_v61 }
 0x311   : > { %v1965_v12 = vpop.f32.mrf.mxu1 }
 0x312   : > { %v6326_v12 = vld [vmem:[#allocation2 + $0xc8] sm:$0xff] }
 0x313   : > { %v7870_v35 = vpop.f32.mrf.mxu3  ;;  %2262 = vmatmul.f32.gmra.mxu2 %v6324_v43 }
 0x314   : > { %11229 = vst [vmem:[#allocation32_spill] sm:$0xff] %v7870_v35  ;;  %v7872_v18 = vpop.f32.mrf.mxu0  ;;  %2012 = vmatmul.f32.gmra.mxu1 %v7722_v29  ;;  %v6325_v35 = vld [vmem:[#allocation2 + $0xc0] sm:$0xff]  ;;  %v11237_v29 = vld [vmem:[#allocation35_spill] sm:$0xff] }
 0x315   : > { %v1026_v46 = vadd.f32 %v7043_v57, %v11237_v29  ;;  %v1029_v57 = vadd.f32 %v7065_v27, %v11240_v56 }
 0x316   : > { %v2215_v49 = vpop.f32.mrf.mxu2 }
 0x317   : > { %1750 = vmatmul.f32.gmra.mxu0 %v11223_v28 }
 0x318   : > { %2500 = vmatmul.f32.gmra.mxu3 %v11230_v59 }
 0x319   : > { %v1968_v28 = vpop.f32.mrf.mxu1 }
 0x31b   : > { %v1615_v39 = vpop.f32.mrf.mxu3  ;;  %2265 = vmatmul.f32.gmra.mxu2 %v6325_v35  ;;  %v6327_v35 = vld [vmem:[#allocation2 + $0xd0] sm:$0xff] }
 0x31c   : > { %v7877_v32 = vpop.f32.mrf.mxu0  ;;  %2015 = vmatmul.f32.gmra.mxu1 %v7736_v16  ;;  %v3807_v16 = vld [vmem:[#allocation7 + $0xf0] sm:$0xff] }
 0x31d   : > { %3810 = vmatpush.msra.mxu1 %v3807_v16  ;;  %v11241_v16 = vld [vmem:[#allocation42_spill] sm:$0xff] }
 0x31e   : > { %v2218_v39 = vpop.f32.mrf.mxu2 }
 0x31f   : > { %1753 = vmatmul.f32.gmra.mxu0 %v11225_v63 }
 0x320   : > { %2503 = vmatmul.f32.gmra.mxu3 %v11231_v23 }
 0x321   : > { %v1971_v63 = vpop.f32.mrf.mxu1 }
 0x323   : > { %v1618_v11 = vpop.f32.mrf.mxu3  ;;  %2268 = vmatmul.f32.gmra.mxu2 %v6326_v12  ;;  %v11236_v12 = vld [vmem:[#allocation52_spill] sm:$0xff] }
 0x324   : > { %v7882_v43 = vpop.f32.mrf.mxu0  ;;  %2018 = vmatmul.f32.gmra.mxu1 %v11233_v45  ;;  %v11234_v11 = vld [vmem:[#allocation48_spill] sm:$0xff] }
 0x326   : > { %v2221_v1 = vpop.f32.mrf.mxu2 }
 0x327   : > { %1756 = vmatmul.f32.gmra.mxu0 %v11228_v61 }
 0x328   : > { %2506 = vmatmul.f32.gmra.mxu3 %v11232_v22 }
 0x329   : > { %v1974_v28 = vpop.f32.mrf.mxu1 }
 0x32b   : > { %v1621_v49 = vpop.f32.mrf.mxu3  ;;  %2271 = vmatmul.f32.gmra.mxu2 %v6327_v35 }
 0x32c   : > { %v1712_v19 = vpop.f32.mrf.mxu0  ;;  %2021 = vmatmul.f32.gmra.mxu1 %v11235_v3  ;;  %v6328_v49 = vld [vmem:[#allocation2 + $0xd8] sm:$0xff] }
 0x32d   : > { %v3790_v19 = vld [vmem:[#allocation7 + $0x70] sm:$0xff] }
 0x32e   : > { %v2224_v7 = vpop.f32.mrf.mxu2  ;;  %3971 = vmatpush.msra.mxu2 %v3790_v19  ;;  %v6329_v19 = vld [vmem:[#allocation2 + $0xe0] sm:$0xff] }
 0x32f   : > { %1759 = vmatmul.f32.gmra.mxu0 %v11230_v59 }
 0x330   : > { %2509 = vmatmul.f32.gmra.mxu3 %v11234_v11 }
 0x331   : > { %v1977_v59 = vpop.f32.mrf.mxu1 }
 0x333   : > { %v2462_v61 = vpop.f32.mrf.mxu3  ;;  %2274 = vmatmul.f32.gmra.mxu2 %v6328_v49 }
 0x334   : > { %v1715_v39 = vpop.f32.mrf.mxu0  ;;  %v11238_v61 = vld [vmem:[#allocation38_spill] sm:$0xff] }
 0x335   : > { %2024 = vmatmul.f32.gmra.mxu1 %v11238_v61  ;;  %v1377_v39 = vadd.f32 %v7703_v20, %v1026_v46  ;;  %v1378_v20 = vadd.f32 %v7719_v14, %v1029_v57  ;;  %v11242_v46 = vld [vmem:[#allocation60_spill] sm:$0xff]  ;;  %v6330_v61 = vld [vmem:[#allocation2 + $0xe8] sm:$0xff] }
 0x336   : > { %v2227_v35 = vpop.f32.mrf.mxu2  ;;  %v11245_v57 = vld [vmem:[#allocation64_spill] sm:$0xff] }
 0x337   : > { %1762 = vmatmul.f32.gmra.mxu0 %v11231_v23  ;;  %v11239_v23 = vld [vmem:[#allocation56_spill] sm:$0xff] }
 0x338   : > { %2512 = vmatmul.f32.gmra.mxu3 %v11236_v12 }
 0x339   : > { %v7899_v49 = vpop.f32.mrf.mxu1 }
 0x33b   : > { %v2465_v47 = vpop.f32.mrf.mxu3  ;;  %2277 = vmatmul.f32.gmra.mxu2 %v6329_v19 }
 0x33c   : > { %v1718_v45 = vpop.f32.mrf.mxu0 }
 0x33d   : > { %v1627_v45 = vadd.f32 %v7279_v9, %v1377_v39  ;;  %2027 = vmatmul.f32.gmra.mxu1 %v11241_v16  ;;  %v1628_v39 = vadd.f32 %v7298_v58, %v1378_v20  ;;  %v3789_v20 = vld [vmem:[#allocation7 + $0x68] sm:$0xff] }
 0x33e   : > { %v2230_v42 = vpop.f32.mrf.mxu2  ;;  %3972 = vmatpush.msra.mxu2 %v3789_v20 }
 0x33f   : > { %1765 = vmatmul.f32.gmra.mxu0 %v11232_v22 }
 0x340   : > { %2515 = vmatmul.f32.gmra.mxu3 %v11239_v23 }
 0x343   : > { %v2468_v47 = vpop.f32.mrf.mxu3  ;;  %2280 = vmatmul.f32.gmra.mxu2 %v6330_v61 }
 0x344   : > { %v1721_v3 = vpop.f32.mrf.mxu0  ;;  %v7908_v47 = vpop.f32.mrf.mxu1 }
 0x345   : > { %v1877_v29 = vadd.f32 %v1721_v3, %v1627_v45  ;;  %v11243_v3 = vld [vmem:[#allocation43_spill] sm:$0xff]  ;;  %v2687_v45 = vld [vmem:[#allocation4 + $0x440] sm:$0xff] }
 0x346   : > { %v7913_v56 = vpop.f32.mrf.mxu2  ;;  %v1032_v14 = vadd.f32 %v7088_v53, %v11243_v3  ;;  %2702 = vmatpush.msrb.mxu0 %v2687_v45  ;;  %v11247_v3 = vld [vmem:[#allocation50_spill] sm:$0xff]  ;;  %v11248_v45 = vld [vmem:[#allocation68_spill] sm:$0xff] }
 0x347   : > { %v2127_v22 = vadd.f32 %v1971_v63, %v1877_v29  ;;  %1768 = vmatmul.f32.gmra.mxu0 %v11234_v11  ;;  %v11244_v11 = vld [vmem:[#allocation46_spill] sm:$0xff] }
 0x348   : > { %2518 = vmatmul.f32.gmra.mxu3 %v11242_v46  ;;  %2030 = vmatmul.f32.gmra.mxu1 %v11244_v11  ;;  %v6331_v29 = vld [vmem:[#allocation2 + $0xf0] sm:$0xff] }
 0x349   : > { %v2377_v19 = vadd.f32 %v2221_v1, %v2127_v22  ;;  %v1379_v1 = vadd.f32 %v7731_v41, %v1032_v14  ;;  %v11246_v41 = vld [vmem:[#allocation47_spill] sm:$0xff] }
 0x34b   : > { %v2471_v9 = vpop.f32.mrf.mxu3  ;;  %2283 = vmatmul.f32.gmra.mxu2 %v6331_v29 }
 0x34c   : > { %v7911_v52 = vadd.f32 %v2471_v9, %v2377_v19  ;;  %v1724_v27 = vpop.f32.mrf.mxu0  ;;  %v7921_v22 = vpop.f32.mrf.mxu1  ;;  %v1629_v19 = vadd.f32 %v7317_v62, %v1379_v1  ;;  %v6332_v1 = vld [vmem:[#allocation2 + $0xf8] sm:$0xff] }
 0x34d   : > { %v1878_v63 = vadd.f32 %v1724_v27, %v1628_v39 }
 0x34e   : > { %v2236_v27 = vpop.f32.mrf.mxu2 }
 0x34f   : > { %v2128_v61 = vadd.f32 %v1974_v28, %v1878_v63  ;;  %1771 = vmatmul.f32.gmra.mxu0 %v11236_v12  ;;  %v1035_v28 = vadd.f32 %v7111_v40, %v11246_v41  ;;  %v11251_v41 = vld [vmem:[#allocation72_spill] sm:$0xff] }
 0x350   : > { %2521 = vmatmul.f32.gmra.mxu3 %v11245_v57  ;;  %2033 = vmatmul.f32.gmra.mxu1 %v11247_v3 }
 0x351   : > { %v2378_v58 = vadd.f32 %v2224_v7, %v2128_v61  ;;  %v3806_v7 = vld [vmem:[#allocation7 + $0xe8] sm:$0xff]  ;;  %v1380_v14 = vadd.f32 %v7745_v30, %v1035_v28 }
 0x352   : > { %3811 = vmatpush.msra.mxu1 %v3806_v7 }
 0x353   : > { %v2474_v53 = vpop.f32.mrf.mxu3  ;;  %2286 = vmatmul.f32.gmra.mxu2 %v6332_v1  ;;  %v1630_v40 = vadd.f32 %v7332_v50, %v1380_v14  ;;  %v6333_v50 = vld [vmem:[#allocation2 + $0x100] sm:$0xff]  ;;  %v11252_v14 = vld [vmem:[#allocation130_spill] sm:$0xff] }
 0x354   : > { %v7924_v9 = vadd.f32 %v2474_v53, %v2378_v58  ;;  %v1727_v39 = vpop.f32.mrf.mxu0  ;;  %v7932_v61 = vpop.f32.mrf.mxu1 }
 0x355   : > { %v1879_v12 = vadd.f32 %v1727_v39, %v1629_v19  ;;  %v11249_v19 = vld [vmem:[#allocation51_spill] sm:$0xff]  ;;  %v11250_v39 = vld [vmem:[#allocation54_spill] sm:$0xff] }
 0x356   : > { %v2239_v53 = vpop.f32.mrf.mxu2  ;;  %v1038_v30 = vadd.f32 %v7131_v44, %v11249_v19  ;;  %v11256_v19 = vld [vmem:[#allocation76_spill] sm:$0xff] }
 0x357   : > { %v2129_v63 = vadd.f32 %v1977_v59, %v1879_v12  ;;  %1774 = vmatmul.f32.gmra.mxu0 %v11239_v23 }
 0x358   : > { %2524 = vmatmul.f32.gmra.mxu3 %v11248_v45  ;;  %2036 = vmatmul.f32.gmra.mxu1 %v11250_v39  ;;  %v1381_v23 = vadd.f32 %v7753_v24, %v1038_v30  ;;  %v11254_v24 = vld [vmem:[#allocation115_spill] sm:$0xff] }
 0x359   : > { %v2379_v62 = vadd.f32 %v2227_v35, %v2129_v63  ;;  %v2686_v30 = vld [vmem:[#allocation4 + $0x438] sm:$0xff] }
 0x35a   : > { %v1631_v63 = vadd.f32 %v11252_v14, %v1381_v23  ;;  %v6334_v23 = vld [vmem:[#allocation2 + $0x108] sm:$0xff]  ;;  %2703 = vmatpush.msrb.mxu0 %v2686_v30  ;;  %v6335_v30 = vld [vmem:[#allocation2 + $0x110] sm:$0xff] }
 0x35b   : > { %v2477_v58 = vpop.f32.mrf.mxu3  ;;  %2289 = vmatmul.f32.gmra.mxu2 %v6333_v50  ;;  %v11257_v50 = vld [vmem:[#allocation135_spill] sm:$0xff] }
 0x35c   : > { %v7935_v29 = vadd.f32 %v2477_v58, %v2379_v62  ;;  %v1730_v20 = vpop.f32.mrf.mxu0  ;;  %v7944_v12 = vpop.f32.mrf.mxu1  ;;  %v11253_v58 = vld [vmem:[#allocation55_spill] sm:$0xff] }
 0x35d   : > { %v1880_v59 = vadd.f32 %v1730_v20, %v1630_v40  ;;  %v1041_v40 = vadd.f32 %v11254_v24, %v11253_v58  ;;  %v11255_v20 = vld [vmem:[#allocation58_spill] sm:$0xff] }
 0x35e   : > { %v2242_v1 = vpop.f32.mrf.mxu2  ;;  %v11260_v24 = vld [vmem:[#allocation62_spill] sm:$0xff] }
 0x35f   : > { %v2130_v35 = vadd.f32 %v7899_v49, %v1880_v59  ;;  %1777 = vmatmul.f32.gmra.mxu0 %v11242_v46  ;;  %v1382_v46 = vadd.f32 %v7763_v51, %v1041_v40 }
 0x360   : > { %2527 = vmatmul.f32.gmra.mxu3 %v11251_v41  ;;  %2039 = vmatmul.f32.gmra.mxu1 %v11255_v20 }
 0x361   : > { %v2380_v28 = vadd.f32 %v2230_v42, %v2130_v35 }
 0x363   : > { %v2480_v7 = vpop.f32.mrf.mxu3  ;;  %2292 = vmatmul.f32.gmra.mxu2 %v6334_v23 }
 0x364   : > { %v7947_v44 = vadd.f32 %v2480_v7, %v2380_v28  ;;  %v1733_v62 = vpop.f32.mrf.mxu0  ;;  %v7957_v35 = vpop.f32.mrf.mxu1  ;;  %v1632_v7 = vadd.f32 %v11257_v50, %v1382_v46  ;;  %v11261_v46 = vld [vmem:[#allocation80_spill] sm:$0xff]  ;;  %v11262_v50 = vld [vmem:[#allocation139_spill] sm:$0xff] }
 0x365   : > { %v1881_v49 = vadd.f32 %v1733_v62, %v1631_v63 }
 0x366   : > { %v7962_v63 = vpop.f32.mrf.mxu2 }
 0x367   : > { %v2131_v42 = vadd.f32 %v7908_v47, %v1881_v49  ;;  %1780 = vmatmul.f32.gmra.mxu0 %v11245_v57  ;;  %v11258_v47 = vld [vmem:[#allocation59_spill] sm:$0xff]  ;;  %v11259_v57 = vld [vmem:[#allocation118_spill] sm:$0xff] }
 0x368   : > { %2530 = vmatmul.f32.gmra.mxu3 %v11256_v19  ;;  %v1044_v62 = vadd.f32 %v11259_v57, %v11258_v47  ;;  %2042 = vmatmul.f32.gmra.mxu1 %v11260_v24  ;;  %v11263_v57 = vld [vmem:[#allocation63_spill] sm:$0xff] }
 0x369   : > { %v2381_v59 = vadd.f32 %v7913_v56, %v2131_v42  ;;  %v3788_v56 = vld [vmem:[#allocation7 + $0x60] sm:$0xff] }
 0x36a   : > { %3973 = vmatpush.msra.mxu2 %v3788_v56  ;;  %v1383_v40 = vadd.f32 %v7773_v55, %v1044_v62 }
 0x36b   : > { %v2483_v28 = vpop.f32.mrf.mxu3  ;;  %2295 = vmatmul.f32.gmra.mxu2 %v6335_v30 }
 0x36c   : > { %v7960_v14 = vadd.f32 %v2483_v28, %v2381_v59  ;;  %v1736_v51 = vpop.f32.mrf.mxu0  ;;  %v3805_v59 = vld [vmem:[#allocation7 + $0xe0] sm:$0xff]  ;;  %v7971_v23 = vpop.f32.mrf.mxu1 }
 0x36d   : > { %v1882_v58 = vadd.f32 %v1736_v51, %v1632_v7  ;;  %3812 = vmatpush.msra.mxu1 %v3805_v59  ;;  %v1633_v7 = vadd.f32 %v11262_v50, %v1383_v40  ;;  %v6336_v40 = vld [vmem:[#allocation2 + $0x118] sm:$0xff] }
 0x36e   : > { %v2248_v55 = vpop.f32.mrf.mxu2 }
 0x36f   : > { %v2132_v49 = vadd.f32 %v7921_v22, %v1882_v58  ;;  %1783 = vmatmul.f32.gmra.mxu0 %v11248_v45  ;;  %v11264_v22 = vld [vmem:[#allocation122_spill] sm:$0xff] }
 0x370   : > { %2533 = vmatmul.f32.gmra.mxu3 %v11261_v46  ;;  %v1047_v62 = vadd.f32 %v11264_v22, %v11263_v57  ;;  %v11265_v58 = vld [vmem:[#allocation66_spill] sm:$0xff]  ;;  %v11268_v22 = vld [vmem:[#allocation67_spill] sm:$0xff] }
 0x371   : > { %v2382_v42 = vadd.f32 %v2236_v27, %v2132_v49  ;;  %2045 = vmatmul.f32.gmra.mxu1 %v11265_v58  ;;  %v11266_v49 = vld [vmem:[#allocation84_spill] sm:$0xff] }
 0x372   : > { %v1384_v27 = vadd.f32 %v7783_v10, %v1047_v62  ;;  %v11269_v10 = vld [vmem:[#allocation129_spill] sm:$0xff] }
 0x373   : > { %v2486_v28 = vpop.f32.mrf.mxu3  ;;  %2298 = vmatmul.f32.gmra.mxu2 %v6336_v40  ;;  %v1050_v62 = vadd.f32 %v11269_v10, %v11268_v22  ;;  %v11273_v10 = vld [vmem:[#allocation71_spill] sm:$0xff] }
 0x374   : > { %v7974_v51 = vadd.f32 %v2486_v28, %v2382_v42  ;;  %v1739_v47 = vpop.f32.mrf.mxu0  ;;  %v7983_v42 = vpop.f32.mrf.mxu1  ;;  %v11267_v28 = vld [vmem:[#allocation143_spill] sm:$0xff] }
 0x375   : > { %v1883_v45 = vadd.f32 %v1739_v47, %v1633_v7  ;;  %v1634_v50 = vadd.f32 %v11267_v28, %v1384_v27  ;;  %v6337_v27 = vld [vmem:[#allocation2 + $0x120] sm:$0xff]  ;;  %v11272_v28 = vld [vmem:[#allocation146_spill] sm:$0xff] }
 0x376   : > { %v2251_v47 = vpop.f32.mrf.mxu2 }
 0x377   : > { %v2133_v56 = vadd.f32 %v7932_v61, %v1883_v45  ;;  %1786 = vmatmul.f32.gmra.mxu0 %v11251_v41  ;;  %v11270_v45 = vld [vmem:[#allocation70_spill] sm:$0xff]  ;;  %v1385_v41 = vadd.f32 %v7793_v21, %v1050_v62 }
 0x378   : > { %2536 = vmatmul.f32.gmra.mxu3 %v11266_v49  ;;  %v2685_v21 = vld [vmem:[#allocation4 + $0x430] sm:$0xff] }
 0x379   : > { %v2383_v30 = vadd.f32 %v2239_v53, %v2133_v56  ;;  %2048 = vmatmul.f32.gmra.mxu1 %v11270_v45  ;;  %v11271_v56 = vld [vmem:[#allocation88_spill] sm:$0xff]  ;;  %v1635_v58 = vadd.f32 %v11272_v28, %v1385_v41  ;;  %2704 = vmatpush.msrb.mxu0 %v2685_v21  ;;  %v11281_v45 = vld [vmem:[#allocation78_spill] sm:$0xff] }
 0x37a   : > { %v11276_v41 = vld [vmem:[#allocation92_spill] sm:$0xff] }
 0x37b   : > { %v2489_v59 = vpop.f32.mrf.mxu3  ;;  %2301 = vmatmul.f32.gmra.mxu2 %v6337_v27 }
 0x37c   : > { %v7986_v57 = vadd.f32 %v2489_v59, %v2383_v30  ;;  %v1742_v7 = vpop.f32.mrf.mxu0  ;;  %v7995_v30 = vpop.f32.mrf.mxu1 }
 0x37d   : > { %v1884_v61 = vadd.f32 %v1742_v7, %v1634_v50 }
 0x37e   : > { %v8000_v7 = vpop.f32.mrf.mxu2 }
 0x37f   : > { %v2134_v53 = vadd.f32 %v7944_v12, %v1884_v61  ;;  %1789 = vmatmul.f32.gmra.mxu0 %v11256_v19  ;;  %v11274_v12 = vld [vmem:[#allocation134_spill] sm:$0xff] }
 0x380   : > { %2539 = vmatmul.f32.gmra.mxu3 %v11271_v56  ;;  %v1053_v62 = vadd.f32 %v11274_v12, %v11273_v10  ;;  %v11275_v61 = vld [vmem:[#allocation74_spill] sm:$0xff] }
 0x381   : > { %v2384_v40 = vadd.f32 %v2242_v1, %v2134_v53  ;;  %2051 = vmatmul.f32.gmra.mxu1 %v11275_v61  ;;  %v11277_v10 = vld [vmem:[#allocation150_spill] sm:$0xff] }
 0x382   : > { %v1386_v1 = vadd.f32 %v7801_v4, %v1053_v62  ;;  %v11279_v62 = vld [vmem:[#allocation75_spill] sm:$0xff] }
 0x383   : > { %v2492_v59 = vpop.f32.mrf.mxu3 }
 0x384   : > { %v7998_v22 = vadd.f32 %v2492_v59, %v2384_v40  ;;  %v1745_v50 = vpop.f32.mrf.mxu0  ;;  %v3787_v40 = vld [vmem:[#allocation7 + $0x58] sm:$0xff]  ;;  %v6338_v59 = vld [vmem:[#allocation2 + $0x128] sm:$0xff] }
 0x385   : > { %v1885_v19 = vadd.f32 %v1745_v50, %v1635_v58  ;;  %2304 = vmatmul.f32.gmra.mxu2 %v6338_v59  ;;  %v1636_v58 = vadd.f32 %v11277_v10, %v1386_v1  ;;  %v2007_v50 = vpop.f32.mrf.mxu1  ;;  %v11282_v1 = vld [vmem:[#allocation96_spill] sm:$0xff] }
 0x386   : > { %3974 = vmatpush.msra.mxu2 %v3787_v40  ;;  %v8013_v4 = vpop.f32.mrf.mxu2 }
 0x387   : > { %v2135_v53 = vadd.f32 %v7957_v35, %v1885_v19  ;;  %1792 = vmatmul.f32.gmra.mxu0 %v11261_v46  ;;  %v3804_v35 = vld [vmem:[#allocation7 + $0xd8] sm:$0xff]  ;;  %v11280_v46 = vld [vmem:[#allocation138_spill] sm:$0xff] }
 0x388   : > { %2542 = vmatmul.f32.gmra.mxu3 %v11276_v41  ;;  %v1056_v19 = vadd.f32 %v11280_v46, %v11279_v62  ;;  %3813 = vmatpush.msra.mxu1 %v3804_v35  ;;  %v11284_v62 = vld [vmem:[#allocation79_spill] sm:$0xff]  ;;  %v11285_v35 = vld [vmem:[#allocation142_spill] sm:$0xff] }
 0x389   : > { %v2385_v27 = vadd.f32 %v7962_v63, %v2135_v53  ;;  %2054 = vmatmul.f32.gmra.mxu1 %v11281_v45  ;;  %v1059_v46 = vadd.f32 %v11285_v35, %v11284_v62  ;;  %v11289_v62 = vld [vmem:[#allocation83_spill] sm:$0xff]  ;;  %v11290_v35 = vld [vmem:[#allocation149_spill] sm:$0xff] }
 0x38a   : > { %v1387_v63 = vadd.f32 %v7813_v38, %v1056_v19 }
 0x38b   : > { %v2495_v28 = vpop.f32.mrf.mxu3 }
 0x38c   : > { %v8011_v12 = vadd.f32 %v2495_v28, %v2385_v27  ;;  %v1748_v21 = vpop.f32.mrf.mxu0  ;;  %v6339_v27 = vld [vmem:[#allocation2 + $0x130] sm:$0xff] }
 0x38d   : > { %v1886_v61 = vadd.f32 %v1748_v21, %v1636_v58  ;;  %2307 = vmatmul.f32.gmra.mxu2 %v6339_v27  ;;  %v11283_v28 = vld [vmem:[#allocation154_spill] sm:$0xff]  ;;  %v2010_v19 = vpop.f32.mrf.mxu1 }
 0x38e   : > { %11278 = vst [vmem:[#allocation36_spill] sm:$0xff] %v8011_v12  ;;  %v1637_v10 = vadd.f32 %v11283_v28, %v1387_v63  ;;  %v2260_v21 = vpop.f32.mrf.mxu2  ;;  %v11288_v27 = vld [vmem:[#allocation158_spill] sm:$0xff] }
 0x38f   : > { %v2136_v53 = vadd.f32 %v7971_v23, %v1886_v61  ;;  %1795 = vmatmul.f32.gmra.mxu0 %v11266_v49  ;;  %v11286_v23 = vld [vmem:[#allocation82_spill] sm:$0xff]  ;;  %v1388_v49 = vadd.f32 %v7825_v36, %v1059_v46  ;;  %v11287_v61 = vld [vmem:[#allocation100_spill] sm:$0xff] }
 0x390   : > { %2545 = vmatmul.f32.gmra.mxu3 %v11282_v1  ;;  %v11291_v46 = vld [vmem:[#allocation86_spill] sm:$0xff] }
 0x391   : > { %v2386_v40 = vadd.f32 %v2248_v55, %v2136_v53  ;;  %2057 = vmatmul.f32.gmra.mxu1 %v11286_v23  ;;  %v6340_v53 = vld [vmem:[#allocation2 + $0x138] sm:$0xff]  ;;  %v1062_v23 = vadd.f32 %v11290_v35, %v11289_v62 }
 0x393   : > { %v2498_v59 = vpop.f32.mrf.mxu3 }
 0x394   : > { %v8023_v12 = vadd.f32 %v2498_v59, %v2386_v40  ;;  %v1751_v58 = vpop.f32.mrf.mxu0  ;;  %v1638_v59 = vadd.f32 %v11288_v27, %v1388_v49  ;;  %v11292_v49 = vld [vmem:[#allocation103_spill] sm:$0xff] }
 0x395   : > { %v1887_v38 = vadd.f32 %v1751_v58, %v1637_v10  ;;  %2310 = vmatmul.f32.gmra.mxu2 %v6340_v53 }
 0x396   : > { %v2263_v58 = vpop.f32.mrf.mxu2 }
 0x397   : > { %v2137_v55 = vadd.f32 %v7983_v42, %v1887_v38  ;;  %1798 = vmatmul.f32.gmra.mxu0 %v11271_v56  ;;  %v2684_v42 = vld [vmem:[#allocation4 + $0x428] sm:$0xff]  ;;  %v1389_v56 = vadd.f32 %v7835_v17, %v1062_v23  ;;  %v2013_v38 = vpop.f32.mrf.mxu1  ;;  %v3786_v17 = vld [vmem:[#allocation7 + $0x50] sm:$0xff]  ;;  %v11294_v23 = vld [vmem:[#allocation87_spill] sm:$0xff] }
 0x398   : > { %2548 = vmatmul.f32.gmra.mxu3 %v11287_v61  ;;  %2705 = vmatpush.msrb.mxu0 %v2684_v42 }
 0x399   : > { %v2387_v63 = vadd.f32 %v2251_v47, %v2137_v55  ;;  %2060 = vmatmul.f32.gmra.mxu1 %v11291_v46  ;;  %3975 = vmatpush.msra.mxu2 %v3786_v17 }
 0x39b   : > { %v2501_v40 = vpop.f32.mrf.mxu3 }
 0x39c   : > { %v8033_v28 = vadd.f32 %v2501_v40, %v2387_v63  ;;  %v1754_v10 = vpop.f32.mrf.mxu0  ;;  %v6341_v63 = vld [vmem:[#allocation2 + $0x140] sm:$0xff]  ;;  %v11293_v40 = vld [vmem:[#allocation163_spill] sm:$0xff] }
 0x39d   : > { %v1888_v36 = vadd.f32 %v1754_v10, %v1638_v59  ;;  %2313 = vmatmul.f32.gmra.mxu2 %v6341_v63  ;;  %v1639_v27 = vadd.f32 %v11293_v40, %v1389_v56  ;;  %v11297_v56 = vld [vmem:[#allocation106_spill] sm:$0xff] }
 0x39e   : > { %v8046_v62 = vpop.f32.mrf.mxu2 }
 0x39f   : > { %v2138_v47 = vadd.f32 %v7995_v30, %v1888_v36  ;;  %1801 = vmatmul.f32.gmra.mxu0 %v11276_v41  ;;  %v11295_v30 = vld [vmem:[#allocation153_spill] sm:$0xff]  ;;  %v11296_v36 = vld [vmem:[#allocation90_spill] sm:$0xff]  ;;  %v2016_v63 = vpop.f32.mrf.mxu1 }
 0x3a0   : > { %2551 = vmatmul.f32.gmra.mxu3 %v11292_v49  ;;  %v1065_v35 = vadd.f32 %v11295_v30, %v11294_v23  ;;  %v11298_v23 = vld [vmem:[#allocation165_spill] sm:$0xff] }
 0x3a1   : > { %v2388_v55 = vadd.f32 %v8000_v7, %v2138_v47  ;;  %2063 = vmatmul.f32.gmra.mxu1 %v11296_v36  ;;  %v3803_v47 = vld [vmem:[#allocation7 + $0xd0] sm:$0xff] }
 0x3a2   : > { %v1390_v7 = vadd.f32 %v7845_v48, %v1065_v35  ;;  %3814 = vmatpush.msra.mxu1 %v3803_v47  ;;  %v11300_v48 = vld [vmem:[#allocation91_spill] sm:$0xff] }
 0x3a3   : > { %v2504_v53 = vpop.f32.mrf.mxu3 }
 0x3a4   : > { %v8044_v59 = vadd.f32 %v2504_v53, %v2388_v55  ;;  %v1757_v10 = vpop.f32.mrf.mxu0  ;;  %v6342_v53 = vld [vmem:[#allocation2 + $0x148] sm:$0xff] }
 0x3a5   : > { %v1889_v41 = vadd.f32 %v1757_v10, %v1639_v27  ;;  %2316 = vmatmul.f32.gmra.mxu2 %v6342_v53  ;;  %v1640_v27 = vadd.f32 %v11298_v23, %v1390_v7  ;;  %v6343_v53 = vld [vmem:[#allocation2 + $0x150] sm:$0xff] }
 0x3a6   : > { %v2269_v30 = vpop.f32.mrf.mxu2 }
 0x3a7   : > { %v2139_v42 = vadd.f32 %v2007_v50, %v1889_v41  ;;  %1804 = vmatmul.f32.gmra.mxu0 %v11282_v1  ;;  %v11301_v50 = vld [vmem:[#allocation157_spill] sm:$0xff]  ;;  %v11302_v41 = vld [vmem:[#allocation94_spill] sm:$0xff]  ;;  %v2019_v23 = vpop.f32.mrf.mxu1 }
 0x3a8   : > { %2554 = vmatmul.f32.gmra.mxu3 %v11297_v56  ;;  %v1068_v35 = vadd.f32 %v11301_v50, %v11300_v48  ;;  %v11306_v50 = vld [vmem:[#allocation162_spill] sm:$0xff] }
 0x3a9   : > { %v2389_v55 = vadd.f32 %v8013_v4, %v2139_v42  ;;  %2066 = vmatmul.f32.gmra.mxu1 %v11302_v41  ;;  %v11303_v4 = vld [vmem:[#allocation108_spill] sm:$0xff] }
 0x3aa   : > { %v1391_v47 = vadd.f32 %v7855_v37, %v1068_v35 }
 0x3ab   : > { %v2507_v40 = vpop.f32.mrf.mxu3 }
 0x3ac   : > { %v8056_v10 = vadd.f32 %v2507_v40, %v2389_v55  ;;  %v1760_v17 = vpop.f32.mrf.mxu0  ;;  %v11304_v55 = vld [vmem:[#allocation169_spill] sm:$0xff] }
 0x3ad   : > { %v1890_v1 = vadd.f32 %v1760_v17, %v1640_v27  ;;  %2319 = vmatmul.f32.gmra.mxu2 %v6343_v53  ;;  %v1641_v40 = vadd.f32 %v11304_v55, %v1391_v47  ;;  %v11305_v17 = vld [vmem:[#allocation95_spill] sm:$0xff]  ;;  %v2683_v47 = vld [vmem:[#allocation4 + $0x420] sm:$0xff] }
 0x3ae   : > { %11299 = vst [vmem:[#allocation40_spill] sm:$0xff] %v8056_v10  ;;  %v2272_v27 = vpop.f32.mrf.mxu2  ;;  %v1071_v41 = vadd.f32 %v11306_v50, %v11305_v17  ;;  %2706 = vmatpush.msrb.mxu0 %v2683_v47  ;;  %v11309_v53 = vld [vmem:[#allocation172_spill] sm:$0xff]  ;;  %v11310_v17 = vld [vmem:[#allocation99_spill] sm:$0xff]  ;;  %v3802_v47 = vld [vmem:[#allocation7 + $0xc8] sm:$0xff] }
 0x3af   : > { %v2140_v36 = vadd.f32 %v2010_v19, %v1890_v1  ;;  %1807 = vmatmul.f32.gmra.mxu0 %v11287_v61  ;;  %v11307_v19 = vld [vmem:[#allocation98_spill] sm:$0xff]  ;;  %v6344_v1 = vld [vmem:[#allocation2 + $0x158] sm:$0xff]  ;;  %3815 = vmatpush.msra.mxu1 %v3802_v47 }
 0x3b0   : > { %2557 = vmatmul.f32.gmra.mxu3 %v11303_v4  ;;  %v1392_v61 = vadd.f32 %v7865_v26, %v1071_v41  ;;  %v11311_v50 = vld [vmem:[#allocation167_spill] sm:$0xff]  ;;  %v2022_v41 = vpop.f32.mrf.mxu1 }
 0x3b1   : > { %v2390_v42 = vadd.f32 %v2260_v21, %v2140_v36  ;;  %2069 = vmatmul.f32.gmra.mxu1 %v11307_v19  ;;  %v11308_v21 = vld [vmem:[#allocation110_spill] sm:$0xff]  ;;  %v1074_v26 = vadd.f32 %v11311_v50, %v11310_v17 }
 0x3b3   : > { %v2510_v7 = vpop.f32.mrf.mxu3 }
 0x3b4   : > { %v8065_v10 = vadd.f32 %v2510_v7, %v2390_v42  ;;  %v1763_v48 = vpop.f32.mrf.mxu0  ;;  %v1642_v7 = vadd.f32 %v11309_v53, %v1392_v61  ;;  %v11314_v53 = vld [vmem:[#allocation176_spill] sm:$0xff] }
 0x3b5   : > { %v1891_v37 = vadd.f32 %v1763_v48, %v1641_v40  ;;  %2322 = vmatmul.f32.gmra.mxu2 %v6344_v1  ;;  %v11313_v1 = vld [vmem:[#allocation112_spill] sm:$0xff] }
 0x3b6   : > { %v2275_v48 = vpop.f32.mrf.mxu2 }
 0x3b7   : > { %v2141_v35 = vadd.f32 %v2013_v38, %v1891_v37  ;;  %1810 = vmatmul.f32.gmra.mxu0 %v11292_v49  ;;  %v11312_v49 = vld [vmem:[#allocation101_spill] sm:$0xff] }
 0x3b8   : > { %2560 = vmatmul.f32.gmra.mxu3 %v11308_v21  ;;  %v3785_v37 = vld [vmem:[#allocation7 + $0x48] sm:$0xff] }
 0x3b9   : > { %v2391_v36 = vadd.f32 %v2263_v58, %v2141_v35  ;;  %2072 = vmatmul.f32.gmra.mxu1 %v11312_v49  ;;  %3976 = vmatpush.msra.mxu2 %v3785_v37  ;;  %v1393_v58 = vadd.f32 %v7872_v18, %v1074_v26  ;;  %v11315_v37 = vld [vmem:[#allocation102_spill] sm:$0xff]  ;;  %v11316_v18 = vld [vmem:[#allocation171_spill] sm:$0xff] }
 0x3bb   : > { %v2513_v42 = vpop.f32.mrf.mxu3 }
 0x3bc   : > { %v8074_v55 = vadd.f32 %v2513_v42, %v2391_v36  ;;  %v1766_v40 = vpop.f32.mrf.mxu0  ;;  %v6345_v36 = vld [vmem:[#allocation2 + $0x160] sm:$0xff] }
 0x3bd   : > { %v1892_v38 = vadd.f32 %v1766_v40, %v1642_v7  ;;  %2325 = vmatmul.f32.gmra.mxu2 %v6345_v36  ;;  %v1643_v7 = vadd.f32 %v11314_v53, %v1393_v58  ;;  %v11318_v36 = vld [vmem:[#allocation114_spill] sm:$0xff]  ;;  %v6346_v58 = vld [vmem:[#allocation2 + $0x168] sm:$0xff] }
 0x3be   : > { %v2278_v50 = vpop.f32.mrf.mxu2 }
 0x3bf   : > { %v2142_v35 = vadd.f32 %v2016_v63, %v1892_v38  ;;  %1813 = vmatmul.f32.gmra.mxu0 %v11297_v56  ;;  %v1077_v63 = vadd.f32 %v11316_v18, %v11315_v37  ;;  %v11317_v56 = vld [vmem:[#allocation104_spill] sm:$0xff]  ;;  %v11321_v18 = vld [vmem:[#allocation175_spill] sm:$0xff] }
 0x3c0   : > { %2563 = vmatmul.f32.gmra.mxu3 %v11313_v1 }
 0x3c1   : > { %v2392_v61 = vadd.f32 %v8046_v62, %v2142_v35  ;;  %2075 = vmatmul.f32.gmra.mxu1 %v11317_v56  ;;  %v1394_v38 = vadd.f32 %v7877_v32, %v1077_v63  ;;  %v2025_v35 = vpop.f32.mrf.mxu1 }
 0x3c3   : > { %v2516_v42 = vpop.f32.mrf.mxu3 }
 0x3c4   : > { %v8084_v40 = vadd.f32 %v2516_v42, %v2392_v61  ;;  %v1769_v17 = vpop.f32.mrf.mxu0  ;;  %v11319_v42 = vld [vmem:[#allocation179_spill] sm:$0xff] }
 0x3c5   : > { %v1893_v26 = vadd.f32 %v1769_v17, %v1643_v7  ;;  %2328 = vmatmul.f32.gmra.mxu2 %v6346_v58  ;;  %v1644_v53 = vadd.f32 %v11319_v42, %v1394_v38  ;;  %v11320_v17 = vld [vmem:[#allocation105_spill] sm:$0xff]  ;;  %v6347_v38 = vld [vmem:[#allocation2 + $0x170] sm:$0xff] }
 0x3c6   : > { %v2281_v7 = vpop.f32.mrf.mxu2  ;;  %v1080_v56 = vadd.f32 %v11321_v18, %v11320_v17  ;;  %v11324_v58 = vld [vmem:[#allocation182_spill] sm:$0xff] }
 0x3c7   : > { %v2143_v62 = vadd.f32 %v2019_v23, %v1893_v26  ;;  %1816 = vmatmul.f32.gmra.mxu0 %v11303_v4  ;;  %v11322_v23 = vld [vmem:[#allocation107_spill] sm:$0xff] }
 0x3c8   : > { %2566 = vmatmul.f32.gmra.mxu3 %v11318_v36  ;;  %v1395_v4 = vadd.f32 %v7882_v43, %v1080_v56  ;;  %v3784_v56 = vld [vmem:[#allocation7 + $0x40] sm:$0xff] }
 0x3c9   : > { %v2393_v47 = vadd.f32 %v2269_v30, %v2143_v62  ;;  %2078 = vmatmul.f32.gmra.mxu1 %v11322_v23  ;;  %v11323_v30 = vld [vmem:[#allocation117_spill] sm:$0xff]  ;;  %v2028_v62 = vpop.f32.mrf.mxu1  ;;  %3977 = vmatpush.msra.mxu2 %v3784_v56 }
 0x3ca   : > { %v11325_v23 = vld [vmem:[#allocation109_spill] sm:$0xff] }
 0x3cb   : > { %v2519_v61 = vpop.f32.mrf.mxu3  ;;  %v11331_v56 = vld [vmem:[#allocation189_spill] sm:$0xff] }
 0x3cc   : > { %v8093_v49 = vadd.f32 %v2519_v61, %v2393_v47  ;;  %v1772_v37 = vpop.f32.mrf.mxu0  ;;  %v1645_v61 = vadd.f32 %v11324_v58, %v1395_v4 }
 0x3cd   : > { %v1894_v32 = vadd.f32 %v1772_v37, %v1644_v53  ;;  %2331 = vmatmul.f32.gmra.mxu2 %v6347_v38  ;;  %v2682_v37 = vld [vmem:[#allocation4 + $0x418] sm:$0xff] }
 0x3ce   : > { %v2284_v53 = vpop.f32.mrf.mxu2  ;;  %2707 = vmatpush.msrb.mxu0 %v2682_v37  ;;  %v6349_v37 = vld [vmem:[#allocation2 + $0x180] sm:$0xff] }
 0x3cf   : > { %v2144_v63 = vadd.f32 %v2022_v41, %v1894_v32  ;;  %1819 = vmatmul.f32.gmra.mxu0 %v11308_v21  ;;  %v11326_v21 = vld [vmem:[#allocation121_spill] sm:$0xff]  ;;  %v6348_v41 = vld [vmem:[#allocation2 + $0x178] sm:$0xff] }
 0x3d0   : > { %2569 = vmatmul.f32.gmra.mxu3 %v11323_v30 }
 0x3d1   : > { %v2394_v26 = vadd.f32 %v2272_v27, %v2144_v63  ;;  %2081 = vmatmul.f32.gmra.mxu1 %v11325_v23  ;;  %v2031_v4 = vpop.f32.mrf.mxu1 }
 0x3d3   : > { %v2522_v47 = vpop.f32.mrf.mxu3 }
 0x3d4   : > { %v8102_v42 = vadd.f32 %v2522_v47, %v2394_v26  ;;  %v1775_v17 = vpop.f32.mrf.mxu0  ;;  %v11327_v47 = vld [vmem:[#allocation186_spill] sm:$0xff] }
 0x3d5   : > { %v1895_v18 = vadd.f32 %v1775_v17, %v1645_v61  ;;  %2334 = vmatmul.f32.gmra.mxu2 %v6348_v41  ;;  %v11328_v61 = vld [vmem:[#allocation111_spill] sm:$0xff] }
 0x3d6   : > { %v2287_v38 = vpop.f32.mrf.mxu2 }
 0x3d7   : > { %v2145_v43 = vadd.f32 %v2025_v35, %v1895_v18  ;;  %1822 = vmatmul.f32.gmra.mxu0 %v11313_v1  ;;  %v3801_v35 = vld [vmem:[#allocation7 + $0xc0] sm:$0xff] }
 0x3d8   : > { %2572 = vmatmul.f32.gmra.mxu3 %v11326_v21  ;;  %3816 = vmatpush.msra.mxu1 %v3801_v35 }
 0x3d9   : > { %v2395_v27 = vadd.f32 %v2275_v48, %v2145_v43  ;;  %2084 = vmatmul.f32.gmra.mxu1 %v11328_v61  ;;  %v11329_v48 = vld [vmem:[#allocation125_spill] sm:$0xff] }
 0x3db   : > { %v2525_v32 = vpop.f32.mrf.mxu3 }
 0x3dc   : > { %v8107_v63 = vadd.f32 %v2525_v32, %v2395_v27  ;;  %v1778_v26 = vpop.f32.mrf.mxu0 }
 0x3dd   : > { %v1896_v58 = vadd.f32 %v1778_v26, %v11327_v47  ;;  %2337 = vmatmul.f32.gmra.mxu2 %v6349_v37  ;;  %v2034_v26 = vpop.f32.mrf.mxu1  ;;  %v11332_v47 = vld [vmem:[#allocation113_spill] sm:$0xff] }
 0x3de   : > { %v2290_v41 = vpop.f32.mrf.mxu2  ;;  %v11334_v37 = vld [vmem:[#allocation193_spill] sm:$0xff] }
 0x3df   : > { %v2146_v1 = vadd.f32 %v2028_v62, %v1896_v58  ;;  %1825 = vmatmul.f32.gmra.mxu0 %v11318_v36  ;;  %v11333_v62 = vld [vmem:[#allocation128_spill] sm:$0xff]  ;;  %v6350_v58 = vld [vmem:[#allocation2 + $0x188] sm:$0xff] }
 0x3e0   : > { %2575 = vmatmul.f32.gmra.mxu3 %v11329_v48 }
 0x3e1   : > { %v2396_v17 = vadd.f32 %v2278_v50, %v2146_v1  ;;  %2087 = vmatmul.f32.gmra.mxu1 %v11332_v47 }
 0x3e3   : > { %v2528_v18 = vpop.f32.mrf.mxu3 }
 0x3e4   : > { %v8113_v43 = vadd.f32 %v2528_v18, %v2396_v17  ;;  %v1781_v27 = vpop.f32.mrf.mxu0 }
 0x3e5   : > { %v1897_v32 = vadd.f32 %v1781_v27, %v11331_v56  ;;  %2340 = vmatmul.f32.gmra.mxu2 %v6350_v58  ;;  %v2681_v56 = vld [vmem:[#allocation4 + $0x410] sm:$0xff] }
 0x3e6   : > { %11330 = vst [vmem:[#allocation44_spill] sm:$0xff] %v8113_v43  ;;  %v2293_v17 = vpop.f32.mrf.mxu2  ;;  %v11335_v43 = vld [vmem:[#allocation116_spill] sm:$0xff]  ;;  %2708 = vmatpush.msrb.mxu0 %v2681_v56 }
 0x3e7   : > { %v2147_v61 = vadd.f32 %v2031_v4, %v1897_v32  ;;  %1828 = vmatmul.f32.gmra.mxu0 %v11323_v30  ;;  %v2037_v4 = vpop.f32.mrf.mxu1  ;;  %v11336_v30 = vld [vmem:[#allocation133_spill] sm:$0xff] }
 0x3e8   : > { %2578 = vmatmul.f32.gmra.mxu3 %v11333_v62 }
 0x3e9   : > { %v2397_v36 = vadd.f32 %v2281_v7, %v2147_v61  ;;  %2090 = vmatmul.f32.gmra.mxu1 %v11335_v43  ;;  %v6351_v61 = vld [vmem:[#allocation2 + $0x190] sm:$0xff] }
 0x3eb   : > { %v2531_v50 = vpop.f32.mrf.mxu3 }
 0x3ec   : > { %v8119_v35 = vadd.f32 %v2531_v50, %v2397_v36  ;;  %v1784_v1 = vpop.f32.mrf.mxu0 }
 0x3ed   : > { %v1898_v18 = vadd.f32 %v1784_v1, %v11334_v37  ;;  %2343 = vmatmul.f32.gmra.mxu2 %v6351_v61  ;;  %v3783_v1 = vld [vmem:[#allocation7 + $0x38] sm:$0xff]  ;;  %v11339_v37 = vld [vmem:[#allocation197_spill] sm:$0xff] }
 0x3ee   : > { %v8127_v50 = vpop.f32.mrf.mxu2  ;;  %3978 = vmatpush.msra.mxu2 %v3783_v1  ;;  %v6352_v61 = vld [vmem:[#allocation2 + $0x198] sm:$0xff] }
 0x3ef   : > { %v2148_v27 = vadd.f32 %v2034_v26, %v1898_v18  ;;  %1831 = vmatmul.f32.gmra.mxu0 %v11326_v21  ;;  %11338 = vst [vmem:[#allocation52_spill] sm:$0xff] %v8127_v50  ;;  %v11340_v26 = vld [vmem:[#allocation119_spill] sm:$0xff]  ;;  %v11341_v18 = vld [vmem:[#allocation137_spill] sm:$0xff]  ;;  %v2040_v56 = vpop.f32.mrf.mxu1 }
 0x3f0   : > { %2581 = vmatmul.f32.gmra.mxu3 %v11336_v30 }
 0x3f1   : > { %v2398_v7 = vadd.f32 %v2284_v53, %v2148_v27  ;;  %2093 = vmatmul.f32.gmra.mxu1 %v11340_v26  ;;  %v3800_v53 = vld [vmem:[#allocation7 + $0xb8] sm:$0xff] }
 0x3f2   : > { %3817 = vmatpush.msra.mxu1 %v3800_v53 }
 0x3f3   : > { %v2534_v32 = vpop.f32.mrf.mxu3 }
 0x3f4   : > { %v8125_v36 = vadd.f32 %v2534_v32, %v2398_v7  ;;  %v1787_v58 = vpop.f32.mrf.mxu0 }
 0x3f5   : > { %v1899_v43 = vadd.f32 %v1787_v58, %v11339_v37  ;;  %2346 = vmatmul.f32.gmra.mxu2 %v6352_v61  ;;  %v11344_v58 = vld [vmem:[#allocation120_spill] sm:$0xff] }
 0x3f6   : > { %11337 = vst [vmem:[#allocation48_spill] sm:$0xff] %v8125_v36  ;;  %v8135_v36 = vpop.f32.mrf.mxu2  ;;  %v1098_v1 = vadd.f32 %v7809_v8, %v11344_v58 }
 0x3f7   : > { %v2149_v21 = vadd.f32 %v2037_v4, %v1899_v43  ;;  %1834 = vmatmul.f32.gmra.mxu0 %v11329_v48  ;;  %11343 = vst [vmem:[#allocation56_spill] sm:$0xff] %v8135_v36  ;;  %v11345_v43 = vld [vmem:[#allocation201_spill] sm:$0xff]  ;;  %v11346_v48 = vld [vmem:[#allocation123_spill] sm:$0xff] }
 0x3f8   : > { %2584 = vmatmul.f32.gmra.mxu3 %v11341_v18 }
 0x3f9   : > { %v2399_v27 = vadd.f32 %v2287_v38, %v2149_v21  ;;  %2096 = vmatmul.f32.gmra.mxu1 %v11346_v48  ;;  %v11347_v38 = vld [vmem:[#allocation141_spill] sm:$0xff]  ;;  %v11348_v21 = vld [vmem:[#allocation168_spill] sm:$0xff] }
 0x3fa   : > { %v1401_v53 = vadd.f32 %v11348_v21, %v1098_v1  ;;  %v6354_v1 = vld [vmem:[#allocation2 + $0x1a8] sm:$0xff]  ;;  %v11354_v21 = vld [vmem:[#allocation131_spill] sm:$0xff] }
 0x3fb   : > { %v2537_v7 = vpop.f32.mrf.mxu3 }
 0x3fc   : > { %v8133_v32 = vadd.f32 %v2537_v7, %v2399_v27  ;;  %v1790_v50 = vpop.f32.mrf.mxu0  ;;  %v6353_v27 = vld [vmem:[#allocation2 + $0x1a0] sm:$0xff]  ;;  %v11349_v7 = vld [vmem:[#allocation205_spill] sm:$0xff] }
 0x3fd   : > { %v1900_v4 = vadd.f32 %v1790_v50, %v11345_v43  ;;  %2349 = vmatmul.f32.gmra.mxu2 %v6353_v27  ;;  %v1651_v26 = vadd.f32 %v11349_v7, %v1401_v53  ;;  %v11352_v43 = vld [vmem:[#allocation145_spill] sm:$0xff]  ;;  %v11357_v27 = vld [vmem:[#allocation216_spill] sm:$0xff] }
 0x3fe   : > { %11342 = vst [vmem:[#allocation35_spill] sm:$0xff] %v8133_v32  ;;  %v2043_v32 = vpop.f32.mrf.mxu1  ;;  %v8147_v50 = vpop.f32.mrf.mxu2  ;;  %v11358_v7 = vld [vmem:[#allocation152_spill] sm:$0xff] }
 0x3ff   : > { %v2150_v37 = vadd.f32 %v2040_v56, %v1900_v4  ;;  %1837 = vmatmul.f32.gmra.mxu0 %v11333_v62  ;;  %11350 = vst [vmem:[#allocation39_spill] sm:$0xff] %v8147_v50  ;;  %v11351_v56 = vld [vmem:[#allocation126_spill] sm:$0xff]  ;;  %v2680_v4 = vld [vmem:[#allocation4 + $0x408] sm:$0xff] }
 0x400   : > { %2587 = vmatmul.f32.gmra.mxu3 %v11347_v38  ;;  %2709 = vmatpush.msrb.mxu0 %v2680_v4  ;;  %v8178_v4 = vld [vmem:[#allocation2 + $0x1c0] sm:$0xff] }
 0x401   : > { %v2400_v61 = vadd.f32 %v2290_v41, %v2150_v37  ;;  %2099 = vmatmul.f32.gmra.mxu1 %v11351_v56 }
 0x403   : > { %v2540_v36 = vpop.f32.mrf.mxu3 }
 0x404   : > { %v8145_v47 = vadd.f32 %v2540_v36, %v2400_v61  ;;  %v1793_v8 = vpop.f32.mrf.mxu0  ;;  %v3799_v61 = vld [vmem:[#allocation7 + $0xb0] sm:$0xff] }
 0x405   : > { %v1901_v58 = vadd.f32 %v1793_v8, %v1651_v26  ;;  %2352 = vmatmul.f32.gmra.mxu2 %v6354_v1  ;;  %v3782_v26 = vld [vmem:[#allocation7 + $0x30] sm:$0xff]  ;;  %3818 = vmatpush.msra.mxu1 %v3799_v61  ;;  %v8168_v8 = vld [vmem:[#allocation2 + $0x1b8] sm:$0xff]  ;;  %v11361_v1 = vld [vmem:[#allocation156_spill] sm:$0xff] }
 0x406   : > { %3979 = vmatpush.msra.mxu2 %v3782_v26  ;;  %v2679_v61 = vld [vmem:[#allocation4 + $0x400] sm:$0xff] }
 0x407   : > { %v2151_v62 = vadd.f32 %v2043_v32, %v1901_v58  ;;  %1840 = vmatmul.f32.gmra.mxu0 %v11336_v30  ;;  %v11355_v32 = vld [vmem:[#allocation148_spill] sm:$0xff]  ;;  %v6355_v30 = vld [vmem:[#allocation2 + $0x1b0] sm:$0xff] }
 0x408   : > { %2590 = vmatmul.f32.gmra.mxu3 %v11352_v43  ;;  %v8156_v36 = vpop.f32.mrf.mxu2  ;;  %2710 = vmatpush.msrb.mxu0 %v2679_v61 }
 0x409   : > { %v8152_v41 = vadd.f32 %v2293_v17, %v2151_v62  ;;  %11353 = vst [vmem:[#allocation60_spill] sm:$0xff] %v8156_v36  ;;  %2102 = vmatmul.f32.gmra.mxu1 %v11354_v21  ;;  %v11360_v62 = vld [vmem:[#allocation220_spill] sm:$0xff] }
 0x40c   : > { %v8154_v37 = vpop.f32.mrf.mxu0 }
 0x40d   : > { %2355 = vmatmul.f32.gmra.mxu2 %v6355_v30  ;;  %v11364_v30 = vld [vmem:[#allocation224_spill] sm:$0xff] }
 0x40f   : > { %1843 = vmatmul.f32.gmra.mxu0 %v11341_v18 }
 0x410   : > { %2593 = vmatmul.f32.gmra.mxu3 %v11355_v32  ;;  %v8163_v53 = vpop.f32.mrf.mxu2 }
 0x411   : > { %11356 = vst [vmem:[#allocation43_spill] sm:$0xff] %v8163_v53  ;;  %2105 = vmatmul.f32.gmra.mxu1 %v11357_v27  ;;  %v8188_v53 = vld [vmem:[#allocation2 + $0x1c8] sm:$0xff] }
 0x412   : > { %11366 = vst [vmem:[#allocation51_spill] sm:$0xff] %v8188_v53 }
 0x414   : > { %v8161_v17 = vpop.f32.mrf.mxu0 }
 0x415   : > { %2358 = vmatmul.f32.gmra.mxu2 %v8168_v8 }
 0x417   : > { %1846 = vmatmul.f32.gmra.mxu0 %v11347_v38 }
 0x418   : > { %2596 = vmatmul.f32.gmra.mxu3 %v11358_v7  ;;  %v8173_v58 = vpop.f32.mrf.mxu2 }
 0x419   : > { %11359 = vst [vmem:[#allocation64_spill] sm:$0xff] %v8173_v58  ;;  %2108 = vmatmul.f32.gmra.mxu1 %v11360_v62  ;;  %v11365_v58 = vld [vmem:[#allocation160_spill] sm:$0xff]  ;;  %v3781_v62 = vld [vmem:[#allocation7 + $0x28] sm:$0xff] }
 0x41a   : > { %3980 = vmatpush.msra.mxu2 %v3781_v62 }
 0x41c   : > { %v8171_v18 = vpop.f32.mrf.mxu0 }
 0x41d   : > { %2361 = vmatmul.f32.gmra.mxu2 %v8178_v4 }
 0x41f   : > { %1849 = vmatmul.f32.gmra.mxu0 %v11352_v43  ;;  %v533_v43 = vrot.slane %v8168_v8, 1 }
 0x420   : > { %2599 = vmatmul.f32.gmra.mxu3 %v11361_v1  ;;  %v8183_v26 = vpop.f32.mrf.mxu2 }
 0x421   : > { %11363 = vst [vmem:[#allocation68_spill] sm:$0xff] %v8183_v26  ;;  %2111 = vmatmul.f32.gmra.mxu1 %v11364_v30  ;;  %v11369_v26 = vrot.slane %v7435_v54, 1  ;;  %v3798_v30 = vld [vmem:[#allocation7 + $0xa8] sm:$0xff] }
 0x422   : > { %3819 = vmatpush.msra.mxu1 %v3798_v30 }
 0x423   : > { %v534_v61 = vsel %vm423_vm0, %v11369_v26, %v533_v43 }
 0x424   : > { %v8181_v38 = vpop.f32.mrf.mxu0 }
 0x425   : > { %11362 = vst [vmem:[#allocation47_spill] sm:$0xff] %v8181_v38  ;;  %2364 = vmatmul.f32.gmra.mxu2 %v8188_v53 }
 0x427   : > { %1852 = vmatmul.f32.gmra.mxu0 %v11355_v32  ;;  %v535_v32 = vrot.slane %v8178_v4, 1 }
 0x428   : > { %2602 = vmatmul.f32.gmra.mxu3 %v11365_v58  ;;  %v8194_v27 = vpop.f32.mrf.mxu2 }
 0x429   : > { %11368 = vst [vmem:[#allocation130_spill] sm:$0xff] %v8194_v27  ;;  %v536_v62 = vsel %vm423_vm0, %v533_v43, %v535_v32  ;;  %v10733_v27 = vrot.slane %v8188_v53, 1  ;;  %v3780_v43 = vld [vmem:[#allocation7 + $0x20] sm:$0xff] }
 0x42a   : > { %3981 = vmatpush.msra.mxu2 %v3780_v43 }
 0x42c   : > { %v8192_v36 = vpop.f32.mrf.mxu0 }
 0x42d   : > { %11367 = vst [vmem:[#allocation72_spill] sm:$0xff] %v8192_v36 }
 0x42f   : > { %1855 = vmatmul.f32.gmra.mxu0 %v11358_v7  ;;  %v538_v7 = vsel %vm423_vm0, %v535_v32, %v10733_v27  ;;  %v8226_v32 = vpop.f32.mrf.mxu1 }
 0x430   : > { %2605 = vmatmul.f32.gmra.mxu3 %v534_v61  ;;  %v8203_v50 = vpop.f32.mrf.mxu2 }
 0x431   : > { %11371 = vst [vmem:[#allocation115_spill] sm:$0xff] %v8203_v50 }
 0x434   : > { %v8201_v38 = vpop.f32.mrf.mxu0 }
 0x435   : > { %11370 = vst [vmem:[#allocation55_spill] sm:$0xff] %v8201_v38  ;;  %v3797_v38 = vld [vmem:[#allocation7 + $0xa0] sm:$0xff] }
 0x436   : > { %3820 = vmatpush.msra.mxu1 %v3797_v38 }
 0x437   : > { %1858 = vmatmul.f32.gmra.mxu0 %v11361_v1  ;;  %v8220_v1 = vpop.f32.mrf.mxu3  ;;  %v8234_v43 = vpop.f32.mrf.mxu1 }
 0x438   : > { %2608 = vmatmul.f32.gmra.mxu3 %v536_v62  ;;  %v8210_v26 = vpop.f32.mrf.mxu2 }
 0x439   : > { %11373 = vst [vmem:[#allocation135_spill] sm:$0xff] %v8210_v26 }
 0x43c   : > { %v8208_v36 = vpop.f32.mrf.mxu0 }
 0x43d   : > { %11372 = vst [vmem:[#allocation76_spill] sm:$0xff] %v8208_v36 }
 0x43f   : > { %1861 = vmatmul.f32.gmra.mxu0 %v11365_v58  ;;  %v8228_v58 = vpop.f32.mrf.mxu3  ;;  %v8247_v21 = vpop.f32.mrf.mxu1 }
 0x440   : > { %2611 = vmatmul.f32.gmra.mxu3 %v538_v7  ;;  %v8218_v50 = vpop.f32.mrf.mxu2 }
 0x441   : > { %11375 = vst [vmem:[#allocation118_spill] sm:$0xff] %v8218_v50 }
 0x444   : > { %v8216_v30 = vpop.f32.mrf.mxu0 }
 0x445   : > { %11374 = vst [vmem:[#allocation59_spill] sm:$0xff] %v8216_v30 }
 0x447   : > { %1864 = vmatmul.f32.gmra.mxu0 %v534_v61  ;;  %v8240_v38 = vpop.f32.mrf.mxu3 }
 0x448   : > { %v8224_v26 = vpop.f32.mrf.mxu2 }
 0x449   : > { %11377 = vst [vmem:[#allocation139_spill] sm:$0xff] %v8224_v26 }
 0x44c   : > { %v8222_v36 = vpop.f32.mrf.mxu0 }
 0x44d   : > { %11376 = vst [vmem:[#allocation80_spill] sm:$0xff] %v8222_v36 }
 0x44f   : > { %1867 = vmatmul.f32.gmra.mxu0 %v536_v62  ;;  %v3779_v62 = vld [vmem:[#allocation7 + $0x18] sm:$0xff] }
 0x450   : > { %v8232_v30 = vpop.f32.mrf.mxu2  ;;  %3982 = vmatpush.msra.mxu2 %v3779_v62 }
 0x451   : > { %11379 = vst [vmem:[#allocation122_spill] sm:$0xff] %v8232_v30 }
 0x454   : > { %v8230_v27 = vpop.f32.mrf.mxu0 }
 0x455   : > { %11378 = vst [vmem:[#allocation63_spill] sm:$0xff] %v8230_v27  ;;  %v3796_v27 = vld [vmem:[#allocation7 + $0x98] sm:$0xff] }
 0x456   : > { %3821 = vmatpush.msra.mxu1 %v3796_v27 }
 0x457   : > { %1870 = vmatmul.f32.gmra.mxu0 %v538_v7  ;;  %v8249_v7 = vpop.f32.mrf.mxu3 }
 0x458   : > { %v8238_v50 = vpop.f32.mrf.mxu2 }
 0x459   : > { %11381 = vst [vmem:[#allocation143_spill] sm:$0xff] %v8238_v50 }
 0x45c   : > { %v8236_v61 = vpop.f32.mrf.mxu0 }
 0x45d   : > { %11380 = vst [vmem:[#allocation84_spill] sm:$0xff] %v8236_v61  ;;  %v8256_v61 = vpop.f32.mrf.mxu1 }
 0x45f   : > { %2711 = vmatmul.f32.vlgmr.msrb.gmra.mxu0 %v7522_v6  ;;  %v8259_v62 = vpop.f32.mrf.mxu3 }
 0x460   : > { %v8245_v36 = vpop.f32.mrf.mxu2  ;;  %11386 = vst [vmem:[#allocation71_spill] sm:$0xff] %v8259_v62 }
 0x461   : > { %11383 = vst [vmem:[#allocation129_spill] sm:$0xff] %v8245_v36 }
 0x464   : > { %v8243_v26 = vpop.f32.mrf.mxu0 }
 0x465   : > { %11382 = vst [vmem:[#allocation67_spill] sm:$0xff] %v8243_v26  ;;  %v8266_v27 = vpop.f32.mrf.mxu1 }
 0x467   : > { %2714 = vmatmul.f32.gmra.mxu0 %v7537_v33  ;;  %v8268_v26 = vpop.f32.mrf.mxu3 }
 0x468   : > { %v8254_v50 = vpop.f32.mrf.mxu2  ;;  %11389 = vst [vmem:[#allocation150_spill] sm:$0xff] %v8268_v26  ;;  %v4147_v26 = vld [vmem:[#allocation7 + $0x178] sm:$0xff] }
 0x469   : > { %11385 = vst [vmem:[#allocation146_spill] sm:$0xff] %v8254_v50  ;;  %v3778_v50 = vld [vmem:[#allocation7 + $0x10] sm:$0xff]  ;;  %4148 = vmatpush.msrb.mxu3 %v4147_v26 }
 0x46a   : > { %3983 = vmatpush.msra.mxu2 %v3778_v50 }
 0x46c   : > { %v8252_v30 = vpop.f32.mrf.mxu0 }
 0x46d   : > { %11384 = vst [vmem:[#allocation88_spill] sm:$0xff] %v8252_v30  ;;  %v8275_v62 = vpop.f32.mrf.mxu1 }
 0x46f   : > { %2717 = vmatmul.f32.gmra.mxu0 %v7550_v60  ;;  %v3795_v60 = vld [vmem:[#allocation7 + $0x90] sm:$0xff] }
 0x470   : > { %v8263_v36 = vpop.f32.mrf.mxu2  ;;  %3822 = vmatpush.msra.mxu1 %v3795_v60 }
 0x471   : > { %11388 = vst [vmem:[#allocation92_spill] sm:$0xff] %v8263_v36 }
 0x474   : > { %v8261_v6 = vpop.f32.mrf.mxu0 }
 0x475   : > { %11387 = vst [vmem:[#allocation134_spill] sm:$0xff] %v8261_v6  ;;  %v8288_v50 = vpop.f32.mrf.mxu1 }
 0x477   : > { %2720 = vmatmul.f32.gmra.mxu0 %v7565_v0  ;;  %v8281_v0 = vpop.f32.mrf.mxu3 }
 0x478   : > { %v8272_v30 = vpop.f32.mrf.mxu2  ;;  %11394 = vst [vmem:[#allocation79_spill] sm:$0xff] %v8281_v0 }
 0x479   : > { %11391 = vst [vmem:[#allocation138_spill] sm:$0xff] %v8272_v30 }
 0x47c   : > { %v8270_v33 = vpop.f32.mrf.mxu0 }
 0x47d   : > { %11390 = vst [vmem:[#allocation75_spill] sm:$0xff] %v8270_v33  ;;  %v8297_v0 = vpop.f32.mrf.mxu1 }
 0x47e   : > { %11399 = vst [vmem:[#allocation149_spill] sm:$0xff] %v8297_v0  ;;  %v4146_v0 = vld [vmem:[#allocation7 + $0x170] sm:$0xff] }
 0x47f   : > { %2723 = vmatmul.f32.gmra.mxu0 %v7580_v5  ;;  %v8290_v5 = vpop.f32.mrf.mxu3  ;;  %4149 = vmatpush.msrb.mxu3 %v4146_v0  ;;  %v11410_v0 = vrot.slane %v8188_v53, 1 }
 0x480   : > { %v8279_v36 = vpop.f32.mrf.mxu2 }
 0x481   : > { %11393 = vst [vmem:[#allocation154_spill] sm:$0xff] %v8279_v36  ;;  %v3777_v36 = vld [vmem:[#allocation7 + $0x8] sm:$0xff] }
 0x482   : > { %3984 = vmatpush.msra.mxu2 %v3777_v36 }
 0x484   : > { %v8277_v6 = vpop.f32.mrf.mxu0 }
 0x485   : > { %11392 = vst [vmem:[#allocation96_spill] sm:$0xff] %v8277_v6 }
 0x487   : > { %2726 = vmatmul.f32.gmra.mxu0 %v7595_v31  ;;  %v8300_v26 = vpop.f32.mrf.mxu3  ;;  %v3794_v31 = vld [vmem:[#allocation7 + $0x88] sm:$0xff] }
 0x488   : > { %v8286_v30 = vpop.f32.mrf.mxu2  ;;  %11400 = vst [vmem:[#allocation103_spill] sm:$0xff] %v8300_v26  ;;  %3823 = vmatpush.msra.mxu1 %v3794_v31 }
 0x489   : > { %11396 = vst [vmem:[#allocation100_spill] sm:$0xff] %v8286_v30 }
 0x48c   : > { %v8284_v33 = vpop.f32.mrf.mxu0 }
 0x48d   : > { %11395 = vst [vmem:[#allocation142_spill] sm:$0xff] %v8284_v33 }
 0x48f   : > { %2729 = vmatmul.f32.gmra.mxu0 %v7608_v2  ;;  %v8307_v2 = vpop.f32.mrf.mxu1 }
 0x490   : > { %v8295_v6 = vpop.f32.mrf.mxu2  ;;  %11403 = vst [vmem:[#allocation153_spill] sm:$0xff] %v8307_v2  ;;  %v4145_v2 = vld [vmem:[#allocation7 + $0x168] sm:$0xff] }
 0x491   : > { %11398 = vst [vmem:[#allocation83_spill] sm:$0xff] %v8295_v6  ;;  %4150 = vmatpush.msrb.mxu3 %v4145_v2  ;;  %v11413_v2 = vrot.slane %v7435_v54, 2 }
 0x494   : > { %v8293_v60 = vpop.f32.mrf.mxu0 }
 0x495   : > { %11397 = vst [vmem:[#allocation158_spill] sm:$0xff] %v8293_v60  ;;  %v8309_v60 = vpop.f32.mrf.mxu3 }
 0x496   : > { %11404 = vst [vmem:[#allocation106_spill] sm:$0xff] %v8309_v60  ;;  %v4144_v60 = vld [vmem:[#allocation7 + $0x160] sm:$0xff] }
 0x497   : > { %2732 = vmatmul.f32.gmra.mxu0 %v7617_v15  ;;  %v8316_v15 = vpop.f32.mrf.mxu1  ;;  %4151 = vmatpush.msrb.mxu3 %v4144_v60  ;;  %v11415_v60 = vld [vmem:[#allocation223_spill] sm:$0xff] }
 0x498   : > { %v8304_v33 = vpop.f32.mrf.mxu2  ;;  %11407 = vst [vmem:[#allocation157_spill] sm:$0xff] %v8316_v15 }
 0x499   : > { %11402 = vst [vmem:[#allocation87_spill] sm:$0xff] %v8304_v33 }
 0x49c   : > { %v8302_v30 = vpop.f32.mrf.mxu0 }
 0x49d   : > { %11401 = vst [vmem:[#allocation163_spill] sm:$0xff] %v8302_v30  ;;  %v8320_v33 = vpop.f32.mrf.mxu3 }
 0x49e   : > { %11409 = vst [vmem:[#allocation169_spill] sm:$0xff] %v8320_v33  ;;  %v4142_v33 = vld [vmem:[#allocation7 + $0x150] sm:$0xff] }
 0x49f   : > { %2735 = vmatmul.f32.gmra.mxu0 %v7628_v13  ;;  %v3776_v13 = vld [vmem:[#allocation7] sm:$0xff]  ;;  %v8329_v26 = vpop.f32.mrf.mxu1 }
 0x4a0   : > { %v8313_v36 = vpop.f32.mrf.mxu2  ;;  %3985 = vmatpush.msra.mxu2 %v3776_v13  ;;  %11412 = vst [vmem:[#allocation162_spill] sm:$0xff] %v8329_v26  ;;  %v11418_v26 = vld [vmem:[#allocation226_spill] sm:$0xff] }
 0x4a1   : > { %11406 = vst [vmem:[#allocation91_spill] sm:$0xff] %v8313_v36 }
 0x4a4   : > { %v8311_v6 = vpop.f32.mrf.mxu0 }
 0x4a5   : > { %11405 = vst [vmem:[#allocation165_spill] sm:$0xff] %v8311_v6  ;;  %v361_v6 = vld [vmem:[#allocation2 + $0x1d0] sm:$0xff]  ;;  %v8336_v13 = vpop.f32.mrf.mxu3 }
 0x4a6   : > { %v539_v36 = vrot.slane %v361_v6, 1  ;;  %2367 = vmatmul.f32.gmra.mxu2 %v361_v6  ;;  %11414 = vst [vmem:[#allocation110_spill] sm:$0xff] %v8336_v13  ;;  %v717_v13 = vrot.slane %v8178_v4, 2 }
 0x4a7   : > { %2738 = vmatmul.f32.gmra.mxu0 %v7640_v34 }
 0x4a8   : > { %v2365_v30 = vpop.f32.mrf.mxu2  ;;  %v540_v34 = vsel %vm423_vm0, %v11410_v0, %v539_v36  ;;  %v362_v0 = vld [vmem:[#allocation2 + $0x1d8] sm:$0xff] }
 0x4a9   : > { %2614 = vmatmul.f32.gmra.mxu3 %v540_v34  ;;  %v3793_v30 = vld [vmem:[#allocation7 + $0x80] sm:$0xff]  ;;  %v4141_v34 = vld [vmem:[#allocation7 + $0x148] sm:$0xff] }
 0x4aa   : > { %3824 = vmatpush.msra.mxu1 %v3793_v30  ;;  %v4139_v30 = vld [vmem:[#allocation7 + $0x138] sm:$0xff] }
 0x4ac   : > { %v8318_v31 = vpop.f32.mrf.mxu0 }
 0x4ad   : > { %11408 = vst [vmem:[#allocation108_spill] sm:$0xff] %v8318_v31  ;;  %v4143_v31 = vld [vmem:[#allocation7 + $0x158] sm:$0xff] }
 0x4ae   : > { %4152 = vmatpush.msrb.mxu3 %v4143_v31  ;;  %2370 = vmatmul.f32.gmra.mxu2 %v362_v0 }
 0x4af   : > { %2741 = vmatmul.f32.gmra.mxu0 %v7660_v25  ;;  %v715_v25 = vrot.slane %v8168_v8, 2  ;;  %v541_v8 = vrot.slane %v362_v0, 1  ;;  %v11420_v0 = vld [vmem:[#allocation20_spill] sm:$0xff] }
 0x4b0   : > { %4153 = vmatpush.msrb.mxu3 %v4142_v33 }
 0x4b1   : > { %v8334_v6 = vsel %vm605_vm1, %v11413_v2, %v715_v25  ;;  %v542_v31 = vsel %vm423_vm0, %v539_v36, %v541_v8  ;;  %v4138_v2 = vld [vmem:[#allocation7 + $0x130] sm:$0xff]  ;;  %v8345_v33 = vsel %vm605_vm1, %v715_v25, %v717_v13  ;;  %v8351_v36 = vpop.f32.mrf.mxu3 }
 0x4b2   : > { %2114 = vmatmul.f32.gmra.mxu1 %v8334_v6  ;;  %4154 = vmatpush.msrb.mxu3 %v4141_v34  ;;  %v4137_v34 = vld [vmem:[#allocation7 + $0x128] sm:$0xff]  ;;  %11419 = vst [vmem:[#allocation167_spill] sm:$0xff] %v8351_v36 }
 0x4b3   : > { %2617 = vmatmul.f32.gmra.mxu3 %v542_v31  ;;  %v11421_v31 = vrot.slane %v11420_v0, 1  ;;  %v4599_v0 = vld [vmem:[#allocation7 + $0x278] sm:$0xff] }
 0x4b4   : > { %v8326_v15 = vpop.f32.mrf.mxu0  ;;  %4600 = vmatpush.msrb.mxu2 %v4599_v0 }
 0x4b5   : > { %11411 = vst [vmem:[#allocation95_spill] sm:$0xff] %v8326_v15  ;;  %v4140_v15 = vld [vmem:[#allocation7 + $0x140] sm:$0xff]  ;;  %v604_v4 = vsel %vm423_vm0, %v541_v8, %v11421_v31  ;;  %v4133_v8 = vld [vmem:[#allocation7 + $0x108] sm:$0xff] }
 0x4b6   : > { %4155 = vmatpush.msrb.mxu3 %v4140_v15  ;;  %v4136_v15 = vld [vmem:[#allocation7 + $0x120] sm:$0xff] }
 0x4b7   : > { %2744 = vmatmul.f32.gmra.mxu0 %v11415_v60  ;;  %v8347_v60 = vpop.f32.mrf.mxu1 }
 0x4b8   : > { %4156 = vmatpush.msrb.mxu3 %v4139_v30  ;;  %11417 = vst [vmem:[#allocation99_spill] sm:$0xff] %v8347_v60  ;;  %v10746_v30 = vmov 0.0  }
 0x4b9   : > { %3986 = vmatmul.f32.vlgmr.msra.gmra.mxu2 %v10746_v30  ;;  %v8366_v31 = vrot.slane %v10746_v30, 2 }
 0x4ba   : > { %4157 = vmatpush.msrb.mxu3 %v4138_v2  ;;  %2117 = vmatmul.f32.gmra.mxu1 %v8345_v33  ;;  %v10745_v2 = vrot.slane %v8188_v53, 2  ;;  %v3059_v53 = vlaneseq }
 0x4bb   : > { %2620 = vmatmul.f32.gmra.mxu3 %v604_v4  ;;  %11424 = vst [vmem:[#allocation176_spill] sm:$0xff] %v8366_v31 }
 0x4bc   : > { %v8341_v54 = vpop.f32.mrf.mxu0  ;;  %4158 = vmatpush.msrb.mxu3 %v4137_v34  ;;  %v8361_v36 = vsel %vm605_vm1, %v717_v13, %v10745_v2  ;;  %v11423_v34 = vld [vmem:[#allocation229_spill] sm:$0xff]  ;;  %v4373_v2 = vld [vmem:[#allocation7 + $0x1f8] sm:$0xff] }
 0x4bd   : > { %11416 = vst [vmem:[#allocation172_spill] sm:$0xff] %v8341_v54  ;;  %v4135_v54 = vld [vmem:[#allocation7 + $0x118] sm:$0xff]  ;;  %4374 = vmatpush.msrb.mxu1 %v4373_v2  ;;  %v4598_v2 = vld [vmem:[#allocation7 + $0x270] sm:$0xff] }
 0x4be   : > { %4159 = vmatpush.msrb.mxu3 %v4136_v15  ;;  %11422 = vst [vmem:[#allocation112_spill] sm:$0xff] %v8361_v36  ;;  %v4132_v15 = vld [vmem:[#allocation7 + $0x100] sm:$0xff]  ;;  %4601 = vmatpush.msrb.mxu2 %v4598_v2 }
 0x4bf   : > { %2747 = vmatmul.f32.gmra.mxu0 %v11418_v26  ;;  %v4134_v26 = vld [vmem:[#allocation7 + $0x110] sm:$0xff]  ;;  %v8368_v4 = vpop.f32.mrf.mxu1 }
 0x4c0   : > { %4160 = vmatpush.msrb.mxu3 %v4135_v54  ;;  %11425 = vst [vmem:[#allocation102_spill] sm:$0xff] %v8368_v4  ;;  %v8371_v54 = vpop.f32.mrf.mxu3  ;;  %v11434_v4 = vld [vmem:[#allocation31_spill] sm:$0xff] }
 0x4c1   : > { %3989 = vmatmul.f32.gmra.mxu2 %v10746_v30  ;;  %11426 = vst [vmem:[#allocation171_spill] sm:$0xff] %v8371_v54 }
 0x4c2   : > { %4161 = vmatpush.msrb.mxu3 %v4134_v26  ;;  %2120 = vmatmul.f32.gmra.mxu1 %v8361_v36  ;;  %v8375_v26 = vrot.slane %v10746_v30, 1 }
 0x4c4   : > { %v1865_v25 = vpop.f32.mrf.mxu0  ;;  %4162 = vmatpush.msrb.mxu3 %v4133_v8  ;;  %11427 = vst [vmem:[#allocation114_spill] sm:$0xff] %v8375_v26 }
 0x4c5   : > { %v11428_v25 = vld [vmem:[#allocation232_spill] sm:$0xff] }
 0x4c6   : > { %4163 = vmatpush.msrb.mxu3 %v4132_v15 }
 0x4c7   : > { %2750 = vmatmul.f32.gmra.mxu0 %v11423_v34  ;;  %4164 = vmatmul.f32.vlgmr.msrb.gmra.mxu3 %v8366_v31  ;;  %v8380_v8 = vpop.f32.mrf.mxu1 }
 0x4c8   : > { %11429 = vst [vmem:[#allocation179_spill] sm:$0xff] %v8380_v8  ;;  %v8383_v15 = vpop.f32.mrf.mxu3 }
 0x4c9   : > { %3992 = vmatmul.f32.gmra.mxu2 %v10746_v30  ;;  %11430 = vst [vmem:[#allocation105_spill] sm:$0xff] %v8383_v15  ;;  %v4372_v15 = vld [vmem:[#allocation7 + $0x1f0] sm:$0xff] }
 0x4ca   : > { %3825 = vmatmul.f32.vlgmr.msra.gmra.mxu1 %v8375_v26 }
 0x4cb   : > { %4375 = vmatpush.msrb.mxu1 %v4372_v15 }
 0x4cc   : > { %v1868_v13 = vpop.f32.mrf.mxu0 }
 0x4cd   : > { %v11431_v13 = vld [vmem:[#allocation235_spill] sm:$0xff] }
 0x4cf   : > { %2753 = vmatmul.f32.gmra.mxu0 %v11428_v25  ;;  %4167 = vmatmul.f32.gmra.mxu3 %v8366_v31  ;;  %v8387_v54 = vpop.f32.mrf.mxu1 }
 0x4d0   : > { %11432 = vst [vmem:[#allocation175_spill] sm:$0xff] %v8387_v54  ;;  %v8389_v25 = vpop.f32.mrf.mxu3  ;;  %v3060_v54 = vshrl.u32 %v3059_v53, 7 }
 0x4d1   : > { %11433 = vst [vmem:[#allocation117_spill] sm:$0xff] %v8389_v25 }
 0x4d2   : > { %3828 = vmatmul.f32.gmra.mxu1 %v8375_v26 }
 0x4d4   : > { %v1871_v0 = vpop.f32.mrf.mxu0 }
 0x4d5   : > { %v11436_v0 = vld [vmem:[#allocation34_spill] sm:$0xff] }
 0x4d7   : > { %2756 = vmatmul.f32.gmra.mxu0 %v11431_v13  ;;  %v8392_v8 = vpop.f32.mrf.mxu1 }
 0x4d8   : > { %11435 = vst [vmem:[#allocation182_spill] sm:$0xff] %v8392_v8  ;;  %v8395_v60 = vpop.f32.mrf.mxu3 }
 0x4d9   : > { %11437 = vst [vmem:[#allocation121_spill] sm:$0xff] %v8395_v60 }
 0x4dc   : > { %v2712_v34 = vpop.f32.mrf.mxu0 }
 0x4dd   : > { %v11438_v34 = vld [vmem:[#allocation38_spill] sm:$0xff] }
 0x4df   : > { %2759 = vmatmul.f32.gmra.mxu0 %v11434_v4  ;;  %v8398_v36 = vpop.f32.mrf.mxu1 }
 0x4e0   : > { %11439 = vst [vmem:[#allocation186_spill] sm:$0xff] %v8398_v36  ;;  %v8400_v25 = vpop.f32.mrf.mxu3 }
 0x4e1   : > { %11440 = vst [vmem:[#allocation125_spill] sm:$0xff] %v8400_v25  ;;  %v4597_v25 = vld [vmem:[#allocation7 + $0x268] sm:$0xff] }
 0x4e2   : > { %4602 = vmatpush.msrb.mxu2 %v4597_v25  ;;  %v4371_v25 = vld [vmem:[#allocation7 + $0x1e8] sm:$0xff] }
 0x4e3   : > { %4376 = vmatpush.msrb.mxu1 %v4371_v25 }
 0x4e4   : > { %v2715_v30 = vpop.f32.mrf.mxu0 }
 0x4e5   : > { %v8405_v30 = vld [vmem:[%s10559_s2] ss:$0 sm:$0xff] }
 0x4e7   : > { %2762 = vmatmul.f32.gmra.mxu0 %v11436_v0  ;;  %v8407_v0 = vadd.s32 4294967295, %v3060_v54 }
 0x4e9   : > { %vm3120_vm2 = vcmp.ge.s32.totalorder %v8407_v0, 0 }
 0x4ec   : > { %v2718_v13 = vpop.f32.mrf.mxu0 }
 0x4ed   : > { %v8415_v13 = vpop.f32.mrf.mxu1 }
 0x4ee   : > { %11442 = vst [vmem:[#allocation128_spill] sm:$0xff] %v8415_v13 }
 0x4ef   : > { %2765 = vmatmul.f32.gmra.mxu0 %v11438_v34 }
 0x4f4   : > { %v2721_v2 = vpop.f32.mrf.mxu0 }
 0x4f5   : > { %v2877_v4 = vadd.f32 %v2721_v2, %v7911_v52 }
 0x4f7   : > { %v2935_v15 = vadd.f32 %v8405_v30, %v2877_v4  ;;  %2768 = vmatmul.f32.gmra.mxu0 %v11241_v16  ;;  %v8423_v16 = vpop.f32.mrf.mxu3 }
 0x4f9   : > { %v8413_v53 = vmax.f32 %v2935_v15, 0.0 }
 0x4fb   : > { %11441 = vst [vmem:[#allocation189_spill] sm:$0xff] %v8413_v53  ;;  %6048 = vmatmul.msk.f32.gmra.mxu2 %vm3120_vm2, %v8413_v53  ;;  %v3345_v34 = vsel %vm3120_vm2, %v8413_v53, 0.0  ;;  %v3062_v53 = vadd.s32 16, %v3060_v54 }
 0x4fc   : > { %v2724_v52 = vpop.f32.mrf.mxu0  ;;  %v3455_v2 = vrot.slane %v3345_v34, 1  ;;  %v3618_v4 = vrot.slane %v3345_v34, 2 }
 0x4fd   : > { %v2878_v15 = vadd.f32 %v2724_v52, %v7924_v9 }
 0x4fe   : > { %v3456_v13 = vsel %vm423_vm0, %v8375_v26, %v3455_v2  ;;  %v3619_v36 = vsel %vm605_vm1, %v8366_v31, %v3618_v4  ;;  %v8437_v26 = vadd.s32 4294967295, %v3062_v53  ;;  %v8439_v31 = vpop.f32.mrf.mxu1 }
 0x4ff   : > { %v2936_v60 = vadd.f32 %v8405_v30, %v2878_v15  ;;  %2771 = vmatmul.f32.gmra.mxu0 %v11244_v11  ;;  %3831 = vmatmul.f32.gmra.mxu1 %v3456_v13  ;;  %v8448_v54 = vpop.f32.mrf.mxu3 }
 0x500   : > { %4170 = vmatmul.f32.gmra.mxu3 %v3619_v36  ;;  %vm3179_vm3 = vcmp.lt.s32.totalorder %v8437_v26, 16 }
 0x501   : > { %v8432_v8 = vmax.f32 %v2936_v60, 0.0 }
 0x503   : > { %11443 = vst [vmem:[#allocation193_spill] sm:$0xff] %v8432_v8  ;;  %3998 = vmatmul.f32.gmra.mxu2 %v8432_v8  ;;  %v3457_v9 = vrot.slane %v8432_v8, 1  ;;  %v3620_v34 = vrot.slane %v8432_v8, 2 }
 0x504   : > { %v2727_v52 = vpop.f32.mrf.mxu0 }
 0x505   : > { %v2879_v15 = vadd.f32 %v2727_v52, %v7935_v29  ;;  %v8443_v36 = vsel %vm423_vm0, %v3455_v2, %v3457_v9  ;;  %v8446_v60 = vsel %vm605_vm1, %v3618_v4, %v3620_v34 }
 0x506   : > { %11444 = vst [vmem:[#allocation133_spill] sm:$0xff] %v8443_v36 }
 0x507   : > { %11445 = vst [vmem:[#allocation197_spill] sm:$0xff] %v8446_v60  ;;  %v2937_v13 = vadd.f32 %v8405_v30, %v2879_v15  ;;  %2774 = vmatmul.f32.gmra.mxu0 %v11247_v3  ;;  %3834 = vmatmul.f32.gmra.mxu1 %v8443_v36  ;;  %v11463_v36 = vld [vmem:[#allocation70_spill] sm:$0xff] }
 0x508   : > { %4173 = vmatmul.f32.gmra.mxu3 %v8446_v60 }
 0x509   : > { %v8455_v53 = vmax.f32 %v2937_v13, 0.0  ;;  %v8470_v13 = vpop.f32.mrf.mxu1 }
 0x50b   : > { %11446 = vst [vmem:[#allocation137_spill] sm:$0xff] %v8455_v53  ;;  %6049 = vmatmul.msk.f32.gmra.mxu2 %vm3179_vm3, %v8455_v53  ;;  %v3347_v29 = vsel %vm3179_vm3, %v8455_v53, 0.0  ;;  %v8476_v53 = vpop.f32.mrf.mxu3 }
 0x50c   : > { %v2730_v2 = vpop.f32.mrf.mxu0  ;;  %v3459_v4 = vrot.slane %v3347_v29, 1  ;;  %v3622_v25 = vrot.slane %v3347_v29, 2 }
 0x50d   : > { %v2880_v52 = vadd.f32 %v2730_v2, %v7947_v44 }
 0x50e   : > { %v8465_v15 = vsel %vm423_vm0, %v3457_v9, %v3459_v4  ;;  %v8468_v3 = vsel %vm605_vm1, %v3620_v34, %v3622_v25  ;;  %v4596_v9 = vld [vmem:[#allocation7 + $0x260] sm:$0xff] }
 0x50f   : > { %11447 = vst [vmem:[#allocation120_spill] sm:$0xff] %v8465_v15  ;;  %v2938_v11 = vadd.f32 %v8405_v30, %v2880_v52  ;;  %2777 = vmatmul.f32.gmra.mxu0 %v11250_v39  ;;  %3837 = vmatmul.f32.gmra.mxu1 %v8465_v15 }
 0x510   : > { %11448 = vst [vmem:[#allocation201_spill] sm:$0xff] %v8468_v3  ;;  %4176 = vmatmul.f32.gmra.mxu3 %v8468_v3  ;;  %4603 = vmatpush.msrb.mxu2 %v4596_v9  ;;  %v4370_v9 = vld [vmem:[#allocation7 + $0x1e0] sm:$0xff] }
 0x511   : > { %v8478_v29 = vmax.f32 %v2938_v11, 0.0  ;;  %v8497_v60 = vpop.f32.mrf.mxu1  ;;  %4377 = vmatpush.msrb.mxu1 %v4370_v9 }
 0x513   : > { %6050 = vmatmul.msk.f32.gmra.mxu2 %vm3120_vm2, %v8478_v29  ;;  %v3348_v44 = vsel %vm3120_vm2, %v8478_v29, 0.0 }
 0x514   : > { %v2733_v34 = vpop.f32.mrf.mxu0  ;;  %v3461_v2 = vrot.slane %v3348_v44, 1  ;;  %v3624_v52 = vrot.slane %v3348_v44, 2 }
 0x515   : > { %v2881_v39 = vadd.f32 %v2733_v34, %v7960_v14  ;;  %v8501_v14 = vpop.f32.mrf.mxu3 }
 0x516   : > { %v8488_v3 = vsel %vm423_vm0, %v3459_v4, %v3461_v2  ;;  %v8491_v11 = vsel %vm605_vm1, %v3622_v25, %v3624_v52  ;;  %11451 = vst [vmem:[#allocation205_spill] sm:$0xff] %v8501_v14 }
 0x517   : > { %11449 = vst [vmem:[#allocation141_spill] sm:$0xff] %v8488_v3  ;;  %v2939_v8 = vadd.f32 %v8405_v30, %v2881_v39  ;;  %2780 = vmatmul.f32.gmra.mxu0 %v11255_v20  ;;  %3840 = vmatmul.f32.gmra.mxu1 %v8488_v3 }
 0x518   : > { %11450 = vst [vmem:[#allocation168_spill] sm:$0xff] %v8491_v11  ;;  %4179 = vmatmul.f32.gmra.mxu3 %v8491_v11 }
 0x519   : > { %v8499_v44 = vmax.f32 %v2939_v8, 0.0  ;;  %v8519_v3 = vpop.f32.mrf.mxu1 }
 0x51a   : > { %11454 = vst [vmem:[#allocation152_spill] sm:$0xff] %v8519_v3 }
 0x51b   : > { %4007 = vmatmul.f32.gmra.mxu2 %v8499_v44  ;;  %v3463_v4 = vrot.slane %v8499_v44, 1  ;;  %v3626_v39 = vrot.slane %v8499_v44, 2 }
 0x51c   : > { %v2736_v25 = vpop.f32.mrf.mxu0 }
 0x51d   : > { %v2882_v34 = vadd.f32 %v2736_v25, %v7974_v51  ;;  %v8508_v20 = vsel %vm423_vm0, %v3461_v2, %v3463_v4  ;;  %v8511_v11 = vsel %vm605_vm1, %v3624_v52, %v3626_v39 }
 0x51e   : > { %11452 = vst [vmem:[#allocation145_spill] sm:$0xff] %v8508_v20 }
 0x51f   : > { %11453 = vst [vmem:[#allocation148_spill] sm:$0xff] %v8511_v11  ;;  %v2940_v8 = vadd.f32 %v8405_v30, %v2882_v34  ;;  %2783 = vmatmul.f32.gmra.mxu0 %v11260_v24  ;;  %3843 = vmatmul.f32.gmra.mxu1 %v8508_v20  ;;  %v8527_v34 = vpop.f32.mrf.mxu3  ;;  %v11458_v20 = vld [vmem:[#allocation66_spill] sm:$0xff] }
 0x520   : > { %4182 = vmatmul.f32.gmra.mxu3 %v8511_v11  ;;  %11455 = vst [vmem:[#allocation156_spill] sm:$0xff] %v8527_v34 }
 0x521   : > { %v8517_v9 = vmax.f32 %v2940_v8, 0.0 }
 0x523   : > { %6051 = vmatmul.msk.f32.gmra.mxu2 %vm3179_vm3, %v8517_v9  ;;  %v3350_v51 = vsel %vm3179_vm3, %v8517_v9, 0.0 }
 0x524   : > { %v2739_v2 = vpop.f32.mrf.mxu0  ;;  %v3465_v52 = vrot.slane %v3350_v51, 1  ;;  %v3628_v25 = vrot.slane %v3350_v51, 2 }
 0x525   : > { %v2883_v24 = vadd.f32 %v2739_v2, %v7986_v57  ;;  %v8548_v2 = vpop.f32.mrf.mxu1 }
 0x526   : > { %v8531_v8 = vsel %vm423_vm0, %v3463_v4, %v3465_v52  ;;  %v8534_v3 = vsel %vm605_vm1, %v3626_v39, %v3628_v25  ;;  %v4595_v4 = vld [vmem:[#allocation7 + $0x258] sm:$0xff]  ;;  %11459 = vst [vmem:[#allocation253_spill] sm:$0xff] %v8548_v2 }
 0x527   : > { %11456 = vst [vmem:[#allocation160_spill] sm:$0xff] %v8531_v8  ;;  %v2941_v11 = vadd.f32 %v8405_v30, %v2883_v24  ;;  %2786 = vmatmul.f32.gmra.mxu0 %v11458_v20  ;;  %3846 = vmatmul.f32.gmra.mxu1 %v8531_v8 }
 0x528   : > { %11457 = vst [vmem:[#allocation20_spill] sm:$0xff] %v8534_v3  ;;  %4185 = vmatmul.f32.gmra.mxu3 %v8534_v3  ;;  %4604 = vmatpush.msrb.mxu2 %v4595_v4  ;;  %v8557_v3 = vpop.f32.mrf.mxu3  ;;  %v4369_v4 = vld [vmem:[#allocation7 + $0x1d8] sm:$0xff] }
 0x529   : > { %v8540_v15 = vmax.f32 %v2941_v11, 0.0  ;;  %11462 = vst [vmem:[#allocation256_spill] sm:$0xff] %v8557_v3  ;;  %4378 = vmatpush.msrb.mxu1 %v4369_v4  ;;  %v11464_v3 = vld [vmem:[#allocation36_spill] sm:$0xff]  ;;  %v11467_v4 = vld [vmem:[#allocation74_spill] sm:$0xff] }
 0x52b   : > { %6052 = vmatmul.msk.f32.gmra.mxu2 %vm3120_vm2, %v8540_v15  ;;  %v3351_v57 = vsel %vm3120_vm2, %v8540_v15, 0.0 }
 0x52c   : > { %v2742_v39 = vpop.f32.mrf.mxu0  ;;  %v3467_v51 = vrot.slane %v3351_v57, 1  ;;  %v3630_v24 = vrot.slane %v3351_v57, 2 }
 0x52d   : > { %v2884_v20 = vadd.f32 %v2742_v39, %v7998_v22  ;;  %v2368_v39 = vpop.f32.mrf.mxu2 }
 0x52e   : > { %v8552_v11 = vsel %vm423_vm0, %v3465_v52, %v3467_v51  ;;  %v8555_v34 = vsel %vm605_vm1, %v3628_v25, %v3630_v24 }
 0x52f   : > { %11460 = vst [vmem:[#allocation254_spill] sm:$0xff] %v8552_v11  ;;  %v2942_v8 = vadd.f32 %v8405_v30, %v2884_v20  ;;  %2789 = vmatmul.f32.gmra.mxu0 %v11463_v36  ;;  %3849 = vmatmul.f32.gmra.mxu1 %v8552_v11 }
 0x530   : > { %11461 = vst [vmem:[#allocation255_spill] sm:$0xff] %v8555_v34  ;;  %4188 = vmatmul.f32.gmra.mxu3 %v8555_v34  ;;  %v2615_v11 = vpop.f32.mrf.mxu3 }
 0x531   : > { %v8563_v57 = vmax.f32 %v2942_v8, 0.0  ;;  %v2115_v8 = vpop.f32.mrf.mxu1 }
 0x533   : > { %4016 = vmatmul.f32.gmra.mxu2 %v8563_v57  ;;  %v3469_v22 = vrot.slane %v8563_v57, 1  ;;  %v3632_v52 = vrot.slane %v8563_v57, 2 }
 0x534   : > { %v2745_v25 = vpop.f32.mrf.mxu0 }
 0x535   : > { %v2885_v20 = vadd.f32 %v2745_v25, %v11464_v3  ;;  %v8570_v36 = vsel %vm423_vm0, %v3467_v51, %v3469_v22  ;;  %v8573_v2 = vsel %vm605_vm1, %v3630_v24, %v3632_v52  ;;  %v2371_v39 = vpop.f32.mrf.mxu2 }
 0x536   : > { %11465 = vst [vmem:[#allocation36_spill] sm:$0xff] %v8570_v36 }
 0x537   : > { %11466 = vst [vmem:[#allocation257_spill] sm:$0xff] %v8573_v2  ;;  %v2943_v34 = vadd.f32 %v8405_v30, %v2885_v20  ;;  %2792 = vmatmul.f32.gmra.mxu0 %v11467_v4  ;;  %3852 = vmatmul.f32.gmra.mxu1 %v8570_v36  ;;  %v11982_v26 = vld [vmem:[#allocation255_spill] sm:$0xff] }
 0x538   : > { %4191 = vmatmul.f32.gmra.mxu3 %v8573_v2  ;;  %v2618_v2 = vpop.f32.mrf.mxu3 }
 0x539   : > { %v8579_v14 = vmax.f32 %v2943_v34, 0.0  ;;  %v2118_v8 = vpop.f32.mrf.mxu1 }
 0x53b   : > { %6053 = vmatmul.msk.f32.gmra.mxu2 %vm3179_vm3, %v8579_v14  ;;  %v3353_v3 = vsel %vm3179_vm3, %v8579_v14, 0.0 }
 0x53c   : > { %v2748_v51 = vpop.f32.mrf.mxu0  ;;  %v3471_v24 = vrot.slane %v3353_v3, 1  ;;  %v3634_v25 = vrot.slane %v3353_v3, 2 }
 0x53d   : > { %v2886_v20 = vadd.f32 %v2748_v51, %v8023_v12 }
 0x53e   : > { %v8589_v11 = vsel %vm423_vm0, %v3469_v22, %v3471_v24  ;;  %v8592_v34 = vsel %vm605_vm1, %v3632_v52, %v3634_v25  ;;  %v4594_v22 = vld [vmem:[#allocation7 + $0x250] sm:$0xff] }
 0x53f   : > { %11468 = vst [vmem:[#allocation258_spill] sm:$0xff] %v8589_v11  ;;  %v2944_v4 = vadd.f32 %v8405_v30, %v2886_v20  ;;  %2795 = vmatmul.f32.gmra.mxu0 %v11281_v45  ;;  %3855 = vmatmul.f32.gmra.mxu1 %v8589_v11 }
 0x540   : > { %11469 = vst [vmem:[#allocation259_spill] sm:$0xff] %v8592_v34  ;;  %4194 = vmatmul.f32.gmra.mxu3 %v8592_v34  ;;  %4605 = vmatpush.msrb.mxu2 %v4594_v22  ;;  %v11472_v34 = vld [vmem:[#allocation82_spill] sm:$0xff]  ;;  %v2621_v11 = vpop.f32.mrf.mxu3 }
 0x541   : > { %v8598_v3 = vmax.f32 %v2944_v4, 0.0  ;;  %v2121_v2 = vpop.f32.mrf.mxu1  ;;  %v4368_v22 = vld [vmem:[#allocation7 + $0x1d0] sm:$0xff] }
 0x542   : > { %4379 = vmatpush.msrb.mxu1 %v4368_v22 }
 0x543   : > { %6054 = vmatmul.msk.f32.gmra.mxu2 %vm3120_vm2, %v8598_v3  ;;  %v3354_v12 = vsel %vm3120_vm2, %v8598_v3, 0.0 }
 0x544   : > { %v2751_v52 = vpop.f32.mrf.mxu0  ;;  %v3473_v51 = vrot.slane %v3354_v12, 1  ;;  %v3636_v39 = vrot.slane %v3354_v12, 2 }
 0x545   : > { %v2887_v20 = vadd.f32 %v2751_v52, %v8033_v28 }
 0x546   : > { %v8608_v8 = vsel %vm423_vm0, %v3471_v24, %v3473_v51  ;;  %v8611_v4 = vsel %vm605_vm1, %v3634_v25, %v3636_v39 }
 0x547   : > { %11470 = vst [vmem:[#allocation260_spill] sm:$0xff] %v8608_v8  ;;  %v2945_v45 = vadd.f32 %v8405_v30, %v2887_v20  ;;  %2798 = vmatmul.f32.gmra.mxu0 %v11472_v34  ;;  %3858 = vmatmul.f32.gmra.mxu1 %v8608_v8 }
 0x548   : > { %11471 = vst [vmem:[#allocation261_spill] sm:$0xff] %v8611_v4  ;;  %4197 = vmatmul.f32.gmra.mxu3 %v8611_v4 }
 0x549   : > { %v8617_v12 = vmax.f32 %v2945_v45, 0.0 }
 0x54b   : > { %4025 = vmatmul.f32.gmra.mxu2 %v8617_v12  ;;  %v3475_v28 = vrot.slane %v8617_v12, 1  ;;  %v3638_v24 = vrot.slane %v8617_v12, 2 }
 0x54c   : > { %v2754_v25 = vpop.f32.mrf.mxu0 }
 0x54d   : > { %v2888_v52 = vadd.f32 %v2754_v25, %v8044_v59  ;;  %v8624_v20 = vsel %vm423_vm0, %v3473_v51, %v3475_v28  ;;  %v8627_v11 = vsel %vm605_vm1, %v3636_v39, %v3638_v24  ;;  %v11475_v25 = vld [vmem:[#allocation40_spill] sm:$0xff] }
 0x54e   : > { %11473 = vst [vmem:[#allocation262_spill] sm:$0xff] %v8624_v20 }
 0x54f   : > { %11474 = vst [vmem:[#allocation263_spill] sm:$0xff] %v8627_v11  ;;  %v2946_v45 = vadd.f32 %v8405_v30, %v2888_v52  ;;  %2801 = vmatmul.f32.gmra.mxu0 %v11291_v46  ;;  %3861 = vmatmul.f32.gmra.mxu1 %v8624_v20  ;;  %v8671_v20 = vpop.f32.mrf.mxu2 }
 0x550   : > { %4200 = vmatmul.f32.gmra.mxu3 %v8627_v11  ;;  %v11478_v11 = vld [vmem:[#allocation90_spill] sm:$0xff]  ;;  %11482 = vst [vmem:[#allocation267_spill] sm:$0xff] %v8671_v20 }
 0x551   : > { %v8633_v2 = vmax.f32 %v2946_v45, 0.0 }
 0x553   : > { %6055 = vmatmul.msk.f32.gmra.mxu2 %vm3179_vm3, %v8633_v2  ;;  %v3356_v59 = vsel %vm3179_vm3, %v8633_v2, 0.0 }
 0x554   : > { %v2757_v51 = vpop.f32.mrf.mxu0  ;;  %v3477_v39 = vrot.slane %v3356_v59, 1  ;;  %v3640_v22 = vrot.slane %v3356_v59, 2 }
 0x555   : > { %v2889_v52 = vadd.f32 %v2757_v51, %v11475_v25 }
 0x556   : > { %v8643_v46 = vsel %vm423_vm0, %v3475_v28, %v3477_v39  ;;  %v8646_v34 = vsel %vm605_vm1, %v3638_v24, %v3640_v22  ;;  %v4593_v24 = vld [vmem:[#allocation7 + $0x248] sm:$0xff] }
 0x557   : > { %11476 = vst [vmem:[#allocation40_spill] sm:$0xff] %v8643_v46  ;;  %v2947_v45 = vadd.f32 %v8405_v30, %v2889_v52  ;;  %2804 = vmatmul.f32.gmra.mxu0 %v11478_v11  ;;  %3864 = vmatmul.f32.gmra.mxu1 %v8643_v46  ;;  %v11481_v46 = vld [vmem:[#allocation94_spill] sm:$0xff] }
 0x558   : > { %11477 = vst [vmem:[#allocation264_spill] sm:$0xff] %v8646_v34  ;;  %4203 = vmatmul.f32.gmra.mxu3 %v8646_v34  ;;  %4606 = vmatpush.msrb.mxu2 %v4593_v24  ;;  %v4367_v24 = vld [vmem:[#allocation7 + $0x1c8] sm:$0xff] }
 0x559   : > { %v8652_v4 = vmax.f32 %v2947_v45, 0.0  ;;  %4380 = vmatpush.msrb.mxu1 %v4367_v24  ;;  %v8689_v24 = vpop.f32.mrf.mxu1 }
 0x55a   : > { %11485 = vst [vmem:[#allocation270_spill] sm:$0xff] %v8689_v24  ;;  %v11489_v24 = vld [vmem:[#allocation101_spill] sm:$0xff] }
 0x55b   : > { %6056 = vmatmul.msk.f32.gmra.mxu2 %vm3120_vm2, %v8652_v4  ;;  %v3357_v28 = vsel %vm3120_vm2, %v8652_v4, 0.0 }
 0x55c   : > { %v2760_v59 = vpop.f32.mrf.mxu0  ;;  %v3479_v51 = vrot.slane %v3357_v28, 1  ;;  %v3642_v25 = vrot.slane %v3357_v28, 2 }
 0x55d   : > { %v2890_v52 = vadd.f32 %v2760_v59, %v8065_v10 }
 0x55e   : > { %v8662_v11 = vsel %vm423_vm0, %v3477_v39, %v3479_v51  ;;  %v8665_v45 = vsel %vm605_vm1, %v3640_v22, %v3642_v25 }
 0x55f   : > { %11479 = vst [vmem:[#allocation265_spill] sm:$0xff] %v8662_v11  ;;  %v2948_v34 = vadd.f32 %v8405_v30, %v2890_v52  ;;  %2807 = vmatmul.f32.gmra.mxu0 %v11481_v46  ;;  %3867 = vmatmul.f32.gmra.mxu1 %v8662_v11 }
 0x560   : > { %11480 = vst [vmem:[#allocation266_spill] sm:$0xff] %v8665_v45  ;;  %4206 = vmatmul.f32.gmra.mxu3 %v8665_v45  ;;  %v8693_v45 = vpop.f32.mrf.mxu2 }
 0x561   : > { %v8673_v28 = vmax.f32 %v2948_v34, 0.0  ;;  %11486 = vst [vmem:[#allocation271_spill] sm:$0xff] %v8693_v45 }
 0x563   : > { %4034 = vmatmul.f32.gmra.mxu2 %v8673_v28  ;;  %v3481_v10 = vrot.slane %v8673_v28, 1  ;;  %v3644_v39 = vrot.slane %v8673_v28, 2 }
 0x564   : > { %v2763_v22 = vpop.f32.mrf.mxu0 }
 0x565   : > { %v2891_v59 = vadd.f32 %v2763_v22, %v8074_v55  ;;  %v8680_v52 = vsel %vm423_vm0, %v3479_v51, %v3481_v10  ;;  %v8683_v46 = vsel %vm605_vm1, %v3642_v25, %v3644_v39 }
 0x566   : > { %11483 = vst [vmem:[#allocation268_spill] sm:$0xff] %v8680_v52 }
 0x567   : > { %11484 = vst [vmem:[#allocation269_spill] sm:$0xff] %v8683_v46  ;;  %v2949_v34 = vadd.f32 %v8405_v30, %v2891_v59  ;;  %2810 = vmatmul.f32.gmra.mxu0 %v11307_v19  ;;  %3870 = vmatmul.f32.gmra.mxu1 %v8680_v52  ;;  %v8714_v52 = vpop.f32.mrf.mxu3 }
 0x568   : > { %4209 = vmatmul.f32.gmra.mxu3 %v8683_v46  ;;  %11490 = vst [vmem:[#allocation274_spill] sm:$0xff] %v8714_v52 }
 0x569   : > { %v8691_v20 = vmax.f32 %v2949_v34, 0.0 }
 0x56b   : > { %6057 = vmatmul.msk.f32.gmra.mxu2 %vm3179_vm3, %v8691_v20  ;;  %v3359_v55 = vsel %vm3179_vm3, %v8691_v20, 0.0 }
 0x56c   : > { %v2766_v51 = vpop.f32.mrf.mxu0  ;;  %v3483_v25 = vrot.slane %v3359_v55, 1  ;;  %v3646_v22 = vrot.slane %v3359_v55, 2  ;;  %v8716_v55 = vpop.f32.mrf.mxu1 }
 0x56d   : > { %v2892_v59 = vadd.f32 %v2766_v51, %v8084_v40  ;;  %11491 = vst [vmem:[#allocation275_spill] sm:$0xff] %v8716_v55 }
 0x56e   : > { %v8703_v19 = vsel %vm423_vm0, %v3481_v10, %v3483_v25  ;;  %v8706_v34 = vsel %vm605_vm1, %v3644_v39, %v3646_v22  ;;  %v3993_v39 = vpop.f32.mrf.mxu2 }
 0x56f   : > { %11487 = vst [vmem:[#allocation272_spill] sm:$0xff] %v8703_v19  ;;  %v2950_v45 = vadd.f32 %v8405_v30, %v2892_v59  ;;  %2813 = vmatmul.f32.gmra.mxu0 %v11489_v24  ;;  %3873 = vmatmul.f32.gmra.mxu1 %v8703_v19  ;;  %v4592_v24 = vld [vmem:[#allocation7 + $0x240] sm:$0xff] }
 0x570   : > { %11488 = vst [vmem:[#allocation273_spill] sm:$0xff] %v8706_v34  ;;  %4212 = vmatmul.f32.gmra.mxu3 %v8706_v34  ;;  %4607 = vmatpush.msrb.mxu2 %v4592_v24  ;;  %v11494_v19 = vld [vmem:[#allocation104_spill] sm:$0xff] }
 0x571   : > { %v8712_v46 = vmax.f32 %v2950_v45, 0.0 }
 0x573   : > { %6058 = vmatmul.msk.f32.gmra.mxu2 %vm3120_vm2, %v8712_v46  ;;  %v3360_v40 = vsel %vm3120_vm2, %v8712_v46, 0.0 }
 0x574   : > { %v2769_v10 = vpop.f32.mrf.mxu0  ;;  %v3485_v51 = vrot.slane %v3360_v40, 1  ;;  %v3648_v59 = vrot.slane %v3360_v40, 2  ;;  %v4366_v40 = vld [vmem:[#allocation7 + $0x1c0] sm:$0xff] }
 0x575   : > { %v2893_v45 = vadd.f32 %v2769_v10, %v8093_v49  ;;  %4381 = vmatpush.msrb.mxu1 %v4366_v40  ;;  %v8737_v49 = vpop.f32.mrf.mxu3 }
 0x576   : > { %v8726_v52 = vsel %vm423_vm0, %v3483_v25, %v3485_v51  ;;  %v8729_v55 = vsel %vm605_vm1, %v3646_v22, %v3648_v59  ;;  %11496 = vst [vmem:[#allocation279_spill] sm:$0xff] %v8737_v49  ;;  %v11499_v49 = vld [vmem:[#allocation107_spill] sm:$0xff] }
 0x577   : > { %11492 = vst [vmem:[#allocation276_spill] sm:$0xff] %v8726_v52  ;;  %v2951_v34 = vadd.f32 %v8405_v30, %v2893_v45  ;;  %2816 = vmatmul.f32.gmra.mxu0 %v11494_v19  ;;  %3876 = vmatmul.f32.gmra.mxu1 %v8726_v52 }
 0x578   : > { %11493 = vst [vmem:[#allocation277_spill] sm:$0xff] %v8729_v55  ;;  %4215 = vmatmul.f32.gmra.mxu3 %v8729_v55 }
 0x579   : > { %v8735_v11 = vmax.f32 %v2951_v34, 0.0 }
 0x57b   : > { %11495 = vst [vmem:[#allocation278_spill] sm:$0xff] %v8735_v11  ;;  %4043 = vmatmul.f32.gmra.mxu2 %v8735_v11  ;;  %v3487_v24 = vrot.slane %v8735_v11, 1  ;;  %v3650_v25 = vrot.slane %v8735_v11, 2 }
 0x57c   : > { %v2772_v22 = vpop.f32.mrf.mxu0  ;;  %v3832_v10 = vpop.f32.mrf.mxu1 }
 0x57d   : > { %v2894_v45 = vadd.f32 %v2772_v22, %v8102_v42  ;;  %v8744_v19 = vsel %vm423_vm0, %v3485_v51, %v3487_v24  ;;  %v8747_v34 = vsel %vm605_vm1, %v3648_v59, %v3650_v25  ;;  %v3994_v8 = vadd.f32 %v3993_v39, %v3832_v10 }
 0x57e   : > { %11497 = vst [vmem:[#allocation280_spill] sm:$0xff] %v8744_v19  ;;  %v3996_v55 = vpop.f32.mrf.mxu2 }
 0x57f   : > { %11498 = vst [vmem:[#allocation281_spill] sm:$0xff] %v8747_v34  ;;  %v2952_v40 = vadd.f32 %v8405_v30, %v2894_v45  ;;  %2819 = vmatmul.f32.gmra.mxu0 %v11499_v49  ;;  %3879 = vmatmul.f32.gmra.mxu1 %v8744_v19 }
 0x580   : > { %4218 = vmatmul.f32.gmra.mxu3 %v8747_v34 }
 0x581   : > { %v8753_v52 = vmax.f32 %v2952_v40, 0.0 }
 0x583   : > { %11500 = vst [vmem:[#allocation282_spill] sm:$0xff] %v8753_v52  ;;  %v4171_v36 = vpop.f32.mrf.mxu3  ;;  %6059 = vmatmul.msk.f32.gmra.mxu2 %vm3179_vm3, %v8753_v52  ;;  %v3362_v42 = vsel %vm3179_vm3, %v8753_v52, 0.0 }
 0x584   : > { %v8761_v51 = vadd.f32 %v4171_v36, %v3994_v8  ;;  %v2775_v59 = vpop.f32.mrf.mxu0  ;;  %v3835_v22 = vpop.f32.mrf.mxu1  ;;  %v3489_v45 = vrot.slane %v3362_v42, 1  ;;  %v3652_v49 = vrot.slane %v3362_v42, 2 }
 0x585   : > { %v2895_v34 = vadd.f32 %v2775_v59, %v8107_v63  ;;  %v3997_v8 = vadd.f32 %v3996_v55, %v3835_v22 }
 0x586   : > { %11501 = vst [vmem:[#allocation283_spill] sm:$0xff] %v8761_v51  ;;  %v3999_v40 = vpop.f32.mrf.mxu2  ;;  %v8765_v39 = vsel %vm423_vm0, %v3487_v24, %v3489_v45  ;;  %v8768_v10 = vsel %vm605_vm1, %v3650_v25, %v3652_v49  ;;  %v4591_v51 = vld [vmem:[#allocation7 + $0x238] sm:$0xff] }
 0x587   : > { %11502 = vst [vmem:[#allocation284_spill] sm:$0xff] %v8765_v39  ;;  %v2953_v19 = vadd.f32 %v8405_v30, %v2895_v34  ;;  %2822 = vmatmul.f32.gmra.mxu0 %v11325_v23  ;;  %3882 = vmatmul.f32.gmra.mxu1 %v8765_v39 }
 0x588   : > { %11503 = vst [vmem:[#allocation285_spill] sm:$0xff] %v8768_v10  ;;  %4221 = vmatmul.f32.gmra.mxu3 %v8768_v10  ;;  %v11506_v10 = vld [vmem:[#allocation44_spill] sm:$0xff]  ;;  %4608 = vmatpush.msrb.mxu2 %v4591_v51 }
 0x589   : > { %v8774_v36 = vmax.f32 %v2953_v19, 0.0 }
 0x58b   : > { %11504 = vst [vmem:[#allocation286_spill] sm:$0xff] %v8774_v36  ;;  %v4174_v42 = vpop.f32.mrf.mxu3  ;;  %6060 = vmatmul.msk.f32.gmra.mxu2 %vm3120_vm2, %v8774_v36  ;;  %v3363_v63 = vsel %vm3120_vm2, %v8774_v36, 0.0  ;;  %v11509_v36 = vld [vmem:[#allocation111_spill] sm:$0xff] }
 0x58c   : > { %v8782_v24 = vadd.f32 %v4174_v42, %v3997_v8  ;;  %v2778_v25 = vpop.f32.mrf.mxu0  ;;  %v3838_v34 = vpop.f32.mrf.mxu1  ;;  %v3491_v59 = vrot.slane %v3363_v63, 1  ;;  %v3654_v23 = vrot.slane %v3363_v63, 2  ;;  %v4365_v42 = vld [vmem:[#allocation7 + $0x1b8] sm:$0xff] }
 0x58d   : > { %v2896_v19 = vadd.f32 %v2778_v25, %v11506_v10  ;;  %v4000_v10 = vadd.f32 %v3999_v40, %v3838_v34  ;;  %4382 = vmatpush.msrb.mxu1 %v4365_v42  ;;  %v11514_v42 = vld [vmem:[#allocation113_spill] sm:$0xff] }
 0x58e   : > { %11505 = vst [vmem:[#allocation287_spill] sm:$0xff] %v8782_v24  ;;  %v4002_v55 = vpop.f32.mrf.mxu2  ;;  %v8786_v22 = vsel %vm423_vm0, %v3489_v45, %v3491_v59  ;;  %v8789_v39 = vsel %vm605_vm1, %v3652_v49, %v3654_v23 }
 0x58f   : > { %11507 = vst [vmem:[#allocation44_spill] sm:$0xff] %v8786_v22  ;;  %v2954_v52 = vadd.f32 %v8405_v30, %v2896_v19  ;;  %2825 = vmatmul.f32.gmra.mxu0 %v11509_v36  ;;  %3885 = vmatmul.f32.gmra.mxu1 %v8786_v22  ;;  %v11520_v22 = vld [vmem:[#allocation116_spill] sm:$0xff] }
 0x590   : > { %11508 = vst [vmem:[#allocation288_spill] sm:$0xff] %v8789_v39  ;;  %4224 = vmatmul.f32.gmra.mxu3 %v8789_v39  ;;  %v11517_v39 = vld [vmem:[#allocation48_spill] sm:$0xff] }
 0x591   : > { %v8795_v8 = vmax.f32 %v2954_v52, 0.0 }
 0x593   : > { %11510 = vst [vmem:[#allocation289_spill] sm:$0xff] %v8795_v8  ;;  %v4177_v51 = vpop.f32.mrf.mxu3  ;;  %4052 = vmatmul.f32.gmra.mxu2 %v8795_v8  ;;  %v3493_v45 = vrot.slane %v8795_v8, 1  ;;  %v3656_v49 = vrot.slane %v8795_v8, 2  ;;  %v11527_v8 = vld [vmem:[#allocation248_spill] sm:$0xff] }
 0x594   : > { %v8800_v63 = vadd.f32 %v4177_v51, %v4000_v10  ;;  %v2781_v25 = vpop.f32.mrf.mxu0  ;;  %v3841_v19 = vpop.f32.mrf.mxu1 }
 0x595   : > { %v2897_v36 = vadd.f32 %v2781_v25, %v8119_v35  ;;  %v8804_v24 = vsel %vm423_vm0, %v3491_v59, %v3493_v45  ;;  %v8807_v52 = vsel %vm605_vm1, %v3654_v23, %v3656_v49  ;;  %v4003_v51 = vadd.f32 %v4002_v55, %v3841_v19 }
 0x596   : > { %11511 = vst [vmem:[#allocation290_spill] sm:$0xff] %v8800_v63  ;;  %v4005_v40 = vpop.f32.mrf.mxu2 }
 0x597   : > { %11512 = vst [vmem:[#allocation291_spill] sm:$0xff] %v8804_v24  ;;  %v2955_v34 = vadd.f32 %v8405_v30, %v2897_v36  ;;  %2828 = vmatmul.f32.gmra.mxu0 %v11514_v42  ;;  %3888 = vmatmul.f32.gmra.mxu1 %v8804_v24 }
 0x598   : > { %11513 = vst [vmem:[#allocation292_spill] sm:$0xff] %v8807_v52  ;;  %4227 = vmatmul.f32.gmra.mxu3 %v8807_v52 }
 0x599   : > { %v8813_v10 = vmax.f32 %v2955_v34, 0.0 }
 0x59b   : > { %11515 = vst [vmem:[#allocation293_spill] sm:$0xff] %v8813_v10  ;;  %v4180_v63 = vpop.f32.mrf.mxu3  ;;  %6061 = vmatmul.msk.f32.gmra.mxu2 %vm3179_vm3, %v8813_v10  ;;  %v3365_v23 = vsel %vm3179_vm3, %v8813_v10, 0.0  ;;  %v11526_v10 = vld [vmem:[#allocation124_spill] sm:$0xff] }
 0x59c   : > { %v8821_v35 = vadd.f32 %v4180_v63, %v4003_v51  ;;  %v2784_v36 = vpop.f32.mrf.mxu0  ;;  %v3844_v59 = vpop.f32.mrf.mxu1  ;;  %v3495_v25 = vrot.slane %v3365_v23, 1  ;;  %v3658_v42 = vrot.slane %v3365_v23, 2 }
 0x59d   : > { %v2898_v52 = vadd.f32 %v2784_v36, %v11517_v39  ;;  %v4006_v51 = vadd.f32 %v4005_v40, %v3844_v59 }
 0x59e   : > { %11516 = vst [vmem:[#allocation294_spill] sm:$0xff] %v8821_v35  ;;  %v4008_v34 = vpop.f32.mrf.mxu2  ;;  %v8825_v55 = vsel %vm423_vm0, %v3493_v45, %v3495_v25  ;;  %v8828_v19 = vsel %vm605_vm1, %v3656_v49, %v3658_v42  ;;  %v4590_v35 = vld [vmem:[#allocation7 + $0x230] sm:$0xff] }
 0x59f   : > { %11518 = vst [vmem:[#allocation48_spill] sm:$0xff] %v8825_v55  ;;  %v2956_v24 = vadd.f32 %v8405_v30, %v2898_v52  ;;  %2831 = vmatmul.f32.gmra.mxu0 %v11520_v22  ;;  %3891 = vmatmul.f32.gmra.mxu1 %v8825_v55 }
 0x5a0   : > { %11519 = vst [vmem:[#allocation295_spill] sm:$0xff] %v8828_v19  ;;  %4230 = vmatmul.f32.gmra.mxu3 %v8828_v19  ;;  %v11523_v19 = vld [vmem:[#allocation35_spill] sm:$0xff]  ;;  %4609 = vmatpush.msrb.mxu2 %v4590_v35  ;;  %v4364_v35 = vld [vmem:[#allocation7 + $0x1b0] sm:$0xff] }
 0x5a1   : > { %v8834_v63 = vmax.f32 %v2956_v24, 0.0  ;;  %4383 = vmatpush.msrb.mxu1 %v4364_v35  ;;  %v11535_v35 = vld [vmem:[#allocation127_spill] sm:$0xff] }
 0x5a3   : > { %11521 = vst [vmem:[#allocation296_spill] sm:$0xff] %v8834_v63  ;;  %v4183_v23 = vpop.f32.mrf.mxu3  ;;  %6062 = vmatmul.msk.f32.gmra.mxu2 %vm3120_vm2, %v8834_v63  ;;  %v3366_v39 = vsel %vm3120_vm2, %v8834_v63, 0.0  ;;  %v1101_v63 = vadd.f32 %v11527_v8, %v11526_v10 }
 0x5a4   : > { %v8842_v45 = vadd.f32 %v4183_v23, %v4006_v51  ;;  %v2787_v49 = vpop.f32.mrf.mxu0  ;;  %v3847_v52 = vpop.f32.mrf.mxu1  ;;  %v3497_v36 = vrot.slane %v3366_v39, 1  ;;  %v3660_v22 = vrot.slane %v3366_v39, 2  ;;  %v11528_v23 = vld [vmem:[#allocation119_spill] sm:$0xff] }
 0x5a5   : > { %v2899_v24 = vadd.f32 %v2787_v49, %v11523_v19  ;;  %v4009_v39 = vadd.f32 %v4008_v34, %v3847_v52 }
 0x5a6   : > { %11522 = vst [vmem:[#allocation297_spill] sm:$0xff] %v8842_v45  ;;  %v4011_v40 = vpop.f32.mrf.mxu2  ;;  %v8846_v59 = vsel %vm423_vm0, %v3495_v25, %v3497_v36  ;;  %v8849_v55 = vsel %vm605_vm1, %v3658_v42, %v3660_v22  ;;  %v11530_v25 = vld [vmem:[#allocation174_spill] sm:$0xff] }
 0x5a7   : > { %11524 = vst [vmem:[#allocation35_spill] sm:$0xff] %v8846_v59  ;;  %v2957_v51 = vadd.f32 %v8405_v30, %v2899_v24  ;;  %2834 = vmatmul.f32.gmra.mxu0 %v11528_v23  ;;  %3894 = vmatmul.f32.gmra.mxu1 %v8846_v59  ;;  %v1402_v49 = vadd.f32 %v11530_v25, %v1101_v63  ;;  %v11532_v59 = vld [vmem:[#allocation208_spill] sm:$0xff]  ;;  %v11536_v25 = vld [vmem:[#allocation250_spill] sm:$0xff] }
 0x5a8   : > { %11525 = vst [vmem:[#allocation298_spill] sm:$0xff] %v8849_v55  ;;  %4233 = vmatmul.f32.gmra.mxu3 %v8849_v55  ;;  %v1104_v11 = vadd.f32 %v11536_v25, %v11535_v35  ;;  %v11540_v35 = vld [vmem:[#allocation211_spill] sm:$0xff] }
 0x5a9   : > { %v8857_v19 = vmax.f32 %v2957_v51, 0.0  ;;  %v1652_v55 = vadd.f32 %v11532_v59, %v1402_v49  ;;  %v11538_v59 = vld [vmem:[#allocation178_spill] sm:$0xff] }
 0x5ab   : > { %11529 = vst [vmem:[#allocation124_spill] sm:$0xff] %v8857_v19  ;;  %v4186_v42 = vpop.f32.mrf.mxu3  ;;  %4061 = vmatmul.f32.gmra.mxu2 %v8857_v19  ;;  %v3499_v8 = vrot.slane %v8857_v19, 1  ;;  %v3662_v10 = vrot.slane %v8857_v19, 2  ;;  %v1902_v19 = vadd.f32 %v8154_v37, %v1652_v55 }
 0x5ac   : > { %v8863_v24 = vadd.f32 %v4186_v42, %v4009_v39  ;;  %v2790_v23 = vpop.f32.mrf.mxu0  ;;  %v3850_v45 = vpop.f32.mrf.mxu1 }
 0x5ad   : > { %v2900_v51 = vadd.f32 %v2790_v23, %v8145_v47  ;;  %v8868_v34 = vsel %vm423_vm0, %v3497_v36, %v3499_v8  ;;  %v8871_v63 = vsel %vm605_vm1, %v3660_v22, %v3662_v10  ;;  %v4012_v36 = vadd.f32 %v4011_v40, %v3850_v45 }
 0x5ae   : > { %11531 = vst [vmem:[#allocation248_spill] sm:$0xff] %v8863_v24  ;;  %v4014_v52 = vpop.f32.mrf.mxu2  ;;  %v1403_v22 = vadd.f32 %v11538_v59, %v1104_v11  ;;  %v2651_v23 = vadd.f32 %v8220_v1, %v8152_v41  ;;  %v2152_v49 = vadd.f32 %v8226_v32, %v1902_v19  ;;  %v11541_v1 = vld [vmem:[#allocation132_spill] sm:$0xff]  ;;  %v11542_v32 = vld [vmem:[#allocation251_spill] sm:$0xff] }
 0x5af   : > { %11533 = vst [vmem:[#allocation174_spill] sm:$0xff] %v8868_v34  ;;  %v2958_v39 = vadd.f32 %v8405_v30, %v2900_v51  ;;  %2837 = vmatmul.f32.gmra.mxu0 %v11346_v48  ;;  %3897 = vmatmul.f32.gmra.mxu1 %v8868_v34  ;;  %v1107_v19 = vadd.f32 %v11542_v32, %v11541_v1  ;;  %v11545_v24 = vld [vmem:[#allocation52_spill] sm:$0xff]  ;;  %v11551_v32 = vld [vmem:[#allocation29_spill] sm:$0xff] }
 0x5b0   : > { %11534 = vst [vmem:[#allocation208_spill] sm:$0xff] %v8871_v63  ;;  %4236 = vmatmul.f32.gmra.mxu3 %v8871_v63  ;;  %v1653_v25 = vadd.f32 %v11540_v35, %v1403_v22  ;;  %v11600_v63 = vld [vmem:[#allocation76_spill] sm:$0xff] }
 0x5b1   : > { %v8880_v47 = vmax.f32 %v2958_v39, 0.0 }
 0x5b3   : > { %11537 = vst [vmem:[#allocation127_spill] sm:$0xff] %v8880_v47  ;;  %v4189_v42 = vpop.f32.mrf.mxu3  ;;  %6063 = vmatmul.msk.f32.gmra.mxu2 %vm3179_vm3, %v8880_v47  ;;  %v3368_v37 = vsel %vm3179_vm3, %v8880_v47, 0.0 }
 0x5b4   : > { %v8892_v55 = vadd.f32 %v4189_v42, %v4012_v36  ;;  %v2793_v51 = vpop.f32.mrf.mxu0  ;;  %v3853_v45 = vpop.f32.mrf.mxu1  ;;  %v3501_v40 = vrot.slane %v3368_v37, 1  ;;  %v3664_v11 = vrot.slane %v3368_v37, 2  ;;  %v2402_v36 = vadd.f32 %v11545_v24, %v2152_v49 }
 0x5b5   : > { %v2901_v41 = vadd.f32 %v2793_v51, %v2651_v23  ;;  %v1903_v42 = vadd.f32 %v8161_v17, %v1653_v25  ;;  %v4015_v23 = vadd.f32 %v4014_v52, %v3853_v45  ;;  %v4589_v25 = vld [vmem:[#allocation7 + $0x228] sm:$0xff] }
 0x5b6   : > { %11539 = vst [vmem:[#allocation250_spill] sm:$0xff] %v8892_v55  ;;  %v4017_v39 = vpop.f32.mrf.mxu2  ;;  %v8898_v59 = vsel %vm423_vm0, %v3499_v8, %v3501_v40  ;;  %v8901_v48 = vsel %vm605_vm1, %v3662_v10, %v3664_v11  ;;  %v11547_v8 = vld [vmem:[#allocation181_spill] sm:$0xff]  ;;  %v2652_v10 = vadd.f32 %v8228_v58, %v2402_v36  ;;  %4610 = vmatpush.msrb.mxu2 %v4589_v25 }
 0x5b7   : > { %11543 = vst [vmem:[#allocation178_spill] sm:$0xff] %v8898_v59  ;;  %v2959_v55 = vadd.f32 %v8405_v30, %v2901_v41  ;;  %2840 = vmatmul.f32.gmra.mxu0 %v11351_v56  ;;  %3900 = vmatmul.f32.gmra.mxu1 %v8898_v59  ;;  %v1404_v37 = vadd.f32 %v11547_v8, %v1107_v19  ;;  %v11549_v41 = vld [vmem:[#allocation214_spill] sm:$0xff] }
 0x5b8   : > { %11544 = vst [vmem:[#allocation211_spill] sm:$0xff] %v8901_v48  ;;  %4239 = vmatmul.f32.gmra.mxu3 %v8901_v48  ;;  %v2153_v51 = vadd.f32 %v8234_v43, %v1903_v42  ;;  %v11550_v43 = vld [vmem:[#allocation136_spill] sm:$0xff] }
 0x5b9   : > { %v8909_v22 = vmax.f32 %v2959_v55, 0.0  ;;  %v1654_v58 = vadd.f32 %v11549_v41, %v1404_v37  ;;  %v1110_v19 = vadd.f32 %v11551_v32, %v11550_v43 }
 0x5bb   : > { %11546 = vst [vmem:[#allocation132_spill] sm:$0xff] %v8909_v22  ;;  %v4192_v24 = vpop.f32.mrf.mxu3  ;;  %6064 = vmatmul.msk.f32.gmra.mxu2 %vm3120_vm2, %v8909_v22  ;;  %v3369_v17 = vsel %vm3120_vm2, %v8909_v22, 0.0  ;;  %v1904_v56 = vadd.f32 %v8171_v18, %v1654_v58  ;;  %v11625_v22 = vld [vmem:[#allocation80_spill] sm:$0xff] }
 0x5bc   : > { %v8920_v49 = vadd.f32 %v4192_v24, %v4015_v23  ;;  %v2796_v55 = vpop.f32.mrf.mxu0  ;;  %v3856_v35 = vpop.f32.mrf.mxu1  ;;  %v3503_v52 = vrot.slane %v3369_v17, 1  ;;  %v3666_v45 = vrot.slane %v3369_v17, 2  ;;  %v11554_v23 = vld [vmem:[#allocation56_spill] sm:$0xff] }
 0x5bd   : > { %v2902_v1 = vadd.f32 %v2796_v55, %v2652_v10  ;;  %v2403_v24 = vadd.f32 %v11554_v23, %v2153_v51  ;;  %v4363_v10 = vld [vmem:[#allocation7 + $0x1a8] sm:$0xff]  ;;  %v4018_v25 = vadd.f32 %v4017_v39, %v3856_v35  ;;  %v2154_v51 = vadd.f32 %v8247_v21, %v1904_v56  ;;  %v11559_v23 = vld [vmem:[#allocation218_spill] sm:$0xff]  ;;  %v11562_v56 = vld [vmem:[#allocation140_spill] sm:$0xff] }
 0x5be   : > { %11548 = vst [vmem:[#allocation251_spill] sm:$0xff] %v8920_v49  ;;  %v4020_v36 = vpop.f32.mrf.mxu2  ;;  %v8926_v42 = vsel %vm423_vm0, %v3501_v40, %v3503_v52  ;;  %v8929_v8 = vsel %vm605_vm1, %v3664_v11, %v3666_v45  ;;  %v11555_v49 = vld [vmem:[#allocation131_spill] sm:$0xff]  ;;  %v11557_v40 = vld [vmem:[#allocation185_spill] sm:$0xff]  ;;  %4384 = vmatpush.msrb.mxu1 %v4363_v10  ;;  %v11563_v21 = vld [vmem:[#allocation28_spill] sm:$0xff] }
 0x5bf   : > { %11552 = vst [vmem:[#allocation52_spill] sm:$0xff] %v8926_v42  ;;  %v2960_v17 = vadd.f32 %v8405_v30, %v2902_v1  ;;  %2843 = vmatmul.f32.gmra.mxu0 %v11555_v49  ;;  %3903 = vmatmul.f32.gmra.mxu1 %v8926_v42  ;;  %v1405_v55 = vadd.f32 %v11557_v40, %v1110_v19  ;;  %v11564_v10 = vld [vmem:[#allocation39_spill] sm:$0xff]  ;;  %v9067_v42 = vld [vmem:[#allocation7 + $0x340] sm:$0xff] }
 0x5c0   : > { %11553 = vst [vmem:[#allocation181_spill] sm:$0xff] %v8929_v8  ;;  %4242 = vmatmul.f32.gmra.mxu3 %v8929_v8  ;;  %v2653_v11 = vadd.f32 %v8240_v38, %v2403_v24  ;;  %v1113_v35 = vadd.f32 %v11563_v21, %v11562_v56  ;;  %v2404_v40 = vadd.f32 %v11564_v10, %v2154_v51  ;;  %v11565_v49 = vld [vmem:[#allocation47_spill] sm:$0xff]  ;;  %v11570_v21 = vld [vmem:[#allocation222_spill] sm:$0xff]  ;;  %v11571_v10 = vld [vmem:[#allocation144_spill] sm:$0xff] }
 0x5c1   : > { %v8937_v37 = vmax.f32 %v2960_v17, 0.0  ;;  %v1655_v17 = vadd.f32 %v11559_v23, %v1405_v55  ;;  %v11568_v55 = vld [vmem:[#allocation192_spill] sm:$0xff] }
 0x5c3   : > { %11556 = vst [vmem:[#allocation214_spill] sm:$0xff] %v8937_v37  ;;  %v4195_v18 = vpop.f32.mrf.mxu3  ;;  %4070 = vmatmul.f32.gmra.mxu2 %v8937_v37  ;;  %v3505_v41 = vrot.slane %v8937_v37, 1  ;;  %v3668_v58 = vrot.slane %v8937_v37, 2 }
 0x5c4   : > { %v8945_v1 = vadd.f32 %v4195_v18, %v4018_v25  ;;  %v2799_v43 = vpop.f32.mrf.mxu0  ;;  %v3859_v32 = vpop.f32.mrf.mxu1  ;;  %v1905_v25 = vadd.f32 %v11565_v49, %v1655_v17 }
 0x5c5   : > { %v2903_v19 = vadd.f32 %v2799_v43, %v2653_v11  ;;  %v8949_v39 = vsel %vm423_vm0, %v3503_v52, %v3505_v41  ;;  %v8952_v38 = vsel %vm605_vm1, %v3666_v45, %v3668_v58  ;;  %v4021_v45 = vadd.f32 %v4020_v36, %v3859_v32 }
 0x5c6   : > { %11558 = vst [vmem:[#allocation136_spill] sm:$0xff] %v8945_v1  ;;  %v4023_v24 = vpop.f32.mrf.mxu2  ;;  %v11566_v1 = vld [vmem:[#allocation216_spill] sm:$0xff]  ;;  %v1406_v11 = vadd.f32 %v11568_v55, %v1113_v35  ;;  %v2654_v43 = vadd.f32 %v8249_v7, %v2404_v40  ;;  %v2155_v23 = vadd.f32 %v8256_v61, %v1905_v25  ;;  %v11572_v61 = vld [vmem:[#allocation30_spill] sm:$0xff] }
 0x5c7   : > { %11560 = vst [vmem:[#allocation29_spill] sm:$0xff] %v8949_v39  ;;  %v2961_v18 = vadd.f32 %v8405_v30, %v2903_v19  ;;  %2846 = vmatmul.f32.gmra.mxu0 %v11566_v1  ;;  %3906 = vmatmul.f32.gmra.mxu1 %v8949_v39  ;;  %v1116_v40 = vadd.f32 %v11572_v61, %v11571_v10  ;;  %v11575_v1 = vld [vmem:[#allocation60_spill] sm:$0xff] }
 0x5c8   : > { %11561 = vst [vmem:[#allocation56_spill] sm:$0xff] %v8952_v38  ;;  %4245 = vmatmul.f32.gmra.mxu3 %v8952_v38  ;;  %v1656_v35 = vadd.f32 %v11570_v21, %v1406_v11  ;;  %v8990_v11 = vld [vmem:[#allocation7 + $0x378] sm:$0xff] }
 0x5c9   : > { %v8962_v52 = vmax.f32 %v2961_v18, 0.0  ;;  %5052 = vmatpush.msra.mxu0 %v8990_v11 }
 0x5cb   : > { %11567 = vst [vmem:[#allocation185_spill] sm:$0xff] %v8962_v52  ;;  %v4198_v51 = vpop.f32.mrf.mxu3  ;;  %6065 = vmatmul.msk.f32.gmra.mxu2 %vm3179_vm3, %v8962_v52  ;;  %v3371_v49 = vsel %vm3179_vm3, %v8962_v52, 0.0 }
 0x5cc   : > { %v8973_v17 = vadd.f32 %v4198_v51, %v4021_v45  ;;  %v2802_v19 = vpop.f32.mrf.mxu0  ;;  %v3862_v56 = vpop.f32.mrf.mxu1  ;;  %v3507_v36 = vrot.slane %v3371_v49, 1  ;;  %v3670_v32 = vrot.slane %v3371_v49, 2  ;;  %v2405_v45 = vadd.f32 %v11575_v1, %v2155_v23  ;;  %v11576_v51 = vld [vmem:[#allocation72_spill] sm:$0xff]  ;;  %v5050_v1 = vld [vmem:[#allocation7 + $0x370] sm:$0xff]  ;;  %v11580_v23 = vld [vmem:[#allocation71_spill] sm:$0xff] }
 0x5cd   : > { %v2904_v7 = vadd.f32 %v2802_v19, %v2654_v43  ;;  %v11577_v49 = vld [vmem:[#allocation220_spill] sm:$0xff]  ;;  %v4024_v19 = vadd.f32 %v4023_v24, %v3862_v56  ;;  %5053 = vmatpush.msra.mxu0 %v5050_v1 }
 0x5ce   : > { %11569 = vst [vmem:[#allocation218_spill] sm:$0xff] %v8973_v17  ;;  %v4026_v25 = vpop.f32.mrf.mxu2  ;;  %v8979_v18 = vsel %vm423_vm0, %v3505_v41, %v3507_v36  ;;  %v8982_v55 = vsel %vm605_vm1, %v3668_v58, %v3670_v32  ;;  %v1906_v17 = vadd.f32 %v11576_v51, %v1656_v35  ;;  %v11579_v41 = vld [vmem:[#allocation196_spill] sm:$0xff]  ;;  %v2655_v21 = vadd.f32 %v11580_v23, %v2405_v45  ;;  %v11584_v23 = vld [vmem:[#allocation33_spill] sm:$0xff] }
 0x5cf   : > { %11573 = vst [vmem:[#allocation140_spill] sm:$0xff] %v8979_v18  ;;  %v2962_v38 = vadd.f32 %v8405_v30, %v2904_v7  ;;  %2849 = vmatmul.f32.gmra.mxu0 %v11577_v49  ;;  %3909 = vmatmul.f32.gmra.mxu1 %v8979_v18  ;;  %v1407_v58 = vadd.f32 %v11579_v41, %v1116_v40  ;;  %v11581_v7 = vld [vmem:[#allocation225_spill] sm:$0xff]  ;;  %v4588_v51 = vld [vmem:[#allocation7 + $0x220] sm:$0xff]  ;;  %v11583_v41 = vld [vmem:[#allocation147_spill] sm:$0xff] }
 0x5d0   : > { %11574 = vst [vmem:[#allocation28_spill] sm:$0xff] %v8982_v55  ;;  %4248 = vmatmul.f32.gmra.mxu3 %v8982_v55  ;;  %v2156_v30 = vadd.f32 %v8266_v27, %v1906_v17  ;;  %v9007_v27 = vld [vmem:[#allocation7 + $0x368] sm:$0xff]  ;;  %4611 = vmatpush.msrb.mxu2 %v4588_v51  ;;  %v1119_v49 = vadd.f32 %v11584_v23, %v11583_v41  ;;  %v11585_v55 = vld [vmem:[#allocation55_spill] sm:$0xff]  ;;  %v11589_v51 = vld [vmem:[#allocation224_spill] sm:$0xff] }
 0x5d1   : > { %v8992_v43 = vmax.f32 %v2962_v38, 0.0  ;;  %v1657_v10 = vadd.f32 %v11581_v7, %v1407_v58  ;;  %5054 = vmatpush.msra.mxu0 %v9007_v27 }
 0x5d3   : > { %11578 = vst [vmem:[#allocation39_spill] sm:$0xff] %v8992_v43  ;;  %v4201_v35 = vpop.f32.mrf.mxu3  ;;  %6066 = vmatmul.msk.f32.gmra.mxu2 %vm3120_vm2, %v8992_v43  ;;  %v3372_v38 = vsel %vm3120_vm2, %v8992_v43, 0.0  ;;  %v1907_v1 = vadd.f32 %v11585_v55, %v1657_v10  ;;  %v4362_v55 = vld [vmem:[#allocation7 + $0x1a0] sm:$0xff] }
 0x5d4   : > { %v9005_v61 = vadd.f32 %v4201_v35, %v4024_v19  ;;  %v2805_v24 = vpop.f32.mrf.mxu0  ;;  %v3865_v56 = vpop.f32.mrf.mxu1  ;;  %v3509_v40 = vrot.slane %v3372_v38, 1  ;;  %v3672_v45 = vrot.slane %v3372_v38, 2  ;;  %v9019_v35 = vld [vmem:[#allocation7 + $0x360] sm:$0xff]  ;;  %v11588_v38 = vld [vmem:[#allocation43_spill] sm:$0xff]  ;;  %4385 = vmatpush.msrb.mxu1 %v4362_v55 }
 0x5d5   : > { %v2905_v17 = vadd.f32 %v2805_v24, %v2655_v21  ;;  %v2406_v7 = vadd.f32 %v11588_v38, %v2156_v30  ;;  %v9025_v21 = vld [vmem:[%s10559_s2] ss:$0 sm:$0xff]  ;;  %5055 = vmatpush.msra.mxu0 %v9019_v35  ;;  %v2157_v41 = vadd.f32 %v8275_v62, %v1907_v1  ;;  %v4027_v23 = vadd.f32 %v4026_v25, %v3865_v56  ;;  %v11592_v38 = vld [vmem:[#allocation150_spill] sm:$0xff] }
 0x5d6   : > { %11582 = vst [vmem:[#allocation47_spill] sm:$0xff] %v9005_v61  ;;  %v4029_v18 = vpop.f32.mrf.mxu2  ;;  %v9014_v58 = vsel %vm423_vm0, %v3507_v36, %v3509_v40  ;;  %v9017_v19 = vsel %vm605_vm1, %v3670_v32, %v3672_v45  ;;  %v9032_v36 = vld [vmem:[#allocation7 + $0x358] sm:$0xff]  ;;  %v11591_v30 = vld [vmem:[#allocation200_spill] sm:$0xff] }
 0x5d7   : > { %11586 = vst [vmem:[#allocation192_spill] sm:$0xff] %v9014_v58  ;;  %v2963_v24 = vadd.f32 %v9025_v21, %v2905_v17  ;;  %2852 = vmatmul.f32.gmra.mxu0 %v11589_v51  ;;  %3912 = vmatmul.f32.gmra.mxu1 %v9014_v58  ;;  %v1408_v10 = vadd.f32 %v11591_v30, %v1119_v49  ;;  %v9039_v17 = vld [vmem:[#allocation7 + $0x350] sm:$0xff]  ;;  %v9042_v61 = vld [vmem:[#allocation2 + $0x1d8] sm:$0xff]  ;;  %v11593_v62 = vld [vmem:[#allocation228_spill] sm:$0xff] }
 0x5d8   : > { %11587 = vst [vmem:[#allocation222_spill] sm:$0xff] %v9017_v19  ;;  %4251 = vmatmul.f32.gmra.mxu3 %v9017_v19  ;;  %5056 = vmatpush.msra.mxu0 %v9032_v36  ;;  %v2656_v51 = vadd.f32 %v11592_v38, %v2406_v7  ;;  %v9052_v7 = vld [vmem:[#allocation7 + $0x348] sm:$0xff]  ;;  %v9054_v30 = vld [vmem:[#allocation2 + $0x1d0] sm:$0xff] }
 0x5d9   : > { %v9034_v32 = vmax.f32 %v2963_v24, 0.0  ;;  %v1658_v25 = vadd.f32 %v11593_v62, %v1408_v10  ;;  %v10883_v38 = vrot.slane %v9054_v30, 2  ;;  %v11597_v10 = vld [vmem:[#allocation151_spill] sm:$0xff]  ;;  %v11599_v62 = vld [vmem:[#allocation64_spill] sm:$0xff]  ;;  %v11632_v47 = vrot.slane %v9054_v30, 2 }
 0x5da   : > { %5057 = vmatpush.msra.mxu0 %v9039_v17  ;;  %v11641_v30 = vld [vmem:[#allocation63_spill] sm:$0xff] }
 0x5db   : > { %11590 = vst [vmem:[#allocation144_spill] sm:$0xff] %v9034_v32  ;;  %v4204_v58 = vpop.f32.mrf.mxu3  ;;  %4079 = vmatmul.f32.gmra.mxu2 %v9034_v32  ;;  %v3511_v24 = vrot.slane %v9034_v32, 1  ;;  %v3674_v49 = vrot.slane %v9034_v32, 2  ;;  %v1908_v59 = vadd.f32 %v11600_v63, %v1658_v25  ;;  %v11603_v25 = vld [vmem:[#allocation204_spill] sm:$0xff] }
 0x5dc   : > { %v9049_v56 = vadd.f32 %v4204_v58, %v4027_v23  ;;  %v2808_v1 = vpop.f32.mrf.mxu0  ;;  %v3868_v55 = vpop.f32.mrf.mxu1  ;;  %v11598_v58 = vld [vmem:[#allocation37_spill] sm:$0xff]  ;;  %5058 = vmatpush.msra.mxu0 %v9052_v7 }
 0x5dd   : > { %v2906_v19 = vadd.f32 %v2808_v1, %v2656_v51  ;;  %v9058_v8 = vsel %vm423_vm0, %v3509_v40, %v3511_v24  ;;  %v9061_v39 = vsel %vm605_vm1, %v3672_v45, %v3674_v49  ;;  %v1122_v23 = vadd.f32 %v11598_v58, %v11597_v10  ;;  %v11604_v10 = vld [vmem:[#allocation79_spill] sm:$0xff] }
 0x5de   : > { %11594 = vst [vmem:[#allocation30_spill] sm:$0xff] %v9049_v56  ;;  %v2407_v56 = vadd.f32 %v11599_v62, %v2157_v41  ;;  %v4032_v48 = vpop.f32.mrf.mxu2  ;;  %v11601_v40 = vrot.slane %v9042_v61, 2  ;;  %5059 = vmatpush.msra.mxu0 %v9067_v42  ;;  %v9082_v41 = vld [vmem:[#allocation7 + $0x338] sm:$0xff]  ;;  %v2158_v62 = vadd.f32 %v8288_v50, %v1908_v59 }
 0x5df   : > { %11595 = vst [vmem:[#allocation60_spill] sm:$0xff] %v9058_v8  ;;  %v2964_v51 = vadd.f32 %v9025_v21, %v2906_v19  ;;  %2855 = vmatmul.f32.gmra.mxu0 %v8334_v6  ;;  %3915 = vmatmul.f32.gmra.mxu1 %v9058_v8  ;;  %v4030_v19 = vadd.f32 %v4029_v18, %v3868_v55  ;;  %v9087_v6 = vld [vmem:[#allocation7 + $0x330] sm:$0xff]  ;;  %v11606_v50 = vld [vmem:[#allocation231_spill] sm:$0xff] }
 0x5e0   : > { %11596 = vst [vmem:[#allocation72_spill] sm:$0xff] %v9061_v39  ;;  %v9078_v45 = vsel %vm605_vm1, %v10883_v38, %v11601_v40  ;;  %4254 = vmatmul.f32.gmra.mxu3 %v9061_v39  ;;  %5060 = vmatpush.msra.mxu0 %v9082_v41  ;;  %v1409_v1 = vadd.f32 %v11603_v25, %v1122_v23  ;;  %v11607_v25 = vld [vmem:[#allocation155_spill] sm:$0xff] }
 0x5e1   : > { %v9084_v63 = vmax.f32 %v2964_v51, 0.0  ;;  %v2657_v58 = vadd.f32 %v11604_v10, %v2407_v56  ;;  %v9101_v56 = vld [vmem:[#allocation7 + $0x328] sm:$0xff] }
 0x5e2   : > { %5061 = vmatpush.msra.mxu0 %v9087_v6  ;;  %v1659_v59 = vadd.f32 %v11606_v50, %v1409_v1  ;;  %v11608_v10 = vld [vmem:[#allocation41_spill] sm:$0xff] }
 0x5e3   : > { %11602 = vst [vmem:[#allocation196_spill] sm:$0xff] %v9084_v63  ;;  %v4207_v40 = vpop.f32.mrf.mxu3  ;;  %6067 = vmatmul.msk.f32.gmra.mxu2 %vm3179_vm3, %v9084_v63  ;;  %v3374_v51 = vsel %vm3179_vm3, %v9084_v63, 0.0  ;;  %v1125_v34 = vadd.f32 %v11608_v10, %v11607_v25  ;;  %v11612_v63 = vld [vmem:[#allocation59_spill] sm:$0xff] }
 0x5e4   : > { %v9098_v18 = vadd.f32 %v4207_v40, %v4030_v19  ;;  %v2811_v55 = vpop.f32.mrf.mxu0  ;;  %v3871_v38 = vpop.f32.mrf.mxu1  ;;  %v3513_v39 = vrot.slane %v3374_v51, 1  ;;  %v3676_v8 = vrot.slane %v3374_v51, 2  ;;  %5062 = vmatpush.msra.mxu0 %v9101_v56  ;;  %v9113_v40 = vld [vmem:[#allocation7 + $0x320] sm:$0xff]  ;;  %v1909_v52 = vadd.f32 %v11612_v63, %v1659_v59  ;;  %v11614_v63 = vld [vmem:[#allocation210_spill] sm:$0xff] }
 0x5e5   : > { %v2907_v23 = vadd.f32 %v2811_v55, %v2657_v58  ;;  %v11611_v51 = vld [vmem:[#allocation68_spill] sm:$0xff]  ;;  %v4033_v58 = vadd.f32 %v4032_v48, %v3871_v38  ;;  %v1410_v55 = vadd.f32 %v11614_v63, %v1125_v34  ;;  %v9141_v34 = vld [vmem:[#allocation7 + $0x308] sm:$0xff] }
 0x5e6   : > { %11605 = vst [vmem:[#allocation71_spill] sm:$0xff] %v9098_v18  ;;  %v4035_v32 = vpop.f32.mrf.mxu2  ;;  %v9107_v43 = vsel %vm423_vm0, %v3511_v24, %v3513_v39  ;;  %v9110_v19 = vsel %vm605_vm1, %v3674_v49, %v3676_v8  ;;  %v2408_v18 = vadd.f32 %v11611_v51, %v2158_v62  ;;  %5063 = vmatpush.msra.mxu0 %v9113_v40  ;;  %v9122_v24 = vld [vmem:[#allocation7 + $0x318] sm:$0xff]  ;;  %v9127_v62 = vld [vmem:[#allocation7 + $0x310] sm:$0xff] }
 0x5e7   : > { %11609 = vst [vmem:[#allocation225_spill] sm:$0xff] %v9107_v43  ;;  %v2965_v1 = vadd.f32 %v9025_v21, %v2907_v23  ;;  %2858 = vmatmul.f32.gmra.mxu0 %v8345_v33  ;;  %3918 = vmatmul.f32.gmra.mxu1 %v9107_v43  ;;  %v11615_v33 = vld [vmem:[#allocation149_spill] sm:$0xff] }
 0x5e8   : > { %11610 = vst [vmem:[#allocation147_spill] sm:$0xff] %v9110_v19  ;;  %4257 = vmatmul.f32.gmra.mxu3 %v9110_v19  ;;  %5064 = vmatpush.msra.mxu0 %v9122_v24  ;;  %v2658_v50 = vadd.f32 %v8290_v5, %v2408_v18  ;;  %v2159_v59 = vadd.f32 %v11615_v33, %v1909_v52  ;;  %v4587_v5 = vld [vmem:[#allocation7 + $0x218] sm:$0xff]  ;;  %v11618_v52 = vld [vmem:[#allocation234_spill] sm:$0xff]  ;;  %v11620_v19 = vld [vmem:[#allocation45_spill] sm:$0xff] }
 0x5e9   : > { %v9124_v49 = vmax.f32 %v2965_v1, 0.0  ;;  %11617 = vst [vmem:[#allocation43_spill] sm:$0xff] %v9141_v34  ;;  %v1660_v18 = vadd.f32 %v11618_v52, %v1410_v55  ;;  %4612 = vmatpush.msrb.mxu2 %v4587_v5  ;;  %v11619_v33 = vld [vmem:[#allocation159_spill] sm:$0xff] }
 0x5ea   : > { %5065 = vmatpush.msra.mxu0 %v9127_v62  ;;  %v1128_v43 = vadd.f32 %v11620_v19, %v11619_v33  ;;  %v11628_v19 = vld [vmem:[#allocation213_spill] sm:$0xff] }
 0x5eb   : > { %11613 = vst [vmem:[#allocation33_spill] sm:$0xff] %v9124_v49  ;;  %v4210_v23 = vpop.f32.mrf.mxu3  ;;  %6068 = vmatmul.msk.f32.gmra.mxu2 %vm3120_vm2, %v9124_v49  ;;  %v3375_v25 = vsel %vm3120_vm2, %v9124_v49, 0.0  ;;  %v1910_v55 = vadd.f32 %v11625_v22, %v1660_v18  ;;  %v11630_v22 = vld [vmem:[#allocation153_spill] sm:$0xff] }
 0x5ec   : > { %v9138_v48 = vadd.f32 %v4210_v23, %v4033_v58  ;;  %v2814_v38 = vpop.f32.mrf.mxu0  ;;  %v3874_v10 = vpop.f32.mrf.mxu1  ;;  %v3515_v51 = vrot.slane %v3375_v25, 1  ;;  %v3678_v1 = vrot.slane %v3375_v25, 2  ;;  %5066 = vmatpush.msra.mxu0 %v9141_v34  ;;  %v9153_v25 = vld [vmem:[#allocation7 + $0x300] sm:$0xff]  ;;  %v1411_v5 = vadd.f32 %v11628_v19, %v1128_v43  ;;  %v11633_v43 = vld [vmem:[#allocation51_spill] sm:$0xff] }
 0x5ed   : > { %v2908_v63 = vadd.f32 %v2814_v38, %v2658_v50  ;;  %11623 = vst [vmem:[#allocation228_spill] sm:$0xff] %v9153_v25  ;;  %v11626_v38 = vld [vmem:[#allocation112_spill] sm:$0xff]  ;;  %v4036_v52 = vadd.f32 %v4035_v32, %v3874_v10  ;;  %v2160_v18 = vadd.f32 %v11630_v22, %v1910_v55  ;;  %v11634_v32 = vrot.slane %v11633_v43, 2 }
 0x5ee   : > { %11616 = vst [vmem:[#allocation55_spill] sm:$0xff] %v9138_v48  ;;  %v4038_v37 = vpop.f32.mrf.mxu2  ;;  %v9147_v58 = vsel %vm423_vm0, %v3513_v39, %v3515_v51  ;;  %v9150_v23 = vsel %vm605_vm1, %v3676_v8, %v3678_v1  ;;  %v11624_v48 = vld [vmem:[#allocation130_spill] sm:$0xff]  ;;  %5067 = vmatpush.msra.mxu0 %v9153_v25  ;;  %v4361_v39 = vld [vmem:[#allocation7 + $0x198] sm:$0xff]  ;;  %v11638_v22 = vld [vmem:[#allocation164_spill] sm:$0xff] }
 0x5ef   : > { %11621 = vst [vmem:[#allocation200_spill] sm:$0xff] %v9147_v58  ;;  %v2409_v49 = vadd.f32 %v11624_v48, %v2159_v59  ;;  %v2966_v50 = vadd.f32 %v9025_v21, %v2908_v63  ;;  %2861 = vmatmul.f32.gmra.mxu0 %v11626_v38  ;;  %3921 = vmatmul.f32.gmra.mxu1 %v9147_v58  ;;  %v11629_v59 = vld [vmem:[#allocation103_spill] sm:$0xff] }
 0x5f0   : > { %11622 = vst [vmem:[#allocation150_spill] sm:$0xff] %v9150_v23  ;;  %4260 = vmatmul.f32.gmra.mxu3 %v9150_v23  ;;  %4386 = vmatpush.msrb.mxu1 %v4361_v39  ;;  %v722_v10 = vsel %vm605_vm1, %v11634_v32, %v11632_v47  ;;  %v11644_v32 = vld [vmem:[#allocation157_spill] sm:$0xff] }
 0x5f1   : > { %v9162_v8 = vmax.f32 %v2966_v50, 0.0  ;;  %v2659_v48 = vadd.f32 %v11629_v59, %v2409_v49  ;;  %v11635_v49 = vld [vmem:[#allocation237_spill] sm:$0xff] }
 0x5f2   : > { %v1661_v39 = vadd.f32 %v11635_v49, %v1411_v5 }
 0x5f3   : > { %11627 = vst [vmem:[#allocation151_spill] sm:$0xff] %v9162_v8  ;;  %v4213_v63 = vpop.f32.mrf.mxu3  ;;  %4088 = vmatmul.f32.gmra.mxu2 %v9162_v8  ;;  %v3517_v33 = vrot.slane %v9162_v8, 1  ;;  %v3680_v38 = vrot.slane %v9162_v8, 2  ;;  %v11640_v8 = vld [vmem:[#allocation115_spill] sm:$0xff] }
 0x5f4   : > { %v9170_v23 = vadd.f32 %v4213_v63, %v4036_v52  ;;  %v2817_v50 = vpop.f32.mrf.mxu0  ;;  %v3877_v58 = vpop.f32.mrf.mxu1  ;;  %v11639_v52 = vld [vmem:[#allocation49_spill] sm:$0xff]  ;;  %v2410_v25 = vadd.f32 %v11640_v8, %v2160_v18  ;;  %v1911_v34 = vadd.f32 %v11641_v30, %v1661_v39 }
 0x5f5   : > { %v2909_v55 = vadd.f32 %v2817_v50, %v2659_v48  ;;  %v9179_v19 = vsel %vm423_vm0, %v3515_v51, %v3517_v33  ;;  %v9182_v59 = vsel %vm605_vm1, %v3678_v1, %v3680_v38  ;;  %v1131_v63 = vadd.f32 %v11639_v52, %v11638_v22  ;;  %v11642_v1 = vld [vmem:[#allocation217_spill] sm:$0xff]  ;;  %v11643_v48 = vld [vmem:[#allocation106_spill] sm:$0xff] }
 0x5f6   : > { %11631 = vst [vmem:[#allocation37_spill] sm:$0xff] %v9170_v23  ;;  %v4041_v23 = vpop.f32.mrf.mxu2  ;;  %v4039_v51 = vadd.f32 %v4038_v37, %v3877_v58  ;;  %v2660_v50 = vadd.f32 %v11643_v48, %v2410_v25  ;;  %v2161_v49 = vadd.f32 %v11644_v32, %v1911_v34  ;;  %v11648_v34 = vld [vmem:[#allocation53_spill] sm:$0xff]  ;;  %v11651_v32 = vld [vmem:[#allocation135_spill] sm:$0xff] }
 0x5f7   : > { %11636 = vst [vmem:[#allocation64_spill] sm:$0xff] %v9179_v19  ;;  %v2967_v43 = vadd.f32 %v9025_v21, %v2909_v55  ;;  %2864 = vmatmul.f32.gmra.mxu0 %v722_v10  ;;  %3924 = vmatmul.f32.gmra.mxu1 %v9179_v19  ;;  %v1412_v5 = vadd.f32 %v11642_v1, %v1131_v63  ;;  %v11646_v55 = vld [vmem:[#allocation238_spill] sm:$0xff] }
 0x5f8   : > { %11637 = vst [vmem:[#allocation76_spill] sm:$0xff] %v9182_v59  ;;  %4263 = vmatmul.f32.gmra.mxu3 %v9182_v59  ;;  %v11647_v63 = vld [vmem:[#allocation166_spill] sm:$0xff] }
 0x5f9   : > { %v9191_v47 = vmax.f32 %v2967_v43, 0.0  ;;  %v1662_v52 = vadd.f32 %v11646_v55, %v1412_v5  ;;  %v1134_v30 = vadd.f32 %v11648_v34, %v11647_v63  ;;  %v11655_v55 = vld [vmem:[#allocation162_spill] sm:$0xff]  ;;  %v11659_v34 = vrot.slane %v9042_v61, 2 }
 0x5fa   : > { %v11665_v61 = vld [vmem:[#allocation118_spill] sm:$0xff] }
 0x5fb   : > { %v4216_v22 = vpop.f32.mrf.mxu3  ;;  %6069 = vmatmul.msk.f32.gmra.mxu2 %vm3179_vm3, %v9191_v47  ;;  %v3377_v8 = vsel %vm3179_vm3, %v9191_v47, 0.0 }
 0x5fc   : > { %v9202_v18 = vadd.f32 %v4216_v22, %v4039_v51  ;;  %v2820_v10 = vpop.f32.mrf.mxu0  ;;  %v3880_v39 = vpop.f32.mrf.mxu1  ;;  %v3519_v37 = vrot.slane %v3377_v8, 1  ;;  %v3682_v58 = vrot.slane %v3377_v8, 2  ;;  %v2411_v51 = vadd.f32 %v11651_v32, %v2161_v49  ;;  %v11652_v22 = vld [vmem:[#allocation84_spill] sm:$0xff] }
 0x5fd   : > { %v2910_v25 = vadd.f32 %v2820_v10, %v2660_v50  ;;  %v4042_v50 = vadd.f32 %v4041_v23, %v3880_v39  ;;  %v11654_v10 = vld [vmem:[#allocation169_spill] sm:$0xff] }
 0x5fe   : > { %11645 = vst [vmem:[#allocation204_spill] sm:$0xff] %v9202_v18  ;;  %v4044_v43 = vpop.f32.mrf.mxu2  ;;  %v9208_v1 = vsel %vm423_vm0, %v3517_v33, %v3519_v37  ;;  %v9211_v48 = vsel %vm605_vm1, %v3680_v38, %v3682_v58  ;;  %v1912_v18 = vadd.f32 %v11652_v22, %v1662_v52  ;;  %v11653_v33 = vld [vmem:[#allocation221_spill] sm:$0xff]  ;;  %v2661_v38 = vadd.f32 %v11654_v10, %v2411_v51  ;;  %v4586_v51 = vld [vmem:[#allocation7 + $0x210] sm:$0xff]  ;;  %v11660_v22 = vld [vmem:[#allocation240_spill] sm:$0xff] }
 0x5ff   : > { %11649 = vst [vmem:[#allocation79_spill] sm:$0xff] %v9208_v1  ;;  %v2968_v59 = vadd.f32 %v9025_v21, %v2910_v25  ;;  %2867 = vmatmul.f32.gmra.mxu0 %v9078_v45  ;;  %3927 = vmatmul.f32.gmra.mxu1 %v9208_v1  ;;  %v1413_v8 = vadd.f32 %v11653_v33, %v1134_v30  ;;  %v11657_v23 = vld [vmem:[#allocation161_spill] sm:$0xff] }
 0x600   : > { %11650 = vst [vmem:[#allocation231_spill] sm:$0xff] %v9211_v48  ;;  %4266 = vmatmul.f32.gmra.mxu3 %v9211_v48  ;;  %v2162_v63 = vadd.f32 %v11655_v55, %v1912_v18  ;;  %v11658_v39 = vrot.slane %v11657_v23, 2  ;;  %4613 = vmatpush.msrb.mxu2 %v4586_v51  ;;  %v11661_v55 = vld [vmem:[#allocation170_spill] sm:$0xff]  ;;  %v11662_v48 = vld [vmem:[#allocation57_spill] sm:$0xff] }
 0x601   : > { %v9219_v5 = vmax.f32 %v2968_v59, 0.0  ;;  %v1663_v33 = vadd.f32 %v11660_v22, %v1413_v8  ;;  %v1137_v1 = vadd.f32 %v11662_v48, %v11661_v55  ;;  %v4360_v48 = vld [vmem:[#allocation7 + $0x190] sm:$0xff]  ;;  %v11669_v22 = vld [vmem:[#allocation99_spill] sm:$0xff] }
 0x602   : > { %v786_v30 = vsel %vm605_vm1, %v11659_v34, %v11658_v39  ;;  %v11666_v39 = vld [vmem:[#allocation67_spill] sm:$0xff]  ;;  %4387 = vmatpush.msrb.mxu1 %v4360_v48 }
 0x603   : > { %v4219_v49 = vpop.f32.mrf.mxu3  ;;  %6070 = vmatmul.msk.f32.gmra.mxu2 %vm3120_vm2, %v9219_v5  ;;  %v3378_v45 = vsel %vm3120_vm2, %v9219_v5, 0.0  ;;  %v1913_v34 = vadd.f32 %v11666_v39, %v1663_v33 }
 0x604   : > { %v9230_v52 = vadd.f32 %v4219_v49, %v4042_v50  ;;  %v2823_v59 = vpop.f32.mrf.mxu0  ;;  %v3883_v25 = vpop.f32.mrf.mxu1  ;;  %v3521_v18 = vrot.slane %v3378_v45, 1  ;;  %v3684_v32 = vrot.slane %v3378_v45, 2 }
 0x605   : > { %v2911_v10 = vadd.f32 %v2823_v59, %v2661_v38  ;;  %v11667_v38 = vld [vmem:[#allocation227_spill] sm:$0xff]  ;;  %v4045_v59 = vadd.f32 %v4044_v43, %v3883_v25  ;;  %v11674_v25 = vld [vmem:[#allocation173_spill] sm:$0xff] }
 0x606   : > { %11656 = vst [vmem:[#allocation155_spill] sm:$0xff] %v9230_v52  ;;  %v4047_v50 = vpop.f32.mrf.mxu2  ;;  %v9241_v49 = vsel %vm423_vm0, %v3519_v37, %v3521_v18  ;;  %v9244_v23 = vsel %vm605_vm1, %v3682_v58, %v3684_v32  ;;  %v2412_v52 = vadd.f32 %v11665_v61, %v2162_v63  ;;  %v1414_v37 = vadd.f32 %v11667_v38, %v1137_v1  ;;  %v11668_v58 = vld [vmem:[#allocation110_spill] sm:$0xff] }
 0x607   : > { %11663 = vst [vmem:[#allocation41_spill] sm:$0xff] %v9241_v49  ;;  %v2969_v45 = vadd.f32 %v9025_v21, %v2911_v10  ;;  %2870 = vmatmul.f32.gmra.mxu0 %v786_v30  ;;  %3930 = vmatmul.f32.gmra.mxu1 %v9241_v49  ;;  %v2163_v63 = vadd.f32 %v11669_v22, %v1913_v34  ;;  %v11675_v34 = vld [vmem:[#allocation61_spill] sm:$0xff]  ;;  %v11677_v49 = vld [vmem:[#allocation88_spill] sm:$0xff] }
 0x608   : > { %11664 = vst [vmem:[#allocation68_spill] sm:$0xff] %v9244_v23  ;;  %4269 = vmatmul.f32.gmra.mxu3 %v9244_v23  ;;  %v2662_v51 = vadd.f32 %v11668_v58, %v2412_v52  ;;  %v1140_v48 = vadd.f32 %v11675_v34, %v11674_v25  ;;  %v11676_v58 = vld [vmem:[#allocation139_spill] sm:$0xff] }
 0x609   : > { %v9251_v8 = vmax.f32 %v2969_v45, 0.0  ;;  %v11671_v45 = vld [vmem:[#allocation242_spill] sm:$0xff]  ;;  %v2413_v22 = vadd.f32 %v11676_v58, %v2163_v63 }
 0x60a   : > { %v1664_v23 = vadd.f32 %v11671_v45, %v1414_v37  ;;  %v11679_v37 = vld [vmem:[#allocation230_spill] sm:$0xff] }
 0x60b   : > { %v4222_v55 = vpop.f32.mrf.mxu3  ;;  %4097 = vmatmul.f32.gmra.mxu2 %v9251_v8  ;;  %v3523_v30 = vrot.slane %v9251_v8, 1  ;;  %v3686_v33 = vrot.slane %v9251_v8, 2  ;;  %v11681_v63 = vld [vmem:[#allocation102_spill] sm:$0xff] }
 0x60c   : > { %v9259_v10 = vadd.f32 %v4222_v55, %v4045_v59  ;;  %v2826_v61 = vpop.f32.mrf.mxu0  ;;  %v3886_v39 = vpop.f32.mrf.mxu1  ;;  %v1914_v59 = vadd.f32 %v11677_v49, %v1664_v23 }
 0x60d   : > { %v2912_v1 = vadd.f32 %v2826_v61, %v2662_v51  ;;  %v9263_v43 = vsel %vm423_vm0, %v3521_v18, %v3523_v30  ;;  %v9266_v52 = vsel %vm605_vm1, %v3684_v32, %v3686_v33  ;;  %v4048_v32 = vadd.f32 %v4047_v50, %v3886_v39  ;;  %v11680_v61 = vld [vmem:[#allocation167_spill] sm:$0xff] }
 0x60e   : > { %11670 = vst [vmem:[#allocation59_spill] sm:$0xff] %v9259_v10  ;;  %v4050_v38 = vpop.f32.mrf.mxu2  ;;  %v1415_v51 = vadd.f32 %v11679_v37, %v1140_v48  ;;  %v2663_v45 = vadd.f32 %v11680_v61, %v2413_v22  ;;  %v2164_v25 = vadd.f32 %v11681_v63, %v1914_v59  ;;  %v11683_v48 = vld [vmem:[#allocation244_spill] sm:$0xff]  ;;  %v11684_v37 = vld [vmem:[#allocation177_spill] sm:$0xff] }
 0x60f   : > { %11672 = vst [vmem:[#allocation210_spill] sm:$0xff] %v9263_v43  ;;  %v2970_v55 = vadd.f32 %v9025_v21, %v2912_v1  ;;  %3933 = vmatmul.f32.gmra.mxu1 %v9263_v43  ;;  %6110 = vmatmul.msk.f32.vlgmr.msra.gmra.mxu0 %vm3120_vm2, %v8478_v29  ;;  %v11685_v59 = vld [vmem:[#allocation65_spill] sm:$0xff]  ;;  %v11688_v43 = vld [vmem:[#allocation122_spill] sm:$0xff] }
 0x610   : > { %11673 = vst [vmem:[#allocation149_spill] sm:$0xff] %v9266_v52  ;;  %4272 = vmatmul.f32.gmra.mxu3 %v9266_v52  ;;  %v1143_v61 = vadd.f32 %v11685_v59, %v11684_v37  ;;  %v4585_v59 = vld [vmem:[#allocation7 + $0x208] sm:$0xff] }
 0x611   : > { %v9278_v18 = vmax.f32 %v2970_v55, 0.0  ;;  %v1665_v55 = vadd.f32 %v11683_v48, %v1415_v51  ;;  %v11693_v48 = vld [vmem:[#allocation179_spill] sm:$0xff]  ;;  %4614 = vmatpush.msrb.mxu2 %v4585_v59 }
 0x613   : > { %11678 = vst [vmem:[#allocation234_spill] sm:$0xff] %v9278_v18  ;;  %v4225_v49 = vpop.f32.mrf.mxu3  ;;  %6071 = vmatmul.msk.f32.gmra.mxu2 %vm3179_vm3, %v9278_v18  ;;  %v3380_v23 = vsel %vm3179_vm3, %v9278_v18, 0.0 }
 0x614   : > { %v9289_v1 = vadd.f32 %v4225_v49, %v4048_v32  ;;  %v2829_v34 = vpop.f32.mrf.mxu0  ;;  %v3889_v58 = vpop.f32.mrf.mxu1  ;;  %v3525_v50 = vrot.slane %v3380_v23, 1  ;;  %v3688_v39 = vrot.slane %v3380_v23, 2  ;;  %v2414_v32 = vadd.f32 %v11688_v43, %v2164_v25  ;;  %v11689_v49 = vld [vmem:[#allocation134_spill] sm:$0xff] }
 0x615   : > { %v2913_v22 = vadd.f32 %v2829_v34, %v2663_v45  ;;  %v4051_v45 = vadd.f32 %v4050_v38, %v3889_v58  ;;  %v11692_v34 = vld [vmem:[#allocation171_spill] sm:$0xff] }
 0x616   : > { %11682 = vst [vmem:[#allocation159_spill] sm:$0xff] %v9289_v1  ;;  %v4053_v63 = vpop.f32.mrf.mxu2  ;;  %v9295_v10 = vsel %vm423_vm0, %v3523_v30, %v3525_v50  ;;  %v9298_v52 = vsel %vm605_vm1, %v3686_v33, %v3688_v39  ;;  %v1915_v1 = vadd.f32 %v11689_v49, %v1665_v55  ;;  %v11691_v30 = vld [vmem:[#allocation233_spill] sm:$0xff]  ;;  %v2664_v33 = vadd.f32 %v11692_v34, %v2414_v32 }
 0x617   : > { %11686 = vst [vmem:[#allocation45_spill] sm:$0xff] %v9295_v10  ;;  %v2971_v19 = vadd.f32 %v9025_v21, %v2913_v22  ;;  %3936 = vmatmul.f32.gmra.mxu1 %v9295_v10  ;;  %5071 = vmatmul.f32.gmra.mxu0 %v8499_v44  ;;  %v1416_v23 = vadd.f32 %v11691_v30, %v1143_v61  ;;  %v11695_v61 = vld [vmem:[#allocation245_spill] sm:$0xff] }
 0x618   : > { %11687 = vst [vmem:[#allocation130_spill] sm:$0xff] %v9298_v52  ;;  %4275 = vmatmul.f32.gmra.mxu3 %v9298_v52  ;;  %v2165_v37 = vadd.f32 %v11693_v48, %v1915_v1  ;;  %v11696_v1 = vld [vmem:[#allocation180_spill] sm:$0xff]  ;;  %v11697_v30 = vld [vmem:[#allocation69_spill] sm:$0xff] }
 0x619   : > { %v9306_v51 = vmax.f32 %v2971_v19, 0.0  ;;  %v1666_v32 = vadd.f32 %v11695_v61, %v1416_v23  ;;  %v1146_v34 = vadd.f32 %v11697_v30, %v11696_v1 }
 0x61b   : > { %11690 = vst [vmem:[#allocation80_spill] sm:$0xff] %v9306_v51  ;;  %v4228_v43 = vpop.f32.mrf.mxu3  ;;  %6072 = vmatmul.msk.f32.gmra.mxu2 %vm3120_vm2, %v9306_v51  ;;  %v3381_v25 = vsel %vm3120_vm2, %v9306_v51, 0.0 }
 0x61c   : > { %v9317_v55 = vadd.f32 %v4228_v43, %v4051_v45  ;;  %v2832_v19 = vpop.f32.mrf.mxu0  ;;  %v3892_v22 = vpop.f32.mrf.mxu1  ;;  %v3527_v38 = vrot.slane %v3381_v25, 1  ;;  %v3690_v58 = vrot.slane %v3381_v25, 2  ;;  %v11700_v45 = vld [vmem:[#allocation143_spill] sm:$0xff] }
 0x61d   : > { %v2914_v49 = vadd.f32 %v2832_v19, %v2664_v33  ;;  %v2415_v43 = vadd.f32 %v11700_v45, %v2165_v37  ;;  %v11703_v33 = vld [vmem:[#allocation236_spill] sm:$0xff]  ;;  %v4054_v19 = vadd.f32 %v4053_v63, %v3892_v22  ;;  %v11704_v37 = vld [vmem:[#allocation105_spill] sm:$0xff] }
 0x61e   : > { %11694 = vst [vmem:[#allocation112_spill] sm:$0xff] %v9317_v55  ;;  %v4056_v48 = vpop.f32.mrf.mxu2  ;;  %v9323_v52 = vsel %vm423_vm0, %v3525_v50, %v3527_v38  ;;  %v9326_v10 = vsel %vm605_vm1, %v3688_v39, %v3690_v58  ;;  %v11701_v55 = vld [vmem:[#allocation75_spill] sm:$0xff]  ;;  %v4359_v50 = vld [vmem:[#allocation7 + $0x188] sm:$0xff]  ;;  %v1417_v39 = vadd.f32 %v11703_v33, %v1146_v34 }
 0x61f   : > { %11698 = vst [vmem:[#allocation213_spill] sm:$0xff] %v9323_v52  ;;  %v1916_v51 = vadd.f32 %v11701_v55, %v1666_v32  ;;  %v2972_v25 = vadd.f32 %v9025_v21, %v2914_v49  ;;  %3939 = vmatmul.f32.gmra.mxu1 %v9323_v52  ;;  %6111 = vmatmul.msk.f32.gmra.mxu0 %vm3179_vm3, %v8517_v9  ;;  %v11705_v55 = vld [vmem:[#allocation175_spill] sm:$0xff] }
 0x620   : > { %11699 = vst [vmem:[#allocation103_spill] sm:$0xff] %v9326_v10  ;;  %4278 = vmatmul.f32.gmra.mxu3 %v9326_v10  ;;  %4388 = vmatpush.msrb.mxu1 %v4359_v50  ;;  %v2665_v59 = vadd.f32 %v11704_v37, %v2415_v43  ;;  %v11707_v10 = vld [vmem:[#allocation22_spill] sm:$0xff]  ;;  %v11711_v43 = vld [vmem:[#allocation73_spill] sm:$0xff] }
 0x621   : > { %v9336_v23 = vmax.f32 %v2972_v25, 0.0  ;;  %v2166_v61 = vadd.f32 %v11705_v55, %v1916_v51  ;;  %v1667_v52 = vadd.f32 %v11707_v10, %v1417_v39  ;;  %v11710_v51 = vld [vmem:[#allocation183_spill] sm:$0xff]  ;;  %v11712_v37 = vld [vmem:[#allocation129_spill] sm:$0xff] }
 0x622   : > { %v1149_v50 = vadd.f32 %v11711_v43, %v11710_v51 }
 0x623   : > { %11702 = vst [vmem:[#allocation153_spill] sm:$0xff] %v9336_v23  ;;  %v4231_v32 = vpop.f32.mrf.mxu3  ;;  %4106 = vmatmul.f32.gmra.mxu2 %v9336_v23  ;;  %v3529_v49 = vrot.slane %v9336_v23, 1  ;;  %v3692_v1 = vrot.slane %v9336_v23, 2  ;;  %v2416_v55 = vadd.f32 %v11712_v37, %v2166_v61  ;;  %v11713_v23 = vld [vmem:[#allocation96_spill] sm:$0xff]  ;;  %v11717_v61 = vld [vmem:[#allocation182_spill] sm:$0xff] }
 0x624   : > { %v9344_v30 = vadd.f32 %v4231_v32, %v4054_v19  ;;  %v2835_v45 = vpop.f32.mrf.mxu0  ;;  %v3895_v25 = vpop.f32.mrf.mxu1  ;;  %v1917_v19 = vadd.f32 %v11713_v23, %v1667_v52 }
 0x625   : > { %v2915_v34 = vadd.f32 %v2835_v45, %v2665_v59  ;;  %v9348_v63 = vsel %vm423_vm0, %v3527_v38, %v3529_v49  ;;  %v9351_v22 = vsel %vm605_vm1, %v3690_v58, %v3692_v1  ;;  %v4057_v38 = vadd.f32 %v4056_v48, %v3895_v25  ;;  %v11715_v58 = vld [vmem:[#allocation239_spill] sm:$0xff]  ;;  %v11716_v59 = vld [vmem:[#allocation117_spill] sm:$0xff] }
 0x626   : > { %11706 = vst [vmem:[#allocation51_spill] sm:$0xff] %v9344_v30  ;;  %v4059_v33 = vpop.f32.mrf.mxu2  ;;  %v1418_v39 = vadd.f32 %v11715_v58, %v1149_v50  ;;  %v2666_v45 = vadd.f32 %v11716_v59, %v2416_v55  ;;  %v2167_v51 = vadd.f32 %v11717_v61, %v1917_v19  ;;  %v11719_v50 = vld [vmem:[#allocation23_spill] sm:$0xff]  ;;  %v11721_v19 = vld [vmem:[#allocation77_spill] sm:$0xff] }
 0x627   : > { %11708 = vst [vmem:[#allocation237_spill] sm:$0xff] %v9348_v63  ;;  %v2973_v32 = vadd.f32 %v9025_v21, %v2915_v34  ;;  %3942 = vmatmul.f32.gmra.mxu1 %v9348_v63  ;;  %6112 = vmatmul.msk.f32.gmra.mxu0 %vm3120_vm2, %v8540_v15  ;;  %v11720_v58 = vld [vmem:[#allocation187_spill] sm:$0xff]  ;;  %v11724_v63 = vld [vmem:[#allocation146_spill] sm:$0xff] }
 0x628   : > { %11709 = vst [vmem:[#allocation164_spill] sm:$0xff] %v9351_v22  ;;  %4281 = vmatmul.f32.gmra.mxu3 %v9351_v22  ;;  %v1152_v59 = vadd.f32 %v11721_v19, %v11720_v58 }
 0x629   : > { %v9363_v10 = vmax.f32 %v2973_v32, 0.0  ;;  %v1668_v32 = vadd.f32 %v11719_v50, %v1418_v39  ;;  %v4825_v39 = vld [vmem:[#allocation7 + $0x2f8] sm:$0xff]  ;;  %v11728_v50 = vld [vmem:[#allocation121_spill] sm:$0xff] }
 0x62a   : > { %4826 = vmatpush.msra.mxu3 %v4825_v39  ;;  %v11731_v39 = vld [vmem:[#allocation24_spill] sm:$0xff] }
 0x62b   : > { %11714 = vst [vmem:[#allocation49_spill] sm:$0xff] %v9363_v10  ;;  %v4234_v52 = vpop.f32.mrf.mxu3  ;;  %6073 = vmatmul.msk.f32.gmra.mxu2 %vm3179_vm3, %v9363_v10  ;;  %v3383_v23 = vsel %vm3179_vm3, %v9363_v10, 0.0 }
 0x62c   : > { %v9374_v34 = vadd.f32 %v4234_v52, %v4057_v38  ;;  %v2838_v43 = vpop.f32.mrf.mxu0  ;;  %v3898_v37 = vpop.f32.mrf.mxu1  ;;  %v3531_v48 = vrot.slane %v3383_v23, 1  ;;  %v3694_v25 = vrot.slane %v3383_v23, 2  ;;  %v2417_v38 = vadd.f32 %v11724_v63, %v2167_v51  ;;  %v11725_v52 = vld [vmem:[#allocation142_spill] sm:$0xff] }
 0x62d   : > { %v2916_v55 = vadd.f32 %v2838_v43, %v2666_v45  ;;  %v4824_v23 = vld [vmem:[#allocation7 + $0x2f0] sm:$0xff] }
 0x62e   : > { %11718 = vst [vmem:[#allocation115_spill] sm:$0xff] %v9374_v34  ;;  %v4062_v61 = vpop.f32.mrf.mxu2  ;;  %v9380_v30 = vsel %vm423_vm0, %v3529_v49, %v3531_v48  ;;  %v9383_v22 = vsel %vm605_vm1, %v3692_v1, %v3694_v25  ;;  %v1918_v34 = vadd.f32 %v11725_v52, %v1668_v32  ;;  %v4060_v49 = vadd.f32 %v4059_v33, %v3898_v37  ;;  %v11727_v1 = vld [vmem:[#allocation241_spill] sm:$0xff]  ;;  %v11729_v51 = vld [vmem:[#allocation186_spill] sm:$0xff]  ;;  %v4584_v52 = vld [vmem:[#allocation7 + $0x200] sm:$0xff] }
 0x62f   : > { %11722 = vst [vmem:[#allocation63_spill] sm:$0xff] %v9380_v30  ;;  %v2974_v10 = vadd.f32 %v9025_v21, %v2916_v55  ;;  %3945 = vmatmul.f32.gmra.mxu1 %v9380_v30  ;;  %5080 = vmatmul.f32.gmra.mxu0 %v8563_v57  ;;  %v1419_v43 = vadd.f32 %v11727_v1, %v1152_v59 }
 0x630   : > { %11723 = vst [vmem:[#allocation217_spill] sm:$0xff] %v9383_v22  ;;  %4284 = vmatmul.f32.gmra.mxu3 %v9383_v22  ;;  %v2667_v63 = vadd.f32 %v11728_v50, %v2417_v38  ;;  %v2168_v32 = vadd.f32 %v11729_v51, %v1918_v34  ;;  %v4823_v38 = vld [vmem:[#allocation7 + $0x2e8] sm:$0xff]  ;;  %4615 = vmatpush.msrb.mxu2 %v4584_v52  ;;  %v11732_v50 = vld [vmem:[#allocation190_spill] sm:$0xff] }
 0x631   : > { %v9391_v45 = vmax.f32 %v2974_v10, 0.0  ;;  %4827 = vmatpush.msra.mxu3 %v4824_v23  ;;  %v1669_v34 = vadd.f32 %v11731_v39, %v1419_v43  ;;  %v11733_v51 = vld [vmem:[#allocation81_spill] sm:$0xff]  ;;  %v4822_v23 = vld [vmem:[#allocation7 + $0x2e0] sm:$0xff] }
 0x632   : > { %v1155_v22 = vadd.f32 %v11733_v51, %v11732_v50 }
 0x633   : > { %11726 = vst [vmem:[#allocation106_spill] sm:$0xff] %v9391_v45  ;;  %v4237_v58 = vpop.f32.mrf.mxu3  ;;  %6074 = vmatmul.msk.f32.gmra.mxu2 %vm3120_vm2, %v9391_v45  ;;  %v3384_v55 = vsel %vm3120_vm2, %v9391_v45, 0.0  ;;  %4828 = vmatpush.msra.mxu3 %v4823_v38  ;;  %v11740_v38 = vld [vmem:[#allocation125_spill] sm:$0xff] }
 0x634   : > { %v9402_v10 = vadd.f32 %v4237_v58, %v4060_v49  ;;  %v2841_v33 = vpop.f32.mrf.mxu0  ;;  %v3901_v37 = vpop.f32.mrf.mxu1  ;;  %v3533_v19 = vrot.slane %v3384_v55, 1  ;;  %v3696_v59 = vrot.slane %v3384_v55, 2  ;;  %v11736_v58 = vld [vmem:[#allocation92_spill] sm:$0xff] }
 0x635   : > { %v2917_v1 = vadd.f32 %v2841_v33, %v2667_v63  ;;  %v2418_v55 = vadd.f32 %v11736_v58, %v2168_v32  ;;  %4829 = vmatpush.msra.mxu3 %v4822_v23  ;;  %v11739_v33 = vld [vmem:[#allocation243_spill] sm:$0xff]  ;;  %v4063_v32 = vadd.f32 %v4062_v61, %v3901_v37 }
 0x636   : > { %11730 = vst [vmem:[#allocation157_spill] sm:$0xff] %v9402_v10  ;;  %v4065_v30 = vpop.f32.mrf.mxu2  ;;  %v9408_v45 = vsel %vm423_vm0, %v3531_v48, %v3533_v19  ;;  %v9411_v49 = vsel %vm605_vm1, %v3694_v25, %v3696_v59  ;;  %v11737_v10 = vld [vmem:[#allocation158_spill] sm:$0xff]  ;;  %v4821_v48 = vld [vmem:[#allocation7 + $0x2d8] sm:$0xff]  ;;  %v4358_v25 = vld [vmem:[#allocation7 + $0x180] sm:$0xff]  ;;  %v1420_v52 = vadd.f32 %v11739_v33, %v1155_v22 }
 0x637   : > { %11734 = vst [vmem:[#allocation238_spill] sm:$0xff] %v9408_v45  ;;  %v1919_v18 = vadd.f32 %v11737_v10, %v1669_v34  ;;  %v2975_v43 = vadd.f32 %v9025_v21, %v2917_v1  ;;  %3948 = vmatmul.f32.gmra.mxu1 %v9408_v45  ;;  %6113 = vmatmul.msk.f32.gmra.mxu0 %vm3179_vm3, %v8579_v14  ;;  %v4820_v10 = vld [vmem:[#allocation7 + $0x2d0] sm:$0xff]  ;;  %v11741_v34 = vld [vmem:[#allocation128_spill] sm:$0xff]  ;;  %v11743_v22 = vld [vmem:[#allocation249_spill] sm:$0xff] }
 0x638   : > { %11735 = vst [vmem:[#allocation166_spill] sm:$0xff] %v9411_v49  ;;  %4287 = vmatmul.f32.gmra.mxu3 %v9411_v49  ;;  %4389 = vmatpush.msrb.mxu1 %v4358_v25  ;;  %v2668_v39 = vadd.f32 %v11740_v38, %v2418_v55  ;;  %v1670_v61 = vadd.f32 %v11743_v22, %v1420_v52  ;;  %v11745_v55 = vld [vmem:[#allocation194_spill] sm:$0xff]  ;;  %v11746_v33 = vld [vmem:[#allocation85_spill] sm:$0xff] }
 0x639   : > { %v9421_v63 = vmax.f32 %v2975_v43, 0.0  ;;  %v2169_v1 = vadd.f32 %v11741_v34, %v1919_v18  ;;  %4830 = vmatpush.msra.mxu3 %v4821_v48  ;;  %v1158_v38 = vadd.f32 %v11746_v33, %v11745_v55  ;;  %v4819_v45 = vld [vmem:[#allocation7 + $0x2c8] sm:$0xff]  ;;  %v11747_v48 = vld [vmem:[#allocation138_spill] sm:$0xff] }
 0x63a   : > { %v11751_v33 = vld [vmem:[#allocation26_spill] sm:$0xff] }
 0x63b   : > { %11738 = vst [vmem:[#allocation53_spill] sm:$0xff] %v9421_v63  ;;  %v4240_v50 = vpop.f32.mrf.mxu3  ;;  %4115 = vmatmul.f32.gmra.mxu2 %v9421_v63  ;;  %v3535_v51 = vrot.slane %v9421_v63, 1  ;;  %v3698_v58 = vrot.slane %v9421_v63, 2  ;;  %4831 = vmatpush.msra.mxu3 %v4820_v10  ;;  %v4817_v10 = vld [vmem:[#allocation7 + $0x2b8] sm:$0xff] }
 0x63c   : > { %v9429_v43 = vadd.f32 %v4240_v50, %v4063_v32  ;;  %v2844_v23 = vpop.f32.mrf.mxu0  ;;  %v3904_v49 = vpop.f32.mrf.mxu1  ;;  %v2419_v32 = vadd.f32 %v11747_v48, %v2169_v1  ;;  %v11748_v50 = vld [vmem:[#allocation163_spill] sm:$0xff] }
 0x63d   : > { %v2918_v37 = vadd.f32 %v2844_v23, %v2668_v39  ;;  %v9433_v25 = vsel %vm423_vm0, %v3533_v19, %v3535_v51  ;;  %v9436_v18 = vsel %vm605_vm1, %v3696_v59, %v3698_v58  ;;  %v4818_v19 = vld [vmem:[#allocation7 + $0x2c0] sm:$0xff]  ;;  %4832 = vmatpush.msra.mxu3 %v4819_v45  ;;  %v4066_v52 = vadd.f32 %v4065_v30, %v3904_v49  ;;  %v11749_v39 = vld [vmem:[#allocation21_spill] sm:$0xff] }
 0x63e   : > { %11742 = vst [vmem:[#allocation135_spill] sm:$0xff] %v9429_v43  ;;  %v4068_v34 = vpop.f32.mrf.mxu2  ;;  %v1920_v43 = vadd.f32 %v11748_v50, %v1670_v61  ;;  %v1421_v1 = vadd.f32 %v11749_v39, %v1158_v38  ;;  %v2669_v23 = vadd.f32 %v8423_v16, %v2419_v32 }
 0x63f   : > { %11744 = vst [vmem:[#allocation84_spill] sm:$0xff] %v9436_v18  ;;  %v2976_v63 = vadd.f32 %v9025_v21, %v2918_v37  ;;  %3951 = vmatmul.f32.gmra.mxu1 %v9433_v25  ;;  %6114 = vmatmul.msk.f32.gmra.mxu0 %vm3120_vm2, %v8598_v3 }
 0x640   : > { %4290 = vmatmul.f32.gmra.mxu3 %v9436_v18  ;;  %v2170_v22 = vadd.f32 %v8439_v31, %v1920_v43  ;;  %v1671_v16 = vadd.f32 %v11751_v33, %v1421_v1  ;;  %v11752_v31 = vld [vmem:[#allocation198_spill] sm:$0xff]  ;;  %v11753_v43 = vld [vmem:[#allocation89_spill] sm:$0xff] }
 0x641   : > { %v9448_v59 = vmax.f32 %v2976_v63, 0.0  ;;  %4833 = vmatpush.msra.mxu3 %v4818_v19  ;;  %v1161_v48 = vadd.f32 %v11753_v43, %v11752_v31  ;;  %v4816_v19 = vld [vmem:[#allocation7 + $0x2b0] sm:$0xff] }
 0x643   : > { %v4243_v61 = vpop.f32.mrf.mxu3  ;;  %6075 = vmatmul.msk.f32.gmra.mxu2 %vm3179_vm3, %v9448_v59  ;;  %v3386_v37 = vsel %vm3179_vm3, %v9448_v59, 0.0  ;;  %4834 = vmatpush.msra.mxu3 %v4817_v10  ;;  %v4815_v10 = vld [vmem:[#allocation7 + $0x2a8] sm:$0xff] }
 0x644   : > { %v9459_v63 = vadd.f32 %v4243_v61, %v4066_v52  ;;  %v2847_v30 = vpop.f32.mrf.mxu0  ;;  %v3907_v45 = vpop.f32.mrf.mxu1  ;;  %v3537_v49 = vrot.slane %v3386_v37, 1  ;;  %v3700_v55 = vrot.slane %v3386_v37, 2  ;;  %v11754_v52 = vld [vmem:[#allocation154_spill] sm:$0xff] }
 0x645   : > { %v2919_v38 = vadd.f32 %v2847_v30, %v2669_v23  ;;  %v2420_v61 = vadd.f32 %v11754_v52, %v2170_v22  ;;  %4835 = vmatpush.msra.mxu3 %v4816_v19  ;;  %v11756_v23 = vld [vmem:[#allocation246_spill] sm:$0xff] }
 0x646   : > { %11750 = vst [vmem:[#allocation221_spill] sm:$0xff] %v9459_v63  ;;  %v4071_v32 = vpop.f32.mrf.mxu2  ;;  %v9465_v50 = vsel %vm423_vm0, %v3535_v51, %v3537_v49  ;;  %v9468_v39 = vsel %vm605_vm1, %v3698_v58, %v3700_v55  ;;  %v11755_v63 = vld [vmem:[#allocation165_spill] sm:$0xff]  ;;  %v4069_v51 = vadd.f32 %v4068_v34, %v3907_v45  ;;  %v4814_v58 = vld [vmem:[#allocation7 + $0x2a0] sm:$0xff]  ;;  %v1422_v30 = vadd.f32 %v11756_v23, %v1161_v48  ;;  %v5503_v48 = vld [vmem:[#allocation7 + $0x478] sm:$0xff] }
 0x647   : > { %v1921_v18 = vadd.f32 %v11755_v63, %v1671_v16  ;;  %v2977_v37 = vadd.f32 %v9025_v21, %v2919_v38  ;;  %3954 = vmatmul.f32.gmra.mxu1 %v9465_v50  ;;  %5089 = vmatmul.f32.gmra.mxu0 %v8617_v12  ;;  %v2670_v22 = vadd.f32 %v8448_v54, %v2420_v61  ;;  %v11757_v54 = vld [vmem:[#allocation27_spill] sm:$0xff]  ;;  %v11760_v23 = vld [vmem:[#allocation108_spill] sm:$0xff] }
 0x648   : > { %4293 = vmatmul.f32.gmra.mxu3 %v9468_v39  ;;  %v1672_v19 = vadd.f32 %v11757_v54, %v1422_v30  ;;  %5504 = vmatpush.msra.mxu2 %v5503_v48 }
 0x649   : > { %v9476_v1 = vmax.f32 %v2977_v37, 0.0  ;;  %v2171_v63 = vadd.f32 %v8470_v13, %v1921_v18  ;;  %4836 = vmatpush.msra.mxu3 %v4815_v10  ;;  %v4813_v37 = vld [vmem:[#allocation7 + $0x298] sm:$0xff]  ;;  %v11759_v10 = vld [vmem:[#allocation100_spill] sm:$0xff] }
 0x64b   : > { %v4246_v33 = vpop.f32.mrf.mxu3  ;;  %6076 = vmatmul.msk.f32.gmra.mxu2 %vm3120_vm2, %v9476_v1  ;;  %v3387_v16 = vsel %vm3120_vm2, %v9476_v1, 0.0  ;;  %4837 = vmatpush.msra.mxu3 %v4814_v58 }
 0x64c   : > { %v9487_v38 = vadd.f32 %v4246_v33, %v4069_v51  ;;  %v2850_v34 = vpop.f32.mrf.mxu0  ;;  %v3910_v45 = vpop.f32.mrf.mxu1  ;;  %v3539_v31 = vrot.slane %v3387_v16, 1  ;;  %v3702_v43 = vrot.slane %v3387_v16, 2  ;;  %v2421_v51 = vadd.f32 %v11759_v10, %v2171_v63 }
 0x64d   : > { %v2920_v13 = vadd.f32 %v2850_v34, %v2670_v22  ;;  %v1922_v33 = vadd.f32 %v11760_v23, %v1672_v19  ;;  %4838 = vmatpush.msra.mxu3 %v4813_v37  ;;  %v4072_v30 = vadd.f32 %v4071_v32, %v3910_v45  ;;  %v4811_v22 = vld [vmem:[#allocation7 + $0x288] sm:$0xff]  ;;  %v4810_v45 = vld [vmem:[#allocation7 + $0x280] sm:$0xff] }
 0x64e   : > { %v4074_v18 = vpop.f32.mrf.mxu2  ;;  %v9491_v52 = vsel %vm423_vm0, %v3537_v49, %v3539_v31  ;;  %v9494_v61 = vsel %vm605_vm1, %v3700_v55, %v3702_v43  ;;  %v4812_v49 = vld [vmem:[#allocation7 + $0x290] sm:$0xff]  ;;  %v5277_v55 = vld [vmem:[#allocation7 + $0x3f8] sm:$0xff]  ;;  %v2671_v63 = vadd.f32 %v8476_v53, %v2421_v51 }
 0x64f   : > { %11758 = vst [vmem:[#allocation169_spill] sm:$0xff] %v9491_v52  ;;  %v2978_v16 = vadd.f32 %v9025_v21, %v2920_v13  ;;  %3957 = vmatmul.f32.gmra.mxu1 %v9491_v52  ;;  %6115 = vmatmul.msk.f32.gmra.mxu0 %vm3179_vm3, %v8633_v2  ;;  %v2172_v34 = vadd.f32 %v8497_v60, %v1922_v33  ;;  %v11761_v51 = vld [vmem:[#allocation83_spill] sm:$0xff] }
 0x650   : > { %4296 = vmatmul.f32.gmra.mxu3 %v9494_v61  ;;  %5278 = vmatpush.msra.mxu1 %v5277_v55 }
 0x651   : > { %v9504_v58 = vmax.f32 %v2978_v16, 0.0  ;;  %4839 = vmatpush.msra.mxu3 %v4812_v49  ;;  %v2422_v33 = vadd.f32 %v11761_v51, %v2172_v34  ;;  %v11762_v49 = vld [vmem:[#allocation205_spill] sm:$0xff] }
 0x653   : > { %v4249_v48 = vpop.f32.mrf.mxu3  ;;  %4124 = vmatmul.f32.gmra.mxu2 %v9504_v58  ;;  %v3541_v54 = vrot.slane %v9504_v58, 1  ;;  %v3704_v19 = vrot.slane %v9504_v58, 2  ;;  %4840 = vmatpush.msra.mxu3 %v4811_v22  ;;  %v2672_v55 = vadd.f32 %v11762_v49, %v2422_v33  ;;  %v11763_v49 = vld [vmem:[#allocation133_spill] sm:$0xff] }
 0x654   : > { %v9511_v13 = vadd.f32 %v4249_v48, %v4072_v30  ;;  %v2853_v10 = vpop.f32.mrf.mxu0  ;;  %v3913_v37 = vpop.f32.mrf.mxu1 }
 0x655   : > { %v2921_v23 = vadd.f32 %v2853_v10, %v2671_v63  ;;  %v9514_v32 = vsel %vm423_vm0, %v3539_v31, %v3541_v54  ;;  %v9517_v53 = vsel %vm605_vm1, %v3702_v43, %v3704_v19  ;;  %4841 = vmatpush.msra.mxu3 %v4810_v45  ;;  %v4075_v43 = vadd.f32 %v4074_v18, %v3913_v37  ;;  %v6361_v18 = vld [vmem:[#allocation7 + $0x370] sm:$0xff] }
 0x656   : > { %v4077_v60 = vpop.f32.mrf.mxu2 }
 0x657   : > { %v2979_v16 = vadd.f32 %v9025_v21, %v2921_v23  ;;  %3960 = vmatmul.f32.gmra.mxu1 %v9514_v32  ;;  %6116 = vmatmul.msk.f32.gmra.mxu0 %vm3120_vm2, %v8652_v4 }
 0x658   : > { %4299 = vmatmul.f32.gmra.mxu3 %v9517_v53 }
 0x659   : > { %v9526_v31 = vmax.f32 %v2979_v16, 0.0  ;;  %6177 = vmatpush.msrb.mxu3 %v8990_v11 }
 0x65b   : > { %v4252_v30 = vpop.f32.mrf.mxu3  ;;  %6077 = vmatmul.msk.f32.gmra.mxu2 %vm3179_vm3, %v9526_v31  ;;  %v3389_v22 = vsel %vm3179_vm3, %v9526_v31, 0.0  ;;  %6178 = vmatpush.msrb.mxu3 %v6361_v18  ;;  %v11764_v18 = vld [vmem:[#allocation120_spill] sm:$0xff] }
 0x65c   : > { %v9536_v63 = vadd.f32 %v4252_v30, %v4075_v43  ;;  %v2856_v34 = vpop.f32.mrf.mxu0  ;;  %v3916_v48 = vpop.f32.mrf.mxu1  ;;  %v3543_v10 = vrot.slane %v3389_v22, 1  ;;  %v3706_v23 = vrot.slane %v3389_v22, 2 }
 0x65d   : > { %v2922_v11 = vadd.f32 %v2856_v34, %v2672_v55  ;;  %6179 = vmatpush.msrb.mxu3 %v9007_v27  ;;  %v4078_v43 = vadd.f32 %v4077_v60, %v3916_v48  ;;  %v5502_v60 = vld [vmem:[#allocation7 + $0x470] sm:$0xff] }
 0x65e   : > { %v4080_v37 = vpop.f32.mrf.mxu2  ;;  %v9539_v45 = vsel %vm423_vm0, %v3541_v54, %v3543_v10  ;;  %v9542_v51 = vsel %vm605_vm1, %v3704_v19, %v3706_v23  ;;  %5505 = vmatpush.msra.mxu2 %v5502_v60 }
 0x65f   : > { %v2980_v33 = vadd.f32 %v9025_v21, %v2922_v11  ;;  %3963 = vmatmul.f32.gmra.mxu1 %v9539_v45  ;;  %5098 = vmatmul.f32.gmra.mxu0 %v8673_v28 }
 0x660   : > { %4302 = vmatmul.f32.gmra.mxu3 %v9542_v51 }
 0x661   : > { %v9549_v16 = vmax.f32 %v2980_v33, 0.0  ;;  %6180 = vmatpush.msrb.mxu3 %v9019_v35 }
 0x663   : > { %v4255_v54 = vpop.f32.mrf.mxu3  ;;  %4616 = vmatmul.f32.vlgmr.msrb.gmra.mxu2 %v11763_v49  ;;  %v9556_v27 = vsel %vm3120_vm2, %v9549_v16, 0.0  ;;  %6181 = vmatpush.msrb.mxu3 %v9032_v36  ;;  %v11767_v49 = vld [vmem:[#allocation141_spill] sm:$0xff] }
 0x664   : > { %v9559_v21 = vadd.f32 %v4255_v54, %v4078_v43  ;;  %v9561_v19 = vpop.f32.mrf.mxu0  ;;  %v3919_v55 = vpop.f32.mrf.mxu1  ;;  %v10969_v30 = vrot.slane %v9556_v27, 1  ;;  %v10968_v35 = vrot.slane %v9556_v27, 2  ;;  %v11765_v54 = vld [vmem:[#allocation189_spill] sm:$0xff] }
 0x665   : > { %6182 = vmatpush.msrb.mxu3 %v9039_v17  ;;  %v5276_v17 = vld [vmem:[#allocation7 + $0x3f0] sm:$0xff]  ;;  %v4081_v48 = vadd.f32 %v4080_v37, %v3919_v55 }
 0x666   : > { %v4083_v22 = vpop.f32.mrf.mxu2  ;;  %v9569_v34 = vsel %vm423_vm0, %v3543_v10, %v10969_v30  ;;  %v9574_v36 = vsel %vm605_vm1, %v3706_v23, %v10968_v35  ;;  %5279 = vmatpush.msra.mxu1 %v5276_v17  ;;  %v11787_v30 = vld [vmem:[#allocation36_spill] sm:$0xff] }
 0x667   : > { %3966 = vmatmul.f32.gmra.mxu1 %v9569_v34  ;;  %6117 = vmatmul.msk.f32.gmra.mxu0 %vm3179_vm3, %v8691_v20 }
 0x668   : > { %4305 = vmatmul.f32.gmra.mxu3 %v9574_v36 }
 0x669   : > { %6183 = vmatpush.msrb.mxu3 %v9052_v7  ;;  %v11766_v7 = vld [vmem:[#allocation197_spill] sm:$0xff] }
 0x66b   : > { %v4258_v10 = vpop.f32.mrf.mxu3  ;;  %4619 = vmatmul.f32.gmra.mxu2 %v11764_v18  ;;  %6184 = vmatpush.msrb.mxu3 %v9067_v42  ;;  %v11771_v18 = vld [vmem:[#allocation201_spill] sm:$0xff] }
 0x66c   : > { %v9584_v23 = vadd.f32 %v4258_v10, %v4081_v48  ;;  %v9586_v11 = vpop.f32.mrf.mxu0  ;;  %v3922_v33 = vpop.f32.mrf.mxu1  ;;  %v11769_v48 = vld [vmem:[#allocation193_spill] sm:$0xff]  ;;  %v11770_v10 = vld [vmem:[#allocation278_spill] sm:$0xff] }
 0x66d   : > { %6185 = vmatpush.msrb.mxu3 %v9082_v41  ;;  %v4084_v42 = vadd.f32 %v4083_v22, %v3922_v33  ;;  %v11772_v33 = vld [vmem:[#allocation145_spill] sm:$0xff] }
 0x66e   : > { %v4086_v43 = vpop.f32.mrf.mxu2 }
 0x66f   : > { %6078 = vmatmul.msk.f32.vlgmr.msrb.gmra.mxu1 %vm3120_vm2, %v11765_v54  ;;  %6118 = vmatmul.msk.f32.gmra.mxu0 %vm3120_vm2, %v8712_v46 }
 0x670   : > { %4842 = vmatmul.f32.vlgmr.msra.gmra.mxu3 %v11766_v7 }
 0x671   : > { %6186 = vmatpush.msrb.mxu3 %v9087_v6 }
 0x673   : > { %v4261_v37 = vpop.f32.mrf.mxu3  ;;  %4622 = vmatmul.f32.gmra.mxu2 %v11767_v49  ;;  %6187 = vmatpush.msrb.mxu3 %v9101_v56  ;;  %v11775_v49 = vld [vmem:[#allocation137_spill] sm:$0xff] }
 0x674   : > { %v9599_v41 = vadd.f32 %v4261_v37, %v4084_v42  ;;  %v2865_v55 = vpop.f32.mrf.mxu0  ;;  %v3925_v60 = vpop.f32.mrf.mxu1  ;;  %v11774_v42 = vld [vmem:[#allocation43_spill] sm:$0xff] }
 0x675   : > { %6188 = vmatpush.msrb.mxu3 %v9113_v40  ;;  %v4087_v6 = vadd.f32 %v4086_v43, %v3925_v60  ;;  %v5501_v40 = vld [vmem:[#allocation7 + $0x468] sm:$0xff]  ;;  %v11777_v43 = vld [vmem:[#allocation168_spill] sm:$0xff] }
 0x676   : > { %11768 = vst [vmem:[#allocation162_spill] sm:$0xff] %v9599_v41  ;;  %v4089_v17 = vpop.f32.mrf.mxu2  ;;  %5506 = vmatpush.msra.mxu2 %v5501_v40  ;;  %v11778_v55 = vld [vmem:[#allocation228_spill] sm:$0xff]  ;;  %v11844_v41 = vld [vmem:[#allocation151_spill] sm:$0xff] }
 0x677   : > { %4393 = vmatmul.f32.gmra.mxu1 %v11769_v48  ;;  %5107 = vmatmul.f32.gmra.mxu0 %v11770_v10 }
 0x678   : > { %4845 = vmatmul.f32.gmra.mxu3 %v11771_v18  ;;  %v11779_v18 = vld [vmem:[#allocation160_spill] sm:$0xff] }
 0x679   : > { %6189 = vmatpush.msrb.mxu3 %v9122_v24  ;;  %v11776_v24 = vld [vmem:[#allocation282_spill] sm:$0xff] }
 0x67b   : > { %v4264_v22 = vpop.f32.mrf.mxu3  ;;  %4625 = vmatmul.f32.gmra.mxu2 %v11772_v33  ;;  %6190 = vmatpush.msrb.mxu3 %v9127_v62  ;;  %v5275_v62 = vld [vmem:[#allocation7 + $0x3e8] sm:$0xff] }
 0x67c   : > { %v9608_v56 = vadd.f32 %v4264_v22, %v4087_v6  ;;  %v2868_v54 = vpop.f32.mrf.mxu0  ;;  %v3928_v7 = vpop.f32.mrf.mxu1  ;;  %5280 = vmatpush.msra.mxu1 %v5275_v62 }
 0x67d   : > { %6191 = vmatpush.msrb.mxu3 %v11774_v42  ;;  %v4090_v60 = vadd.f32 %v4089_v17, %v3928_v7  ;;  %v11781_v42 = vld [vmem:[#allocation286_spill] sm:$0xff] }
 0x67e   : > { %11773 = vst [vmem:[#allocation161_spill] sm:$0xff] %v9608_v56  ;;  %v4092_v37 = vpop.f32.mrf.mxu2  ;;  %v11783_v7 = vld [vmem:[#allocation254_spill] sm:$0xff] }
 0x67f   : > { %6079 = vmatmul.msk.f32.gmra.mxu1 %vm3179_vm3, %v11775_v49  ;;  %6119 = vmatmul.msk.f32.gmra.mxu0 %vm3179_vm3, %v11776_v24  ;;  %v11782_v49 = vld [vmem:[#allocation148_spill] sm:$0xff] }
 0x680   : > { %4848 = vmatmul.f32.gmra.mxu3 %v11777_v43 }
 0x681   : > { %6192 = vmatpush.msrb.mxu3 %v11778_v55 }
 0x683   : > { %v4267_v48 = vpop.f32.mrf.mxu3  ;;  %4628 = vmatmul.f32.gmra.mxu2 %v11779_v18 }
 0x684   : > { %v9620_v6 = vadd.f32 %v4267_v48, %v4090_v60  ;;  %v2871_v22 = vpop.f32.mrf.mxu0  ;;  %v3931_v54 = vpop.f32.mrf.mxu1  ;;  %v11785_v48 = vld [vmem:[#allocation289_spill] sm:$0xff] }
 0x685   : > { %v4093_v43 = vadd.f32 %v4092_v37, %v3931_v54  ;;  %v11786_v22 = vld [vmem:[#allocation20_spill] sm:$0xff] }
 0x686   : > { %11780 = vst [vmem:[#allocation240_spill] sm:$0xff] %v9620_v6  ;;  %v4095_v40 = vpop.f32.mrf.mxu2  ;;  %v5500_v54 = vld [vmem:[#allocation7 + $0x460] sm:$0xff] }
 0x687   : > { %6080 = vmatmul.msk.f32.gmra.mxu1 %vm3120_vm2, %v8478_v29  ;;  %6120 = vmatmul.msk.f32.gmra.mxu0 %vm3120_vm2, %v11781_v42 }
 0x688   : > { %4851 = vmatmul.f32.gmra.mxu3 %v11782_v49  ;;  %5507 = vmatpush.msra.mxu2 %v5500_v54 }
 0x68b   : > { %v4270_v17 = vpop.f32.mrf.mxu3  ;;  %4631 = vmatmul.f32.gmra.mxu2 %v11783_v7 }
 0x68c   : > { %v9630_v62 = vadd.f32 %v4270_v17, %v4093_v43  ;;  %v3934_v55 = vpop.f32.mrf.mxu1  ;;  %v11789_v43 = vld [vmem:[#allocation293_spill] sm:$0xff] }
 0x68d   : > { %v4096_v29 = vadd.f32 %v4095_v40, %v3934_v55  ;;  %v5274_v40 = vld [vmem:[#allocation7 + $0x3e0] sm:$0xff] }
 0x68e   : > { %11784 = vst [vmem:[#allocation170_spill] sm:$0xff] %v9630_v62  ;;  %v4098_v60 = vpop.f32.mrf.mxu2  ;;  %5281 = vmatpush.msra.mxu1 %v5274_v40 }
 0x68f   : > { %4402 = vmatmul.f32.gmra.mxu1 %v8499_v44  ;;  %5116 = vmatmul.f32.gmra.mxu0 %v11785_v48  ;;  %v11790_v44 = vld [vmem:[#allocation255_spill] sm:$0xff] }
 0x690   : > { %4854 = vmatmul.f32.gmra.mxu3 %v11786_v22  ;;  %v11848_v22 = vld [vmem:[#allocation291_spill] sm:$0xff] }
 0x693   : > { %v4273_v35 = vpop.f32.mrf.mxu3  ;;  %4634 = vmatmul.f32.gmra.mxu2 %v11787_v30  ;;  %v11794_v30 = vld [vmem:[#allocation257_spill] sm:$0xff] }
 0x694   : > { %v9636_v6 = vadd.f32 %v4273_v35, %v4096_v29  ;;  %v3937_v37 = vpop.f32.mrf.mxu1  ;;  %v11791_v35 = vld [vmem:[#allocation258_spill] sm:$0xff] }
 0x695   : > { %v4099_v17 = vadd.f32 %v4098_v60, %v3937_v37  ;;  %v11795_v60 = vld [vmem:[#allocation260_spill] sm:$0xff] }
 0x696   : > { %11788 = vst [vmem:[#allocation57_spill] sm:$0xff] %v9636_v6  ;;  %v4101_v7 = vpop.f32.mrf.mxu2 }
 0x697   : > { %6081 = vmatmul.msk.f32.gmra.mxu1 %vm3179_vm3, %v8517_v9  ;;  %6121 = vmatmul.msk.f32.gmra.mxu0 %vm3179_vm3, %v11789_v43  ;;  %v11793_v9 = vld [vmem:[#allocation296_spill] sm:$0xff] }
 0x698   : > { %4857 = vmatmul.f32.gmra.mxu3 %v11790_v44  ;;  %v11800_v44 = vld [vmem:[#allocation262_spill] sm:$0xff] }
 0x69b   : > { %v4276_v55 = vpop.f32.mrf.mxu3  ;;  %4637 = vmatmul.f32.gmra.mxu2 %v11791_v35  ;;  %v11798_v35 = vld [vmem:[#allocation124_spill] sm:$0xff] }
 0x69c   : > { %v9646_v29 = vadd.f32 %v4276_v55, %v4099_v17  ;;  %v3940_v54 = vpop.f32.mrf.mxu1  ;;  %v9658_v55 = vpop.f32.mrf.mxu0 }
 0x69d   : > { %v4102_v62 = vadd.f32 %v4101_v7, %v3940_v54  ;;  %11797 = vst [vmem:[#allocation227_spill] sm:$0xff] %v9658_v55  ;;  %v11805_v55 = vld [vmem:[#allocation40_spill] sm:$0xff] }
 0x69e   : > { %11792 = vst [vmem:[#allocation118_spill] sm:$0xff] %v9646_v29  ;;  %v4104_v6 = vpop.f32.mrf.mxu2 }
 0x69f   : > { %6082 = vmatmul.msk.f32.gmra.mxu1 %vm3120_vm2, %v8540_v15  ;;  %6122 = vmatmul.msk.f32.gmra.mxu0 %vm3120_vm2, %v11793_v9  ;;  %v11799_v15 = vld [vmem:[#allocation259_spill] sm:$0xff] }
 0x6a0   : > { %4860 = vmatmul.f32.gmra.mxu3 %v11794_v30  ;;  %v11815_v30 = vld [vmem:[#allocation268_spill] sm:$0xff] }
 0x6a3   : > { %v4279_v40 = vpop.f32.mrf.mxu3  ;;  %4640 = vmatmul.f32.gmra.mxu2 %v11795_v60  ;;  %v5499_v60 = vld [vmem:[#allocation7 + $0x458] sm:$0xff] }
 0x6a4   : > { %v9656_v37 = vadd.f32 %v4279_v40, %v4102_v62  ;;  %v3943_v17 = vpop.f32.mrf.mxu1  ;;  %5508 = vmatpush.msra.mxu2 %v5499_v60  ;;  %v9666_v40 = vpop.f32.mrf.mxu0 }
 0x6a5   : > { %v4105_v18 = vadd.f32 %v4104_v6, %v3943_v17  ;;  %11802 = vst [vmem:[#allocation99_spill] sm:$0xff] %v9666_v40  ;;  %v11804_v6 = vld [vmem:[#allocation261_spill] sm:$0xff]  ;;  %v5273_v17 = vld [vmem:[#allocation7 + $0x3d8] sm:$0xff] }
 0x6a6   : > { %11796 = vst [vmem:[#allocation67_spill] sm:$0xff] %v9656_v37  ;;  %v4107_v29 = vpop.f32.mrf.mxu2  ;;  %5282 = vmatpush.msra.mxu1 %v5273_v17  ;;  %v11810_v17 = vld [vmem:[#allocation265_spill] sm:$0xff] }
 0x6a7   : > { %4411 = vmatmul.f32.gmra.mxu1 %v8563_v57  ;;  %5125 = vmatmul.f32.gmra.mxu0 %v11798_v35  ;;  %v11803_v57 = vld [vmem:[#allocation127_spill] sm:$0xff] }
 0x6a8   : > { %4863 = vmatmul.f32.gmra.mxu3 %v11799_v15 }
 0x6ab   : > { %v4282_v56 = vpop.f32.mrf.mxu3  ;;  %4643 = vmatmul.f32.gmra.mxu2 %v11800_v44  ;;  %v11808_v44 = vld [vmem:[#allocation263_spill] sm:$0xff] }
 0x6ac   : > { %v9664_v7 = vadd.f32 %v4282_v56, %v4105_v18  ;;  %v3946_v54 = vpop.f32.mrf.mxu1  ;;  %v9685_v37 = vpop.f32.mrf.mxu0 }
 0x6ad   : > { %v4108_v56 = vadd.f32 %v4107_v29, %v3946_v54  ;;  %11809 = vst [vmem:[#allocation173_spill] sm:$0xff] %v9685_v37  ;;  %v5498_v37 = vld [vmem:[#allocation7 + $0x450] sm:$0xff] }
 0x6ae   : > { %11801 = vst [vmem:[#allocation110_spill] sm:$0xff] %v9664_v7  ;;  %v4110_v62 = vpop.f32.mrf.mxu2  ;;  %5509 = vmatpush.msra.mxu2 %v5498_v37 }
 0x6af   : > { %6083 = vmatmul.msk.f32.gmra.mxu1 %vm3179_vm3, %v8579_v14  ;;  %6123 = vmatmul.msk.f32.gmra.mxu0 %vm3179_vm3, %v11803_v57  ;;  %v11807_v14 = vld [vmem:[#allocation132_spill] sm:$0xff] }
 0x6b0   : > { %4866 = vmatmul.f32.gmra.mxu3 %v11804_v6 }
 0x6b3   : > { %v4285_v18 = vpop.f32.mrf.mxu3  ;;  %4646 = vmatmul.f32.gmra.mxu2 %v11805_v55  ;;  %v11812_v55 = vld [vmem:[#allocation214_spill] sm:$0xff] }
 0x6b4   : > { %v9676_v60 = vadd.f32 %v4285_v18, %v4108_v56  ;;  %v3949_v7 = vpop.f32.mrf.mxu1  ;;  %v9693_v15 = vpop.f32.mrf.mxu0 }
 0x6b5   : > { %v4111_v29 = vadd.f32 %v4110_v62, %v3949_v7  ;;  %11814 = vst [vmem:[#allocation139_spill] sm:$0xff] %v9693_v15 }
 0x6b6   : > { %11806 = vst [vmem:[#allocation242_spill] sm:$0xff] %v9676_v60  ;;  %v4113_v40 = vpop.f32.mrf.mxu2 }
 0x6b7   : > { %6084 = vmatmul.msk.f32.gmra.mxu1 %vm3120_vm2, %v8598_v3  ;;  %6124 = vmatmul.msk.f32.gmra.mxu0 %vm3120_vm2, %v11807_v14  ;;  %v11813_v3 = vld [vmem:[#allocation264_spill] sm:$0xff] }
 0x6b8   : > { %4869 = vmatmul.f32.gmra.mxu3 %v11808_v44 }
 0x6bb   : > { %v4288_v54 = vpop.f32.mrf.mxu3  ;;  %4649 = vmatmul.f32.gmra.mxu2 %v11810_v17 }
 0x6bc   : > { %v9688_v56 = vadd.f32 %v4288_v54, %v4111_v29  ;;  %v3952_v18 = vpop.f32.mrf.mxu1  ;;  %v5272_v54 = vld [vmem:[#allocation7 + $0x3d0] sm:$0xff] }
 0x6bd   : > { %v4114_v6 = vadd.f32 %v4113_v40, %v3952_v18  ;;  %v11818_v40 = vld [vmem:[#allocation266_spill] sm:$0xff]  ;;  %5283 = vmatpush.msra.mxu1 %v5272_v54  ;;  %v11824_v54 = vld [vmem:[#allocation276_spill] sm:$0xff] }
 0x6be   : > { %11811 = vst [vmem:[#allocation61_spill] sm:$0xff] %v9688_v56  ;;  %v4116_v60 = vpop.f32.mrf.mxu2  ;;  %v11823_v56 = vld [vmem:[#allocation269_spill] sm:$0xff] }
 0x6bf   : > { %4420 = vmatmul.f32.gmra.mxu1 %v8617_v12  ;;  %5134 = vmatmul.f32.gmra.mxu0 %v11812_v55  ;;  %v11817_v12 = vld [vmem:[#allocation185_spill] sm:$0xff] }
 0x6c0   : > { %4872 = vmatmul.f32.gmra.mxu3 %v11813_v3  ;;  %v11829_v3 = vld [vmem:[#allocation280_spill] sm:$0xff] }
 0x6c3   : > { %v4291_v44 = vpop.f32.mrf.mxu3  ;;  %4652 = vmatmul.f32.gmra.mxu2 %v11815_v30 }
 0x6c4   : > { %v9696_v7 = vadd.f32 %v4291_v44, %v4114_v6  ;;  %v3955_v62 = vpop.f32.mrf.mxu1  ;;  %v11819_v44 = vld [vmem:[#allocation272_spill] sm:$0xff] }
 0x6c5   : > { %v4117_v18 = vadd.f32 %v4116_v60, %v3955_v62 }
 0x6c6   : > { %11816 = vst [vmem:[#allocation88_spill] sm:$0xff] %v9696_v7  ;;  %v4119_v29 = vpop.f32.mrf.mxu2  ;;  %v9708_v7 = vpop.f32.mrf.mxu0 }
 0x6c7   : > { %6085 = vmatmul.msk.f32.gmra.mxu1 %vm3179_vm3, %v8633_v2  ;;  %6125 = vmatmul.msk.f32.gmra.mxu0 %vm3179_vm3, %v11817_v12  ;;  %11821 = vst [vmem:[#allocation167_spill] sm:$0xff] %v9708_v7  ;;  %v11822_v2 = vld [vmem:[#allocation39_spill] sm:$0xff] }
 0x6c8   : > { %4875 = vmatmul.f32.gmra.mxu3 %v11818_v40 }
 0x6cb   : > { %v4294_v15 = vpop.f32.mrf.mxu3  ;;  %4655 = vmatmul.f32.gmra.mxu2 %v11819_v44  ;;  %v11827_v44 = vld [vmem:[#allocation144_spill] sm:$0xff] }
 0x6cc   : > { %v9706_v6 = vadd.f32 %v4294_v15, %v4117_v18  ;;  %v3958_v37 = vpop.f32.mrf.mxu1 }
 0x6cd   : > { %v4120_v60 = vadd.f32 %v4119_v29, %v3958_v37 }
 0x6ce   : > { %11820 = vst [vmem:[#allocation230_spill] sm:$0xff] %v9706_v6  ;;  %v4122_v30 = vpop.f32.mrf.mxu2  ;;  %v9720_v7 = vpop.f32.mrf.mxu0 }
 0x6cf   : > { %6086 = vmatmul.msk.f32.gmra.mxu1 %vm3120_vm2, %v8652_v4  ;;  %6126 = vmatmul.msk.f32.gmra.mxu0 %vm3120_vm2, %v11822_v2  ;;  %11826 = vst [vmem:[#allocation244_spill] sm:$0xff] %v9720_v7  ;;  %v11828_v4 = vld [vmem:[#allocation273_spill] sm:$0xff]  ;;  %v11834_v7 = vld [vmem:[#allocation284_spill] sm:$0xff] }
 0x6d0   : > { %4878 = vmatmul.f32.gmra.mxu3 %v11823_v56 }
 0x6d3   : > { %v4297_v62 = vpop.f32.mrf.mxu3  ;;  %4658 = vmatmul.f32.gmra.mxu2 %v11824_v54  ;;  %v5497_v54 = vld [vmem:[#allocation7 + $0x448] sm:$0xff] }
 0x6d4   : > { %v9718_v15 = vadd.f32 %v4297_v62, %v4120_v60  ;;  %v3961_v18 = vpop.f32.mrf.mxu1  ;;  %5510 = vmatpush.msra.mxu2 %v5497_v54  ;;  %v11831_v62 = vld [vmem:[#allocation196_spill] sm:$0xff] }
 0x6d5   : > { %v4123_v17 = vadd.f32 %v4122_v30, %v3961_v18  ;;  %v5271_v30 = vld [vmem:[#allocation7 + $0x3c8] sm:$0xff] }
 0x6d6   : > { %11825 = vst [vmem:[#allocation102_spill] sm:$0xff] %v9718_v15  ;;  %v4125_v6 = vpop.f32.mrf.mxu2  ;;  %v9735_v18 = vpop.f32.mrf.mxu0  ;;  %5284 = vmatpush.msra.mxu1 %v5271_v30  ;;  %v11837_v15 = vld [vmem:[#allocation270_spill] sm:$0xff]  ;;  %v11839_v30 = vld [vmem:[#allocation281_spill] sm:$0xff] }
 0x6d7   : > { %4429 = vmatmul.f32.gmra.mxu1 %v8673_v28  ;;  %5143 = vmatmul.f32.gmra.mxu0 %v11827_v44  ;;  %v11832_v28 = vld [vmem:[#allocation277_spill] sm:$0xff]  ;;  %11833 = vst [vmem:[#allocation65_spill] sm:$0xff] %v9735_v18 }
 0x6d8   : > { %4881 = vmatmul.f32.gmra.mxu3 %v11828_v4 }
 0x6db   : > { %v4300_v40 = vpop.f32.mrf.mxu3  ;;  %4661 = vmatmul.f32.gmra.mxu2 %v11829_v3 }
 0x6dc   : > { %v9726_v29 = vadd.f32 %v4300_v40, %v4123_v17  ;;  %v3964_v37 = vpop.f32.mrf.mxu1 }
 0x6dd   : > { %v4126_v17 = vadd.f32 %v4125_v6, %v3964_v37 }
 0x6de   : > { %11830 = vst [vmem:[#allocation177_spill] sm:$0xff] %v9726_v29  ;;  %v4128_v60 = vpop.f32.mrf.mxu2  ;;  %v9749_v37 = vpop.f32.mrf.mxu0 }
 0x6df   : > { %6087 = vmatmul.msk.f32.gmra.mxu1 %vm3179_vm3, %v8691_v20  ;;  %6127 = vmatmul.msk.f32.gmra.mxu0 %vm3179_vm3, %v11831_v62  ;;  %v11836_v20 = vld [vmem:[#allocation33_spill] sm:$0xff]  ;;  %11840 = vst [vmem:[#allocation134_spill] sm:$0xff] %v9749_v37 }
 0x6e0   : > { %4884 = vmatmul.f32.gmra.mxu3 %v11832_v28  ;;  %v11838_v28 = vld [vmem:[#allocation267_spill] sm:$0xff] }
 0x6e1   : > { %v3988_v18 = vadd.f32 %v11838_v28, %v11837_v15  ;;  %v11845_v15 = vld [vmem:[#allocation275_spill] sm:$0xff] }
 0x6e2   : > { %v11846_v28 = vld [vmem:[#allocation271_spill] sm:$0xff] }
 0x6e3   : > { %v4303_v40 = vpop.f32.mrf.mxu3  ;;  %4664 = vmatmul.f32.gmra.mxu2 %v11834_v7 }
 0x6e4   : > { %v9738_v54 = vadd.f32 %v4303_v40, %v4126_v17  ;;  %v3967_v29 = vpop.f32.mrf.mxu1  ;;  %v11841_v40 = vld [vmem:[#allocation44_spill] sm:$0xff] }
 0x6e5   : > { %v4129_v6 = vadd.f32 %v4128_v60, %v3967_v29  ;;  %v11847_v29 = vld [vmem:[#allocation285_spill] sm:$0xff] }
 0x6e6   : > { %11835 = vst [vmem:[#allocation122_spill] sm:$0xff] %v9738_v54  ;;  %v4617_v3 = vpop.f32.mrf.mxu2  ;;  %v11842_v54 = vld [vmem:[#allocation274_spill] sm:$0xff] }
 0x6e7   : > { %6088 = vmatmul.msk.f32.gmra.mxu1 %vm3120_vm2, %v8712_v46  ;;  %6128 = vmatmul.msk.f32.gmra.mxu0 %vm3120_vm2, %v11836_v20  ;;  %v4309_v7 = vadd.f32 %v11842_v54, %v3988_v18 }
 0x6e8   : > { %4887 = vmatmul.f32.gmra.mxu3 %v11839_v30  ;;  %v3991_v30 = vadd.f32 %v11846_v28, %v11845_v15 }
 0x6eb   : > { %v4306_v17 = vpop.f32.mrf.mxu3  ;;  %4667 = vmatmul.f32.gmra.mxu2 %v11841_v40  ;;  %v11849_v40 = vld [vmem:[#allocation279_spill] sm:$0xff] }
 0x6ec   : > { %v9753_v4 = vadd.f32 %v4306_v17, %v4129_v6  ;;  %v4391_v46 = vpop.f32.mrf.mxu1  ;;  %v4310_v18 = vadd.f32 %v11849_v40, %v3991_v30  ;;  %v9764_v17 = vpop.f32.mrf.mxu0  ;;  %v11853_v40 = vld [vmem:[#allocation48_spill] sm:$0xff] }
 0x6ed   : > { %v4535_v56 = vadd.f32 %v4391_v46, %v4309_v7  ;;  %v5496_v7 = vld [vmem:[#allocation7 + $0x440] sm:$0xff]  ;;  %11851 = vst [vmem:[#allocation179_spill] sm:$0xff] %v9764_v17  ;;  %v11861_v17 = vld [vmem:[#allocation295_spill] sm:$0xff] }
 0x6ee   : > { %11843 = vst [vmem:[#allocation233_spill] sm:$0xff] %v9753_v4  ;;  %v4620_v33 = vpop.f32.mrf.mxu2  ;;  %5511 = vmatpush.msra.mxu2 %v5496_v7 }
 0x6ef   : > { %4438 = vmatmul.f32.gmra.mxu1 %v11770_v10  ;;  %5152 = vmatmul.f32.gmra.mxu0 %v11844_v41  ;;  %v4761_v60 = vadd.f32 %v4617_v3, %v4535_v56  ;;  %v11852_v56 = vld [vmem:[#allocation288_spill] sm:$0xff] }
 0x6f0   : > { %4890 = vmatmul.f32.gmra.mxu3 %v11847_v29  ;;  %v5270_v3 = vld [vmem:[#allocation7 + $0x3c0] sm:$0xff] }
 0x6f1   : > { %5285 = vmatpush.msra.mxu1 %v5270_v3  ;;  %v11858_v3 = vld [vmem:[#allocation35_spill] sm:$0xff] }
 0x6f3   : > { %v4843_v37 = vpop.f32.mrf.mxu3  ;;  %4670 = vmatmul.f32.gmra.mxu2 %v11848_v22  ;;  %v11915_v22 = vld [vmem:[#allocation97_spill] sm:$0xff] }
 0x6f4   : > { %v9762_v54 = vadd.f32 %v4843_v37, %v4761_v60  ;;  %v4394_v6 = vpop.f32.mrf.mxu1  ;;  %v11855_v60 = vld [vmem:[#allocation283_spill] sm:$0xff]  ;;  %v9777_v7 = vpop.f32.mrf.mxu0 }
 0x6f5   : > { %v4536_v10 = vadd.f32 %v4394_v6, %v4310_v18  ;;  %11856 = vst [vmem:[#allocation180_spill] sm:$0xff] %v9777_v7 }
 0x6f6   : > { %11850 = vst [vmem:[#allocation171_spill] sm:$0xff] %v9762_v54  ;;  %v4623_v46 = vpop.f32.mrf.mxu2 }
 0x6f7   : > { %6089 = vmatmul.msk.f32.gmra.mxu1 %vm3179_vm3, %v11776_v24  ;;  %6129 = vmatmul.msk.f32.gmra.mxu0 %vm3179_vm3, %v9191_v47  ;;  %v4762_v30 = vadd.f32 %v4620_v33, %v4536_v10  ;;  %v11857_v24 = vld [vmem:[#allocation292_spill] sm:$0xff] }
 0x6f8   : > { %4893 = vmatmul.f32.gmra.mxu3 %v11852_v56 }
 0x6fb   : > { %v4846_v37 = vpop.f32.mrf.mxu3  ;;  %4673 = vmatmul.f32.gmra.mxu2 %v11853_v40 }
 0x6fc   : > { %v9774_v15 = vadd.f32 %v4846_v37, %v4762_v30  ;;  %v4397_v28 = vpop.f32.mrf.mxu1 }
 0x6fd   : > { %v4537_v18 = vadd.f32 %v4397_v28, %v11855_v60  ;;  %v11860_v28 = vld [vmem:[#allocation287_spill] sm:$0xff] }
 0x6fe   : > { %11854 = vst [vmem:[#allocation245_spill] sm:$0xff] %v9774_v15  ;;  %v4626_v6 = vpop.f32.mrf.mxu2  ;;  %v9793_v15 = vpop.f32.mrf.mxu0 }
 0x6ff   : > { %6090 = vmatmul.msk.f32.gmra.mxu1 %vm3120_vm2, %v11781_v42  ;;  %6130 = vmatmul.msk.f32.gmra.mxu0 %vm3120_vm2, %v9219_v5  ;;  %v4763_v33 = vadd.f32 %v4623_v46, %v4537_v18  ;;  %11862 = vst [vmem:[#allocation143_spill] sm:$0xff] %v9793_v15  ;;  %v11863_v18 = vld [vmem:[#allocation174_spill] sm:$0xff] }
 0x700   : > { %4896 = vmatmul.f32.gmra.mxu3 %v11857_v24  ;;  %v11869_v15 = vld [vmem:[#allocation178_spill] sm:$0xff] }
 0x703   : > { %v4849_v10 = vpop.f32.mrf.mxu3  ;;  %4676 = vmatmul.f32.gmra.mxu2 %v11858_v3 }
 0x704   : > { %v9787_v30 = vadd.f32 %v4849_v10, %v4763_v33  ;;  %v4400_v37 = vpop.f32.mrf.mxu1  ;;  %v5495_v10 = vld [vmem:[#allocation7 + $0x438] sm:$0xff] }
 0x705   : > { %v4538_v60 = vadd.f32 %v4400_v37, %v11860_v28  ;;  %5512 = vmatpush.msra.mxu2 %v5495_v10  ;;  %v11867_v28 = vld [vmem:[#allocation298_spill] sm:$0xff] }
 0x706   : > { %11859 = vst [vmem:[#allocation69_spill] sm:$0xff] %v9787_v30  ;;  %v4629_v7 = vpop.f32.mrf.mxu2  ;;  %v11865_v30 = vld [vmem:[#allocation290_spill] sm:$0xff] }
 0x707   : > { %4447 = vmatmul.f32.gmra.mxu1 %v11785_v48  ;;  %5161 = vmatmul.f32.gmra.mxu0 %v9251_v8  ;;  %v4764_v42 = vadd.f32 %v4626_v6, %v4538_v60  ;;  %v11866_v48 = vld [vmem:[#allocation234_spill] sm:$0xff]  ;;  %v5269_v60 = vld [vmem:[#allocation7 + $0x3b8] sm:$0xff] }
 0x708   : > { %4899 = vmatmul.f32.gmra.mxu3 %v11861_v17  ;;  %5286 = vmatpush.msra.mxu1 %v5269_v60  ;;  %v11871_v10 = vld [vmem:[#allocation294_spill] sm:$0xff]  ;;  %v11873_v60 = vld [vmem:[#allocation208_spill] sm:$0xff]  ;;  %v11916_v17 = vld [vmem:[#allocation95_spill] sm:$0xff] }
 0x70b   : > { %v4852_v46 = vpop.f32.mrf.mxu3  ;;  %4679 = vmatmul.f32.gmra.mxu2 %v11863_v18  ;;  %v11874_v18 = vld [vmem:[#allocation52_spill] sm:$0xff] }
 0x70c   : > { %v9796_v40 = vadd.f32 %v4852_v46, %v4764_v42  ;;  %v4403_v33 = vpop.f32.mrf.mxu1  ;;  %v9806_v42 = vpop.f32.mrf.mxu0 }
 0x70d   : > { %v4539_v3 = vadd.f32 %v4403_v33, %v11865_v30  ;;  %11868 = vst [vmem:[#allocation236_spill] sm:$0xff] %v9806_v42 }
 0x70e   : > { %11864 = vst [vmem:[#allocation75_spill] sm:$0xff] %v9796_v40  ;;  %v4632_v37 = vpop.f32.mrf.mxu2 }
 0x70f   : > { %6091 = vmatmul.msk.f32.gmra.mxu1 %vm3179_vm3, %v11789_v43  ;;  %6131 = vmatmul.msk.f32.gmra.mxu0 %vm3179_vm3, %v11866_v48  ;;  %v4765_v6 = vadd.f32 %v4629_v7, %v4539_v3  ;;  %v11872_v7 = vld [vmem:[#allocation80_spill] sm:$0xff] }
 0x710   : > { %4902 = vmatmul.f32.gmra.mxu3 %v11867_v28  ;;  %v11879_v28 = vld [vmem:[#allocation211_spill] sm:$0xff] }
 0x713   : > { %v4855_v46 = vpop.f32.mrf.mxu3  ;;  %4682 = vmatmul.f32.gmra.mxu2 %v11869_v15 }
 0x714   : > { %v9809_v30 = vadd.f32 %v4855_v46, %v4765_v6  ;;  %v4406_v33 = vpop.f32.mrf.mxu1 }
 0x715   : > { %v4540_v40 = vadd.f32 %v4406_v33, %v11871_v10  ;;  %v11877_v33 = vld [vmem:[#allocation297_spill] sm:$0xff] }
 0x716   : > { %11870 = vst [vmem:[#allocation105_spill] sm:$0xff] %v9809_v30  ;;  %v4635_v43 = vpop.f32.mrf.mxu2  ;;  %v9822_v30 = vpop.f32.mrf.mxu0 }
 0x717   : > { %6092 = vmatmul.msk.f32.gmra.mxu1 %vm3120_vm2, %v11793_v9  ;;  %6132 = vmatmul.msk.f32.gmra.mxu0 %vm3120_vm2, %v11872_v7  ;;  %v4766_v3 = vadd.f32 %v4632_v37, %v4540_v40  ;;  %11876 = vst [vmem:[#allocation22_spill] sm:$0xff] %v9822_v30  ;;  %v11878_v9 = vld [vmem:[#allocation153_spill] sm:$0xff] }
 0x718   : > { %4905 = vmatmul.f32.gmra.mxu3 %v11873_v60  ;;  %v11880_v37 = vld [vmem:[#allocation29_spill] sm:$0xff] }
 0x71b   : > { %v4858_v42 = vpop.f32.mrf.mxu3  ;;  %4685 = vmatmul.f32.gmra.mxu2 %v11874_v18 }
 0x71c   : > { %v9820_v6 = vadd.f32 %v4858_v42, %v4766_v3  ;;  %v4409_v46 = vpop.f32.mrf.mxu1  ;;  %v5494_v3 = vld [vmem:[#allocation7 + $0x430] sm:$0xff] }
 0x71d   : > { %v4541_v10 = vadd.f32 %v4409_v46, %v11877_v33  ;;  %5513 = vmatpush.msra.mxu2 %v5494_v3  ;;  %v11885_v33 = vld [vmem:[#allocation181_spill] sm:$0xff]  ;;  %v11888_v3 = vld [vmem:[#allocation250_spill] sm:$0xff] }
 0x71e   : > { %11875 = vst [vmem:[#allocation175_spill] sm:$0xff] %v9820_v6  ;;  %v4638_v15 = vpop.f32.mrf.mxu2  ;;  %v11882_v6 = vld [vmem:[#allocation248_spill] sm:$0xff]  ;;  %v9832_v46 = vpop.f32.mrf.mxu0 }
 0x71f   : > { %4456 = vmatmul.f32.gmra.mxu1 %v11798_v35  ;;  %5170 = vmatmul.f32.gmra.mxu0 %v11878_v9  ;;  %v4767_v54 = vadd.f32 %v4635_v43, %v4541_v10  ;;  %11883 = vst [vmem:[#allocation73_spill] sm:$0xff] %v9832_v46  ;;  %v11884_v35 = vld [vmem:[#allocation49_spill] sm:$0xff] }
 0x720   : > { %4908 = vmatmul.f32.gmra.mxu3 %v11879_v28  ;;  %v11896_v28 = vld [vmem:[#allocation28_spill] sm:$0xff] }
 0x723   : > { %v4861_v40 = vpop.f32.mrf.mxu3  ;;  %4688 = vmatmul.f32.gmra.mxu2 %v11880_v37 }
 0x724   : > { %v9829_v60 = vadd.f32 %v4861_v40, %v4767_v54  ;;  %v4412_v42 = vpop.f32.mrf.mxu1  ;;  %v5268_v54 = vld [vmem:[#allocation7 + $0x3b0] sm:$0xff]  ;;  %v11886_v40 = vld [vmem:[#allocation140_spill] sm:$0xff] }
 0x725   : > { %v4542_v18 = vadd.f32 %v4412_v42, %v11882_v6  ;;  %5287 = vmatpush.msra.mxu1 %v5268_v54 }
 0x726   : > { %11881 = vst [vmem:[#allocation183_spill] sm:$0xff] %v9829_v60  ;;  %v4641_v30 = vpop.f32.mrf.mxu2  ;;  %v9852_v54 = vpop.f32.mrf.mxu0 }
 0x727   : > { %6093 = vmatmul.msk.f32.gmra.mxu1 %vm3179_vm3, %v11803_v57  ;;  %6133 = vmatmul.msk.f32.gmra.mxu0 %vm3179_vm3, %v11884_v35  ;;  %v4768_v43 = vadd.f32 %v4638_v15, %v4542_v18  ;;  %v11889_v57 = vld [vmem:[#allocation106_spill] sm:$0xff]  ;;  %v11890_v18 = vld [vmem:[#allocation56_spill] sm:$0xff]  ;;  %11891 = vst [vmem:[#allocation96_spill] sm:$0xff] %v9852_v54 }
 0x728   : > { %4911 = vmatmul.f32.gmra.mxu3 %v11885_v33  ;;  %v11898_v54 = vld [vmem:[#allocation60_spill] sm:$0xff] }
 0x72b   : > { %v4864_v10 = vpop.f32.mrf.mxu3  ;;  %4691 = vmatmul.f32.gmra.mxu2 %v11886_v40 }
 0x72c   : > { %v9842_v6 = vadd.f32 %v4864_v10, %v4768_v43  ;;  %v4415_v42 = vpop.f32.mrf.mxu1  ;;  %v11892_v43 = vld [vmem:[#allocation192_spill] sm:$0xff] }
 0x72d   : > { %v4543_v46 = vadd.f32 %v4415_v42, %v11888_v3  ;;  %v11894_v3 = vld [vmem:[#allocation251_spill] sm:$0xff] }
 0x72e   : > { %11887 = vst [vmem:[#allocation129_spill] sm:$0xff] %v9842_v6  ;;  %v4644_v60 = vpop.f32.mrf.mxu2 }
 0x72f   : > { %6094 = vmatmul.msk.f32.gmra.mxu1 %vm3120_vm2, %v11807_v14  ;;  %6134 = vmatmul.msk.f32.gmra.mxu0 %vm3120_vm2, %v11889_v57  ;;  %v4769_v15 = vadd.f32 %v4641_v30, %v4543_v46  ;;  %v11895_v14 = vld [vmem:[#allocation53_spill] sm:$0xff]  ;;  %v9861_v30 = vpop.f32.mrf.mxu0 }
 0x730   : > { %4914 = vmatmul.f32.gmra.mxu3 %v11890_v18  ;;  %11897 = vst [vmem:[#allocation117_spill] sm:$0xff] %v9861_v30 }
 0x733   : > { %v4867_v40 = vpop.f32.mrf.mxu3  ;;  %4694 = vmatmul.f32.gmra.mxu2 %v11892_v43 }
 0x734   : > { %v9855_v10 = vadd.f32 %v4867_v40, %v4769_v15  ;;  %v4418_v42 = vpop.f32.mrf.mxu1  ;;  %v5493_v15 = vld [vmem:[#allocation7 + $0x428] sm:$0xff] }
 0x735   : > { %v4544_v6 = vadd.f32 %v4418_v42, %v11894_v3  ;;  %5514 = vmatpush.msra.mxu2 %v5493_v15  ;;  %v11902_v3 = vld [vmem:[#allocation225_spill] sm:$0xff]  ;;  %v11905_v15 = vld [vmem:[#allocation218_spill] sm:$0xff] }
 0x736   : > { %11893 = vst [vmem:[#allocation239_spill] sm:$0xff] %v9855_v10  ;;  %v4647_v37 = vpop.f32.mrf.mxu2  ;;  %v11900_v10 = vld [vmem:[#allocation136_spill] sm:$0xff] }
 0x737   : > { %4465 = vmatmul.f32.gmra.mxu1 %v11812_v55  ;;  %5179 = vmatmul.f32.gmra.mxu0 %v11895_v14  ;;  %v4770_v33 = vadd.f32 %v4644_v60, %v4544_v6  ;;  %v11901_v60 = vld [vmem:[#allocation222_spill] sm:$0xff]  ;;  %v5267_v6 = vld [vmem:[#allocation7 + $0x3a8] sm:$0xff] }
 0x738   : > { %4917 = vmatmul.f32.gmra.mxu3 %v11896_v28  ;;  %5288 = vmatpush.msra.mxu1 %v5267_v6 }
 0x73b   : > { %v4870_v46 = vpop.f32.mrf.mxu3  ;;  %4697 = vmatmul.f32.gmra.mxu2 %v11898_v54  ;;  %v11907_v54 = vld [vmem:[#allocation93_spill] sm:$0xff] }
 0x73c   : > { %v9864_v18 = vadd.f32 %v4870_v46, %v4770_v33  ;;  %v4421_v40 = vpop.f32.mrf.mxu1 }
 0x73d   : > { %v4545_v43 = vadd.f32 %v4421_v40, %v11900_v10  ;;  %v9877_v40 = vpop.f32.mrf.mxu0 }
 0x73e   : > { %11899 = vst [vmem:[#allocation182_spill] sm:$0xff] %v9864_v18  ;;  %v4650_v42 = vpop.f32.mrf.mxu2  ;;  %v11906_v18 = vld [vmem:[#allocation202_spill] sm:$0xff] }
 0x73f   : > { %6095 = vmatmul.msk.f32.gmra.mxu1 %vm3179_vm3, %v11817_v12  ;;  %6135 = vmatmul.msk.f32.gmra.mxu0 %vm3179_vm3, %v9448_v59  ;;  %v4771_v55 = vadd.f32 %v4647_v37, %v4545_v43  ;;  %11904 = vst [vmem:[#allocation187_spill] sm:$0xff] %v9877_v40  ;;  %v1164_v28 = vadd.f32 %v11907_v54, %v11906_v18  ;;  %v11908_v43 = vld [vmem:[#allocation72_spill] sm:$0xff] }
 0x740   : > { %4920 = vmatmul.f32.gmra.mxu3 %v11901_v60  ;;  %v11910_v40 = vld [vmem:[#allocation200_spill] sm:$0xff]  ;;  %v11914_v60 = vld [vmem:[#allocation206_spill] sm:$0xff] }
 0x741   : > { %v11912_v18 = vld [vmem:[#allocation252_spill] sm:$0xff]  ;;  %v1167_v4 = vadd.f32 %v11915_v22, %v11914_v60 }
 0x742   : > { %v11922_v60 = vld [vmem:[#allocation32_spill] sm:$0xff] }
 0x743   : > { %v4873_v33 = vpop.f32.mrf.mxu3  ;;  %4700 = vmatmul.f32.gmra.mxu2 %v11902_v3 }
 0x744   : > { %v9875_v46 = vadd.f32 %v4873_v33, %v4771_v55  ;;  %v4424_v10 = vpop.f32.mrf.mxu1  ;;  %v11909_v55 = vld [vmem:[#allocation247_spill] sm:$0xff] }
 0x745   : > { %v4546_v30 = vadd.f32 %v4424_v10, %v11905_v15  ;;  %v1423_v6 = vadd.f32 %v11909_v55, %v1164_v28  ;;  %v11919_v55 = vld [vmem:[#allocation25_spill] sm:$0xff] }
 0x746   : > { %11903 = vst [vmem:[#allocation23_spill] sm:$0xff] %v9875_v46  ;;  %v4653_v12 = vpop.f32.mrf.mxu2  ;;  %v11913_v46 = vld [vmem:[#allocation47_spill] sm:$0xff] }
 0x747   : > { %6096 = vmatmul.msk.f32.gmra.mxu1 %vm3120_vm2, %v11822_v2  ;;  %6136 = vmatmul.msk.f32.gmra.mxu0 %vm3120_vm2, %v9476_v1  ;;  %v4772_v37 = vadd.f32 %v4650_v42, %v4546_v30  ;;  %v1673_v54 = vadd.f32 %v11912_v18, %v1423_v6  ;;  %v9898_v42 = vpop.f32.mrf.mxu0  ;;  %v11920_v6 = vld [vmem:[#allocation152_spill] sm:$0xff] }
 0x748   : > { %4923 = vmatmul.f32.gmra.mxu3 %v11908_v43  ;;  %11917 = vst [vmem:[#allocation146_spill] sm:$0xff] %v9898_v42  ;;  %v11923_v42 = vld [vmem:[#allocation30_spill] sm:$0xff] }
 0x749   : > { %v1923_v30 = vadd.f32 %v11916_v17, %v1673_v54  ;;  %v5492_v17 = vld [vmem:[#allocation7 + $0x420] sm:$0xff] }
 0x74a   : > { %5515 = vmatpush.msra.mxu2 %v5492_v17 }
 0x74b   : > { %v4876_v33 = vpop.f32.mrf.mxu3  ;;  %4703 = vmatmul.f32.gmra.mxu2 %v11910_v40  ;;  %v2173_v18 = vadd.f32 %v11920_v6, %v1923_v30  ;;  %v11926_v30 = vld [vmem:[#allocation150_spill] sm:$0xff]  ;;  %v11929_v6 = vld [vmem:[#allocation253_spill] sm:$0xff] }
 0x74c   : > { %v9891_v10 = vadd.f32 %v4876_v33, %v4772_v37  ;;  %v4427_v15 = vpop.f32.mrf.mxu1  ;;  %v11918_v37 = vld [vmem:[#allocation147_spill] sm:$0xff]  ;;  %v1424_v33 = vadd.f32 %v11919_v55, %v1167_v4 }
 0x74d   : > { %v4547_v3 = vadd.f32 %v4427_v15, %v11913_v46  ;;  %v11921_v15 = vld [vmem:[#allocation64_spill] sm:$0xff] }
 0x74e   : > { %11911 = vst [vmem:[#allocation77_spill] sm:$0xff] %v9891_v10  ;;  %v4656_v2 = vpop.f32.mrf.mxu2  ;;  %v1674_v54 = vadd.f32 %v11922_v60, %v1424_v33  ;;  %v11931_v60 = vld [vmem:[#allocation71_spill] sm:$0xff] }
 0x74f   : > { %4474 = vmatmul.f32.gmra.mxu1 %v11827_v44  ;;  %5188 = vmatmul.f32.gmra.mxu0 %v9504_v58  ;;  %v4773_v28 = vadd.f32 %v4653_v12, %v4547_v3  ;;  %v11924_v3 = vld [vmem:[#allocation87_spill] sm:$0xff]  ;;  %v9919_v55 = vpop.f32.mrf.mxu0 }
 0x750   : > { %4926 = vmatmul.f32.gmra.mxu3 %v11918_v37  ;;  %v2423_v12 = vadd.f32 %v11924_v3, %v2173_v18  ;;  %v11925_v37 = vld [vmem:[#allocation172_spill] sm:$0xff]  ;;  %11927 = vst [vmem:[#allocation142_spill] sm:$0xff] %v9919_v55  ;;  %v11940_v55 = vld [vmem:[#allocation210_spill] sm:$0xff] }
 0x751   : > { %v1924_v43 = vadd.f32 %v11925_v37, %v1674_v54 }
 0x753   : > { %v4879_v46 = vpop.f32.mrf.mxu3  ;;  %4706 = vmatmul.f32.gmra.mxu2 %v11921_v15  ;;  %v2174_v18 = vadd.f32 %v11929_v6, %v1924_v43 }
 0x754   : > { %v9906_v10 = vadd.f32 %v4879_v46, %v4773_v28  ;;  %v4430_v22 = vpop.f32.mrf.mxu1  ;;  %v5266_v28 = vld [vmem:[#allocation7 + $0x3a0] sm:$0xff]  ;;  %v11930_v46 = vld [vmem:[#allocation79_spill] sm:$0xff] }
 0x755   : > { %v4548_v44 = vadd.f32 %v4430_v22, %v11923_v42  ;;  %5289 = vmatpush.msra.mxu1 %v5266_v28  ;;  %v11928_v42 = vld [vmem:[#allocation156_spill] sm:$0xff] }
 0x756   : > { %v4659_v40 = vpop.f32.mrf.mxu2  ;;  %v2673_v33 = vadd.f32 %v11928_v42, %v2423_v12  ;;  %v11933_v12 = vld [vmem:[#allocation76_spill] sm:$0xff] }
 0x757   : > { %6097 = vmatmul.msk.f32.gmra.mxu1 %vm3179_vm3, %v11831_v62  ;;  %6137 = vmatmul.msk.f32.gmra.mxu0 %vm3179_vm3, %v9526_v31  ;;  %v4774_v4 = vadd.f32 %v4656_v2, %v4548_v44  ;;  %v11932_v44 = vld [vmem:[#allocation91_spill] sm:$0xff]  ;;  %v11934_v28 = vld [vmem:[#allocation256_spill] sm:$0xff] }
 0x758   : > { %4929 = vmatmul.f32.gmra.mxu3 %v11926_v30  ;;  %v2923_v17 = vadd.f32 %v9561_v19, %v2673_v33  ;;  %v2424_v3 = vadd.f32 %v11932_v44, %v2174_v18  ;;  %v6362_v19 = vld [vmem:[%s10559_s2] ss:$0 sm:$0xff]  ;;  %v9940_v33 = vpop.f32.mrf.mxu0  ;;  %v11936_v18 = vld [vmem:[#allocation41_spill] sm:$0xff] }
 0x759   : > { %11935 = vst [vmem:[#allocation241_spill] sm:$0xff] %v9940_v33 }
 0x75a   : > { %v2674_v42 = vadd.f32 %v11934_v28, %v2424_v3  ;;  %v11939_v3 = vld [vmem:[#allocation231_spill] sm:$0xff] }
 0x75b   : > { %v4882_v37 = vpop.f32.mrf.mxu3  ;;  %4709 = vmatmul.f32.gmra.mxu2 %v11930_v46 }
 0x75c   : > { %v9924_v22 = vadd.f32 %v4882_v37, %v4774_v4  ;;  %v4433_v62 = vpop.f32.mrf.mxu1  ;;  %v2981_v4 = vadd.f32 %v6362_v19, %v2923_v17 }
 0x75d   : > { %v4549_v2 = vadd.f32 %v4433_v62, %v11931_v60  ;;  %v11938_v60 = vld [vmem:[#allocation55_spill] sm:$0xff] }
 0x75e   : > { %v4662_v54 = vpop.f32.mrf.mxu2  ;;  %v9945_v62 = vmax.f32 %v2981_v4, 0.0 }
 0x75f   : > { %6098 = vmatmul.msk.f32.gmra.mxu1 %vm3120_vm2, %v11836_v20  ;;  %6138 = vmatmul.msk.f32.gmra.mxu0 %vm3120_vm2, %v9549_v16  ;;  %v4775_v43 = vadd.f32 %v4659_v40, %v4549_v2  ;;  %v2924_v40 = vadd.f32 %v9586_v11, %v2674_v42  ;;  %v11943_v42 = vld [vmem:[#allocation37_spill] sm:$0xff] }
 0x760   : > { %4932 = vmatmul.f32.gmra.mxu3 %v11933_v12  ;;  %v9957_v11 = vpop.f32.mrf.mxu0 }
 0x761   : > { %v2982_v28 = vadd.f32 %v6362_v19, %v2924_v40  ;;  %11942 = vst [vmem:[#allocation24_spill] sm:$0xff] %v9957_v11  ;;  %v11944_v19 = vld [vmem:[#allocation68_spill] sm:$0xff]  ;;  %v11951_v11 = vld [vmem:[#allocation213_spill] sm:$0xff] }
 0x763   : > { %v4885_v6 = vpop.f32.mrf.mxu3  ;;  %4712 = vmatmul.f32.gmra.mxu2 %v11936_v18  ;;  %v11956_v18 = vld [vmem:[#allocation59_spill] sm:$0xff] }
 0x764   : > { %v9943_v20 = vadd.f32 %v4885_v6, %v4775_v43  ;;  %v4436_v37 = vpop.f32.mrf.mxu1  ;;  %v5491_v6 = vld [vmem:[#allocation7 + $0x418] sm:$0xff] }
 0x765   : > { %v4550_v2 = vadd.f32 %v4436_v37, %v11938_v60  ;;  %5516 = vmatpush.msra.mxu2 %v5491_v6  ;;  %v11945_v60 = vld [vmem:[#allocation45_spill] sm:$0xff] }
 0x766   : > { %11937 = vst [vmem:[#allocation121_spill] sm:$0xff] %v9943_v20  ;;  %v4665_v44 = vpop.f32.mrf.mxu2  ;;  %v9955_v20 = vmax.f32 %v2982_v28, 0.0  ;;  %v11947_v28 = vld [vmem:[#allocation204_spill] sm:$0xff] }
 0x767   : > { %4483 = vmatmul.f32.gmra.mxu1 %v11844_v41  ;;  %5197 = vmatmul.f32.gmra.mxu0 %v9945_v62  ;;  %v4776_v17 = vadd.f32 %v4662_v54, %v4550_v2 }
 0x768   : > { %4935 = vmatmul.f32.gmra.mxu3 %v11939_v3 }
 0x76b   : > { %v4888_v33 = vpop.f32.mrf.mxu3  ;;  %4715 = vmatmul.f32.gmra.mxu2 %v11940_v55  ;;  %v5490_v55 = vld [vmem:[#allocation7 + $0x410] sm:$0xff] }
 0x76c   : > { %v9953_v43 = vadd.f32 %v4888_v33, %v4776_v17  ;;  %v4439_v4 = vpop.f32.mrf.mxu1  ;;  %v5265_v33 = vld [vmem:[#allocation7 + $0x398] sm:$0xff]  ;;  %5517 = vmatpush.msra.mxu2 %v5490_v55 }
 0x76d   : > { %v4551_v37 = vadd.f32 %v4439_v4, %v11943_v42  ;;  %5290 = vmatpush.msra.mxu1 %v5265_v33  ;;  %v9971_v42 = vpop.f32.mrf.mxu0 }
 0x76e   : > { %11941 = vst [vmem:[#allocation186_spill] sm:$0xff] %v9953_v43  ;;  %v4668_v41 = vpop.f32.mrf.mxu2 }
 0x76f   : > { %6099 = vmatmul.msk.f32.gmra.mxu1 %vm3179_vm3, %v9191_v47  ;;  %6139 = vmatmul.msk.f32.gmra.mxu0 %vm3179_vm3, %v9955_v20  ;;  %v4777_v54 = vadd.f32 %v4665_v44, %v4551_v37  ;;  %11948 = vst [vmem:[#allocation81_spill] sm:$0xff] %v9971_v42  ;;  %v11949_v44 = vmov 0.0   ;;  %v11950_v37 = vld [vmem:[#allocation149_spill] sm:$0xff] }
 0x770   : > { %4938 = vmatmul.f32.gmra.mxu3 %v11944_v19 }
 0x773   : > { %v4891_v40 = vpop.f32.mrf.mxu3  ;;  %4718 = vmatmul.f32.gmra.mxu2 %v11945_v60  ;;  %v11953_v60 = vld [vmem:[#allocation130_spill] sm:$0xff] }
 0x774   : > { %v9968_v2 = vadd.f32 %v4891_v40, %v4777_v54  ;;  %v4442_v17 = vpop.f32.mrf.mxu1 }
 0x775   : > { %v4552_v4 = vadd.f32 %v4442_v17, %v11947_v28 }
 0x776   : > { %11946 = vst [vmem:[#allocation190_spill] sm:$0xff] %v9968_v2  ;;  %v4671_v6 = vpop.f32.mrf.mxu2  ;;  %v11952_v2 = vld [vmem:[#allocation155_spill] sm:$0xff] }
 0x777   : > { %6100 = vmatmul.msk.f32.gmra.mxu1 %vm3120_vm2, %v9219_v5  ;;  %v4778_v47 = vadd.f32 %v4668_v41, %v4552_v4  ;;  %5203 = vmatmul.f32.gmra.mxu0 %v11949_v44  ;;  %v11954_v41 = vld [vmem:[#allocation237_spill] sm:$0xff] }
 0x778   : > { %4941 = vmatmul.f32.gmra.mxu3 %v11950_v37 }
 0x77b   : > { %v4894_v33 = vpop.f32.mrf.mxu3  ;;  %4721 = vmatmul.f32.gmra.mxu2 %v11951_v11 }
 0x77c   : > { %v9979_v54 = vadd.f32 %v4894_v33, %v4778_v47  ;;  %v4445_v40 = vpop.f32.mrf.mxu1 }
 0x77d   : > { %v4553_v17 = vadd.f32 %v4445_v40, %v11952_v2  ;;  %v11958_v40 = vld [vmem:[#allocation63_spill] sm:$0xff] }
 0x77e   : > { %v4674_v28 = vpop.f32.mrf.mxu2 }
 0x77f   : > { %4492 = vmatmul.f32.gmra.mxu1 %v9251_v8  ;;  %v4779_v42 = vadd.f32 %v4671_v6, %v4553_v17  ;;  %v11957_v8 = vld [vmem:[#allocation103_spill] sm:$0xff]  ;;  %v5264_v6 = vld [vmem:[#allocation7 + $0x390] sm:$0xff] }
 0x780   : > { %4944 = vmatmul.f32.gmra.mxu3 %v11953_v60  ;;  %5291 = vmatpush.msra.mxu1 %v5264_v6 }
 0x783   : > { %v4897_v5 = vpop.f32.mrf.mxu3  ;;  %4724 = vmatmul.f32.gmra.mxu2 %v11954_v41  ;;  %v11965_v41 = vld [vmem:[#allocation51_spill] sm:$0xff] }
 0x784   : > { %v9985_v4 = vadd.f32 %v4897_v5, %v4779_v42  ;;  %v4448_v43 = vpop.f32.mrf.mxu1  ;;  %v11960_v5 = vld [vmem:[#allocation159_spill] sm:$0xff] }
 0x785   : > { %v4554_v11 = vadd.f32 %v4448_v43, %v11956_v18 }
 0x786   : > { %11955 = vst [vmem:[#allocation92_spill] sm:$0xff] %v9985_v4  ;;  %v4677_v47 = vpop.f32.mrf.mxu2 }
 0x787   : > { %6101 = vmatmul.msk.f32.gmra.mxu1 %vm3179_vm3, %v11866_v48  ;;  %v4780_v2 = vadd.f32 %v4674_v28, %v4554_v11  ;;  %v11961_v48 = vld [vmem:[#allocation164_spill] sm:$0xff]  ;;  %v11962_v11 = vld [vmem:[#allocation238_spill] sm:$0xff] }
 0x788   : > { %4947 = vmatmul.f32.gmra.mxu3 %v11957_v8 }
 0x78b   : > { %v4900_v33 = vpop.f32.mrf.mxu3  ;;  %4727 = vmatmul.f32.gmra.mxu2 %v11958_v40  ;;  %v11963_v40 = vld [vmem:[#allocation112_spill] sm:$0xff] }
 0x78c   : > { %v9993_v42 = vadd.f32 %v4900_v33, %v4780_v2  ;;  %v4451_v17 = vpop.f32.mrf.mxu1 }
 0x78d   : > { %v4555_v4 = vadd.f32 %v4451_v17, %v11960_v5  ;;  %v11964_v5 = vld [vmem:[#allocation217_spill] sm:$0xff] }
 0x78e   : > { %11959 = vst [vmem:[#allocation158_spill] sm:$0xff] %v9993_v42  ;;  %v4680_v18 = vpop.f32.mrf.mxu2 }
 0x78f   : > { %6102 = vmatmul.msk.f32.gmra.mxu1 %vm3120_vm2, %v11872_v7  ;;  %v4781_v55 = vadd.f32 %v4677_v47, %v4555_v4  ;;  %v5489_v47 = vld [vmem:[#allocation7 + $0x408] sm:$0xff] }
 0x790   : > { %4950 = vmatmul.f32.gmra.mxu3 %v11961_v48  ;;  %5518 = vmatpush.msra.mxu2 %v5489_v47 }
 0x793   : > { %v4903_v43 = vpop.f32.mrf.mxu3  ;;  %4730 = vmatmul.f32.gmra.mxu2 %v11962_v11 }
 0x794   : > { %v10001_v28 = vadd.f32 %v4903_v43, %v4781_v55  ;;  %v4454_v6 = vpop.f32.mrf.mxu1 }
 0x795   : > { %v4556_v2 = vadd.f32 %v4454_v6, %v11963_v40 }
 0x796   : > { %v4683_v33 = vpop.f32.mrf.mxu2 }
 0x797   : > { %4501 = vmatmul.f32.gmra.mxu1 %v11878_v9  ;;  %v4782_v17 = vadd.f32 %v4680_v18, %v4556_v2  ;;  %v11966_v9 = vld [vmem:[#allocation166_spill] sm:$0xff]  ;;  %v5263_v18 = vld [vmem:[#allocation7 + $0x388] sm:$0xff]  ;;  %v11968_v2 = vld [vmem:[#allocation115_spill] sm:$0xff] }
 0x798   : > { %4953 = vmatmul.f32.gmra.mxu3 %v11964_v5  ;;  %5292 = vmatpush.msra.mxu1 %v5263_v18  ;;  %v11970_v18 = vld [vmem:[#allocation157_spill] sm:$0xff] }
 0x79b   : > { %v4906_v42 = vpop.f32.mrf.mxu3  ;;  %4733 = vmatmul.f32.gmra.mxu2 %v9433_v25 }
 0x79c   : > { %v10007_v7 = vadd.f32 %v4906_v42, %v4782_v17  ;;  %v4457_v4 = vpop.f32.mrf.mxu1 }
 0x79d   : > { %v4557_v11 = vadd.f32 %v4457_v4, %v11965_v41 }
 0x79e   : > { %v4686_v55 = vpop.f32.mrf.mxu2 }
 0x79f   : > { %6103 = vmatmul.msk.f32.gmra.mxu1 %vm3179_vm3, %v11884_v35  ;;  %v4783_v40 = vadd.f32 %v4683_v33, %v4557_v11  ;;  %v11969_v35 = vld [vmem:[#allocation84_spill] sm:$0xff] }
 0x7a0   : > { %4956 = vmatmul.f32.gmra.mxu3 %v11966_v9 }
 0x7a3   : > { %v4909_v43 = vpop.f32.mrf.mxu3  ;;  %4736 = vmatmul.f32.gmra.mxu2 %v9465_v50 }
 0x7a4   : > { %v10015_v42 = vadd.f32 %v4909_v43, %v4783_v40  ;;  %v4460_v6 = vpop.f32.mrf.mxu1 }
 0x7a5   : > { %v4558_v17 = vadd.f32 %v4460_v6, %v11968_v2 }
 0x7a6   : > { %11967 = vst [vmem:[#allocation243_spill] sm:$0xff] %v10015_v42  ;;  %v4689_v41 = vpop.f32.mrf.mxu2  ;;  %v11971_v42 = vld [vmem:[#allocation135_spill] sm:$0xff] }
 0x7a7   : > { %6104 = vmatmul.msk.f32.gmra.mxu1 %vm3120_vm2, %v11889_v57  ;;  %v4784_v4 = vadd.f32 %v4686_v55, %v4558_v17  ;;  %v5488_v17 = vld [vmem:[#allocation7 + $0x400] sm:$0xff] }
 0x7a8   : > { %4959 = vmatmul.f32.gmra.mxu3 %v11969_v35  ;;  %5519 = vmatpush.msra.mxu2 %v5488_v17 }
 0x7ab   : > { %v4912_v11 = vpop.f32.mrf.mxu3  ;;  %4739 = vmatmul.f32.gmra.mxu2 %v9491_v52 }
 0x7ac   : > { %v10023_v33 = vadd.f32 %v4912_v11, %v4784_v4  ;;  %v4463_v47 = vpop.f32.mrf.mxu1 }
 0x7ad   : > { %v4559_v40 = vadd.f32 %v4463_v47, %v11970_v18 }
 0x7ae   : > { %v4692_v43 = vpop.f32.mrf.mxu2 }
 0x7af   : > { %4510 = vmatmul.f32.gmra.mxu1 %v11895_v14  ;;  %v4785_v6 = vadd.f32 %v4689_v41, %v4559_v40  ;;  %v5262_v14 = vld [vmem:[#allocation7 + $0x380] sm:$0xff]  ;;  %v11972_v40 = vld [vmem:[#allocation221_spill] sm:$0xff] }
 0x7b0   : > { %4962 = vmatmul.f32.gmra.mxu3 %v9468_v39  ;;  %5293 = vmatpush.msra.mxu1 %v5262_v14 }
 0x7b3   : > { %v4915_v2 = vpop.f32.mrf.mxu3  ;;  %4742 = vmatmul.f32.gmra.mxu2 %v9514_v32 }
 0x7b4   : > { %v10029_v57 = vadd.f32 %v4915_v2, %v4785_v6  ;;  %v4466_v55 = vpop.f32.mrf.mxu1 }
 0x7b5   : > { %v4560_v52 = vadd.f32 %v4466_v55, %v11971_v42  ;;  %v3547_v55 = vrot.slane %v9945_v62, 1 }
 0x7b6   : > { %v4695_v4 = vpop.f32.mrf.mxu2 }
 0x7b7   : > { %6105 = vmatmul.msk.f32.gmra.mxu1 %vm3179_vm3, %v9448_v59  ;;  %v4786_v11 = vadd.f32 %v4692_v43, %v4560_v52 }
 0x7b8   : > { %4965 = vmatmul.f32.gmra.mxu3 %v9494_v61 }
 0x7bb   : > { %v4918_v41 = vpop.f32.mrf.mxu3  ;;  %4745 = vmatmul.f32.gmra.mxu2 %v9539_v45 }
 0x7bc   : > { %v10037_v47 = vadd.f32 %v4918_v41, %v4786_v11  ;;  %v4469_v18 = vpop.f32.mrf.mxu1 }
 0x7bd   : > { %v4561_v6 = vadd.f32 %v4469_v18, %v11972_v40 }
 0x7be   : > { %v4698_v42 = vpop.f32.mrf.mxu2 }
 0x7bf   : > { %6106 = vmatmul.msk.f32.gmra.mxu1 %vm3120_vm2, %v9476_v1  ;;  %v10043_v2 = vadd.f32 %v4695_v4, %v4561_v6  ;;  %v11973_v1 = vrot.slane %v9556_v27, 1  ;;  %v3710_v6 = vrot.slane %v9945_v62, 2 }
 0x7c0   : > { %4968 = vmatmul.f32.gmra.mxu3 %v9517_v53 }
 0x7c1   : > { %v10056_v4 = vsel %vm423_vm0, %v11973_v1, %v3547_v55 }
 0x7c3   : > { %4748 = vmatmul.f32.gmra.mxu2 %v9569_v34 }
 0x7c4   : > { %v4472_v59 = vpop.f32.mrf.mxu1 }
 0x7c5   : > { %v4562_v52 = vadd.f32 %v4472_v59, %v9487_v38  ;;  %v3392_v38 = vsel %vm3179_vm3, %v9955_v20, 0.0 }
 0x7c6   : > { %v4701_v43 = vpop.f32.mrf.mxu2 }
 0x7c7   : > { %4519 = vmatmul.f32.gmra.mxu1 %v9504_v58  ;;  %v10050_v17 = vadd.f32 %v4698_v42, %v4562_v52  ;;  %v3549_v58 = vrot.slane %v3392_v38, 1 }
 0x7c8   : > { %4971 = vmatmul.f32.gmra.mxu3 %v9542_v51 }
 0x7c9   : > { %v10070_v40 = vsel %vm423_vm0, %v3547_v55, %v3549_v58  ;;  %v11975_v55 = vld [vmem:[#allocation114_spill] sm:$0xff] }
 0x7ca   : > { %v10088_v1 = vsel %vm423_vm0, %v3549_v58, %v11975_v55  ;;  %v11996_v55 = vld [vmem:[#allocation258_spill] sm:$0xff] }
 0x7cb   : > { %4751 = vmatmul.f32.gmra.mxu2 %v10056_v4 }
 0x7cc   : > { %v4475_v11 = vpop.f32.mrf.mxu1 }
 0x7cd   : > { %v4563_v14 = vadd.f32 %v4475_v11, %v9511_v13 }
 0x7ce   : > { %v4704_v41 = vpop.f32.mrf.mxu2 }
 0x7cf   : > { %6107 = vmatmul.msk.f32.gmra.mxu1 %vm3179_vm3, %v9526_v31  ;;  %v10066_v18 = vadd.f32 %v4701_v43, %v4563_v14  ;;  %v11974_v31 = vrot.slane %v9556_v27, 2 }
 0x7d0   : > { %4974 = vmatmul.f32.gmra.mxu3 %v9574_v36 }
 0x7d1   : > { %v10081_v52 = vsel %vm605_vm1, %v11974_v31, %v3710_v6 }
 0x7d3   : > { %4754 = vmatmul.f32.gmra.mxu2 %v10070_v40 }
 0x7d4   : > { %v4478_v42 = vpop.f32.mrf.mxu1 }
 0x7d5   : > { %v4564_v13 = vadd.f32 %v4478_v42, %v9536_v63  ;;  %v3712_v63 = vrot.slane %v3392_v38, 2 }
 0x7d6   : > { %v4707_v59 = vpop.f32.mrf.mxu2 }
 0x7d7   : > { %6108 = vmatmul.msk.f32.gmra.mxu1 %vm3120_vm2, %v9549_v16  ;;  %v10083_v43 = vadd.f32 %v4704_v41, %v4564_v13  ;;  %v10094_v27 = vsel %vm605_vm1, %v3710_v6, %v3712_v63  ;;  %v11978_v6 = vld [vmem:[#allocation20_spill] sm:$0xff] }
 0x7d8   : > { %4977 = vmatmul.f32.gmra.mxu3 %v10081_v52 }
 0x7db   : > { %4757 = vmatmul.f32.gmra.mxu2 %v10088_v1 }
 0x7dc   : > { %v4481_v11 = vpop.f32.mrf.mxu1 }
 0x7dd   : > { %v4565_v0 = vadd.f32 %v4481_v11, %v9559_v21  ;;  %v11976_v21 = vld [vmem:[#allocation176_spill] sm:$0xff] }
 0x7de   : > { %v4710_v16 = vpop.f32.mrf.mxu2 }
 0x7df   : > { %4528 = vmatmul.f32.gmra.mxu1 %v9945_v62  ;;  %v10096_v14 = vadd.f32 %v4707_v59, %v4565_v0  ;;  %v10106_v62 = vsel %vm605_vm1, %v3712_v63, %v11976_v21  ;;  %v11983_v63 = vld [vmem:[#allocation161_spill] sm:$0xff] }
 0x7e0   : > { %4980 = vmatmul.f32.gmra.mxu3 %v10094_v27 }
 0x7e3   : > { %5520 = vmatmul.f32.vlgmr.msra.gmra.mxu2 %v11782_v49  ;;  %v11979_v49 = vld [vmem:[#allocation162_spill] sm:$0xff] }
 0x7e4   : > { %v4484_v41 = vpop.f32.mrf.mxu1 }
 0x7e5   : > { %v4566_v58 = vadd.f32 %v4484_v41, %v9584_v23  ;;  %v11980_v23 = vld [vmem:[#allocation145_spill] sm:$0xff]  ;;  %v11984_v41 = vld [vmem:[#allocation160_spill] sm:$0xff] }
 0x7e6   : > { %v4713_v42 = vpop.f32.mrf.mxu2 }
 0x7e7   : > { %6109 = vmatmul.msk.f32.gmra.mxu1 %vm3179_vm3, %v9955_v20  ;;  %v10108_v38 = vadd.f32 %v4710_v16, %v4566_v58 }
 0x7e8   : > { %4983 = vmatmul.f32.gmra.mxu3 %v10106_v62 }
 0x7e9   : > { %11977 = vst [vmem:[#allocation125_spill] sm:$0xff] %v10108_v38 }
 0x7eb   : > { %5523 = vmatmul.f32.gmra.mxu2 %v11978_v6  ;;  %v11986_v6 = vld [vmem:[#allocation257_spill] sm:$0xff] }
 0x7ec   : > { %v4487_v13 = vpop.f32.mrf.mxu1 }
 0x7ed   : > { %v4567_v59 = vadd.f32 %v4487_v13, %v11979_v49  ;;  %v11987_v49 = vld [vmem:[#allocation240_spill] sm:$0xff] }
 0x7ee   : > { %v4716_v31 = vpop.f32.mrf.mxu2 }
 0x7ef   : > { %5294 = vmatmul.f32.vlgmr.msra.gmra.mxu1 %v11980_v23  ;;  %v10114_v11 = vadd.f32 %v4713_v42, %v4567_v59  ;;  %v11988_v23 = vld [vmem:[#allocation254_spill] sm:$0xff] }
 0x7f0   : > { %5206 = vmatmul.f32.vlgmr.msrb.gmra.mxu3 %v11949_v44 }
 0x7f1   : > { %11981 = vst [vmem:[#allocation128_spill] sm:$0xff] %v10114_v11 }
 0x7f3   : > { %5526 = vmatmul.f32.gmra.mxu2 %v11982_v26  ;;  %v11990_v26 = vld [vmem:[#allocation259_spill] sm:$0xff] }
 0x7f4   : > { %v4490_v20 = vpop.f32.mrf.mxu1 }
 0x7f5   : > { %v4568_v0 = vadd.f32 %v4490_v20, %v11983_v63  ;;  %v11991_v63 = vld [vmem:[#allocation170_spill] sm:$0xff] }
 0x7f6   : > { %v4719_v16 = vpop.f32.mrf.mxu2 }
 0x7f7   : > { %5297 = vmatmul.f32.gmra.mxu1 %v11984_v41  ;;  %v10120_v58 = vadd.f32 %v4716_v31, %v4568_v0  ;;  %v11992_v31 = vld [vmem:[#allocation36_spill] sm:$0xff] }
 0x7f8   : > { %5209 = vmatmul.f32.gmra.mxu3 %v11949_v44  ;;  %v11994_v44 = vld [vmem:[#allocation261_spill] sm:$0xff] }
 0x7f9   : > { %11985 = vst [vmem:[#allocation249_spill] sm:$0xff] %v10120_v58  ;;  %v11995_v58 = vld [vmem:[#allocation57_spill] sm:$0xff] }
 0x7fb   : > { %5529 = vmatmul.f32.gmra.mxu2 %v11986_v6 }
 0x7fc   : > { %v4493_v13 = vpop.f32.mrf.mxu1 }
 0x7fd   : > { %v4569_v42 = vadd.f32 %v4493_v13, %v11987_v49 }
 0x7fe   : > { %v4722_v59 = vpop.f32.mrf.mxu2 }
 0x7ff   : > { %5300 = vmatmul.f32.gmra.mxu1 %v11988_v23  ;;  %v10126_v11 = vadd.f32 %v4719_v16, %v4569_v42  ;;  %v11998_v42 = vld [vmem:[#allocation263_spill] sm:$0xff] }
 0x801   : > { %11989 = vst [vmem:[#allocation194_spill] sm:$0xff] %v10126_v11  ;;  %v12000_v11 = vld [vmem:[#allocation260_spill] sm:$0xff] }
 0x803   : > { %5532 = vmatmul.f32.gmra.mxu2 %v11990_v26  ;;  %v11999_v26 = vld [vmem:[#allocation118_spill] sm:$0xff] }
 0x804   : > { %v4496_v20 = vpop.f32.mrf.mxu1 }
 0x805   : > { %v4570_v38 = vadd.f32 %v4496_v20, %v11991_v63 }
 0x806   : > { %v4725_v41 = vpop.f32.mrf.mxu2 }
 0x807   : > { %5303 = vmatmul.f32.gmra.mxu1 %v11992_v31  ;;  %v10131_v0 = vadd.f32 %v4722_v59, %v4570_v38  ;;  %v12002_v59 = vld [vmem:[#allocation264_spill] sm:$0xff] }
 0x809   : > { %11993 = vst [vmem:[#allocation85_spill] sm:$0xff] %v10131_v0  ;;  %v12004_v0 = vld [vmem:[#allocation262_spill] sm:$0xff] }
 0x80b   : > { %5535 = vmatmul.f32.gmra.mxu2 %v11994_v44  ;;  %v12003_v44 = vld [vmem:[#allocation67_spill] sm:$0xff] }
 0x80c   : > { %v4499_v6 = vpop.f32.mrf.mxu1 }
 0x80d   : > { %v4571_v13 = vadd.f32 %v4499_v6, %v11995_v58 }
 0x80e   : > { %v4728_v49 = vpop.f32.mrf.mxu2 }
 0x80f   : > { %5306 = vmatmul.f32.gmra.mxu1 %v11996_v55  ;;  %v10136_v16 = vadd.f32 %v4725_v41, %v4571_v13  ;;  %v12006_v41 = vld [vmem:[#allocation266_spill] sm:$0xff] }
 0x811   : > { %11997 = vst [vmem:[#allocation138_spill] sm:$0xff] %v10136_v16  ;;  %v12008_v16 = vld [vmem:[#allocation40_spill] sm:$0xff] }
 0x813   : > { %5538 = vmatmul.f32.gmra.mxu2 %v11998_v42  ;;  %v12007_v42 = vld [vmem:[#allocation110_spill] sm:$0xff] }
 0x814   : > { %v4502_v23 = vpop.f32.mrf.mxu1 }
 0x815   : > { %v4572_v20 = vadd.f32 %v4502_v23, %v11999_v26 }
 0x816   : > { %v4731_v63 = vpop.f32.mrf.mxu2 }
 0x817   : > { %5309 = vmatmul.f32.gmra.mxu1 %v12000_v11  ;;  %v10141_v38 = vadd.f32 %v4728_v49, %v4572_v20  ;;  %v12010_v49 = vld [vmem:[#allocation269_spill] sm:$0xff] }
 0x819   : > { %12001 = vst [vmem:[#allocation163_spill] sm:$0xff] %v10141_v38  ;;  %v12012_v38 = vld [vmem:[#allocation265_spill] sm:$0xff] }
 0x81b   : > { %5541 = vmatmul.f32.gmra.mxu2 %v12002_v59  ;;  %v12011_v59 = vld [vmem:[#allocation242_spill] sm:$0xff] }
 0x81c   : > { %v4505_v31 = vpop.f32.mrf.mxu1 }
 0x81d   : > { %v4573_v58 = vadd.f32 %v4505_v31, %v12003_v44 }
 0x81e   : > { %v4734_v6 = vpop.f32.mrf.mxu2 }
 0x81f   : > { %5312 = vmatmul.f32.gmra.mxu1 %v12004_v0  ;;  %v10146_v55 = vadd.f32 %v4731_v63, %v4573_v58  ;;  %v12014_v63 = vld [vmem:[#allocation273_spill] sm:$0xff] }
 0x821   : > { %12005 = vst [vmem:[#allocation21_spill] sm:$0xff] %v10146_v55  ;;  %v12016_v55 = vld [vmem:[#allocation268_spill] sm:$0xff] }
 0x823   : > { %5544 = vmatmul.f32.gmra.mxu2 %v12006_v41  ;;  %v12015_v41 = vld [vmem:[#allocation61_spill] sm:$0xff] }
 0x824   : > { %v4508_v13 = vpop.f32.mrf.mxu1 }
 0x825   : > { %v4574_v23 = vadd.f32 %v4508_v13, %v12007_v42 }
 0x826   : > { %v4737_v26 = vpop.f32.mrf.mxu2 }
 0x827   : > { %5315 = vmatmul.f32.gmra.mxu1 %v12008_v16  ;;  %v10151_v11 = vadd.f32 %v4734_v6, %v4574_v23  ;;  %v12017_v6 = vld [vmem:[#allocation277_spill] sm:$0xff] }
 0x829   : > { %12009 = vst [vmem:[#allocation26_spill] sm:$0xff] %v10151_v11  ;;  %v12019_v11 = vld [vmem:[#allocation272_spill] sm:$0xff] }
 0x82b   : > { %5547 = vmatmul.f32.gmra.mxu2 %v12010_v49  ;;  %v12018_v49 = vld [vmem:[#allocation88_spill] sm:$0xff] }
 0x82c   : > { %v4511_v20 = vpop.f32.mrf.mxu1 }
 0x82d   : > { %v4575_v31 = vadd.f32 %v4511_v20, %v12011_v59 }
 0x82e   : > { %v4740_v44 = vpop.f32.mrf.mxu2 }
 0x82f   : > { %5318 = vmatmul.f32.gmra.mxu1 %v12012_v38  ;;  %v10156_v0 = vadd.f32 %v4737_v26, %v4575_v31  ;;  %v12021_v26 = vld [vmem:[#allocation281_spill] sm:$0xff] }
 0x831   : > { %12013 = vst [vmem:[#allocation198_spill] sm:$0xff] %v10156_v0  ;;  %v12023_v0 = vld [vmem:[#allocation276_spill] sm:$0xff] }
 0x833   : > { %5550 = vmatmul.f32.gmra.mxu2 %v12014_v63  ;;  %v12022_v63 = vld [vmem:[#allocation230_spill] sm:$0xff] }
 0x834   : > { %v4514_v58 = vpop.f32.mrf.mxu1 }
 0x835   : > { %v4576_v13 = vadd.f32 %v4514_v58, %v12015_v41 }
 0x836   : > { %v4743_v42 = vpop.f32.mrf.mxu2 }
 0x837   : > { %5321 = vmatmul.f32.gmra.mxu1 %v12016_v55  ;;  %v10161_v16 = vadd.f32 %v4740_v44, %v4576_v13  ;;  %v12025_v13 = vld [vmem:[#allocation102_spill] sm:$0xff] }
 0x83b   : > { %5553 = vmatmul.f32.gmra.mxu2 %v12017_v6 }
 0x83c   : > { %v4517_v23 = vpop.f32.mrf.mxu1 }
 0x83d   : > { %v4577_v20 = vadd.f32 %v4517_v23, %v12018_v49  ;;  %v12026_v49 = vld [vmem:[#allocation280_spill] sm:$0xff] }
 0x83e   : > { %v4746_v59 = vpop.f32.mrf.mxu2 }
 0x83f   : > { %5324 = vmatmul.f32.gmra.mxu1 %v12019_v11  ;;  %v10166_v38 = vadd.f32 %v4743_v42, %v4577_v20  ;;  %v12028_v20 = vld [vmem:[#allocation177_spill] sm:$0xff] }
 0x841   : > { %12020 = vst [vmem:[#allocation89_spill] sm:$0xff] %v10166_v38 }
 0x843   : > { %5556 = vmatmul.f32.gmra.mxu2 %v12021_v26 }
 0x844   : > { %v4520_v31 = vpop.f32.mrf.mxu1 }
 0x845   : > { %v4578_v58 = vadd.f32 %v4520_v31, %v12022_v63  ;;  %v12029_v63 = vld [vmem:[#allocation284_spill] sm:$0xff] }
 0x846   : > { %v4749_v41 = vpop.f32.mrf.mxu2 }
 0x847   : > { %5327 = vmatmul.f32.gmra.mxu1 %v12023_v0  ;;  %v10171_v55 = vadd.f32 %v4746_v59, %v4578_v58  ;;  %v12031_v59 = vld [vmem:[#allocation122_spill] sm:$0xff] }
 0x849   : > { %12024 = vst [vmem:[#allocation154_spill] sm:$0xff] %v10171_v55  ;;  %v12046_v55 = vld [vmem:[#allocation35_spill] sm:$0xff] }
 0x84b   : > { %5559 = vmatmul.f32.gmra.mxu2 %v11847_v29 }
 0x84c   : > { %v4523_v44 = vpop.f32.mrf.mxu1 }
 0x84d   : > { %v4579_v6 = vadd.f32 %v4523_v44, %v12025_v13  ;;  %v12032_v13 = vld [vmem:[#allocation44_spill] sm:$0xff] }
 0x84e   : > { %v4752_v23 = vpop.f32.mrf.mxu2 }
 0x84f   : > { %5330 = vmatmul.f32.gmra.mxu1 %v12026_v49  ;;  %v10176_v11 = vadd.f32 %v4749_v41, %v4579_v6  ;;  %v12034_v6 = vld [vmem:[#allocation295_spill] sm:$0xff]  ;;  %v12035_v49 = vld [vmem:[#allocation233_spill] sm:$0xff] }
 0x851   : > { %12027 = vst [vmem:[#allocation165_spill] sm:$0xff] %v10176_v11  ;;  %v12036_v11 = vld [vmem:[#allocation291_spill] sm:$0xff] }
 0x853   : > { %5562 = vmatmul.f32.gmra.mxu2 %v11852_v56 }
 0x854   : > { %v4526_v42 = vpop.f32.mrf.mxu1 }
 0x855   : > { %v4580_v26 = vadd.f32 %v4526_v42, %v12028_v20 }
 0x856   : > { %v4755_v31 = vpop.f32.mrf.mxu2 }
 0x857   : > { %5333 = vmatmul.f32.gmra.mxu1 %v12029_v63  ;;  %v10181_v0 = vadd.f32 %v4752_v23, %v4580_v26  ;;  %v12038_v26 = vld [vmem:[#allocation298_spill] sm:$0xff]  ;;  %v12040_v63 = vld [vmem:[#allocation227_spill] sm:$0xff] }
 0x859   : > { %12030 = vst [vmem:[#allocation246_spill] sm:$0xff] %v10181_v0 }
 0x85b   : > { %5565 = vmatmul.f32.gmra.mxu2 %v11857_v24  ;;  %v12039_v24 = vld [vmem:[#allocation171_spill] sm:$0xff] }
 0x85c   : > { %v4529_v29 = vpop.f32.mrf.mxu1 }
 0x85d   : > { %v4581_v58 = vadd.f32 %v4529_v29, %v12031_v59  ;;  %v5213_v29 = vadd.f32 %v12040_v63, %v12039_v24 }
 0x85e   : > { %v4758_v44 = vpop.f32.mrf.mxu2 }
 0x85f   : > { %5336 = vmatmul.f32.gmra.mxu1 %v12032_v13  ;;  %v10186_v41 = vadd.f32 %v4755_v31, %v4581_v58  ;;  %v10199_v31 = vld [vmem:[%s10561_s4] ss:$0 sm:$0xff] }
 0x861   : > { %12033 = vst [vmem:[#allocation27_spill] sm:$0xff] %v10186_v41 }
 0x863   : > { %5568 = vmatmul.f32.gmra.mxu2 %v12034_v6 }
 0x864   : > { %v4532_v56 = vpop.f32.mrf.mxu1 }
 0x865   : > { %v4582_v42 = vadd.f32 %v4532_v56, %v12035_v49  ;;  %v12041_v56 = vld [vmem:[#allocation48_spill] sm:$0xff] }
 0x866   : > { %v5521_v20 = vpop.f32.mrf.mxu2 }
 0x867   : > { %5339 = vmatmul.f32.gmra.mxu1 %v12036_v11  ;;  %v10191_v23 = vadd.f32 %v4758_v44, %v4582_v42  ;;  %v12042_v44 = vld [vmem:[#allocation184_spill] sm:$0xff] }
 0x868   : > { %v12043_v42 = vld [vmem:[#allocation208_spill] sm:$0xff] }
 0x869   : > { %12037 = vst [vmem:[#allocation100_spill] sm:$0xff] %v10191_v23  ;;  %v12045_v23 = vld [vmem:[#allocation99_spill] sm:$0xff] }
 0x86b   : > { %5571 = vmatmul.f32.gmra.mxu2 %v12038_v26  ;;  %v12044_v26 = vld [vmem:[#allocation245_spill] sm:$0xff] }
 0x86c   : > { %v5295_v59 = vpop.f32.mrf.mxu1  ;;  %v5214_v24 = vadd.f32 %v12045_v23, %v12044_v26 }
 0x86d   : > { %v5439_v13 = vadd.f32 %v5295_v59, %v5213_v29 }
 0x86e   : > { %v5524_v58 = vpop.f32.mrf.mxu2 }
 0x86f   : > { %v5665_v6 = vadd.f32 %v5521_v20, %v5439_v13  ;;  %5342 = vmatmul.f32.gmra.mxu1 %v12041_v56  ;;  %v12047_v13 = vld [vmem:[#allocation188_spill] sm:$0xff]  ;;  %v12048_v56 = vld [vmem:[#allocation211_spill] sm:$0xff] }
 0x871   : > { %v5717_v11 = vadd.f32 %v10199_v31, %v5665_v6 }
 0x873   : > { %v5765_v49 = vadd.f32 %v5717_v11, %v12042_v44  ;;  %5574 = vmatmul.f32.gmra.mxu2 %v12043_v42  ;;  %v12049_v11 = vld [vmem:[#allocation69_spill] sm:$0xff] }
 0x874   : > { %v5298_v63 = vpop.f32.mrf.mxu1  ;;  %v12050_v44 = vld [vmem:[#allocation173_spill] sm:$0xff] }
 0x875   : > { %v5813_v29 = vmax.f32 %v5765_v49, 0.0  ;;  %v5440_v59 = vadd.f32 %v5298_v63, %v5214_v24  ;;  %v5215_v42 = vadd.f32 %v12050_v44, %v12049_v11  ;;  %v12051_v63 = vld [vmem:[#allocation174_spill] sm:$0xff] }
 0x876   : > { %v5527_v41 = vpop.f32.mrf.mxu2 }
 0x877   : > { %5861 = vst [vmem:[%s6672_s9] sm:$0xff] %v5813_v29  ;;  %v5666_v0 = vadd.f32 %v5524_v58, %v5440_v59  ;;  %5345 = vmatmul.f32.gmra.mxu1 %v12046_v55  ;;  %v12052_v58 = vld [vmem:[#allocation191_spill] sm:$0xff]  ;;  %v12053_v29 = vld [vmem:[#allocation181_spill] sm:$0xff] }
 0x878   : > { %v12054_v59 = vld [vmem:[#allocation75_spill] sm:$0xff] }
 0x879   : > { %v5718_v20 = vadd.f32 %v10199_v31, %v5666_v0 }
 0x87b   : > { %v5766_v6 = vadd.f32 %v5718_v20, %v12047_v13  ;;  %5577 = vmatmul.f32.gmra.mxu2 %v12048_v56  ;;  %v12055_v20 = vld [vmem:[#allocation139_spill] sm:$0xff] }
 0x87c   : > { %v5301_v23 = vpop.f32.mrf.mxu1  ;;  %v5216_v13 = vadd.f32 %v12055_v20, %v12054_v59 }
 0x87d   : > { %v5814_v26 = vmax.f32 %v5766_v6, 0.0  ;;  %v5441_v38 = vadd.f32 %v5301_v23, %v5215_v42  ;;  %v12056_v23 = vld [vmem:[#allocation178_spill] sm:$0xff] }
 0x87e   : > { %v5530_v49 = vpop.f32.mrf.mxu2 }
 0x87f   : > { %5862 = vst [vmem:[%s6672_s9 + $0x8] sm:$0xff] %v5814_v26  ;;  %v5667_v24 = vadd.f32 %v5527_v41, %v5441_v38  ;;  %5348 = vmatmul.f32.gmra.mxu1 %v12051_v63  ;;  %v12057_v41 = vld [vmem:[#allocation195_spill] sm:$0xff]  ;;  %v12059_v63 = vld [vmem:[#allocation105_spill] sm:$0xff] }
 0x881   : > { %v5719_v55 = vadd.f32 %v10199_v31, %v5667_v24  ;;  %v12058_v24 = vld [vmem:[#allocation56_spill] sm:$0xff] }
 0x883   : > { %v5767_v0 = vadd.f32 %v5719_v55, %v12052_v58  ;;  %5580 = vmatmul.f32.gmra.mxu2 %v12053_v29  ;;  %v12060_v55 = vld [vmem:[#allocation167_spill] sm:$0xff] }
 0x884   : > { %v5304_v56 = vpop.f32.mrf.mxu1  ;;  %v5217_v58 = vadd.f32 %v12060_v55, %v12059_v63 }
 0x885   : > { %v5815_v11 = vmax.f32 %v5767_v0, 0.0  ;;  %v5442_v44 = vadd.f32 %v5304_v56, %v5216_v13  ;;  %v12061_v56 = vld [vmem:[#allocation52_spill] sm:$0xff] }
 0x886   : > { %v5533_v6 = vpop.f32.mrf.mxu2 }
 0x887   : > { %5863 = vst [vmem:[%s6672_s9 + $0x10] sm:$0xff] %v5815_v11  ;;  %v5668_v42 = vadd.f32 %v5530_v49, %v5442_v44  ;;  %5351 = vmatmul.f32.gmra.mxu1 %v12056_v23  ;;  %v12062_v11 = vld [vmem:[#allocation199_spill] sm:$0xff] }
 0x888   : > { %v12064_v23 = vld [vmem:[#allocation175_spill] sm:$0xff] }
 0x889   : > { %v5720_v38 = vadd.f32 %v10199_v31, %v5668_v42  ;;  %v12063_v42 = vld [vmem:[#allocation28_spill] sm:$0xff] }
 0x88b   : > { %v5768_v26 = vadd.f32 %v5720_v38, %v12057_v41  ;;  %5583 = vmatmul.f32.gmra.mxu2 %v12058_v24  ;;  %v12065_v38 = vld [vmem:[#allocation244_spill] sm:$0xff] }
 0x88c   : > { %v5307_v29 = vpop.f32.mrf.mxu1  ;;  %v5218_v41 = vadd.f32 %v12065_v38, %v12064_v23 }
 0x88d   : > { %v5816_v59 = vmax.f32 %v5768_v26, 0.0  ;;  %v5443_v20 = vadd.f32 %v5307_v29, %v5217_v58  ;;  %v12066_v29 = vld [vmem:[#allocation29_spill] sm:$0xff] }
 0x88e   : > { %v5536_v0 = vpop.f32.mrf.mxu2 }
 0x88f   : > { %5864 = vst [vmem:[%s6672_s9 + $0x18] sm:$0xff] %v5816_v59  ;;  %v5669_v13 = vadd.f32 %v5533_v6, %v5443_v20  ;;  %5354 = vmatmul.f32.gmra.mxu1 %v12061_v56  ;;  %v12067_v59 = vld [vmem:[#allocation203_spill] sm:$0xff] }
 0x890   : > { %v12069_v56 = vld [vmem:[#allocation183_spill] sm:$0xff] }
 0x891   : > { %v5721_v49 = vadd.f32 %v10199_v31, %v5669_v13  ;;  %v12068_v13 = vld [vmem:[#allocation222_spill] sm:$0xff] }
 0x893   : > { %v5769_v44 = vadd.f32 %v5721_v49, %v12062_v11  ;;  %5586 = vmatmul.f32.gmra.mxu2 %v12063_v42  ;;  %v12070_v49 = vld [vmem:[#allocation65_spill] sm:$0xff] }
 0x894   : > { %v5310_v24 = vpop.f32.mrf.mxu1  ;;  %v5219_v11 = vadd.f32 %v12070_v49, %v12069_v56 }
 0x895   : > { %v5817_v63 = vmax.f32 %v5769_v44, 0.0  ;;  %v5444_v55 = vadd.f32 %v5310_v24, %v5218_v41  ;;  %v12071_v24 = vld [vmem:[#allocation140_spill] sm:$0xff] }
 0x896   : > { %v5539_v26 = vpop.f32.mrf.mxu2 }
 0x897   : > { %5865 = vst [vmem:[%s6672_s9 + $0x20] sm:$0xff] %v5817_v63  ;;  %v5670_v58 = vadd.f32 %v5536_v0, %v5444_v55  ;;  %5357 = vmatmul.f32.gmra.mxu1 %v12066_v29  ;;  %v12072_v63 = vld [vmem:[#allocation207_spill] sm:$0xff]  ;;  %v12074_v29 = vld [vmem:[#allocation129_spill] sm:$0xff] }
 0x899   : > { %v5722_v6 = vadd.f32 %v10199_v31, %v5670_v58  ;;  %v12073_v58 = vld [vmem:[#allocation72_spill] sm:$0xff] }
 0x89b   : > { %v5770_v20 = vadd.f32 %v5722_v6, %v12067_v59  ;;  %5589 = vmatmul.f32.gmra.mxu2 %v12068_v13  ;;  %v12075_v6 = vld [vmem:[#allocation134_spill] sm:$0xff] }
 0x89c   : > { %v5313_v42 = vpop.f32.mrf.mxu1  ;;  %v5220_v59 = vadd.f32 %v12075_v6, %v12074_v29 }
 0x89d   : > { %v5818_v23 = vmax.f32 %v5770_v20, 0.0  ;;  %v5445_v38 = vadd.f32 %v5313_v42, %v5219_v11  ;;  %v12076_v42 = vld [vmem:[#allocation192_spill] sm:$0xff] }
 0x89e   : > { %v5542_v44 = vpop.f32.mrf.mxu2 }
 0x89f   : > { %5866 = vst [vmem:[%s6672_s9 + $0x28] sm:$0xff] %v5818_v23  ;;  %v5671_v41 = vadd.f32 %v5539_v26, %v5445_v38  ;;  %5360 = vmatmul.f32.gmra.mxu1 %v12071_v24  ;;  %v12077_v23 = vld [vmem:[#allocation209_spill] sm:$0xff]  ;;  %v12079_v24 = vld [vmem:[#allocation239_spill] sm:$0xff] }
 0x8a1   : > { %v5723_v0 = vadd.f32 %v10199_v31, %v5671_v41  ;;  %v12078_v41 = vld [vmem:[#allocation147_spill] sm:$0xff] }
 0x8a3   : > { %v5771_v55 = vadd.f32 %v5723_v0, %v12072_v63  ;;  %5592 = vmatmul.f32.gmra.mxu2 %v12073_v58  ;;  %v12080_v0 = vld [vmem:[#allocation179_spill] sm:$0xff] }
 0x8a4   : > { %v5316_v13 = vpop.f32.mrf.mxu1  ;;  %v5221_v63 = vadd.f32 %v12080_v0, %v12079_v24 }
 0x8a5   : > { %v5819_v56 = vmax.f32 %v5771_v55, 0.0  ;;  %v5446_v49 = vadd.f32 %v5316_v13, %v5220_v59  ;;  %v12081_v13 = vld [vmem:[#allocation60_spill] sm:$0xff] }
 0x8a6   : > { %v5545_v20 = vpop.f32.mrf.mxu2 }
 0x8a7   : > { %5867 = vst [vmem:[%s6672_s9 + $0x30] sm:$0xff] %v5819_v56  ;;  %v5672_v11 = vadd.f32 %v5542_v44, %v5446_v49  ;;  %5363 = vmatmul.f32.gmra.mxu1 %v12076_v42  ;;  %v12082_v56 = vld [vmem:[#allocation212_spill] sm:$0xff] }
 0x8a8   : > { %v12084_v42 = vld [vmem:[#allocation180_spill] sm:$0xff] }
 0x8a9   : > { %v5724_v26 = vadd.f32 %v10199_v31, %v5672_v11  ;;  %v12083_v11 = vld [vmem:[#allocation182_spill] sm:$0xff] }
 0x8ab   : > { %v5772_v38 = vadd.f32 %v5724_v26, %v12077_v23  ;;  %5595 = vmatmul.f32.gmra.mxu2 %v12078_v41  ;;  %v5222_v26 = vadd.f32 %v12084_v42, %v12083_v11  ;;  %v12089_v42 = vld [vmem:[#allocation200_spill] sm:$0xff] }
 0x8ac   : > { %v5319_v58 = vpop.f32.mrf.mxu1 }
 0x8ad   : > { %v5820_v29 = vmax.f32 %v5772_v38, 0.0  ;;  %v5447_v6 = vadd.f32 %v5319_v58, %v5221_v63  ;;  %v12085_v63 = vld [vmem:[#allocation225_spill] sm:$0xff]  ;;  %v12086_v58 = vld [vmem:[#allocation215_spill] sm:$0xff] }
 0x8ae   : > { %v5548_v55 = vpop.f32.mrf.mxu2 }
 0x8af   : > { %5868 = vst [vmem:[%s6672_s9 + $0x38] sm:$0xff] %v5820_v29  ;;  %v5673_v59 = vadd.f32 %v5545_v20, %v5447_v6  ;;  %5366 = vmatmul.f32.gmra.mxu1 %v12081_v13  ;;  %v12087_v6 = vld [vmem:[#allocation23_spill] sm:$0xff] }
 0x8b1   : > { %v5725_v44 = vadd.f32 %v10199_v31, %v5673_v59 }
 0x8b3   : > { %v5773_v49 = vadd.f32 %v5725_v44, %v12082_v56  ;;  %5598 = vmatmul.f32.gmra.mxu2 %v11926_v30  ;;  %v12088_v30 = vld [vmem:[#allocation143_spill] sm:$0xff] }
 0x8b4   : > { %v5322_v23 = vpop.f32.mrf.mxu1  ;;  %v5223_v59 = vadd.f32 %v12088_v30, %v12087_v6  ;;  %v12093_v6 = vld [vmem:[#allocation223_spill] sm:$0xff] }
 0x8b5   : > { %v5821_v41 = vmax.f32 %v5773_v49, 0.0  ;;  %v5448_v24 = vadd.f32 %v5322_v23, %v5222_v26  ;;  %v12090_v26 = vld [vmem:[#allocation219_spill] sm:$0xff] }
 0x8b6   : > { %v5551_v38 = vpop.f32.mrf.mxu2 }
 0x8b7   : > { %5869 = vst [vmem:[%s6672_s9 + $0x40] sm:$0xff] %v5821_v41  ;;  %v5674_v0 = vadd.f32 %v5548_v55, %v5448_v24  ;;  %5369 = vmatmul.f32.gmra.mxu1 %v12085_v63  ;;  %v12091_v41 = vld [vmem:[#allocation77_spill] sm:$0xff] }
 0x8b9   : > { %v5726_v20 = vadd.f32 %v10199_v31, %v5674_v0 }
 0x8bb   : > { %v5774_v29 = vadd.f32 %v5726_v20, %v12086_v58  ;;  %5601 = vmatmul.f32.gmra.mxu2 %v11933_v12  ;;  %v12092_v12 = vld [vmem:[#allocation236_spill] sm:$0xff] }
 0x8bc   : > { %v5325_v13 = vpop.f32.mrf.mxu1  ;;  %v5224_v24 = vadd.f32 %v12092_v12, %v12091_v41 }
 0x8bd   : > { %v5822_v44 = vmax.f32 %v5774_v29, 0.0  ;;  %v5449_v56 = vadd.f32 %v5325_v13, %v5223_v59 }
 0x8be   : > { %v5554_v49 = vpop.f32.mrf.mxu2 }
 0x8bf   : > { %5870 = vst [vmem:[%s6672_s9 + $0x48] sm:$0xff] %v5822_v44  ;;  %v5675_v11 = vadd.f32 %v5551_v38, %v5449_v56  ;;  %5372 = vmatmul.f32.gmra.mxu1 %v12089_v42 }
 0x8c1   : > { %v5727_v55 = vadd.f32 %v10199_v31, %v5675_v11 }
 0x8c3   : > { %v5775_v23 = vadd.f32 %v5727_v55, %v12090_v26  ;;  %5604 = vmatmul.f32.gmra.mxu2 %v11939_v3  ;;  %v12094_v3 = vld [vmem:[#allocation22_spill] sm:$0xff] }
 0x8c4   : > { %v5328_v0 = vpop.f32.mrf.mxu1  ;;  %v5225_v59 = vadd.f32 %v12094_v3, %v9906_v10 }
 0x8c5   : > { %v5823_v63 = vmax.f32 %v5775_v23, 0.0  ;;  %v5450_v20 = vadd.f32 %v5328_v0, %v5224_v24  ;;  %v12097_v0 = vld [vmem:[#allocation41_spill] sm:$0xff] }
 0x8c6   : > { %v5557_v58 = vpop.f32.mrf.mxu2 }
 0x8c7   : > { %5871 = vst [vmem:[%s6672_s9 + $0x50] sm:$0xff] %v5823_v63  ;;  %v5676_v29 = vadd.f32 %v5554_v49, %v5450_v20  ;;  %5375 = vmatmul.f32.gmra.mxu1 %v11921_v15  ;;  %v12095_v49 = vld [vmem:[#allocation226_spill] sm:$0xff]  ;;  %v12098_v63 = vld [vmem:[#allocation229_spill] sm:$0xff] }
 0x8c9   : > { %v5728_v38 = vadd.f32 %v10199_v31, %v5676_v29 }
 0x8cb   : > { %v5776_v30 = vadd.f32 %v5728_v38, %v12093_v6  ;;  %5607 = vmatmul.f32.gmra.mxu2 %v11944_v19  ;;  %v12096_v19 = vld [vmem:[#allocation73_spill] sm:$0xff] }
 0x8cc   : > { %v5331_v13 = vpop.f32.mrf.mxu1  ;;  %v5226_v26 = vadd.f32 %v12096_v19, %v9924_v22 }
 0x8cd   : > { %v5824_v44 = vmax.f32 %v5776_v30, 0.0  ;;  %v5451_v56 = vadd.f32 %v5331_v13, %v5225_v59  ;;  %v12101_v59 = vld [vmem:[#allocation210_spill] sm:$0xff] }
 0x8ce   : > { %v5560_v11 = vpop.f32.mrf.mxu2 }
 0x8cf   : > { %5872 = vst [vmem:[%s6672_s9 + $0x58] sm:$0xff] %v5824_v44  ;;  %v5677_v42 = vadd.f32 %v5557_v58, %v5451_v56  ;;  %5378 = vmatmul.f32.gmra.mxu1 %v11930_v46  ;;  %v12099_v58 = vld [vmem:[#allocation121_spill] sm:$0xff]  ;;  %v12102_v44 = vld [vmem:[#allocation232_spill] sm:$0xff] }
 0x8d1   : > { %v5729_v15 = vadd.f32 %v10199_v31, %v5677_v42 }
 0x8d3   : > { %v5777_v55 = vadd.f32 %v5729_v15, %v12095_v49  ;;  %5610 = vmatmul.f32.gmra.mxu2 %v11950_v37  ;;  %v12100_v37 = vld [vmem:[#allocation96_spill] sm:$0xff] }
 0x8d4   : > { %v5334_v10 = vpop.f32.mrf.mxu1  ;;  %v5227_v29 = vadd.f32 %v12100_v37, %v12099_v58 }
 0x8d5   : > { %v5825_v23 = vmax.f32 %v5777_v55, 0.0  ;;  %v5452_v41 = vadd.f32 %v5334_v10, %v5226_v26  ;;  %v12105_v10 = vld [vmem:[#allocation45_spill] sm:$0xff] }
 0x8d6   : > { %v5563_v12 = vpop.f32.mrf.mxu2 }
 0x8d7   : > { %5873 = vst [vmem:[%s6672_s9 + $0x60] sm:$0xff] %v5825_v23  ;;  %v5678_v24 = vadd.f32 %v5560_v11, %v5452_v41  ;;  %5381 = vmatmul.f32.gmra.mxu1 %v12097_v0  ;;  %v12103_v11 = vld [vmem:[#allocation186_spill] sm:$0xff]  ;;  %v12106_v41 = vld [vmem:[#allocation235_spill] sm:$0xff] }
 0x8d9   : > { %v5730_v46 = vadd.f32 %v10199_v31, %v5678_v24  ;;  %v12107_v24 = vld [vmem:[#allocation190_spill] sm:$0xff] }
 0x8db   : > { %v5778_v20 = vadd.f32 %v5730_v46, %v12098_v63  ;;  %5613 = vmatmul.f32.gmra.mxu2 %v11953_v60  ;;  %v12104_v60 = vld [vmem:[#allocation117_spill] sm:$0xff]  ;;  %v10312_v46 = vpop.f32.mrf.mxu0 }
 0x8dc   : > { %v5337_v22 = vpop.f32.mrf.mxu1  ;;  %v5228_v42 = vadd.f32 %v12104_v60, %v12103_v11 }
 0x8dd   : > { %v5826_v38 = vmax.f32 %v5778_v20, 0.0  ;;  %v5453_v6 = vadd.f32 %v5337_v22, %v5227_v29  ;;  %v12109_v22 = vld [vmem:[#allocation213_spill] sm:$0xff] }
 0x8de   : > { %v5566_v30 = vpop.f32.mrf.mxu2 }
 0x8df   : > { %5874 = vst [vmem:[%s6672_s9 + $0x68] sm:$0xff] %v5826_v38  ;;  %v5679_v3 = vadd.f32 %v5563_v12, %v5453_v6  ;;  %5384 = vmatmul.f32.gmra.mxu1 %v12101_v59  ;;  %v12110_v6 = vld [vmem:[#allocation31_spill] sm:$0xff] }
 0x8e1   : > { %v5731_v13 = vadd.f32 %v10199_v31, %v5679_v3 }
 0x8e3   : > { %v5779_v56 = vadd.f32 %v5731_v13, %v12102_v44  ;;  %5616 = vmatmul.f32.gmra.mxu2 %v11957_v8  ;;  %v12108_v8 = vld [vmem:[#allocation187_spill] sm:$0xff] }
 0x8e4   : > { %v5340_v15 = vpop.f32.mrf.mxu1  ;;  %v5229_v0 = vadd.f32 %v12108_v8, %v12107_v24  ;;  %v12116_v8 = vld [vmem:[#allocation63_spill] sm:$0xff] }
 0x8e5   : > { %v5827_v49 = vmax.f32 %v5779_v56, 0.0  ;;  %v5454_v55 = vadd.f32 %v5340_v15, %v5228_v42  ;;  %v10321_v56 = vpop.f32.mrf.mxu0  ;;  %v12112_v42 = vld [vmem:[#allocation237_spill] sm:$0xff] }
 0x8e6   : > { %v5569_v19 = vpop.f32.mrf.mxu2 }
 0x8e7   : > { %5875 = vst [vmem:[%s6672_s9 + $0x70] sm:$0xff] %v5827_v49  ;;  %v5680_v26 = vadd.f32 %v5566_v30, %v5454_v55  ;;  %5387 = vmatmul.f32.gmra.mxu1 %v12105_v10  ;;  %v10326_v49 = vpop.f32.mrf.mxu3  ;;  %v12113_v55 = vld [vmem:[#allocation34_spill] sm:$0xff] }
 0x8e9   : > { %v5732_v23 = vadd.f32 %v10199_v31, %v5680_v26 }
 0x8eb   : > { %v5780_v12 = vadd.f32 %v5732_v23, %v12106_v41  ;;  %5619 = vmatmul.f32.gmra.mxu2 %v11961_v48  ;;  %v12111_v48 = vld [vmem:[#allocation146_spill] sm:$0xff] }
 0x8ec   : > { %v5343_v63 = vpop.f32.mrf.mxu1  ;;  %v5230_v3 = vadd.f32 %v12111_v48, %v9979_v54  ;;  %v12114_v54 = vld [vmem:[#allocation92_spill] sm:$0xff] }
 0x8ed   : > { %v5828_v20 = vmax.f32 %v5780_v12, 0.0  ;;  %v5455_v58 = vadd.f32 %v5343_v63, %v5229_v0  ;;  %v10334_v0 = vpop.f32.mrf.mxu0 }
 0x8ee   : > { %v5572_v37 = vpop.f32.mrf.mxu2 }
 0x8ef   : > { %5876 = vst [vmem:[%s6672_s9 + $0x78] sm:$0xff] %v5828_v20  ;;  %v5681_v29 = vadd.f32 %v5569_v19, %v5455_v58  ;;  %5390 = vmatmul.f32.gmra.mxu1 %v12109_v22  ;;  %v12115_v19 = vld [vmem:[#allocation142_spill] sm:$0xff]  ;;  %v10341_v22 = vpop.f32.mrf.mxu3 }
 0x8f0   : > { %v5231_v26 = vadd.f32 %v12115_v19, %v12114_v54  ;;  %v12117_v20 = vld [vmem:[#allocation38_spill] sm:$0xff] }
 0x8f1   : > { %v5733_v38 = vadd.f32 %v10199_v31, %v5681_v29 }
 0x8f3   : > { %v5781_v30 = vadd.f32 %v5733_v38, %v12110_v6  ;;  %5622 = vmatmul.f32.gmra.mxu2 %v11964_v5 }
 0x8f4   : > { %v5346_v59 = vpop.f32.mrf.mxu1 }
 0x8f5   : > { %v5829_v13 = vmax.f32 %v5781_v30, 0.0  ;;  %v5456_v44 = vadd.f32 %v5346_v59, %v5230_v3  ;;  %v12120_v59 = vld [vmem:[#allocation238_spill] sm:$0xff] }
 0x8f6   : > { %v5575_v11 = vpop.f32.mrf.mxu2 }
 0x8f7   : > { %5877 = vst [vmem:[%s6672_s9 + $0x80] sm:$0xff] %v5829_v13  ;;  %v5682_v60 = vadd.f32 %v5572_v37, %v5456_v44  ;;  %5393 = vmatmul.f32.gmra.mxu1 %v12112_v42  ;;  %v12119_v37 = vld [vmem:[#allocation241_spill] sm:$0xff]  ;;  %v10346_v44 = vpop.f32.mrf.mxu0  ;;  %v10352_v54 = vpop.f32.mrf.mxu3 }
 0x8f9   : > { %v5734_v15 = vadd.f32 %v10199_v31, %v5682_v60  ;;  %v12122_v60 = vld [vmem:[#allocation24_spill] sm:$0xff] }
 0x8fa   : > { %v5233_v42 = vadd.f32 %v12122_v60, %v10001_v28 }
 0x8fb   : > { %v5782_v5 = vadd.f32 %v5734_v15, %v12113_v55  ;;  %5625 = vmatmul.f32.gmra.mxu2 %v11966_v9  ;;  %v12118_v9 = vld [vmem:[#allocation158_spill] sm:$0xff] }
 0x8fc   : > { %v5349_v10 = vpop.f32.mrf.mxu1  ;;  %v5232_v29 = vadd.f32 %v12119_v37, %v12118_v9  ;;  %v12125_v37 = vld [vmem:[#allocation50_spill] sm:$0xff] }
 0x8fd   : > { %v5830_v23 = vmax.f32 %v5782_v5, 0.0  ;;  %v5457_v41 = vadd.f32 %v5349_v10, %v5231_v26 }
 0x8fe   : > { %v5578_v12 = vpop.f32.mrf.mxu2 }
 0x8ff   : > { %5878 = vst [vmem:[%s6672_s9 + $0x88] sm:$0xff] %v5830_v23  ;;  %v5683_v24 = vadd.f32 %v5575_v11, %v5457_v41  ;;  %5396 = vmatmul.f32.gmra.mxu1 %v12116_v8  ;;  %v12121_v11 = vld [vmem:[#allocation42_spill] sm:$0xff] }
 0x900   : > { %v12123_v23 = vld [vmem:[#allocation46_spill] sm:$0xff] }
 0x901   : > { %v5735_v63 = vadd.f32 %v10199_v31, %v5683_v24 }
 0x903   : > { %v5783_v58 = vadd.f32 %v5735_v63, %v12117_v20  ;;  %5628 = vmatmul.f32.gmra.mxu2 %v11969_v35 }
 0x904   : > { %v5352_v38 = vpop.f32.mrf.mxu1 }
 0x905   : > { %v5831_v6 = vmax.f32 %v5783_v58, 0.0  ;;  %v5458_v30 = vadd.f32 %v5352_v38, %v5232_v29 }
 0x906   : > { %v5581_v48 = vpop.f32.mrf.mxu2 }
 0x907   : > { %5879 = vst [vmem:[%s6672_s9 + $0x90] sm:$0xff] %v5831_v6  ;;  %v5684_v3 = vadd.f32 %v5578_v12, %v5458_v30  ;;  %5399 = vmatmul.f32.gmra.mxu1 %v12120_v59  ;;  %v10361_v12 = vpop.f32.mrf.mxu0 }
 0x909   : > { %v5736_v13 = vadd.f32 %v10199_v31, %v5684_v3 }
 0x90b   : > { %v5784_v35 = vadd.f32 %v5736_v13, %v12121_v11  ;;  %5631 = vmatmul.f32.gmra.mxu2 %v9468_v39  ;;  %v12124_v39 = vld [vmem:[#allocation81_spill] sm:$0xff] }
 0x90c   : > { %v5355_v15 = vpop.f32.mrf.mxu1  ;;  %v5234_v28 = vadd.f32 %v12124_v39, %v10007_v7  ;;  %v12126_v7 = vld [vmem:[#allocation243_spill] sm:$0xff] }
 0x90d   : > { %v5832_v55 = vmax.f32 %v5784_v35, 0.0  ;;  %v5459_v5 = vadd.f32 %v5355_v15, %v5233_v42  ;;  %v5235_v29 = vadd.f32 %v10312_v46, %v12126_v7  ;;  %v12128_v35 = vld [vmem:[#allocation54_spill] sm:$0xff] }
 0x90e   : > { %v5584_v19 = vpop.f32.mrf.mxu2 }
 0x90f   : > { %5880 = vst [vmem:[%s6672_s9 + $0x98] sm:$0xff] %v5832_v55  ;;  %v5685_v26 = vadd.f32 %v5581_v48, %v5459_v5  ;;  %5402 = vmatmul.f32.gmra.mxu1 %v9433_v25  ;;  %v10365_v25 = vpop.f32.mrf.mxu3  ;;  %v5150_v48 = vpop.f32.mrf.mxu0 }
 0x911   : > { %v5737_v10 = vadd.f32 %v10199_v31, %v5685_v26 }
 0x913   : > { %v5785_v41 = vadd.f32 %v5737_v10, %v12123_v23  ;;  %5634 = vmatmul.f32.gmra.mxu2 %v9494_v61  ;;  %v12129_v10 = vld [vmem:[#allocation58_spill] sm:$0xff] }
 0x914   : > { %v5358_v24 = vpop.f32.mrf.mxu1 }
 0x915   : > { %v5833_v8 = vmax.f32 %v5785_v41, 0.0  ;;  %v5460_v63 = vadd.f32 %v5358_v24, %v5234_v28 }
 0x916   : > { %v5587_v20 = vpop.f32.mrf.mxu2 }
 0x917   : > { %5881 = vst [vmem:[%s6672_s9 + $0xa0] sm:$0xff] %v5833_v8  ;;  %v5686_v58 = vadd.f32 %v5584_v19, %v5460_v63  ;;  %5405 = vmatmul.f32.gmra.mxu1 %v9465_v50  ;;  %v12127_v50 = vld [vmem:[#allocation169_spill] sm:$0xff]  ;;  %v10375_v11 = vpop.f32.mrf.mxu3  ;;  %v5153_v19 = vpop.f32.mrf.mxu0  ;;  %v12130_v63 = vld [vmem:[#allocation62_spill] sm:$0xff] }
 0x919   : > { %v5738_v9 = vadd.f32 %v10199_v31, %v5686_v58 }
 0x91b   : > { %v5786_v61 = vadd.f32 %v5738_v9, %v12125_v37  ;;  %5637 = vmatmul.f32.gmra.mxu2 %v9517_v53  ;;  %v5236_v53 = vadd.f32 %v10321_v56, %v10023_v33 }
 0x91c   : > { %v5361_v38 = vpop.f32.mrf.mxu1 }
 0x91d   : > { %v5834_v6 = vmax.f32 %v5786_v61, 0.0  ;;  %v5461_v30 = vadd.f32 %v5361_v38, %v5235_v29 }
 0x91e   : > { %v5590_v3 = vpop.f32.mrf.mxu2 }
 0x91f   : > { %5882 = vst [vmem:[%s6672_s9 + $0xa8] sm:$0xff] %v5834_v6  ;;  %v5687_v59 = vadd.f32 %v5587_v20, %v5461_v30  ;;  %5408 = vmatmul.f32.gmra.mxu1 %v12127_v50  ;;  %v10388_v33 = vpop.f32.mrf.mxu3  ;;  %v5156_v8 = vpop.f32.mrf.mxu0 }
 0x921   : > { %v5739_v13 = vadd.f32 %v10199_v31, %v5687_v59 }
 0x923   : > { %v5787_v60 = vadd.f32 %v5739_v13, %v12128_v35  ;;  %5640 = vmatmul.f32.gmra.mxu2 %v9542_v51  ;;  %v5237_v51 = vadd.f32 %v10334_v0, %v10029_v57 }
 0x924   : > { %v5364_v46 = vpop.f32.mrf.mxu1 }
 0x925   : > { %v5835_v42 = vmax.f32 %v5787_v60, 0.0  ;;  %v5462_v15 = vadd.f32 %v5364_v46, %v5236_v53 }
 0x926   : > { %v5593_v55 = vpop.f32.mrf.mxu2 }
 0x927   : > { %5883 = vst [vmem:[%s6672_s9 + $0xb0] sm:$0xff] %v5835_v42  ;;  %v5688_v5 = vadd.f32 %v5590_v3, %v5462_v15  ;;  %5411 = vmatmul.f32.gmra.mxu1 %v9514_v32  ;;  %v10397_v9 = vpop.f32.mrf.mxu3  ;;  %v12133_v15 = vld [vmem:[#allocation74_spill] sm:$0xff] }
 0x929   : > { %v5740_v26 = vadd.f32 %v10199_v31, %v5688_v5 }
 0x92b   : > { %v5788_v23 = vadd.f32 %v5740_v26, %v12129_v10  ;;  %5643 = vmatmul.f32.gmra.mxu2 %v9574_v36  ;;  %v5238_v36 = vadd.f32 %v10346_v44, %v10037_v47  ;;  %v5159_v44 = vpop.f32.mrf.mxu0 }
 0x92c   : > { %v5367_v56 = vpop.f32.mrf.mxu1 }
 0x92d   : > { %v5836_v41 = vmax.f32 %v5788_v23, 0.0  ;;  %v5463_v39 = vadd.f32 %v5367_v56, %v5237_v51  ;;  %v12134_v51 = vld [vmem:[#allocation78_spill] sm:$0xff] }
 0x92e   : > { %v5596_v28 = vpop.f32.mrf.mxu2 }
 0x92f   : > { %5884 = vst [vmem:[%s6672_s9 + $0xb8] sm:$0xff] %v5836_v41  ;;  %v5689_v24 = vadd.f32 %v5593_v55, %v5463_v39  ;;  %5414 = vmatmul.f32.gmra.mxu1 %v9539_v45  ;;  %v5013_v45 = vadd.f32 %v10326_v49, %v10043_v2  ;;  %v5014_v2 = vadd.f32 %v10341_v22, %v10050_v17 }
 0x930   : > { %v5015_v17 = vadd.f32 %v10352_v54, %v10066_v18  ;;  %v5016_v18 = vadd.f32 %v10365_v25, %v10083_v43  ;;  %v5017_v43 = vadd.f32 %v10375_v11, %v10096_v14  ;;  %v12135_v25 = vld [vmem:[#allocation114_spill] sm:$0xff] }
 0x931   : > { %v5741_v32 = vadd.f32 %v10199_v31, %v5689_v24  ;;  %v5239_v47 = vadd.f32 %v10361_v12, %v5013_v45  ;;  %v5240_v12 = vadd.f32 %v5150_v48, %v5014_v2  ;;  %v12139_v2 = vld [vmem:[#allocation128_spill] sm:$0xff] }
 0x932   : > { %v5241_v48 = vadd.f32 %v5153_v19, %v5015_v17  ;;  %v5242_v19 = vadd.f32 %v5156_v8, %v5016_v18  ;;  %v12136_v8 = vld [vmem:[#allocation82_spill] sm:$0xff] }
 0x933   : > { %v5789_v20 = vadd.f32 %v5741_v32, %v12130_v63  ;;  %5646 = vmatmul.f32.gmra.mxu2 %v10081_v52  ;;  %v12131_v52 = vld [vmem:[#allocation66_spill] sm:$0xff]  ;;  %v5162_v53 = vpop.f32.mrf.mxu0 }
 0x934   : > { %v5370_v57 = vpop.f32.mrf.mxu1 }
 0x935   : > { %v5837_v0 = vmax.f32 %v5789_v20, 0.0  ;;  %v5464_v58 = vadd.f32 %v5370_v57, %v5238_v36  ;;  %v5243_v57 = vadd.f32 %v5159_v44, %v5017_v43 }
 0x936   : > { %v5599_v37 = vpop.f32.mrf.mxu2 }
 0x937   : > { %5885 = vst [vmem:[%s6672_s9 + $0xc0] sm:$0xff] %v5837_v0  ;;  %v5690_v61 = vadd.f32 %v5596_v28, %v5464_v58  ;;  %5417 = vmatmul.f32.gmra.mxu1 %v9569_v34  ;;  %v10411_v34 = vpop.f32.mrf.mxu3 }
 0x939   : > { %v5742_v7 = vadd.f32 %v10199_v31, %v5690_v61 }
 0x93b   : > { %v5790_v29 = vadd.f32 %v5742_v7, %v12131_v52  ;;  %5649 = vmatmul.f32.gmra.mxu2 %v10094_v27  ;;  %v12132_v27 = vld [vmem:[#allocation70_spill] sm:$0xff]  ;;  %v12137_v7 = vld [vmem:[#allocation125_spill] sm:$0xff] }
 0x93c   : > { %v5373_v38 = vpop.f32.mrf.mxu1  ;;  %v5018_v14 = vadd.f32 %v10388_v33, %v12137_v7 }
 0x93d   : > { %v5838_v6 = vmax.f32 %v5790_v29, 0.0  ;;  %v5465_v30 = vadd.f32 %v5373_v38, %v5239_v47  ;;  %v12138_v29 = vld [vmem:[#allocation86_spill] sm:$0xff] }
 0x93e   : > { %v5602_v3 = vpop.f32.mrf.mxu2  ;;  %v5244_v44 = vadd.f32 %v5162_v53, %v5018_v14 }
 0x93f   : > { %5886 = vst [vmem:[%s6672_s9 + $0xc8] sm:$0xff] %v5838_v6  ;;  %v5691_v49 = vadd.f32 %v5599_v37, %v5465_v30  ;;  %5420 = vmatmul.f32.gmra.mxu1 %v10056_v4  ;;  %v10421_v42 = vpop.f32.mrf.mxu3 }
 0x941   : > { %v5743_v59 = vadd.f32 %v10199_v31, %v5691_v49  ;;  %v5019_v49 = vadd.f32 %v10397_v9, %v12139_v2 }
 0x943   : > { %v5791_v50 = vadd.f32 %v5743_v59, %v12132_v27  ;;  %5652 = vmatmul.f32.gmra.mxu2 %v10106_v62 }
 0x944   : > { %v5376_v13 = vpop.f32.mrf.mxu1 }
 0x945   : > { %v5839_v35 = vmax.f32 %v5791_v50, 0.0  ;;  %v5466_v60 = vadd.f32 %v5376_v13, %v5240_v12  ;;  %v12140_v50 = vld [vmem:[#allocation90_spill] sm:$0xff] }
 0x946   : > { %v5605_v46 = vpop.f32.mrf.mxu2 }
 0x947   : > { %5887 = vst [vmem:[%s6672_s9 + $0xd0] sm:$0xff] %v5839_v35  ;;  %v5692_v4 = vadd.f32 %v5602_v3, %v5466_v60  ;;  %5423 = vmatmul.f32.gmra.mxu1 %v10070_v40  ;;  %v5165_v40 = vpop.f32.mrf.mxu0  ;;  %v10432_v41 = vpop.f32.mrf.mxu3 }
 0x948   : > { %v5245_v13 = vadd.f32 %v5165_v40, %v5019_v49  ;;  %v12143_v40 = vld [vmem:[#allocation194_spill] sm:$0xff] }
 0x949   : > { %v5744_v22 = vadd.f32 %v10199_v31, %v5692_v4  ;;  %v12141_v4 = vld [vmem:[#allocation249_spill] sm:$0xff] }
 0x94b   : > { %v5792_v62 = vadd.f32 %v5744_v22, %v12133_v15  ;;  %5655 = vmatmul.f32.gmra.mxu2 %v11976_v21  ;;  %v5020_v22 = vadd.f32 %v10411_v34, %v12141_v4 }
 0x94c   : > { %v5379_v55 = vpop.f32.mrf.mxu1 }
 0x94d   : > { %v5840_v5 = vmax.f32 %v5792_v62, 0.0  ;;  %v5467_v26 = vadd.f32 %v5379_v55, %v5241_v48  ;;  %v12142_v48 = vld [vmem:[#allocation94_spill] sm:$0xff] }
 0x94e   : > { %v5608_v10 = vpop.f32.mrf.mxu2 }
 0x94f   : > { %5888 = vst [vmem:[%s6672_s9 + $0xd8] sm:$0xff] %v5840_v5  ;;  %v5693_v54 = vadd.f32 %v5605_v46, %v5467_v26  ;;  %5426 = vmatmul.f32.gmra.mxu1 %v10088_v1  ;;  %v5168_v20 = vpop.f32.mrf.mxu0  ;;  %v4951_v45 = vpop.f32.mrf.mxu3 }
 0x950   : > { %v5246_v5 = vadd.f32 %v5168_v20, %v5020_v22 }
 0x951   : > { %v5745_v23 = vadd.f32 %v10199_v31, %v5693_v54 }
 0x953   : > { %v5793_v56 = vadd.f32 %v5745_v23, %v12134_v51  ;;  %5658 = vmatmul.f32.gmra.mxu2 %v11976_v21  ;;  %v5021_v23 = vadd.f32 %v10421_v42, %v12143_v40 }
 0x954   : > { %v5382_v39 = vpop.f32.mrf.mxu1 }
 0x955   : > { %v5841_v28 = vmax.f32 %v5793_v56, 0.0  ;;  %v5468_v24 = vadd.f32 %v5382_v39, %v5242_v19  ;;  %v12144_v19 = vld [vmem:[#allocation98_spill] sm:$0xff] }
 0x956   : > { %v5611_v32 = vpop.f32.mrf.mxu2 }
 0x957   : > { %5889 = vst [vmem:[%s6672_s9 + $0xe0] sm:$0xff] %v5841_v28  ;;  %v5694_v1 = vadd.f32 %v5608_v10, %v5468_v24  ;;  %5429 = vmatmul.f32.gmra.mxu1 %v12135_v25  ;;  %v5171_v38 = vpop.f32.mrf.mxu0  ;;  %v4954_v59 = vpop.f32.mrf.mxu3 }
 0x958   : > { %v5247_v28 = vadd.f32 %v5171_v38, %v5021_v23 }
 0x959   : > { %v5746_v63 = vadd.f32 %v10199_v31, %v5694_v1 }
 0x95b   : > { %v5794_v36 = vadd.f32 %v5746_v63, %v12136_v8  ;;  %5661 = vmatmul.f32.gmra.mxu2 %v11976_v21  ;;  %v12145_v63 = vld [vmem:[#allocation85_spill] sm:$0xff] }
 0x95c   : > { %v5385_v0 = vpop.f32.mrf.mxu1  ;;  %v5022_v20 = vadd.f32 %v10432_v41, %v12145_v63 }
 0x95d   : > { %v5842_v58 = vmax.f32 %v5794_v36, 0.0  ;;  %v5469_v37 = vadd.f32 %v5385_v0, %v5243_v57  ;;  %v12146_v57 = vld [vmem:[#allocation101_spill] sm:$0xff] }
 0x95e   : > { %v5614_v61 = vpop.f32.mrf.mxu2 }
 0x95f   : > { %5890 = vst [vmem:[%s6672_s9 + $0xe8] sm:$0xff] %v5842_v58  ;;  %v5695_v11 = vadd.f32 %v5611_v32, %v5469_v37  ;;  %5432 = vmatmul.f32.gmra.mxu1 %v12135_v25  ;;  %v5174_v46 = vpop.f32.mrf.mxu0  ;;  %v4957_v62 = vpop.f32.mrf.mxu3 }
 0x960   : > { %v5248_v58 = vadd.f32 %v5174_v46, %v5022_v20 }
 0x961   : > { %v5747_v52 = vadd.f32 %v10199_v31, %v5695_v11 }
 0x963   : > { %v5795_v47 = vadd.f32 %v5747_v52, %v12138_v29  ;;  %v12147_v52 = vld [vmem:[#allocation138_spill] sm:$0xff] }
 0x964   : > { %v5388_v21 = vpop.f32.mrf.mxu1  ;;  %v5023_v29 = vadd.f32 %v4951_v45, %v12147_v52 }
 0x965   : > { %v5843_v6 = vmax.f32 %v5795_v47, 0.0  ;;  %v5470_v30 = vadd.f32 %v5388_v21, %v5244_v44  ;;  %v12148_v44 = vld [vmem:[#allocation104_spill] sm:$0xff] }
 0x966   : > { %v5617_v3 = vpop.f32.mrf.mxu2 }
 0x967   : > { %5891 = vst [vmem:[%s6672_s9 + $0xf0] sm:$0xff] %v5843_v6  ;;  %v5696_v33 = vadd.f32 %v5614_v61, %v5470_v30  ;;  %5435 = vmatmul.f32.gmra.mxu1 %v12135_v25  ;;  %v5177_v56 = vpop.f32.mrf.mxu0  ;;  %v4960_v24 = vpop.f32.mrf.mxu3 }
 0x968   : > { %v5249_v21 = vadd.f32 %v5177_v56, %v5023_v29 }
 0x969   : > { %v5748_v27 = vadd.f32 %v10199_v31, %v5696_v33  ;;  %v12149_v33 = vld [vmem:[#allocation163_spill] sm:$0xff] }
 0x96b   : > { %v5796_v12 = vadd.f32 %v5748_v27, %v12140_v50  ;;  %v5024_v27 = vadd.f32 %v4954_v59, %v12149_v33  ;;  %v12158_v33 = vld [vmem:[#allocation89_spill] sm:$0xff] }
 0x96c   : > { %v5391_v35 = vpop.f32.mrf.mxu1 }
 0x96d   : > { %v5844_v60 = vmax.f32 %v5796_v12, 0.0  ;;  %v5471_v53 = vadd.f32 %v5391_v35, %v5245_v13  ;;  %v12150_v13 = vld [vmem:[#allocation107_spill] sm:$0xff] }
 0x96e   : > { %v5620_v17 = vpop.f32.mrf.mxu2 }
 0x96f   : > { %5892 = vst [vmem:[%s6672_s9 + $0xf8] sm:$0xff] %v5844_v60  ;;  %v5697_v9 = vadd.f32 %v5617_v3, %v5471_v53  ;;  %v5180_v36 = vpop.f32.mrf.mxu0  ;;  %v4963_v14 = vpop.f32.mrf.mxu3 }
 0x970   : > { %v5250_v60 = vadd.f32 %v5180_v36, %v5024_v27 }
 0x971   : > { %v5749_v15 = vadd.f32 %v10199_v31, %v5697_v9  ;;  %v12151_v9 = vld [vmem:[#allocation21_spill] sm:$0xff] }
 0x973   : > { %v5797_v55 = vadd.f32 %v5749_v15, %v12142_v48  ;;  %v5025_v15 = vadd.f32 %v4957_v62, %v12151_v9 }
 0x974   : > { %v5394_v26 = vpop.f32.mrf.mxu1 }
 0x975   : > { %v5845_v10 = vmax.f32 %v5797_v55, 0.0  ;;  %v5472_v18 = vadd.f32 %v5394_v26, %v5246_v5  ;;  %v12152_v5 = vld [vmem:[#allocation109_spill] sm:$0xff] }
 0x976   : > { %v5623_v54 = vpop.f32.mrf.mxu2 }
 0x977   : > { %5893 = vst [vmem:[%s6672_s9 + $0x100] sm:$0xff] %v5845_v10  ;;  %v5698_v51 = vadd.f32 %v5620_v17, %v5472_v18  ;;  %v5183_v6 = vpop.f32.mrf.mxu0  ;;  %v4966_v12 = vpop.f32.mrf.mxu3 }
 0x978   : > { %v5251_v10 = vadd.f32 %v5183_v6, %v5025_v15 }
 0x979   : > { %v5750_v34 = vadd.f32 %v10199_v31, %v5698_v51  ;;  %v12153_v51 = vld [vmem:[#allocation26_spill] sm:$0xff] }
 0x97a   : > { %v5026_v56 = vadd.f32 %v4960_v24, %v12153_v51 }
 0x97b   : > { %v5798_v39 = vadd.f32 %v5750_v34, %v12144_v19 }
 0x97c   : > { %v5397_v32 = vpop.f32.mrf.mxu1 }
 0x97d   : > { %v5846_v43 = vmax.f32 %v5798_v39, 0.0  ;;  %v5473_v1 = vadd.f32 %v5397_v32, %v5247_v28  ;;  %v12154_v39 = vld [vmem:[#allocation111_spill] sm:$0xff] }
 0x97e   : > { %v5626_v25 = vpop.f32.mrf.mxu2 }
 0x97f   : > { %5894 = vst [vmem:[%s6672_s9 + $0x108] sm:$0xff] %v5846_v43  ;;  %v5699_v8 = vadd.f32 %v5623_v54, %v5473_v1  ;;  %v5186_v4 = vpop.f32.mrf.mxu0  ;;  %v4969_v55 = vpop.f32.mrf.mxu3 }
 0x980   : > { %v5252_v32 = vadd.f32 %v5186_v4, %v5026_v56  ;;  %v5029_v27 = vadd.f32 %v4969_v55, %v12158_v33  ;;  %v12161_v55 = vld [vmem:[#allocation123_spill] sm:$0xff]  ;;  %v12168_v33 = vld [vmem:[#allocation100_spill] sm:$0xff] }
 0x981   : > { %v5751_v42 = vadd.f32 %v10199_v31, %v5699_v8  ;;  %v12155_v8 = vld [vmem:[#allocation198_spill] sm:$0xff] }
 0x983   : > { %v5799_v0 = vadd.f32 %v5751_v42, %v12146_v57  ;;  %v5027_v42 = vadd.f32 %v4963_v14, %v12155_v8 }
 0x984   : > { %v5400_v37 = vpop.f32.mrf.mxu1 }
 0x985   : > { %v5847_v61 = vmax.f32 %v5799_v0, 0.0  ;;  %v5474_v7 = vadd.f32 %v5400_v37, %v5248_v58  ;;  %v12156_v0 = vld [vmem:[#allocation113_spill] sm:$0xff] }
 0x986   : > { %v5629_v11 = vpop.f32.mrf.mxu2 }
 0x987   : > { %5895 = vst [vmem:[%s6672_s9 + $0x110] sm:$0xff] %v5847_v61  ;;  %v5700_v47 = vadd.f32 %v5626_v25, %v5474_v7  ;;  %v5189_v19 = vpop.f32.mrf.mxu0  ;;  %v4972_v43 = vpop.f32.mrf.mxu3 }
 0x988   : > { %v5253_v37 = vadd.f32 %v5189_v19, %v5027_v42  ;;  %v6363_v19 = vld [vmem:[%s10561_s4] ss:$0 sm:$0xff] }
 0x989   : > { %v5752_v41 = vadd.f32 %v10199_v31, %v5700_v47  ;;  %v5028_v47 = vadd.f32 %v4966_v12, %v10161_v16  ;;  %v12159_v12 = vld [vmem:[#allocation119_spill] sm:$0xff] }
 0x98b   : > { %v5800_v38 = vadd.f32 %v5752_v41, %v12148_v44  ;;  %v12157_v44 = vld [vmem:[#allocation116_spill] sm:$0xff] }
 0x98c   : > { %v5403_v30 = vpop.f32.mrf.mxu1 }
 0x98d   : > { %v5848_v3 = vmax.f32 %v5800_v38, 0.0  ;;  %v5475_v2 = vadd.f32 %v5403_v30, %v5249_v21 }
 0x98e   : > { %v5632_v49 = vpop.f32.mrf.mxu2 }
 0x98f   : > { %5896 = vst [vmem:[%s6672_s9 + $0x118] sm:$0xff] %v5848_v3  ;;  %v5701_v50 = vadd.f32 %v5629_v11, %v5475_v2  ;;  %v5192_v57 = vpop.f32.mrf.mxu0  ;;  %v4975_v52 = vpop.f32.mrf.mxu3 }
 0x990   : > { %v5254_v21 = vadd.f32 %v5192_v57, %v5028_v47 }
 0x991   : > { %v5753_v45 = vadd.f32 %v10199_v31, %v5701_v50 }
 0x993   : > { %v5801_v35 = vadd.f32 %v5753_v45, %v12150_v13 }
 0x994   : > { %v5406_v53 = vpop.f32.mrf.mxu1 }
 0x995   : > { %v5849_v46 = vmax.f32 %v5801_v35, 0.0  ;;  %v5476_v17 = vadd.f32 %v5406_v53, %v5250_v60 }
 0x996   : > { %v5635_v22 = vpop.f32.mrf.mxu2 }
 0x997   : > { %5897 = vst [vmem:[%s6672_s9 + $0x120] sm:$0xff] %v5849_v46  ;;  %v5702_v48 = vadd.f32 %v5632_v49, %v5476_v17  ;;  %v5195_v6 = vpop.f32.mrf.mxu0  ;;  %v4978_v45 = vpop.f32.mrf.mxu3 }
 0x998   : > { %v5255_v35 = vadd.f32 %v5195_v6, %v5029_v27 }
 0x999   : > { %v5754_v59 = vadd.f32 %v10199_v31, %v5702_v48 }
 0x99b   : > { %v5802_v26 = vadd.f32 %v5754_v59, %v12152_v5 }
 0x99c   : > { %v5409_v18 = vpop.f32.mrf.mxu1 }
 0x99d   : > { %v5850_v54 = vmax.f32 %v5802_v26, 0.0  ;;  %v5477_v40 = vadd.f32 %v5409_v18, %v5251_v10 }
 0x99e   : > { %v5638_v23 = vpop.f32.mrf.mxu2 }
 0x99f   : > { %5898 = vst [vmem:[%s6672_s9 + $0x128] sm:$0xff] %v5850_v54  ;;  %v5703_v34 = vadd.f32 %v5635_v22, %v5477_v40  ;;  %v5198_v17 = vpop.f32.mrf.mxu0  ;;  %v12160_v22 = vld [vmem:[#allocation154_spill] sm:$0xff]  ;;  %v4981_v59 = vpop.f32.mrf.mxu3  ;;  %v12162_v40 = vld [vmem:[#allocation165_spill] sm:$0xff] }
 0x9a0   : > { %v5030_v9 = vadd.f32 %v4972_v43, %v12160_v22 }
 0x9a1   : > { %v5755_v62 = vadd.f32 %v10199_v31, %v5703_v34 }
 0x9a2   : > { %v5256_v26 = vadd.f32 %v5198_v17, %v5030_v9 }
 0x9a3   : > { %v5803_v28 = vadd.f32 %v5755_v62, %v12154_v39 }
 0x9a4   : > { %v5412_v1 = vpop.f32.mrf.mxu1 }
 0x9a5   : > { %v5851_v25 = vmax.f32 %v5803_v28, 0.0  ;;  %v5478_v63 = vadd.f32 %v5412_v1, %v5252_v32 }
 0x9a6   : > { %v5641_v20 = vpop.f32.mrf.mxu2 }
 0x9a7   : > { %5899 = vst [vmem:[%s6672_s9 + $0x130] sm:$0xff] %v5851_v25  ;;  %v5704_v36 = vadd.f32 %v5638_v23, %v5478_v63  ;;  %v5031_v23 = vadd.f32 %v4975_v52, %v12162_v40  ;;  %v5201_v56 = vpop.f32.mrf.mxu0  ;;  %v4984_v32 = vpop.f32.mrf.mxu3  ;;  %v12164_v63 = vld [vmem:[#allocation246_spill] sm:$0xff] }
 0x9a8   : > { %v5034_v27 = vadd.f32 %v4984_v32, %v12168_v33 }
 0x9a9   : > { %v5756_v24 = vadd.f32 %v10199_v31, %v5704_v36  ;;  %v5257_v28 = vadd.f32 %v5201_v56, %v5031_v23 }
 0x9ab   : > { %v5804_v58 = vadd.f32 %v5756_v24, %v12156_v0  ;;  %v12165_v0 = vld [vmem:[#allocation131_spill] sm:$0xff] }
 0x9ac   : > { %v5415_v61 = vpop.f32.mrf.mxu1 }
 0x9ad   : > { %v5852_v7 = vmax.f32 %v5804_v58, 0.0  ;;  %v5479_v11 = vadd.f32 %v5415_v61, %v5253_v37 }
 0x9ae   : > { %v5644_v29 = vpop.f32.mrf.mxu2 }
 0x9af   : > { %5900 = vst [vmem:[%s6672_s9 + $0x138] sm:$0xff] %v5852_v7  ;;  %v5705_v41 = vadd.f32 %v5641_v20, %v5479_v11  ;;  %v5032_v20 = vadd.f32 %v4978_v45, %v12164_v63  ;;  %v5204_v42 = vpop.f32.mrf.mxu0  ;;  %v5207_v11 = vpop.f32.mrf.mxu3 }
 0x9b1   : > { %v5757_v14 = vadd.f32 %v10199_v31, %v5705_v41  ;;  %v5258_v57 = vadd.f32 %v5204_v42, %v5032_v20 }
 0x9b3   : > { %v5805_v38 = vadd.f32 %v5757_v14, %v12157_v44 }
 0x9b4   : > { %v5418_v30 = vpop.f32.mrf.mxu1 }
 0x9b5   : > { %v5853_v3 = vmax.f32 %v5805_v38, 0.0  ;;  %v5480_v2 = vadd.f32 %v5418_v30, %v5254_v21  ;;  %v12167_v38 = vld [vmem:[#allocation216_spill] sm:$0xff] }
 0x9b6   : > { %v5647_v49 = vpop.f32.mrf.mxu2 }
 0x9b7   : > { %5901 = vst [vmem:[%s6672_s9 + $0x140] sm:$0xff] %v5853_v3  ;;  %v5706_v50 = vadd.f32 %v5644_v29, %v5480_v2  ;;  %v12166_v29 = vld [vmem:[#allocation27_spill] sm:$0xff] }
 0x9b8   : > { %v5033_v47 = vadd.f32 %v4981_v59, %v12166_v29 }
 0x9b9   : > { %v5758_v16 = vadd.f32 %v10199_v31, %v5706_v50 }
 0x9ba   : > { %v5259_v44 = vadd.f32 %v5207_v11, %v5033_v47 }
 0x9bb   : > { %v5806_v13 = vadd.f32 %v5758_v16, %v12159_v12  ;;  %v12169_v16 = vld [vmem:[#allocation220_spill] sm:$0xff] }
 0x9bc   : > { %v5421_v60 = vpop.f32.mrf.mxu1 }
 0x9bd   : > { %v5854_v53 = vmax.f32 %v5806_v13, 0.0  ;;  %v5481_v46 = vadd.f32 %v5421_v60, %v5255_v35 }
 0x9be   : > { %v5650_v4 = vpop.f32.mrf.mxu2 }
 0x9bf   : > { %5902 = vst [vmem:[%s6672_s9 + $0x148] sm:$0xff] %v5854_v53  ;;  %v5707_v15 = vadd.f32 %v5647_v49, %v5481_v46  ;;  %v5210_v49 = vpop.f32.mrf.mxu3 }
 0x9c0   : > { %v5260_v45 = vadd.f32 %v5210_v49, %v5034_v27 }
 0x9c1   : > { %v5759_v48 = vadd.f32 %v10199_v31, %v5707_v15  ;;  %v12163_v31 = vld [vmem:[#allocation126_spill] sm:$0xff] }
 0x9c3   : > { %v5807_v5 = vadd.f32 %v5759_v48, %v12161_v55 }
 0x9c4   : > { %v5424_v10 = vpop.f32.mrf.mxu1 }
 0x9c5   : > { %v5855_v18 = vmax.f32 %v5807_v5, 0.0  ;;  %v5482_v54 = vadd.f32 %v5424_v10, %v5256_v26 }
 0x9c6   : > { %v5653_v34 = vpop.f32.mrf.mxu2 }
 0x9c7   : > { %5903 = vst [vmem:[%s6672_s9 + $0x150] sm:$0xff] %v5855_v18  ;;  %v5708_v51 = vadd.f32 %v5650_v4, %v5482_v54  ;;  %v12170_v4 = vld [vmem:[#allocation224_spill] sm:$0xff] }
 0x9c9   : > { %v5760_v62 = vadd.f32 %v6363_v19, %v5708_v51 }
 0x9cb   : > { %v5808_v39 = vadd.f32 %v5760_v62, %v12163_v31 }
 0x9cc   : > { %v5427_v43 = vpop.f32.mrf.mxu1 }
 0x9cd   : > { %v5856_v1 = vmax.f32 %v5808_v39, 0.0  ;;  %v5483_v25 = vadd.f32 %v5427_v43, %v5257_v28 }
 0x9ce   : > { %v5656_v36 = vpop.f32.mrf.mxu2 }
 0x9cf   : > { %5904 = vst [vmem:[%s6672_s9 + $0x158] sm:$0xff] %v5856_v1  ;;  %v5709_v8 = vadd.f32 %v5653_v34, %v5483_v25 }
 0x9d1   : > { %v5761_v24 = vadd.f32 %v6363_v19, %v5709_v8 }
 0x9d3   : > { %v5809_v58 = vadd.f32 %v5761_v24, %v12165_v0 }
 0x9d4   : > { %v5430_v37 = vpop.f32.mrf.mxu1 }
 0x9d5   : > { %v5857_v61 = vmax.f32 %v5809_v58, 0.0  ;;  %v5484_v7 = vadd.f32 %v5430_v37, %v5258_v57 }
 0x9d6   : > { %v5659_v14 = vpop.f32.mrf.mxu2 }
 0x9d7   : > { %5905 = vst [vmem:[%s6672_s9 + $0x160] sm:$0xff] %v5857_v61  ;;  %v5710_v52 = vadd.f32 %v5656_v36, %v5484_v7 }
 0x9d9   : > { %v5762_v41 = vadd.f32 %v6363_v19, %v5710_v52 }
 0x9db   : > { %v5810_v21 = vadd.f32 %v5762_v41, %v12167_v38 }
 0x9dc   : > { %v5433_v6 = vpop.f32.mrf.mxu1 }
 0x9dd   : > { %v5858_v30 = vmax.f32 %v5810_v21, 0.0  ;;  %v5485_v3 = vadd.f32 %v5433_v6, %v5259_v44 }
 0x9de   : > { %v5662_v35 = vpop.f32.mrf.mxu2 }
 0x9df   : > { %5906 = vst [vmem:[%s6672_s9 + $0x168] sm:$0xff] %v5858_v30  ;;  %v5711_v2 = vadd.f32 %v5659_v14, %v5485_v3 }
 0x9e1   : > { %v5763_v50 = vadd.f32 %v6363_v19, %v5711_v2 }
 0x9e3   : > { %v5811_v12 = vadd.f32 %v5763_v50, %v12169_v16 }
 0x9e4   : > { %v5436_v13 = vpop.f32.mrf.mxu1 }
 0x9e5   : > { %v5859_v60 = vmax.f32 %v5811_v12, 0.0  ;;  %v5486_v53 = vadd.f32 %v5436_v13, %v5260_v45 }
 0x9e7   : > { %5907 = vst [vmem:[%s6672_s9 + $0x170] sm:$0xff] %v5859_v60  ;;  %v5712_v46 = vadd.f32 %v5662_v35, %v5486_v53 }
 0x9e9   : > { %v5764_v17 = vadd.f32 %v6363_v19, %v5712_v46 }
 0x9eb   : > { %v5812_v22 = vadd.f32 %v5764_v17, %v12170_v4 }
 0x9ed   : > { %v5860_v9 = vmax.f32 %v5812_v22, 0.0 }
 0x9ef   : > { %5908 = vst [vmem:[%s6672_s9 + $0x178] sm:$0xff] %v5860_v9 }
 0x9f0   : > { %6475 = shalt.err (!%p6472_p13)
}
 0x9f1   : > { %s6544_s29 = smov 128   ;;  %s6545_s9 = smov 8  }
 0x9f2   : > { %6203 = dma.vmem_to_hbm [thread:$0]  (%p6616_p4), %s5926_s1, 6144, %s5928_s7, %s5910_s21, %s6544_s29, %s6544_s29, %s6545_s9  }
 0x9f3 PF: > { %p6220_p0 = scmp.ge.s32.totalorder %s6536_s23, 2  ;;  %s5942_s8 = sand.u32 1, %s6516_s18  }
 0x9f4   : > { %s5943_s17 = scalar_lea.sflag [#allocation6], %s5942_s8 }
 0x9f5   : > { %p6213_p1 = pnand %p6220_p0, %p6623_p8 }
 0x9f7   : > { %p6214_p2 = pneg %p6213_p1 }
 0x9f9   : > { %6511 = dma.done.wait (%p6214_p2), %s5943_s17, 6144  }
 0x9fa   : > { %6513 = vsyncadd (%p6214_p2), %s5943_s17, 4294961152  ;;  %s20_s23 = sadd.s32 1, %s6536_s23   ;;  %s12171_s18 = smov %s6520_s19 }
 0x9fb   : > { %p17_p3 = scmp.ge.s32.totalorder %s20_s23, 4   ;;  %s12172_s19 = smov %s6524_s20 }
 0x9fc   : > { %s12173_s20 = smov %s6629_s6  ;;  %s12174_s21 = smov %s6532_s22 }
 0x9fd   : > { %s12175_s22 = smov %s12177_s26  ;;  %19 = sbr.rel (!%p17_p3) target bundleno = 8 (0x8), region = 116 }
 0xa02   :  { %5949 = vsyncpa [#allocation5], 1 }
 0xa03   :  { %5951 = vsyncpa [#allocation5 + $0x1], 1 }
 0xa04   :  { %5952 = vsyncpa [#allocation8], 1 }
 0xa05   :  { %5953 = vsyncpa [#allocation6], 1 }
 0xa06   :  { %5955 = vsyncpa [#allocation6 + $0x1], 1 }
 0xa07   :  { %5956 = vsyncmov [#allocation3] }
 0xa0a   :  { %s5957_s28 = vpop.sfrf %5956 }
 0xa0b   :  { %p6143_p4 = scmp.ne.s32.totalorder %s5957_s28, 0 }
 0xa0d   :  { %5961 = shalt.err (%p6143_p4)  }
 0xa0e   :  { %5963 = vsyncmov [#allocation3 + $0x1] }
 0xa11   :  { %s5964_s30 = vpop.sfrf %5963 }
 0xa12   :  { %p6144_p8 = scmp.ne.s32.totalorder %s5964_s30, 0 }
 0xa14   :  { %5968 = shalt.err (%p6144_p8)  }

</bundles_post_ra>
